<compile_context>
chip_gen: v6e
topology: v6e:2x2x1
jax: 0.10.0
libtpu: 0.0.40
codegen_flags: <defaults>
</compile_context>

<pallas_src>
import functools
import math

import jax
import jax.numpy as jnp
from jax.experimental import pallas as pl
from jax.experimental.pallas import tpu as pltpu

NORM_EPS = 1e-12  # F.normalize default eps


def _round_up(v, m):
    return (v + m - 1) // m * m


def _subcenter_kernel(x_ref, w_ref, out_ref, inv_ref):
    """One (class tile, batch tile) grid step.

    x_ref  : (TB, E)      compute dtype (bf16 or f32)
    w_ref  : (K, TC, E)   compute dtype; [s, c, :] = sub-center s of class c
    out_ref: (TB, TC)     f32
    inv_ref: (K, TC)      f32 scratch: 1 / max(||w[s, c]||, eps)
    """
    # The weight block only changes with the class-tile (outer) grid index, so
    # recompute its inverse row norms only on the first batch step.
    @pl.when(pl.program_id(1) == 0)
    def _():
        w32 = w_ref[...].astype(jnp.float32)                  # (K, TC, E)
        sq = jnp.sum(w32 * w32, axis=-1)                      # (K, TC)
        inv_ref[...] = jax.lax.rsqrt(jnp.maximum(sq, NORM_EPS * NORM_EPS))

    x = x_ref[...]                                            # (TB, E)
    dims = (((1,), (1,)), ((), ()))                           # contract E with E (NT form)
    best = None
    for s in range(w_ref.shape[0]):                           # static loop, k is small
        raw = jax.lax.dot_general(x, w_ref[s], dims,
                                  preferred_element_type=jnp.float32)  # (TB, TC) f32
        cos = raw * inv_ref[pl.ds(s, 1), :]                   # fold L2-norm as column scale
        best = cos if best is None else jnp.maximum(best, cos)
    out_ref[...] = best.astype(out_ref.dtype)


@functools.partial(
    jax.jit,
    static_argnames=("out_features", "k", "block_b", "block_c", "compute_dtype"))
def arc_margin_subcenter(x, weight, *, out_features, k,
                         block_b=128, block_c=2048,
                         compute_dtype=jnp.bfloat16):
    """ArcMarginProduct_subcenter.forward(x) -> (B, out_features) f32 cosines."""
    B, E = x.shape
    NCK, E2 = weight.shape
    assert E2 == E and NCK == out_features * k

    # (out_features*k, E) -> (k, out_features, E); PyTorch row c*k + s -> [s, c].
    w3 = weight.reshape(out_features, k, E).transpose(1, 0, 2)

    # Tile sizes: batch sublane-aligned (mult of 8), classes lane-dense (mult of 128).
    tb = min(block_b, _round_up(B, 8))
    tc = min(block_c, _round_up(out_features, 128))
    bp = _round_up(B, tb)
    cp = _round_up(out_features, tc)

    x_p = x.astype(compute_dtype)
    if bp != B:
        x_p = jnp.pad(x_p, ((0, bp - B), (0, 0)))
    w_p = w3.astype(compute_dtype)
    if cp != out_features:
        # Zero-padded classes are harmless: raw dot is exactly 0, inv is finite.
        w_p = jnp.pad(w_p, ((0, 0), (0, cp - out_features), (0, 0)))

    grid = (cp // tc, bp // tb)  # (class tiles outer/parallel, batch tiles inner)

    out = pl.pallas_call(
        _subcenter_kernel,
        out_shape=jax.ShapeDtypeStruct((bp, cp), jnp.float32),
        grid_spec=pltpu.PrefetchScalarGridSpec(
            num_scalar_prefetch=0,
            grid=grid,
            in_specs=[
                pl.BlockSpec((tb, E), lambda j, i: (i, 0)),        # x tile
                pl.BlockSpec((k, tc, E), lambda j, i: (0, j, 0)),  # weight tile
            ],
            out_specs=pl.BlockSpec((tb, tc), lambda j, i: (i, j)),
            scratch_shapes=[pltpu.VMEM((k, tc), jnp.float32)],     # inverse norms
        ),
        compiler_params=pltpu.CompilerParams(
            dimension_semantics=("parallel", "arbitrary"),
            vmem_limit_bytes=48 * 1024 * 1024,
        ),
    )(x_p, w_p)

    return out[:B, :out_features]


# ---------------------------------------------------------------------------
# Pure-JAX references for the correctness check.
# ---------------------------------------------------------------------------
def _ref_f32(x, weight, out_features, k):
    """Literal f32 translation of the PyTorch forward."""
    nrm = jnp.sqrt(jnp.sum(weight * weight, axis=1, keepdims=True))
    wn = weight / jnp.maximum(nrm, NORM_EPS)
    cos_all = (x @ wn.T).reshape(x.shape[0], out_features, k)
    return jnp.max(cos_all, axis=2)


def _ref_mirror(x, weight, out_features, k, compute_dtype):
    """Mirrors the kernel arithmetic (compute-dtype operands, f32 accumulation,
    norm folded into a post-matmul column scale) for a tight comparison."""
    xc = x.astype(compute_dtype)
    wc = weight.astype(compute_dtype)
    w32 = wc.astype(jnp.float32)
    inv = jax.lax.rsqrt(jnp.maximum(jnp.sum(w32 * w32, axis=1), NORM_EPS * NORM_EPS))
    raw = jax.lax.dot_general(xc, wc, (((1,), (1,)), ((), ())),
                              preferred_element_type=jnp.float32)
    cos_all = (raw * inv[None, :]).reshape(x.shape[0], out_features, k)
    return jnp.max(cos_all, axis=2)


if __name__ == "__main__":
    # Small shapes consistent with the module: x (batch, in_features),
    # weight (out_features * k, in_features).
    B, E = 2, 512        # batch, in_features (embedding size)
    OUT, K = 512, 3      # out_features, sub-centers per class

    key = jax.random.PRNGKey(0)
    kx, kw = jax.random.split(key)
    x = jax.random.normal(kx, (B, E), dtype=jnp.float32)
    stdv = 1.0 / math.sqrt(E)  # reset_parameters(): uniform_(-stdv, stdv)
    weight = jax.random.uniform(kw, (OUT * K, E), dtype=jnp.float32,
                                minval=-stdv, maxval=stdv)

    cosine = arc_margin_subcenter(x, weight, out_features=OUT, k=K)
    jax.block_until_ready(cosine)
    assert cosine.shape == (B, OUT)

    ref_mirror = _ref_mirror(x, weight, OUT, K, jnp.bfloat16)
    assert jnp.allclose(cosine, ref_mirror, atol=5e-4, rtol=5e-4), (
        "kernel mismatch vs mirrored (bf16-compute) reference")

    ref32 = _ref_f32(x, weight, OUT, K)
    assert jnp.allclose(cosine, ref32, atol=5e-2, rtol=5e-2), (
        "kernel drifted too far from full-f32 PyTorch-equivalent reference")

    print("KERNEL_OK")
</pallas_src>

<mosaic_0001>
module attributes {stable_mosaic.version = 11 : i64} {
  func.func @_subcenter_kernel(%arg0: i32, %arg1: i32, %arg2: memref<8x512xbf16, #tpu.memory_space<vmem>>, %arg3: memref<3x512x512xbf16, #tpu.memory_space<vmem>>, %arg4: memref<8x512xf32, #tpu.memory_space<vmem>>, %arg5: memref<3x512xf32, #tpu.memory_space<vmem>>) attributes {dimension_semantics = [#tpu.dimension_semantics<parallel>, #tpu.dimension_semantics<arbitrary>], iteration_bounds = array<i64: 1, 1>, scalar_prefetch = 0 : i64, scratch_operands = 1 : i64, tpu.core_type = #tpu.core_type<tc>, window_params = [{transform_indices = @transform_0, window_bounds = array<i64: 8, 512>}, {transform_indices = @transform_1, window_bounds = array<i64: 3, 512, 512>}, {transform_indices = @transform_2, window_bounds = array<i64: 8, 512>}]} {
    %c0_i32 = arith.constant 0 : i32
    %0 = arith.cmpi eq, %arg1, %c0_i32 : i32
    %1 = arith.extui %0 : i1 to i32
    %c0_i32_0 = arith.constant 0 : i32
    %2 = arith.cmpi ne, %1, %c0_i32_0 : i32
    scf.if %2 {
      %c0_19 = arith.constant 0 : index
      %c0_20 = arith.constant 0 : index
      %c0_21 = arith.constant 0 : index
      %25 = vector.load %arg3[%c0_19, %c0_20, %c0_21] : memref<3x512x512xbf16, #tpu.memory_space<vmem>>, vector<3x512x512xbf16>
      %26 = arith.extf %25 : vector<3x512x512xbf16> to vector<3x512x512xf32>
      %27 = arith.mulf %26, %26 : vector<3x512x512xf32>
      %cst_22 = arith.constant dense<0.000000e+00> : vector<3x512xf32>
      %28 = vector.multi_reduction <add>, %27, %cst_22 [2] : vector<3x512x512xf32> to vector<3x512xf32>
      %cst_23 = arith.constant 1.000000e-24 : f32
      %29 = vector.broadcast %cst_23 : f32 to vector<3x512xf32>
      %30 = arith.maximumf %28, %29 : vector<3x512xf32>
      %31 = math.rsqrt %30 : vector<3x512xf32>
      %c0_24 = arith.constant 0 : index
      %c0_25 = arith.constant 0 : index
      %32 = vector.load %arg5[%c0_24, %c0_25] : memref<3x512xf32, #tpu.memory_space<vmem>>, vector<3x512xf32>
      tpu.vector_store %arg5[%c0_24, %c0_25], %31 {strides = array<i32>} : memref<3x512xf32, #tpu.memory_space<vmem>>, vector<3x512xf32>,
    } else {
    }
    %c0 = arith.constant 0 : index
    %c0_1 = arith.constant 0 : index
    %3 = vector.load %arg2[%c0, %c0_1] : memref<8x512xbf16, #tpu.memory_space<vmem>>, vector<8x512xbf16>
    %c0_2 = arith.constant 0 : index
    %c0_3 = arith.constant 0 : index
    %c0_4 = arith.constant 0 : index
    %4 = vector.load %arg3[%c0_2, %c0_3, %c0_4] : memref<3x512x512xbf16, #tpu.memory_space<vmem>>, vector<1x512x512xbf16>
    %5 = vector.shape_cast %4 : vector<1x512x512xbf16> to vector<512x512xbf16>
    %cst = arith.constant dense<0.000000e+00> : vector<8x512xf32>
    %6 = tpu.matmul %3, %5, %cst {dimension_numbers = #tpu.dot_dimension_numbers<[1], [1], [0], [0], [0, 0, 1, 0], [], []>} : vector<8x512xbf16>, vector<512x512xbf16>, vector<8x512xf32> -> vector<8x512xf32>
    %c0_5 = arith.constant 0 : index
    %c0_6 = arith.constant 0 : index
    %7 = vector.load %arg5[%c0_5, %c0_6] : memref<3x512xf32, #tpu.memory_space<vmem>>, vector<1x512xf32>
    %8 = vector.broadcast %7 : vector<1x512xf32> to vector<8x512xf32>
    %9 = arith.mulf %6, %8 : vector<8x512xf32>
    %c1 = arith.constant 1 : index
    %c0_7 = arith.constant 0 : index
    %c0_8 = arith.constant 0 : index
    %10 = vector.load %arg3[%c1, %c0_7, %c0_8] : memref<3x512x512xbf16, #tpu.memory_space<vmem>>, vector<1x512x512xbf16>
    %11 = vector.shape_cast %10 : vector<1x512x512xbf16> to vector<512x512xbf16>
    %cst_9 = arith.constant dense<0.000000e+00> : vector<8x512xf32>
    %12 = tpu.matmul %3, %11, %cst_9 {dimension_numbers = #tpu.dot_dimension_numbers<[1], [1], [0], [0], [0, 0, 1, 0], [], []>} : vector<8x512xbf16>, vector<512x512xbf16>, vector<8x512xf32> -> vector<8x512xf32>
    %c1_10 = arith.constant 1 : index
    %c0_11 = arith.constant 0 : index
    %13 = vector.load %arg5[%c1_10, %c0_11] : memref<3x512xf32, #tpu.memory_space<vmem>>, vector<1x512xf32>
    %14 = vector.broadcast %13 : vector<1x512xf32> to vector<8x512xf32>
    %15 = arith.mulf %12, %14 : vector<8x512xf32>
    %16 = arith.maximumf %9, %15 : vector<8x512xf32>
    %c2 = arith.constant 2 : index
    %c0_12 = arith.constant 0 : index
    %c0_13 = arith.constant 0 : index
    %17 = vector.load %arg3[%c2, %c0_12, %c0_13] : memref<3x512x512xbf16, #tpu.memory_space<vmem>>, vector<1x512x512xbf16>
    %18 = vector.shape_cast %17 : vector<1x512x512xbf16> to vector<512x512xbf16>
    %cst_14 = arith.constant dense<0.000000e+00> : vector<8x512xf32>
    %19 = tpu.matmul %3, %18, %cst_14 {dimension_numbers = #tpu.dot_dimension_numbers<[1], [1], [0], [0], [0, 0, 1, 0], [], []>} : vector<8x512xbf16>, vector<512x512xbf16>, vector<8x512xf32> -> vector<8x512xf32>
    %c2_15 = arith.constant 2 : index
    %c0_16 = arith.constant 0 : index
    %20 = vector.load %arg5[%c2_15, %c0_16] : memref<3x512xf32, #tpu.memory_space<vmem>>, vector<1x512xf32>
    %21 = vector.broadcast %20 : vector<1x512xf32> to vector<8x512xf32>
    %22 = arith.mulf %19, %21 : vector<8x512xf32>
    %23 = arith.maximumf %16, %22 : vector<8x512xf32>
    %c0_17 = arith.constant 0 : index
    %c0_18 = arith.constant 0 : index
    %24 = vector.load %arg4[%c0_17, %c0_18] : memref<8x512xf32, #tpu.memory_space<vmem>>, vector<8x512xf32>
    tpu.vector_store %arg4[%c0_17, %c0_18], %23 {strides = array<i32>} : memref<8x512xf32, #tpu.memory_space<vmem>>, vector<8x512xf32>,
    return
  }
  func.func @transform_0(%arg0: i32, %arg1: i32) -> (i32, i32) {
    %c0_i32 = arith.constant 0 : i32
    %c0_i32_0 = arith.constant 0 : i32
    return %arg1, %c0_i32 : i32, i32
  }
  func.func @transform_1(%arg0: i32, %arg1: i32) -> (i32, i32, i32) {
    %c0_i32 = arith.constant 0 : i32
    %c0_i32_0 = arith.constant 0 : i32
    %c0_i32_1 = arith.constant 0 : i32
    return %c0_i32, %arg0, %c0_i32_0 : i32, i32, i32
  }
  func.func @transform_2(%arg0: i32, %arg1: i32) -> (i32, i32) {
    %c0_i32 = arith.constant 0 : i32
    return %arg1, %arg0 : i32, i32
  }
}

</mosaic_0001>

<bundles_post_ra>
// kernel: arc_margin_subcenter.1
= control target key start
LH: loop header
LB: loop body
LE: loop exit
PB: predicated region body
PF: predicated region fallthrough
CT: control target
= control target key end

     0   :  { %vm6938_vm0 = vcmask 130112   ;;  %vm6945_vm1 = vcmask 195712   ;;  %vm6952_vm2 = vcmask 261312   ;;  %vm6959_vm3 = vcmask 326912   ;;  %s17077_s1 = inlined_call_operand.vmem [shape: bf16[3,512,512], index: 1, kind: input, shape index: {}]   ;;  %s17078_s0 = inlined_call_operand.vmem [shape: bf16[8,512], index: 0, kind: input, shape index: {}]   ;;  %s17079_s2 = inlined_call_operand.vmem [shape: f32[8,512], index: 2, kind: output, shape index: {}]  }
   0x1   :  { %v12445_v0 = vld [vmem:[%s17077_s1 + $0xe0] sm:$0xff]  ;;  %v12450_v1 = vld [vmem:[%s17077_s1 + $0xf0] sm:$0xff]  ;;  %v12455_v2 = vld [vmem:[%s17077_s1 + $0xe8] sm:$0xff]  ;;  %vm6966_vm4 = vcmask 392512   ;;  %vm6973_vm5 = vcmask 458112   ;;  %vm6980_vm6 = vcmask 523712  }
   0x2   :  { %v10866_v3 = vcombine.high %v12445_v0, %v12450_v1  ;;  %v12462_v4 = vld [vmem:[%s17077_s1 + $0xf8] sm:$0xff]  ;;  %v10865_v5 = vcombine.low %v12445_v0, %v12450_v1  ;;  %v12469_v6 = vld [vmem:[%s17077_s1 + $0xc0] sm:$0xff]  ;;  %v12474_v7 = vld [vmem:[%s17077_s1 + $0xd0] sm:$0xff]  ;;  %v459_v8 = vunpack.c.l.bf16 %v12450_v1  ;;  %v460_v9 = vunpack.c.h.bf16 %v12450_v1 }
   0x3   :  { %v10868_v10 = vcombine.high %v12455_v2, %v12462_v4  ;;  %v10867_v11 = vcombine.low %v12455_v2, %v12462_v4  ;;  %v10862_v12 = vcombine.high %v12469_v6, %v12474_v7  ;;  %v12487_v13 = vld [vmem:[%s17077_s1 + $0xc8] sm:$0xff]  ;;  %v12492_v14 = vld [vmem:[%s17077_s1 + $0xd8] sm:$0xff]  ;;  %v12497_v15 = vld [vmem:[%s17077_s1 + $0x20] sm:$0xff]  ;;  %v10861_v16 = vcombine.low %v12469_v6, %v12474_v7 }
   0x4   :  { %8707 = vmatprep.subr.bf16.mxu0 %v10866_v3  ;;  %v10864_v17 = vcombine.high %v12487_v13, %v12492_v14  ;;  %v12506_v18 = vld [vmem:[%s17077_s1 + $0x28] sm:$0xff]  ;;  %v407_v19 = vunpack.c.l.bf16 %v12497_v15  ;;  %v408_v20 = vunpack.c.h.bf16 %v12497_v15  ;;  %v12513_v21 = vld [vmem:[%s17077_s1] sm:$0xff]  ;;  %v10863_v23 = vcombine.low %v12487_v13, %v12492_v14  ;;  %v12529_v28 = vld [vmem:[%s17077_s1 + $0x30] sm:$0xff] }
   0x5   :  { %v12518_v22 = vld [vmem:[%s17077_s1 + $0x8] sm:$0xff]  ;;  %8748 = vmatprep.subr.bf16.mxu1 %v10868_v10  ;;  %8708 = vmatpush1.bf16.xpose.msra.mxu0 %v10865_v5  ;;  %v409_v24 = vunpack.c.l.bf16 %v12506_v18  ;;  %v410_v25 = vunpack.c.h.bf16 %v12506_v18  ;;  %v399_v26 = vunpack.c.l.bf16 %v12513_v21  ;;  %v400_v27 = vunpack.c.h.bf16 %v12513_v21  ;;  %v12536_v33 = vld [vmem:[%s17077_s1 + $0x38] sm:$0xff]  ;;  %v12541_v38 = vld [vmem:[%s17077_s1 + $0x10] sm:$0xff] }
   0x6   :  { %8749 = vmatpush1.bf16.xpose.msra.mxu1 %v10867_v11  ;;  %8709 = vmatprep.subr.bf16.mxu0 %v10862_v12  ;;  %v1175_v29 = vmul.f32 %v407_v19, %v407_v19  ;;  %v1176_v30 = vmul.f32 %v408_v20, %v408_v20  ;;  %v401_v31 = vunpack.c.l.bf16 %v12518_v22  ;;  %v402_v32 = vunpack.c.h.bf16 %v12518_v22  ;;  %v12550_v47 = vld [vmem:[%s17077_s1 + $0x18] sm:$0xff]  ;;  %v12557_v52 = vld [vmem:[%s17077_s1 + $0xa0] sm:$0xff]  ;;  %v12562_v53 = vld [vmem:[%s17077_s1 + $0xb0] sm:$0xff] }
   0x7   :  { %8750 = vmatprep.subr.bf16.mxu1 %v10864_v17  ;;  %v1177_v34 = vmul.f32 %v409_v24, %v409_v24  ;;  %v1178_v35 = vmul.f32 %v410_v25, %v410_v25  ;;  %v1167_v36 = vmul.f32 %v399_v26, %v399_v26  ;;  %v1168_v37 = vmul.f32 %v400_v27, %v400_v27  ;;  %v12567_v58 = vld [vmem:[%s17077_s1 + $0xa8] sm:$0xff]  ;;  %v12572_v59 = vld [vmem:[%s17077_s1 + $0xb8] sm:$0xff]  ;;  %v12577_v60 = vld [vmem:[%s17077_s1 + $0x50] sm:$0xff] }
   0x8   :  { %v1945_v39 = vadd.f32 %v1176_v30, %v1175_v29  ;;  %v1169_v40 = vmul.f32 %v401_v31, %v401_v31  ;;  %v1170_v41 = vmul.f32 %v402_v32, %v402_v32  ;;  %v411_v42 = vunpack.c.l.bf16 %v12529_v28  ;;  %v12584_v5 = vld [vmem:[%s17077_s1 + $0x58] sm:$0xff]  ;;  %v12591_v19 = vld [vmem:[%s17077_s1 + $0x40] sm:$0xff]  ;;  %v12601_v31 = vld [vmem:[%s17077_s1 + $0x48] sm:$0xff] }
   0x9   :  { %v1935_v43 = vadd.f32 %v1168_v37, %v1167_v36  ;;  %v412_v44 = vunpack.c.h.bf16 %v12529_v28  ;;  %v413_v45 = vunpack.c.l.bf16 %v12536_v33  ;;  %v414_v46 = vunpack.c.h.bf16 %v12536_v33  ;;  %v50_v1 = vld [vmem:[%s17077_s1 + $0x118] sm:$0xff] }
   0xa   :  { %v1946_v48 = vadd.f32 %v1945_v39, %v1177_v34  ;;  %v1179_v49 = vmul.f32 %v411_v42, %v411_v42  ;;  %v403_v50 = vunpack.c.l.bf16 %v12541_v38  ;;  %v404_v51 = vunpack.c.h.bf16 %v12541_v38 }
   0xb   :  { %v1936_v54 = vadd.f32 %v1935_v43, %v1169_v40  ;;  %v1180_v55 = vmul.f32 %v412_v44, %v412_v44  ;;  %v1181_v56 = vmul.f32 %v413_v45, %v413_v45  ;;  %v1182_v57 = vmul.f32 %v414_v46, %v414_v46  ;;  %v12616_v46 = vld [vmem:[%s17077_s1 + $0x78] sm:$0xff] }
   0xc   :  { %v1947_v61 = vadd.f32 %v1946_v48, %v1178_v35  ;;  %v405_v62 = vunpack.c.l.bf16 %v12550_v47  ;;  %v406_v63 = vunpack.c.h.bf16 %v12550_v47  ;;  %v1171_v3 = vmul.f32 %v403_v50, %v403_v50 }
   0xd   :  { %v1937_v10 = vadd.f32 %v1936_v54, %v1170_v41  ;;  %8710 = vmatpush1.bf16.xpose.msra.mxu0 %v10861_v16  ;;  %v1950_v11 = vadd.f32 %v1180_v55, %v1179_v49  ;;  %v1172_v12 = vmul.f32 %v404_v51, %v404_v51  ;;  %v10858_v17 = vcombine.high %v12557_v52, %v12562_v53  ;;  %v12609_v41 = vld [vmem:[%s17077_s1 + $0x70] sm:$0xff]  ;;  %v12623_v54 = vld [vmem:[%s17077_s1 + $0x60] sm:$0xff] }
   0xe   :  { %1948 = vadd.xlane.f32.xlu1 %v1947_v61  ;;  %8751 = vmatpush1.bf16.xpose.msra.mxu1 %v10863_v23  ;;  %v1173_v20 = vmul.f32 %v405_v62, %v405_v62  ;;  %v1174_v24 = vmul.f32 %v406_v63, %v406_v63  ;;  %v10860_v25 = vcombine.high %v12567_v58, %v12572_v59  ;;  %v419_v26 = vunpack.c.l.bf16 %v12577_v60 }
   0xf   :  { %1938 = vadd.xlane.f32.xlu0 %v1937_v10  ;;  %v1951_v16 = vadd.f32 %v1950_v11, %v1181_v56  ;;  %v1940_v27 = vadd.f32 %v1172_v12, %v1171_v3  ;;  %8711 = vmatprep.subr.bf16.mxu0 %v10858_v17  ;;  %v420_v29 = vunpack.c.h.bf16 %v12577_v60  ;;  %v421_v30 = vunpack.c.l.bf16 %v12584_v5  ;;  %v12633_v11 = vld [vmem:[%s17077_s1 + $0x68] sm:$0xff] }
  0x10   :  { %8752 = vmatprep.subr.bf16.mxu1 %v10860_v25  ;;  %v422_v23 = vunpack.c.h.bf16 %v12584_v5  ;;  %v1187_v32 = vmul.f32 %v419_v26, %v419_v26  ;;  %v415_v34 = vunpack.c.l.bf16 %v12591_v19  ;;  %v416_v35 = vunpack.c.h.bf16 %v12591_v19 }
  0x11   :  { %v1952_v36 = vadd.f32 %v1951_v16, %v1182_v57  ;;  %v1941_v37 = vadd.f32 %v1940_v27, %v1173_v20  ;;  %v1188_v39 = vmul.f32 %v420_v29, %v420_v29  ;;  %v1189_v40 = vmul.f32 %v421_v30, %v421_v30  ;;  %v7943_v29 = vld [vmem:[%s17077_s1 + $0x90] sm:$0xff] }
  0x12   :  { %v1190_v42 = vmul.f32 %v422_v23, %v422_v23  ;;  %v417_v43 = vunpack.c.l.bf16 %v12601_v31  ;;  %v418_v44 = vunpack.c.h.bf16 %v12601_v31  ;;  %v1183_v45 = vmul.f32 %v415_v34, %v415_v34 }
  0x13   :  { %1953 = vadd.xlane.f32.xlu1 %v1952_v36  ;;  %v1942_v48 = vadd.f32 %v1941_v37, %v1174_v24  ;;  %v1960_v49 = vadd.f32 %v1188_v39, %v1187_v32  ;;  %v1184_v50 = vmul.f32 %v416_v35, %v416_v35  ;;  %v10857_v51 = vcombine.low %v12557_v52, %v12562_v53  ;;  %v7941_v35 = vld [vmem:[%s17077_s1 + $0x80] sm:$0xff]  ;;  %v7944_v36 = vld [vmem:[%s17077_s1 + $0x98] sm:$0xff] }
  0x14   :  { %v1185_v55 = vmul.f32 %v417_v43, %v417_v43  ;;  %v1186_v56 = vmul.f32 %v418_v44, %v418_v44  ;;  %v10859_v57 = vcombine.low %v12567_v58, %v12572_v59  ;;  %v427_v61 = vunpack.c.l.bf16 %v12609_v41  ;;  %v7942_v43 = vld [vmem:[%s17077_s1 + $0x88] sm:$0xff] }
  0x15   :  { %1943 = vadd.xlane.f32.xlu0 %v1942_v48  ;;  %v1961_v62 = vadd.f32 %v1960_v49, %v1189_v40  ;;  %v1955_v63 = vadd.f32 %v1184_v50, %v1183_v45  ;;  %8712 = vmatpush1.bf16.xpose.msra.mxu0 %v10857_v51  ;;  %v428_v3 = vunpack.c.h.bf16 %v12609_v41  ;;  %v429_v10 = vunpack.c.l.bf16 %v12616_v46 }
  0x16   :  { %8753 = vmatpush1.bf16.xpose.msra.mxu1 %v10859_v57  ;;  %v430_v12 = vunpack.c.h.bf16 %v12616_v46  ;;  %v1195_v17 = vmul.f32 %v427_v61, %v427_v61  ;;  %v423_v20 = vunpack.c.l.bf16 %v12623_v54  ;;  %v424_v24 = vunpack.c.h.bf16 %v12623_v54 }
  0x17   :  { %v1962_v25 = vadd.f32 %v1961_v62, %v1190_v42  ;;  %v1956_v26 = vadd.f32 %v1955_v63, %v1185_v55  ;;  %v1196_v16 = vmul.f32 %v428_v3, %v428_v3  ;;  %v1197_v27 = vmul.f32 %v429_v10, %v429_v10 }
  0x18   :  { %v1198_v30 = vmul.f32 %v430_v12, %v430_v12  ;;  %v425_v23 = vunpack.c.l.bf16 %v12633_v11  ;;  %v426_v32 = vunpack.c.h.bf16 %v12633_v11  ;;  %v1191_v34 = vmul.f32 %v423_v20, %v423_v20 }
  0x19   :  { %1963 = vadd.xlane.f32.xlu1 %v1962_v25  ;;  %v1957_v37 = vadd.f32 %v1956_v26, %v1186_v56  ;;  %v1970_v39 = vadd.f32 %v1196_v16, %v1195_v17  ;;  %v1192_v40 = vmul.f32 %v424_v24, %v424_v24  ;;  %v10854_v42 = vcombine.high %v7941_v35, %v7943_v29 }
  0x1a   :  { %v1193_v44 = vmul.f32 %v425_v23, %v425_v23  ;;  %v1194_v45 = vmul.f32 %v426_v32, %v426_v32  ;;  %v10856_v48 = vcombine.high %v7942_v43, %v7944_v36  ;;  %v435_v49 = vunpack.c.l.bf16 %v7943_v29 }
  0x1b   :  { %1958 = vadd.xlane.f32.xlu0 %v1957_v37  ;;  %v1971_v50 = vadd.f32 %v1970_v39, %v1197_v27  ;;  %v1965_v51 = vadd.f32 %v1192_v40, %v1191_v34  ;;  %8713 = vmatprep.subr.bf16.mxu0 %v10854_v42  ;;  %v436_v55 = vunpack.c.h.bf16 %v7943_v29  ;;  %v437_v57 = vunpack.c.l.bf16 %v7944_v36 }
  0x1c   :  { %8754 = vmatprep.subr.bf16.mxu1 %v10856_v48  ;;  %v438_v61 = vunpack.c.h.bf16 %v7944_v36  ;;  %v1203_v56 = vmul.f32 %v435_v49, %v435_v49  ;;  %v431_v62 = vunpack.c.l.bf16 %v7941_v35  ;;  %v432_v63 = vunpack.c.h.bf16 %v7941_v35 }
  0x1d   :  { %v1972_v3 = vadd.f32 %v1971_v50, %v1198_v30  ;;  %v1966_v10 = vadd.f32 %v1965_v51, %v1193_v44  ;;  %v1204_v12 = vmul.f32 %v436_v55, %v436_v55  ;;  %v1205_v17 = vmul.f32 %v437_v57, %v437_v57 }
  0x1e   :  { %v1206_v20 = vmul.f32 %v438_v61, %v438_v61  ;;  %v433_v24 = vunpack.c.l.bf16 %v7942_v43  ;;  %v434_v25 = vunpack.c.h.bf16 %v7942_v43  ;;  %v1199_v26 = vmul.f32 %v431_v62, %v431_v62 }
  0x1f   :  { %1973 = vadd.xlane.f32.xlu1 %v1972_v3  ;;  %v1967_v16 = vadd.f32 %v1966_v10, %v1194_v45  ;;  %v1980_v27 = vadd.f32 %v1204_v12, %v1203_v56  ;;  %v1200_v23 = vmul.f32 %v432_v63, %v432_v63  ;;  %v10853_v32 = vcombine.low %v7941_v35, %v7943_v29 }
  0x20   :  { %v1201_v34 = vmul.f32 %v433_v24, %v433_v24  ;;  %v1202_v37 = vmul.f32 %v434_v25, %v434_v25  ;;  %v10855_v39 = vcombine.low %v7942_v43, %v7944_v36  ;;  %v443_v40 = vunpack.c.l.bf16 %v12562_v53 }
  0x21   :  { %1968 = vadd.xlane.f32.xlu0 %v1967_v16  ;;  %v1981_v42 = vadd.f32 %v1980_v27, %v1205_v17  ;;  %v1975_v30 = vadd.f32 %v1200_v23, %v1199_v26  ;;  %8714 = vmatpush1.bf16.xpose.msra.mxu0 %v10853_v32  ;;  %v444_v44 = vunpack.c.h.bf16 %v12562_v53  ;;  %v445_v48 = vunpack.c.l.bf16 %v12572_v59 }
  0x22   :  { %8755 = vmatpush1.bf16.xpose.msra.mxu1 %v10855_v39  ;;  %v446_v49 = vunpack.c.h.bf16 %v12572_v59  ;;  %v1211_v45 = vmul.f32 %v443_v40, %v443_v40  ;;  %v439_v50 = vunpack.c.l.bf16 %v12557_v52  ;;  %v440_v29 = vunpack.c.h.bf16 %v12557_v52 }
  0x23   :  { %v1982_v35 = vadd.f32 %v1981_v42, %v1206_v20  ;;  %v1976_v36 = vadd.f32 %v1975_v30, %v1201_v34  ;;  %v1212_v43 = vmul.f32 %v444_v44, %v444_v44  ;;  %v1213_v51 = vmul.f32 %v445_v48, %v445_v48 }
  0x24   :  { %v1214_v55 = vmul.f32 %v446_v49, %v446_v49  ;;  %v441_v57 = vunpack.c.l.bf16 %v12567_v58  ;;  %v442_v61 = vunpack.c.h.bf16 %v12567_v58  ;;  %v1207_v53 = vmul.f32 %v439_v50, %v439_v50 }
  0x25   :  { %1983 = vadd.xlane.f32.xlu1 %v1982_v35  ;;  %v1977_v56 = vadd.f32 %v1976_v36, %v1202_v37  ;;  %v1990_v62 = vadd.f32 %v1212_v43, %v1211_v45  ;;  %v1208_v63 = vmul.f32 %v440_v29, %v440_v29  ;;  %v10850_v59 = vcombine.high %v12623_v54, %v12609_v41 }
  0x26   :  { %v1209_v3 = vmul.f32 %v441_v57, %v441_v57  ;;  %v1210_v10 = vmul.f32 %v442_v61, %v442_v61  ;;  %v10852_v52 = vcombine.high %v12633_v11, %v12616_v46  ;;  %v451_v12 = vunpack.c.l.bf16 %v12474_v7 }
  0x27   :  { %1978 = vadd.xlane.f32.xlu0 %v1977_v56  ;;  %v1991_v17 = vadd.f32 %v1990_v62, %v1213_v51  ;;  %v1985_v20 = vadd.f32 %v1208_v63, %v1207_v53  ;;  %8715 = vmatprep.subr.bf16.mxu0 %v10850_v59  ;;  %v452_v58 = vunpack.c.h.bf16 %v12474_v7  ;;  %v453_v24 = vunpack.c.l.bf16 %v12492_v14  ;;  %v48_v56 = vld [vmem:[%s17077_s1 + $0x108] sm:$0xff] }
  0x28   :  { %8756 = vmatprep.subr.bf16.mxu1 %v10852_v52  ;;  %v454_v25 = vunpack.c.h.bf16 %v12492_v14  ;;  %v1219_v26 = vmul.f32 %v451_v12, %v451_v12  ;;  %v447_v16 = vunpack.c.l.bf16 %v12469_v6  ;;  %v448_v27 = vunpack.c.h.bf16 %v12469_v6 }
  0x29   :  { %v1992_v23 = vadd.f32 %v1991_v17, %v1214_v55  ;;  %v1986_v32 = vadd.f32 %v1985_v20, %v1209_v3  ;;  %v1220_v34 = vmul.f32 %v452_v58, %v452_v58  ;;  %v1221_v37 = vmul.f32 %v453_v24, %v453_v24 }
  0x2a   :  { %v1222_v39 = vmul.f32 %v454_v25, %v454_v25  ;;  %v449_v40 = vunpack.c.l.bf16 %v12487_v13  ;;  %v450_v42 = vunpack.c.h.bf16 %v12487_v13  ;;  %v1215_v7 = vmul.f32 %v447_v16, %v447_v16 }
  0x2b   :  { %1993 = vadd.xlane.f32.xlu1 %v1992_v23  ;;  %v1987_v30 = vadd.f32 %v1986_v32, %v1210_v10  ;;  %v2000_v44 = vadd.f32 %v1220_v34, %v1219_v26  ;;  %v1216_v48 = vmul.f32 %v448_v27, %v448_v27  ;;  %v10849_v14 = vcombine.low %v12623_v54, %v12609_v41  ;;  %v53_v23 = vld [vmem:[%s17077_s1 + $0x130] sm:$0xff] }
  0x2c   :  { %v1217_v49 = vmul.f32 %v449_v40, %v449_v40  ;;  %v1218_v45 = vmul.f32 %v450_v42, %v450_v42  ;;  %v10851_v6 = vcombine.low %v12633_v11, %v12616_v46  ;;  %v461_v50 = vunpack.c.l.bf16 %v12462_v4  ;;  %v54_v40 = vld [vmem:[%s17077_s1 + $0x138] sm:$0xff]  ;;  %v51_v42 = vld [vmem:[%s17077_s1 + $0x120] sm:$0xff] }
  0x2d   :  { %1988 = vadd.xlane.f32.xlu0 %v1987_v30  ;;  %v2001_v29 = vadd.f32 %v2000_v44, %v1221_v37  ;;  %v1995_v35 = vadd.f32 %v1216_v48, %v1215_v7  ;;  %8716 = vmatpush1.bf16.xpose.msra.mxu0 %v10849_v14  ;;  %v462_v13 = vunpack.c.h.bf16 %v12462_v4  ;;  %v1227_v36 = vmul.f32 %v459_v8, %v459_v8  ;;  %v49_v4 = vld [vmem:[%s17077_s1 + $0x110] sm:$0xff] }
  0x2e   :  { %8757 = vmatpush1.bf16.xpose.msra.mxu1 %v10851_v6  ;;  %v1228_v41 = vmul.f32 %v460_v9, %v460_v9  ;;  %v1229_v54 = vmul.f32 %v461_v50, %v461_v50  ;;  %v455_v46 = vunpack.c.l.bf16 %v12445_v0  ;;  %v456_v11 = vunpack.c.h.bf16 %v12445_v0  ;;  %v47_v0 = vld [vmem:[%s17077_s1 + $0x100] sm:$0xff]  ;;  %v52_v50 = vld [vmem:[%s17077_s1 + $0x128] sm:$0xff] }
  0x2f   :  { %v2002_v43 = vadd.f32 %v2001_v29, %v1222_v39  ;;  %v1996_v51 = vadd.f32 %v1995_v35, %v1217_v49  ;;  %v1230_v55 = vmul.f32 %v462_v13, %v462_v13  ;;  %v457_v57 = vunpack.c.l.bf16 %v12455_v2 }
  0x30   :  { %v2010_v8 = vadd.f32 %v1228_v41, %v1227_v36  ;;  %v458_v9 = vunpack.c.h.bf16 %v12455_v2  ;;  %v1223_v61 = vmul.f32 %v455_v46, %v455_v46  ;;  %v1224_v53 = vmul.f32 %v456_v11, %v456_v11 }
  0x31   :  { %2003 = vadd.xlane.f32.xlu1 %v2002_v43  ;;  %v1997_v62 = vadd.f32 %v1996_v51, %v1218_v45  ;;  %v1225_v63 = vmul.f32 %v457_v57, %v457_v57  ;;  %v10846_v59 = vcombine.high %v12591_v19, %v12577_v60  ;;  %v10848_v3 = vcombine.high %v12601_v31, %v12584_v5 }
  0x32   :  { %v2011_v2 = vadd.f32 %v2010_v8, %v1229_v54  ;;  %v1226_v10 = vmul.f32 %v458_v9, %v458_v9  ;;  %v2005_v52 = vadd.f32 %v1224_v53, %v1223_v61  ;;  %v467_v12 = vunpack.c.l.bf16 %v49_v4 }
  0x33   :  { %1998 = vadd.xlane.f32.xlu0 %v1997_v62  ;;  %8717 = vmatprep.subr.bf16.mxu0 %v10846_v59  ;;  %v468_v17 = vunpack.c.h.bf16 %v49_v4  ;;  %v469_v20 = vunpack.c.l.bf16 %v50_v1  ;;  %v470_v58 = vunpack.c.h.bf16 %v50_v1  ;;  %v463_v24 = vunpack.c.l.bf16 %v47_v0  ;;  %v58_v1 = vld [vmem:[%s17077_s1 + $0x158] sm:$0xff] }
  0x34   :  { %v2012_v25 = vadd.f32 %v2011_v2, %v1230_v55  ;;  %v2006_v26 = vadd.f32 %v2005_v52, %v1225_v63  ;;  %8758 = vmatprep.subr.bf16.mxu1 %v10848_v3  ;;  %v1235_v16 = vmul.f32 %v467_v12, %v467_v12  ;;  %v464_v27 = vunpack.c.h.bf16 %v47_v0  ;;  %v55_v0 = vld [vmem:[%s17077_s1 + $0x140] sm:$0xff] }
  0x35   :  { %v1236_v32 = vmul.f32 %v468_v17, %v468_v17  ;;  %v1237_v34 = vmul.f32 %v469_v20, %v469_v20  ;;  %v1238_v37 = vmul.f32 %v470_v58, %v470_v58  ;;  %v465_v39 = vunpack.c.l.bf16 %v48_v56 }
  0x36   :  { %2013 = vadd.xlane.f32.xlu1 %v2012_v25  ;;  %v2007_v7 = vadd.f32 %v2006_v26, %v1226_v10  ;;  %v466_v30 = vunpack.c.h.bf16 %v48_v56  ;;  %v1231_v44 = vmul.f32 %v463_v24, %v463_v24  ;;  %v1232_v48 = vmul.f32 %v464_v27, %v464_v27  ;;  %v56_v56 = vld [vmem:[%s17077_s1 + $0x148] sm:$0xff]  ;;  %v61_v25 = vld [vmem:[%s17077_s1 + $0x170] sm:$0xff] }
  0x37   :  { %v2020_v14 = vadd.f32 %v1236_v32, %v1235_v16  ;;  %v1233_v49 = vmul.f32 %v465_v39, %v465_v39  ;;  %v10845_v45 = vcombine.low %v12591_v19, %v12577_v60  ;;  %v10847_v6 = vcombine.low %v12601_v31, %v12584_v5  ;;  %v57_v5 = vld [vmem:[%s17077_s1 + $0x150] sm:$0xff] }
  0x38   :  { %2008 = vadd.xlane.f32.xlu0 %v2007_v7  ;;  %v1234_v29 = vmul.f32 %v466_v30, %v466_v30  ;;  %v2015_v35 = vadd.f32 %v1232_v48, %v1231_v44  ;;  %v475_v13 = vunpack.c.l.bf16 %v53_v23  ;;  %v476_v36 = vunpack.c.h.bf16 %v53_v23 }
  0x39   :  { %v2021_v41 = vadd.f32 %v2020_v14, %v1237_v34  ;;  %8718 = vmatpush1.bf16.xpose.msra.mxu0 %v10845_v45  ;;  %8759 = vmatpush1.bf16.xpose.msra.mxu1 %v10847_v6  ;;  %v477_v54 = vunpack.c.l.bf16 %v54_v40  ;;  %v478_v46 = vunpack.c.h.bf16 %v54_v40  ;;  %v471_v11 = vunpack.c.l.bf16 %v51_v42  ;;  %v12742_v40 = vld [vmem:[%s17077_s1 + $0x178] sm:$0xff] }
  0x3a   :  { %v2016_v43 = vadd.f32 %v2015_v35, %v1233_v49  ;;  %v1243_v60 = vmul.f32 %v475_v13, %v475_v13  ;;  %v1244_v19 = vmul.f32 %v476_v36, %v476_v36  ;;  %v472_v51 = vunpack.c.h.bf16 %v51_v42  ;;  %v12747_v42 = vld [vmem:[%s17077_s1 + $0x160] sm:$0xff] }
  0x3b   :  { %v2022_v31 = vadd.f32 %v2021_v41, %v1238_v37  ;;  %v1245_v55 = vmul.f32 %v477_v54, %v477_v54  ;;  %v1246_v57 = vmul.f32 %v478_v46, %v478_v46  ;;  %v473_v4 = vunpack.c.l.bf16 %v52_v50 }
  0x3c   :  { %v2017_v8 = vadd.f32 %v2016_v43, %v1234_v29  ;;  %v2030_v9 = vadd.f32 %v1244_v19, %v1243_v60  ;;  %v474_v61 = vunpack.c.h.bf16 %v52_v50  ;;  %v1239_v53 = vmul.f32 %v471_v11, %v471_v11  ;;  %v12756_v50 = vld [vmem:[%s17077_s1 + $0x168] sm:$0xff]  ;;  %v12765_v43 = vld [vmem:[%s17077_s1 + $0x190] sm:$0xff] }
  0x3d   :  { %2023 = vadd.xlane.f32.xlu1 %v2022_v31  ;;  %v1240_v62 = vmul.f32 %v472_v51, %v472_v51  ;;  %v1241_v63 = vmul.f32 %v473_v4, %v473_v4  ;;  %v10842_v59 = vcombine.high %v12497_v15, %v12529_v28  ;;  %v10844_v3 = vcombine.high %v12506_v18, %v12536_v33  ;;  %v12771_v31 = vld [vmem:[%s17077_s1 + $0x198] sm:$0xff] }
  0x3e   :  { %2018 = vadd.xlane.f32.xlu0 %v2017_v8  ;;  %v2031_v2 = vadd.f32 %v2030_v9, %v1245_v55  ;;  %v1242_v10 = vmul.f32 %v474_v61, %v474_v61  ;;  %v483_v52 = vunpack.c.l.bf16 %v57_v5  ;;  %v484_v12 = vunpack.c.h.bf16 %v57_v5  ;;  %v12777_v8 = vld [vmem:[%s17077_s1 + $0x180] sm:$0xff] }
  0x3f   :  { %v2025_v17 = vadd.f32 %v1240_v62, %v1239_v53  ;;  %8719 = vmatprep.subr.bf16.mxu0 %v10842_v59  ;;  %8760 = vmatprep.subr.bf16.mxu1 %v10844_v3  ;;  %v485_v20 = vunpack.c.l.bf16 %v58_v1  ;;  %v486_v58 = vunpack.c.h.bf16 %v58_v1  ;;  %v479_v24 = vunpack.c.l.bf16 %v55_v0 }
  0x40   :  { %v2032_v26 = vadd.f32 %v2031_v2, %v1246_v57  ;;  %v1251_v16 = vmul.f32 %v483_v52, %v483_v52  ;;  %v1252_v27 = vmul.f32 %v484_v12, %v484_v12  ;;  %v480_v23 = vunpack.c.h.bf16 %v55_v0 }
  0x41   :  { %v2026_v32 = vadd.f32 %v2025_v17, %v1241_v63  ;;  %v1253_v34 = vmul.f32 %v485_v20, %v485_v20  ;;  %v1254_v37 = vmul.f32 %v486_v58, %v486_v58  ;;  %v481_v39 = vunpack.c.l.bf16 %v56_v56 }
  0x42   :  { %2033 = vadd.xlane.f32.xlu1 %v2032_v26  ;;  %v2040_v7 = vadd.f32 %v1252_v27, %v1251_v16  ;;  %v482_v30 = vunpack.c.h.bf16 %v56_v56  ;;  %v1247_v44 = vmul.f32 %v479_v24, %v479_v24  ;;  %v1248_v48 = vmul.f32 %v480_v23, %v480_v23  ;;  %v12786_v56 = vld [vmem:[%s17077_s1 + $0x188] sm:$0xff]  ;;  %v12802_v26 = vld [vmem:[%s17077_s1 + $0x1b8] sm:$0xff] }
  0x43   :  { %v2027_v14 = vadd.f32 %v2026_v32, %v1242_v10  ;;  %v1249_v49 = vmul.f32 %v481_v39, %v481_v39  ;;  %v10841_v45 = vcombine.low %v12497_v15, %v12529_v28  ;;  %v10843_v6 = vcombine.low %v12506_v18, %v12536_v33 }
  0x44   :  { %v2041_v29 = vadd.f32 %v2040_v7, %v1253_v34  ;;  %v1250_v35 = vmul.f32 %v482_v30, %v482_v30  ;;  %v2035_v13 = vadd.f32 %v1248_v48, %v1247_v44  ;;  %v491_v36 = vunpack.c.l.bf16 %v61_v25  ;;  %v12809_v30 = vld [vmem:[%s17077_s1 + $0x1a0] sm:$0xff]  ;;  %v12814_v44 = vld [vmem:[%s17077_s1 + $0x1a8] sm:$0xff] }
  0x45   :  { %2028 = vadd.xlane.f32.xlu0 %v2027_v14  ;;  %8720 = vmatpush1.bf16.xpose.msra.mxu0 %v10841_v45  ;;  %v492_v41 = vunpack.c.h.bf16 %v61_v25  ;;  %v493_v54 = vunpack.c.l.bf16 %v12742_v40  ;;  %v494_v46 = vunpack.c.h.bf16 %v12742_v40  ;;  %v487_v15 = vunpack.c.l.bf16 %v12747_v42  ;;  %v12797_v25 = vld [vmem:[%s17077_s1 + $0x1b0] sm:$0xff] }
  0x46   :  { %v2042_v28 = vadd.f32 %v2041_v29, %v1254_v37  ;;  %v2036_v18 = vadd.f32 %v2035_v13, %v1249_v49  ;;  %8761 = vmatpush1.bf16.xpose.msra.mxu1 %v10843_v6  ;;  %v1259_v33 = vmul.f32 %v491_v36, %v491_v36  ;;  %v488_v11 = vunpack.c.h.bf16 %v12747_v42 }
  0x47   :  { %v1260_v60 = vmul.f32 %v492_v41, %v492_v41  ;;  %v1261_v19 = vmul.f32 %v493_v54, %v493_v54  ;;  %v1262_v51 = vmul.f32 %v494_v46, %v494_v46  ;;  %v489_v5 = vunpack.c.l.bf16 %v12756_v50 }
  0x48   :  { %2043 = vadd.xlane.f32.xlu1 %v2042_v28  ;;  %v2037_v55 = vadd.f32 %v2036_v18, %v1250_v35  ;;  %v490_v57 = vunpack.c.h.bf16 %v12756_v50  ;;  %v1255_v4 = vmul.f32 %v487_v15, %v487_v15  ;;  %v1256_v1 = vmul.f32 %v488_v11, %v488_v11  ;;  %v12834_v28 = vld [vmem:[%s17077_s1 + $0x1f0] sm:$0xff]  ;;  %v12839_v18 = vld [vmem:[%s17077_s1 + $0x1e8] sm:$0xff] }
  0x49   :  { %v2050_v9 = vadd.f32 %v1260_v60, %v1259_v33  ;;  %v1257_v61 = vmul.f32 %v489_v5, %v489_v5  ;;  %v10838_v53 = vcombine.high %v12513_v21, %v12541_v38  ;;  %v10840_v0 = vcombine.high %v12518_v22, %v12550_v47  ;;  %v12844_v33 = vld [vmem:[%s17077_s1 + $0x1f8] sm:$0xff]  ;;  %v12849_v11 = vld [vmem:[%s17077_s1 + $0x1d0] sm:$0xff] }
  0x4a   :  { %2038 = vadd.xlane.f32.xlu0 %v2037_v55  ;;  %v1258_v62 = vmul.f32 %v490_v57, %v490_v57  ;;  %v2045_v63 = vadd.f32 %v1256_v1, %v1255_v4  ;;  %v499_v59 = vunpack.c.l.bf16 %v12765_v43  ;;  %v500_v3 = vunpack.c.h.bf16 %v12765_v43  ;;  %v12855_v55 = vld [vmem:[%s17077_s1 + $0x1d8] sm:$0xff] }
  0x4b   :  { %v2051_v2 = vadd.f32 %v2050_v9, %v1261_v19  ;;  %8721 = vmatprep.subr.bf16.mxu0 %v10838_v53  ;;  %8762 = vmatprep.subr.bf16.mxu1 %v10840_v0  ;;  %v501_v10 = vunpack.c.l.bf16 %v12771_v31  ;;  %v502_v52 = vunpack.c.h.bf16 %v12771_v31  ;;  %v495_v12 = vunpack.c.l.bf16 %v12777_v8 }
  0x4c   :  { %v2046_v17 = vadd.f32 %v2045_v63, %v1257_v61  ;;  %v1267_v20 = vmul.f32 %v499_v59, %v499_v59  ;;  %v1268_v58 = vmul.f32 %v500_v3, %v500_v3  ;;  %v496_v24 = vunpack.c.h.bf16 %v12777_v8  ;;  %v12861_v61 = vld [vmem:[%s17077_s1 + $0x1c0] sm:$0xff]  ;;  %v12870_v59 = vld [vmem:[%s17077_s1 + $0x1c8] sm:$0xff] }
  0x4d   :  { %v2052_v16 = vadd.f32 %v2051_v2, %v1262_v51  ;;  %v1269_v27 = vmul.f32 %v501_v10, %v501_v10  ;;  %v1270_v23 = vmul.f32 %v502_v52, %v502_v52  ;;  %v497_v32 = vunpack.c.l.bf16 %v12786_v56 }
  0x4e   :  { %v2047_v34 = vadd.f32 %v2046_v17, %v1258_v62  ;;  %v2060_v37 = vadd.f32 %v1268_v58, %v1267_v20  ;;  %v498_v39 = vunpack.c.h.bf16 %v12786_v56  ;;  %v1263_v7 = vmul.f32 %v495_v12, %v495_v12 }
  0x4f   :  { %2053 = vadd.xlane.f32.xlu1 %v2052_v16  ;;  %v1264_v48 = vmul.f32 %v496_v24, %v496_v24  ;;  %v1265_v14 = vmul.f32 %v497_v32, %v497_v32  ;;  %v10837_v49 = vcombine.low %v12513_v21, %v12541_v38  ;;  %v10839_v45 = vcombine.low %v12518_v22, %v12550_v47  ;;  %v12829_v47 = vld [vmem:[%s17077_s1 + $0x1e0] sm:$0xff] }
  0x50   :  { %2048 = vadd.xlane.f32.xlu0 %v2047_v34  ;;  %v2061_v6 = vadd.f32 %v2060_v37, %v1269_v27  ;;  %v1266_v29 = vmul.f32 %v498_v39, %v498_v39  ;;  %v507_v35 = vunpack.c.l.bf16 %v12797_v25  ;;  %v508_v13 = vunpack.c.h.bf16 %v12797_v25 }
  0x51   :  { %v2055_v36 = vadd.f32 %v1264_v48, %v1263_v7  ;;  %8722 = vmatpush1.bf16.xpose.msra.mxu0 %v10837_v49  ;;  %8763 = vmatpush1.bf16.xpose.msra.mxu1 %v10839_v45  ;;  %v509_v41 = vunpack.c.l.bf16 %v12802_v26  ;;  %v510_v54 = vunpack.c.h.bf16 %v12802_v26  ;;  %v503_v46 = vunpack.c.l.bf16 %v12809_v30 }
  0x52   :  { %v2062_v21 = vadd.f32 %v2061_v6, %v1270_v23  ;;  %v1275_v38 = vmul.f32 %v507_v35, %v507_v35  ;;  %v1276_v15 = vmul.f32 %v508_v13, %v508_v13  ;;  %v504_v22 = vunpack.c.h.bf16 %v12809_v30 }
  0x53   :  { %v2056_v60 = vadd.f32 %v2055_v36, %v1265_v14  ;;  %v1277_v19 = vmul.f32 %v509_v41, %v509_v41  ;;  %v1278_v51 = vmul.f32 %v510_v54, %v510_v54  ;;  %v505_v5 = vunpack.c.l.bf16 %v12814_v44 }
  0x54   :  { %2063 = vadd.xlane.f32.xlu1 %v2062_v21  ;;  %v2070_v57 = vadd.f32 %v1276_v15, %v1275_v38  ;;  %v506_v4 = vunpack.c.h.bf16 %v12814_v44  ;;  %v1271_v1 = vmul.f32 %v503_v46, %v503_v46  ;;  %v1272_v9 = vmul.f32 %v504_v22, %v504_v22  ;;  %v81_v22 = vld [vmem:[%s17077_s1 + $0x210] sm:$0xff] }
  0x55   :  { %v2057_v53 = vadd.f32 %v2056_v60, %v1266_v29  ;;  %v1273_v0 = vmul.f32 %v505_v5, %v505_v5  ;;  %v10898_v62 = vcombine.high %v12829_v47, %v12834_v28  ;;  %v10900_v63 = vcombine.high %v12839_v18, %v12844_v33 }
  0x56   :  { %v2071_v3 = vadd.f32 %v2070_v57, %v1277_v19  ;;  %v1274_v2 = vmul.f32 %v506_v4, %v506_v4  ;;  %v2065_v10 = vadd.f32 %v1272_v9, %v1271_v1  ;;  %v515_v52 = vunpack.c.l.bf16 %v12849_v11 }
  0x57   :  { %2058 = vadd.xlane.f32.xlu0 %v2057_v53  ;;  %8723 = vmatprep.subr.bf16.mxu0 %v10898_v62  ;;  %v516_v12 = vunpack.c.h.bf16 %v12849_v11  ;;  %v517_v17 = vunpack.c.l.bf16 %v12855_v55  ;;  %v518_v20 = vunpack.c.h.bf16 %v12855_v55  ;;  %v511_v58 = vunpack.c.l.bf16 %v12861_v61  ;;  %v82_v62 = vld [vmem:[%s17077_s1 + $0x218] sm:$0xff] }
  0x58   :  { %v2072_v24 = vadd.f32 %v2071_v3, %v1278_v51  ;;  %v2066_v16 = vadd.f32 %v2065_v10, %v1273_v0  ;;  %8764 = vmatprep.subr.bf16.mxu1 %v10900_v63  ;;  %v1283_v27 = vmul.f32 %v515_v52, %v515_v52  ;;  %v512_v23 = vunpack.c.h.bf16 %v12861_v61  ;;  %v79_v63 = vld [vmem:[%s17077_s1 + $0x200] sm:$0xff] }
  0x59   :  { %v1284_v32 = vmul.f32 %v516_v12, %v516_v12  ;;  %v1285_v34 = vmul.f32 %v517_v17, %v517_v17  ;;  %v1286_v37 = vmul.f32 %v518_v20, %v518_v20  ;;  %v513_v39 = vunpack.c.l.bf16 %v12870_v59  ;;  %v80_v20 = vld [vmem:[%s17077_s1 + $0x208] sm:$0xff] }
  0x5a   :  { %2073 = vadd.xlane.f32.xlu1 %v2072_v24  ;;  %v2067_v7 = vadd.f32 %v2066_v16, %v1274_v2  ;;  %v514_v48 = vunpack.c.h.bf16 %v12870_v59  ;;  %v1279_v14 = vmul.f32 %v511_v58, %v511_v58  ;;  %v1280_v49 = vmul.f32 %v512_v23, %v512_v23 }
  0x5b   :  { %v2080_v45 = vadd.f32 %v1284_v32, %v1283_v27  ;;  %v1281_v6 = vmul.f32 %v513_v39, %v513_v39  ;;  %v10897_v29 = vcombine.low %v12829_v47, %v12834_v28  ;;  %v10899_v35 = vcombine.low %v12839_v18, %v12844_v33 }
  0x5c   :  { %2068 = vadd.xlane.f32.xlu0 %v2067_v7  ;;  %v1282_v13 = vmul.f32 %v514_v48, %v514_v48  ;;  %v2075_v36 = vadd.f32 %v1280_v49, %v1279_v14  ;;  %v523_v41 = vunpack.c.l.bf16 %v12834_v28  ;;  %v524_v54 = vunpack.c.h.bf16 %v12834_v28  ;;  %v85_v49 = vld [vmem:[%s17077_s1 + $0x230] sm:$0xff] }
  0x5d   :  { %v2081_v46 = vadd.f32 %v2080_v45, %v1285_v34  ;;  %8724 = vmatpush2.bf16.xpose.msra.mxu0 %v10897_v29  ;;  %8765 = vmatpush2.bf16.xpose.msra.mxu1 %v10899_v35  ;;  %v525_v21 = vunpack.c.l.bf16 %v12844_v33  ;;  %v526_v38 = vunpack.c.h.bf16 %v12844_v33  ;;  %v519_v15 = vunpack.c.l.bf16 %v12829_v47 }
  0x5e   :  { %v2076_v60 = vadd.f32 %v2075_v36, %v1281_v6  ;;  %v1291_v19 = vmul.f32 %v523_v41, %v523_v41  ;;  %v1292_v51 = vmul.f32 %v524_v54, %v524_v54  ;;  %v520_v5 = vunpack.c.h.bf16 %v12829_v47  ;;  %v83_v36 = vld [vmem:[%s17077_s1 + $0x220] sm:$0xff] }
  0x5f   :  { %v2082_v57 = vadd.f32 %v2081_v46, %v1286_v37  ;;  %v1293_v28 = vmul.f32 %v525_v21, %v525_v21  ;;  %v1294_v4 = vmul.f32 %v526_v38, %v526_v38  ;;  %v521_v1 = vunpack.c.l.bf16 %v12839_v18  ;;  %v84_v38 = vld [vmem:[%s17077_s1 + $0x228] sm:$0xff] }
  0x60   :  { %v2077_v9 = vadd.f32 %v2076_v60, %v1282_v13  ;;  %v2090_v53 = vadd.f32 %v1292_v51, %v1291_v19  ;;  %v522_v33 = vunpack.c.h.bf16 %v12839_v18  ;;  %v1287_v0 = vmul.f32 %v519_v15, %v519_v15  ;;  %v86_v13 = vld [vmem:[%s17077_s1 + $0x238] sm:$0xff] }
  0x61   :  { %2083 = vadd.xlane.f32.xlu1 %v2082_v57  ;;  %v1288_v47 = vmul.f32 %v520_v5, %v520_v5  ;;  %v1289_v3 = vmul.f32 %v521_v1, %v521_v1  ;;  %v10894_v2 = vcombine.high %v12861_v61, %v12849_v11  ;;  %v10896_v10 = vcombine.high %v12870_v59, %v12855_v55  ;;  %v90_v1 = vld [vmem:[%s17077_s1 + $0x258] sm:$0xff] }
  0x62   :  { %2078 = vadd.xlane.f32.xlu0 %v2077_v9  ;;  %v2091_v18 = vadd.f32 %v2090_v53, %v1293_v28  ;;  %v1290_v52 = vmul.f32 %v522_v33, %v522_v33  ;;  %v531_v12 = vunpack.c.l.bf16 %v81_v22  ;;  %v532_v17 = vunpack.c.h.bf16 %v81_v22  ;;  %v87_v9 = vld [vmem:[%s17077_s1 + $0x240] sm:$0xff] }
  0x63   :  { %v2085_v58 = vadd.f32 %v1288_v47, %v1287_v0  ;;  %8725 = vmatprep.subr.bf16.mxu0 %v10894_v2  ;;  %8766 = vmatprep.subr.bf16.mxu1 %v10896_v10  ;;  %v533_v24 = vunpack.c.l.bf16 %v82_v62  ;;  %v534_v16 = vunpack.c.h.bf16 %v82_v62  ;;  %v527_v27 = vunpack.c.l.bf16 %v79_v63 }
  0x64   :  { %v2092_v23 = vadd.f32 %v2091_v18, %v1294_v4  ;;  %v1299_v32 = vmul.f32 %v531_v12, %v531_v12  ;;  %v1300_v34 = vmul.f32 %v532_v17, %v532_v17  ;;  %v528_v37 = vunpack.c.h.bf16 %v79_v63  ;;  %v88_v17 = vld [vmem:[%s17077_s1 + $0x248] sm:$0xff] }
  0x65   :  { %v2086_v39 = vadd.f32 %v2085_v58, %v1289_v3  ;;  %v1301_v7 = vmul.f32 %v533_v24, %v533_v24  ;;  %v1302_v48 = vmul.f32 %v534_v16, %v534_v16  ;;  %v529_v14 = vunpack.c.l.bf16 %v80_v20 }
  0x66   :  { %2093 = vadd.xlane.f32.xlu1 %v2092_v23  ;;  %v2100_v45 = vadd.f32 %v1300_v34, %v1299_v32  ;;  %v530_v6 = vunpack.c.h.bf16 %v80_v20  ;;  %v1295_v29 = vmul.f32 %v527_v27, %v527_v27  ;;  %v1296_v35 = vmul.f32 %v528_v37, %v528_v37  ;;  %v93_v37 = vld [vmem:[%s17077_s1 + $0x270] sm:$0xff] }
  0x67   :  { %v2087_v41 = vadd.f32 %v2086_v39, %v1290_v52  ;;  %v1297_v54 = vmul.f32 %v529_v14, %v529_v14  ;;  %v10893_v46 = vcombine.low %v12861_v61, %v12849_v11  ;;  %v10895_v21 = vcombine.low %v12870_v59, %v12855_v55  ;;  %v89_v11 = vld [vmem:[%s17077_s1 + $0x250] sm:$0xff] }
  0x68   :  { %v2101_v15 = vadd.f32 %v2100_v45, %v1301_v7  ;;  %v1298_v22 = vmul.f32 %v530_v6, %v530_v6  ;;  %v2095_v60 = vadd.f32 %v1296_v35, %v1295_v29  ;;  %v539_v19 = vunpack.c.l.bf16 %v85_v49 }
  0x69   :  { %2088 = vadd.xlane.f32.xlu0 %v2087_v41  ;;  %8726 = vmatpush2.bf16.xpose.msra.mxu0 %v10893_v46  ;;  %v540_v51 = vunpack.c.h.bf16 %v85_v49  ;;  %v541_v5 = vunpack.c.l.bf16 %v86_v13  ;;  %v542_v57 = vunpack.c.h.bf16 %v86_v13  ;;  %v535_v28 = vunpack.c.l.bf16 %v83_v36  ;;  %v91_v46 = vld [vmem:[%s17077_s1 + $0x260] sm:$0xff] }
  0x6a   :  { %v2102_v61 = vadd.f32 %v2101_v15, %v1302_v48  ;;  %v2096_v55 = vadd.f32 %v2095_v60, %v1297_v54  ;;  %8767 = vmatpush2.bf16.xpose.msra.mxu1 %v10895_v21  ;;  %v1307_v59 = vmul.f32 %v539_v19, %v539_v19  ;;  %v536_v4 = vunpack.c.h.bf16 %v83_v36  ;;  %v94_v54 = vld [vmem:[%s17077_s1 + $0x278] sm:$0xff] }
  0x6b   :  { %v1308_v53 = vmul.f32 %v540_v51, %v540_v51  ;;  %v1309_v33 = vmul.f32 %v541_v5, %v541_v5  ;;  %v1310_v0 = vmul.f32 %v542_v57, %v542_v57  ;;  %v537_v62 = vunpack.c.l.bf16 %v84_v38  ;;  %v92_v57 = vld [vmem:[%s17077_s1 + $0x268] sm:$0xff] }
  0x6c   :  { %2103 = vadd.xlane.f32.xlu1 %v2102_v61  ;;  %v2097_v63 = vadd.f32 %v2096_v55, %v1298_v22  ;;  %v538_v47 = vunpack.c.h.bf16 %v84_v38  ;;  %v1303_v3 = vmul.f32 %v535_v28, %v535_v28  ;;  %v1304_v2 = vmul.f32 %v536_v4, %v536_v4  ;;  %v98_v4 = vld [vmem:[%s17077_s1 + $0x298] sm:$0xff] }
  0x6d   :  { %v2110_v10 = vadd.f32 %v1308_v53, %v1307_v59  ;;  %v1305_v18 = vmul.f32 %v537_v62, %v537_v62  ;;  %v10890_v52 = vcombine.high %v12809_v30, %v12797_v25  ;;  %v10892_v12 = vcombine.high %v12814_v44, %v12802_v26 }
  0x6e   :  { %2098 = vadd.xlane.f32.xlu0 %v2097_v63  ;;  %v1306_v20 = vmul.f32 %v538_v47, %v538_v47  ;;  %v2105_v58 = vadd.f32 %v1304_v2, %v1303_v3  ;;  %v547_v24 = vunpack.c.l.bf16 %v89_v11  ;;  %v548_v16 = vunpack.c.h.bf16 %v89_v11 }
  0x6f   :  { %v2111_v27 = vadd.f32 %v2110_v10, %v1309_v33  ;;  %8727 = vmatprep.subr.bf16.mxu0 %v10890_v52  ;;  %8768 = vmatprep.subr.bf16.mxu1 %v10892_v12  ;;  %v549_v23 = vunpack.c.l.bf16 %v90_v1  ;;  %v550_v32 = vunpack.c.h.bf16 %v90_v1  ;;  %v543_v34 = vunpack.c.l.bf16 %v87_v9  ;;  %v95_v1 = vld [vmem:[%s17077_s1 + $0x280] sm:$0xff] }
  0x70   :  { %v2106_v39 = vadd.f32 %v2105_v58, %v1305_v18  ;;  %v1315_v7 = vmul.f32 %v547_v24, %v547_v24  ;;  %v1316_v48 = vmul.f32 %v548_v16, %v548_v16  ;;  %v544_v14 = vunpack.c.h.bf16 %v87_v9  ;;  %v96_v24 = vld [vmem:[%s17077_s1 + $0x288] sm:$0xff] }
  0x71   :  { %v2112_v49 = vadd.f32 %v2111_v27, %v1310_v0  ;;  %v1317_v45 = vmul.f32 %v549_v23, %v549_v23  ;;  %v1318_v6 = vmul.f32 %v550_v32, %v550_v32  ;;  %v545_v29 = vunpack.c.l.bf16 %v88_v17 }
  0x72   :  { %v2107_v35 = vadd.f32 %v2106_v39, %v1306_v20  ;;  %v2120_v13 = vadd.f32 %v1316_v48, %v1315_v7  ;;  %v546_v36 = vunpack.c.h.bf16 %v88_v17  ;;  %v1311_v41 = vmul.f32 %v543_v34, %v543_v34  ;;  %v101_v34 = vld [vmem:[%s17077_s1 + $0x2b0] sm:$0xff] }
  0x73   :  { %2113 = vadd.xlane.f32.xlu1 %v2112_v49  ;;  %v1312_v21 = vmul.f32 %v544_v14, %v544_v14  ;;  %v1313_v38 = vmul.f32 %v545_v29, %v545_v29  ;;  %v10889_v15 = vcombine.low %v12809_v30, %v12797_v25  ;;  %v10891_v22 = vcombine.low %v12814_v44, %v12802_v26  ;;  %v97_v25 = vld [vmem:[%s17077_s1 + $0x290] sm:$0xff]  ;;  %v102_v14 = vld [vmem:[%s17077_s1 + $0x2b8] sm:$0xff]  ;;  %v99_v49 = vld [vmem:[%s17077_s1 + $0x2a0] sm:$0xff] }
  0x74   :  { %2108 = vadd.xlane.f32.xlu0 %v2107_v35  ;;  %v2121_v60 = vadd.f32 %v2120_v13, %v1317_v45  ;;  %v1314_v19 = vmul.f32 %v546_v36, %v546_v36  ;;  %v555_v51 = vunpack.c.l.bf16 %v93_v37  ;;  %v556_v5 = vunpack.c.h.bf16 %v93_v37 }
  0x75   :  { %v2115_v28 = vadd.f32 %v1312_v21, %v1311_v41  ;;  %8728 = vmatpush2.bf16.xpose.msra.mxu0 %v10889_v15  ;;  %8769 = vmatpush2.bf16.xpose.msra.mxu1 %v10891_v22  ;;  %v557_v11 = vunpack.c.l.bf16 %v94_v54  ;;  %v558_v61 = vunpack.c.h.bf16 %v94_v54  ;;  %v551_v55 = vunpack.c.l.bf16 %v91_v46 }
  0x76   :  { %v2122_v26 = vadd.f32 %v2121_v60, %v1318_v6  ;;  %v1323_v30 = vmul.f32 %v555_v51, %v555_v51  ;;  %v1324_v44 = vmul.f32 %v556_v5, %v556_v5  ;;  %v552_v59 = vunpack.c.h.bf16 %v91_v46  ;;  %v100_v5 = vld [vmem:[%s17077_s1 + $0x2a8] sm:$0xff] }
  0x77   :  { %v2116_v9 = vadd.f32 %v2115_v28, %v1313_v38  ;;  %v1325_v53 = vmul.f32 %v557_v11, %v557_v11  ;;  %v1326_v33 = vmul.f32 %v558_v61, %v558_v61  ;;  %v553_v0 = vunpack.c.l.bf16 %v92_v57 }
  0x78   :  { %2123 = vadd.xlane.f32.xlu1 %v2122_v26  ;;  %v2130_v62 = vadd.f32 %v1324_v44, %v1323_v30  ;;  %v554_v63 = vunpack.c.h.bf16 %v92_v57  ;;  %v1319_v47 = vmul.f32 %v551_v55, %v551_v55  ;;  %v1320_v3 = vmul.f32 %v552_v59, %v552_v59  ;;  %v12996_v59 = vld [vmem:[%s17077_s1 + $0x2d8] sm:$0xff] }
  0x79   :  { %v2117_v2 = vadd.f32 %v2116_v9, %v1314_v19  ;;  %v1321_v10 = vmul.f32 %v553_v0, %v553_v0  ;;  %v10886_v18 = vcombine.high %v12777_v8, %v12765_v43  ;;  %v10888_v52 = vcombine.high %v12786_v56, %v12771_v31  ;;  %v13006_v0 = vld [vmem:[%s17077_s1 + $0x2c8] sm:$0xff] }
  0x7a   :  { %v2131_v12 = vadd.f32 %v2130_v62, %v1325_v53  ;;  %v1322_v17 = vmul.f32 %v554_v63, %v554_v63  ;;  %v2125_v20 = vadd.f32 %v1320_v3, %v1319_v47  ;;  %v563_v58 = vunpack.c.l.bf16 %v97_v25  ;;  %v12412_v47 = vld [vmem:[%s17077_s1 + $0x170] sm:$0xff] }
  0x7b   :  { %2118 = vadd.xlane.f32.xlu0 %v2117_v2  ;;  %8729 = vmatprep.subr.bf16.mxu0 %v10886_v18  ;;  %v564_v16 = vunpack.c.h.bf16 %v97_v25  ;;  %v565_v27 = vunpack.c.l.bf16 %v98_v4  ;;  %v566_v23 = vunpack.c.h.bf16 %v98_v4  ;;  %v559_v32 = vunpack.c.l.bf16 %v95_v1  ;;  %v13001_v4 = vld [vmem:[%s17077_s1 + $0x2c0] sm:$0xff] }
  0x7c   :  { %v2132_v37 = vadd.f32 %v2131_v12, %v1326_v33  ;;  %v2126_v39 = vadd.f32 %v2125_v20, %v1321_v10  ;;  %8770 = vmatprep.subr.bf16.mxu1 %v10888_v52  ;;  %v1331_v7 = vmul.f32 %v563_v58, %v563_v58  ;;  %v560_v48 = vunpack.c.h.bf16 %v95_v1 }
  0x7d   :  { %v1332_v45 = vmul.f32 %v564_v16, %v564_v16  ;;  %v1333_v6 = vmul.f32 %v565_v27, %v565_v27  ;;  %v1334_v29 = vmul.f32 %v566_v23, %v566_v23  ;;  %v561_v35 = vunpack.c.l.bf16 %v96_v24 }
  0x7e   :  { %2133 = vadd.xlane.f32.xlu1 %v2132_v37  ;;  %v2127_v13 = vadd.f32 %v2126_v39, %v1322_v17  ;;  %v562_v36 = vunpack.c.h.bf16 %v96_v24  ;;  %v1327_v41 = vmul.f32 %v559_v32, %v559_v32  ;;  %v1328_v54 = vmul.f32 %v560_v48, %v560_v48  ;;  %v13029_v39 = vld [vmem:[%s17077_s1 + $0x2f8] sm:$0xff] }
  0x7f   :  { %v2140_v46 = vadd.f32 %v1332_v45, %v1331_v7  ;;  %v1329_v21 = vmul.f32 %v561_v35, %v561_v35  ;;  %v10885_v38 = vcombine.low %v12777_v8, %v12765_v43  ;;  %v10887_v15 = vcombine.low %v12786_v56, %v12771_v31  ;;  %v12991_v43 = vld [vmem:[%s17077_s1 + $0x2d0] sm:$0xff]  ;;  %v13034_v7 = vld [vmem:[%s17077_s1 + $0x2e0] sm:$0xff] }
  0x80   :  { %2128 = vadd.xlane.f32.xlu0 %v2127_v13  ;;  %v1330_v22 = vmul.f32 %v562_v36, %v562_v36  ;;  %v2135_v60 = vadd.f32 %v1328_v54, %v1327_v41  ;;  %v571_v19 = vunpack.c.l.bf16 %v101_v34  ;;  %v572_v51 = vunpack.c.h.bf16 %v101_v34  ;;  %v12413_v35 = vld [vmem:[%s17077_s1 + $0x160] sm:$0xff]  ;;  %v12414_v36 = vld [vmem:[%s17077_s1 + $0x178] sm:$0xff]  ;;  %v12415_v41 = vld [vmem:[%s17077_s1 + $0x168] sm:$0xff] }
  0x81   :  { %v2141_v57 = vadd.f32 %v2140_v46, %v1333_v6  ;;  %8730 = vmatpush2.bf16.xpose.msra.mxu0 %v10885_v38  ;;  %8771 = vmatpush2.bf16.xpose.msra.mxu1 %v10887_v15  ;;  %v573_v28 = vunpack.c.l.bf16 %v102_v14  ;;  %v574_v11 = vunpack.c.h.bf16 %v102_v14  ;;  %v567_v61 = vunpack.c.l.bf16 %v99_v49 }
  0x82   :  { %v2136_v31 = vadd.f32 %v2135_v60, %v1329_v21  ;;  %v1339_v8 = vmul.f32 %v571_v19, %v571_v19  ;;  %v1340_v56 = vmul.f32 %v572_v51, %v572_v51  ;;  %v568_v55 = vunpack.c.h.bf16 %v99_v49 }
  0x83   :  { %v2142_v25 = vadd.f32 %v2141_v57, %v1334_v29  ;;  %v1341_v26 = vmul.f32 %v573_v28, %v573_v28  ;;  %v1342_v30 = vmul.f32 %v574_v11, %v574_v11  ;;  %v569_v44 = vunpack.c.l.bf16 %v100_v5 }
  0x84   :  { %v2137_v1 = vadd.f32 %v2136_v31, %v1330_v22  ;;  %v2150_v9 = vadd.f32 %v1340_v56, %v1339_v8  ;;  %v570_v53 = vunpack.c.h.bf16 %v100_v5  ;;  %v1335_v33 = vmul.f32 %v567_v61, %v567_v61  ;;  %v13050_v22 = vld [vmem:[%s17077_s1 + $0x2e8] sm:$0xff]  ;;  %v113_v31 = vld [vmem:[%s17077_s1 + $0x310] sm:$0xff] }
  0x85   :  { %2143 = vadd.xlane.f32.xlu1 %v2142_v25  ;;  %v1336_v62 = vmul.f32 %v568_v55, %v568_v55  ;;  %v1337_v63 = vmul.f32 %v569_v44, %v569_v44  ;;  %v10882_v3 = vcombine.high %v12747_v42, %v12412_v47  ;;  %v10884_v2 = vcombine.high %v12756_v50, %v12742_v40  ;;  %v13022_v40 = vld [vmem:[%s17077_s1 + $0x2f0] sm:$0xff] }
  0x86   :  { %2138 = vadd.xlane.f32.xlu0 %v2137_v1  ;;  %v2151_v10 = vadd.f32 %v2150_v9, %v1341_v26  ;;  %v1338_v18 = vmul.f32 %v570_v53, %v570_v53  ;;  %v579_v52 = vunpack.c.l.bf16 %v12991_v43  ;;  %v580_v12 = vunpack.c.h.bf16 %v12991_v43  ;;  %v114_v26 = vld [vmem:[%s17077_s1 + $0x318] sm:$0xff] }
  0x87   :  { %v2145_v17 = vadd.f32 %v1336_v62, %v1335_v33  ;;  %8731 = vmatprep.subr.bf16.mxu0 %v10882_v3  ;;  %8772 = vmatprep.subr.bf16.mxu1 %v10884_v2  ;;  %v581_v20 = vunpack.c.l.bf16 %v12996_v59  ;;  %v582_v58 = vunpack.c.h.bf16 %v12996_v59  ;;  %v575_v24 = vunpack.c.l.bf16 %v13001_v4  ;;  %v112_v33 = vld [vmem:[%s17077_s1 + $0x308] sm:$0xff]  ;;  %v12417_v3 = vld [vmem:[%s17077_s1 + $0x140] sm:$0xff] }
  0x88   :  { %v2152_v42 = vadd.f32 %v2151_v10, %v1342_v30  ;;  %v1347_v50 = vmul.f32 %v579_v52, %v579_v52  ;;  %v1348_v16 = vmul.f32 %v580_v12, %v580_v12  ;;  %v576_v27 = vunpack.c.h.bf16 %v13001_v4  ;;  %v111_v30 = vld [vmem:[%s17077_s1 + $0x300] sm:$0xff]  ;;  %v12418_v10 = vld [vmem:[%s17077_s1 + $0x158] sm:$0xff] }
  0x89   :  { %v2146_v23 = vadd.f32 %v2145_v17, %v1337_v63  ;;  %v1349_v32 = vmul.f32 %v581_v20, %v581_v20  ;;  %v1350_v34 = vmul.f32 %v582_v58, %v582_v58  ;;  %v577_v37 = vunpack.c.l.bf16 %v13006_v0 }
  0x8a   :  { %2153 = vadd.xlane.f32.xlu1 %v2152_v42  ;;  %v2160_v48 = vadd.f32 %v1348_v16, %v1347_v50  ;;  %v578_v14 = vunpack.c.h.bf16 %v13006_v0  ;;  %v1343_v49 = vmul.f32 %v575_v24, %v575_v24  ;;  %v1344_v45 = vmul.f32 %v576_v27, %v576_v27  ;;  %v117_v27 = vld [vmem:[%s17077_s1 + $0x330] sm:$0xff] }
  0x8b   :  { %v2147_v6 = vadd.f32 %v2146_v23, %v1338_v18  ;;  %v1345_v29 = vmul.f32 %v577_v37, %v577_v37  ;;  %v10881_v13 = vcombine.low %v12413_v35, %v12412_v47  ;;  %v10883_v54 = vcombine.low %v12415_v41, %v12414_v36  ;;  %v12416_v47 = vld [vmem:[%s17077_s1 + $0x150] sm:$0xff]  ;;  %v12419_v18 = vld [vmem:[%s17077_s1 + $0x148] sm:$0xff] }
  0x8c   :  { %v2161_v46 = vadd.f32 %v2160_v48, %v1349_v32  ;;  %v1346_v21 = vmul.f32 %v578_v14, %v578_v14  ;;  %v2155_v38 = vadd.f32 %v1344_v45, %v1343_v49  ;;  %v587_v15 = vunpack.c.l.bf16 %v13022_v40  ;;  %v118_v48 = vld [vmem:[%s17077_s1 + $0x338] sm:$0xff]  ;;  %v115_v14 = vld [vmem:[%s17077_s1 + $0x320] sm:$0xff] }
  0x8d   :  { %2148 = vadd.xlane.f32.xlu0 %v2147_v6  ;;  %8732 = vmatpush2.bf16.xpose.msra.mxu0 %v10881_v13  ;;  %v588_v60 = vunpack.c.h.bf16 %v13022_v40  ;;  %v589_v19 = vunpack.c.l.bf16 %v13029_v39  ;;  %v590_v51 = vunpack.c.h.bf16 %v13029_v39  ;;  %v583_v5 = vunpack.c.l.bf16 %v13034_v7 }
  0x8e   :  { %v2162_v57 = vadd.f32 %v2161_v46, %v1350_v34  ;;  %v2156_v28 = vadd.f32 %v2155_v38, %v1345_v29  ;;  %8773 = vmatpush2.bf16.xpose.msra.mxu1 %v10883_v54  ;;  %v1355_v11 = vmul.f32 %v587_v15, %v587_v15  ;;  %v584_v61 = vunpack.c.h.bf16 %v13034_v7  ;;  %v116_v54 = vld [vmem:[%s17077_s1 + $0x328] sm:$0xff]  ;;  %v11538_v46 = vld [vmem:[%s17077_s1 + $0x124] ss:$16 sps:$4 sm:$0xff]  }
  0x8f   :  { %v1356_v8 = vmul.f32 %v588_v60, %v588_v60  ;;  %v1357_v56 = vmul.f32 %v589_v19, %v589_v19  ;;  %v1358_v55 = vmul.f32 %v590_v51, %v590_v51  ;;  %v585_v25 = vunpack.c.l.bf16 %v13050_v22 }
  0x90   :  { %2163 = vadd.xlane.f32.xlu1 %v2162_v57  ;;  %v2157_v44 = vadd.f32 %v2156_v28, %v1346_v21  ;;  %v586_v1 = vunpack.c.h.bf16 %v13050_v22  ;;  %v1351_v9 = vmul.f32 %v583_v5, %v583_v5  ;;  %v1352_v53 = vmul.f32 %v584_v61, %v584_v61  ;;  %v11540_v21 = vld [vmem:[%s17077_s1 + $0x12c] ss:$16 sps:$4 sm:$0xff]  }
  0x91   :  { %v2170_v62 = vadd.f32 %v1356_v8, %v1355_v11  ;;  %v1353_v63 = vmul.f32 %v585_v25, %v585_v25  ;;  %v10878_v2 = vcombine.high %v12417_v3, %v12416_v47  ;;  %v10880_v52 = vcombine.high %v12419_v18, %v12418_v10 }
  0x92   :  { %2158 = vadd.xlane.f32.xlu0 %v2157_v44  ;;  %v1354_v12 = vmul.f32 %v586_v1, %v586_v1  ;;  %v2165_v17 = vadd.f32 %v1352_v53, %v1351_v9  ;;  %v595_v20 = vunpack.c.l.bf16 %v113_v31  ;;  %v596_v58 = vunpack.c.h.bf16 %v113_v31  ;;  %v122_v44 = vld [vmem:[%s17077_s1 + $0x358] sm:$0xff]  ;;  %v119_v1 = vld [vmem:[%s17077_s1 + $0x340] sm:$0xff] }
  0x93   :  { %v2171_v24 = vadd.f32 %v2170_v62, %v1357_v56  ;;  %8733 = vmatprep.subr.bf16.mxu0 %v10878_v2  ;;  %8774 = vmatprep.subr.bf16.mxu1 %v10880_v52  ;;  %v597_v42 = vunpack.c.l.bf16 %v114_v26  ;;  %v598_v50 = vunpack.c.h.bf16 %v114_v26  ;;  %v591_v16 = vunpack.c.l.bf16 %v111_v30  ;;  %v121_v56 = vld [vmem:[%s17077_s1 + $0x350] sm:$0xff]  ;;  %v120_v52 = vld [vmem:[%s17077_s1 + $0x348] sm:$0xff] }
  0x94   :  { %v2166_v23 = vadd.f32 %v2165_v17, %v1353_v63  ;;  %v1363_v32 = vmul.f32 %v595_v20, %v595_v20  ;;  %v1364_v34 = vmul.f32 %v596_v58, %v596_v58  ;;  %v592_v37 = vunpack.c.h.bf16 %v111_v30  ;;  %v11542_v63 = vld [vmem:[%s17077_s1 + $0x120] ss:$16 sps:$4 sm:$0xff]  }
  0x95   :  { %v2172_v49 = vadd.f32 %v2171_v24, %v1358_v55  ;;  %v1365_v45 = vmul.f32 %v597_v42, %v597_v42  ;;  %v1366_v6 = vmul.f32 %v598_v50, %v598_v50  ;;  %v593_v29 = vunpack.c.l.bf16 %v112_v33  ;;  %v125_v24 = vld [vmem:[%s17077_s1 + $0x370] sm:$0xff]  ;;  %v11546_v50 = vld [vmem:[%s17077_s1 + $0x10c] ss:$16 sps:$4 sm:$0xff]  }
  0x96   :  { %v2167_v35 = vadd.f32 %v2166_v23, %v1354_v12  ;;  %v2180_v13 = vadd.f32 %v1364_v34, %v1363_v32  ;;  %v594_v36 = vunpack.c.h.bf16 %v112_v33  ;;  %v1359_v41 = vmul.f32 %v591_v16, %v591_v16  ;;  %v11544_v42 = vld [vmem:[%s17077_s1 + $0x104] ss:$16 sps:$4 sm:$0xff]  }
  0x97   :  { %2173 = vadd.xlane.f32.xlu1 %v2172_v49  ;;  %v1360_v38 = vmul.f32 %v592_v37, %v592_v37  ;;  %v1361_v15 = vmul.f32 %v593_v29, %v593_v29  ;;  %v10877_v60 = vcombine.low %v12417_v3, %v12416_v47  ;;  %v10879_v19 = vcombine.low %v12419_v18, %v12418_v10  ;;  %v11543_v47 = vld [vmem:[%s17077_s1 + $0x128] ss:$16 sps:$4 sm:$0xff]  }
  0x98   :  { %2168 = vadd.xlane.f32.xlu0 %v2167_v35  ;;  %v2181_v51 = vadd.f32 %v2180_v13, %v1365_v45  ;;  %v1362_v5 = vmul.f32 %v594_v36, %v594_v36  ;;  %v603_v57 = vunpack.c.l.bf16 %v117_v27  ;;  %v604_v28 = vunpack.c.h.bf16 %v117_v27  ;;  %v126_v49 = vld [vmem:[%s17077_s1 + $0x378] sm:$0xff] }
  0x99   :  { %v2175_v11 = vadd.f32 %v1360_v38, %v1359_v41  ;;  %8734 = vmatpush2.bf16.xpose.msra.mxu0 %v10877_v60  ;;  %8775 = vmatpush2.bf16.xpose.msra.mxu1 %v10879_v19  ;;  %v605_v61 = vunpack.c.l.bf16 %v118_v48  ;;  %v606_v31 = vunpack.c.h.bf16 %v118_v48  ;;  %v599_v8 = vunpack.c.l.bf16 %v115_v14 }
  0x9a   :  { %v2182_v55 = vadd.f32 %v2181_v51, %v1366_v6  ;;  %v1371_v25 = vmul.f32 %v603_v57, %v603_v57  ;;  %v1372_v26 = vmul.f32 %v604_v28, %v604_v28  ;;  %v600_v30 = vunpack.c.h.bf16 %v115_v14  ;;  %8735 = vmatprep.subr.bf16.mxu0 %v11538_v46  ;;  %8776 = vmatprep.subr.bf16.mxu1 %v11540_v21  ;;  %v123_v46 = vld [vmem:[%s17077_s1 + $0x360] sm:$0xff]  ;;  %v124_v21 = vld [vmem:[%s17077_s1 + $0x368] sm:$0xff] }
  0x9b   :  { %v2176_v9 = vadd.f32 %v2175_v11, %v1361_v15  ;;  %v1373_v53 = vmul.f32 %v605_v61, %v605_v61  ;;  %v1374_v33 = vmul.f32 %v606_v31, %v606_v31  ;;  %v601_v62 = vunpack.c.l.bf16 %v116_v54  ;;  %v129_v11 = vld [vmem:[%s17077_s1 + $0x390] sm:$0xff]  ;;  %v11549_v31 = vld [vmem:[%s17077_s1 + $0x108] ss:$16 sps:$4 sm:$0xff]  }
  0x9c   :  { %2183 = vadd.xlane.f32.xlu1 %v2182_v55  ;;  %v2190_v3 = vadd.f32 %v1372_v26, %v1371_v25  ;;  %v602_v2 = vunpack.c.h.bf16 %v116_v54  ;;  %v1367_v10 = vmul.f32 %v599_v8, %v599_v8  ;;  %v1368_v18 = vmul.f32 %v600_v30, %v600_v30  ;;  %v11548_v61 = vld [vmem:[%s17077_s1 + $0x100] ss:$16 sps:$4 sm:$0xff]  }
  0x9d   :  { %v2177_v12 = vadd.f32 %v2176_v9, %v1362_v5  ;;  %v1369_v17 = vmul.f32 %v601_v62, %v601_v62  ;;  %v611_v20 = vunpack.c.l.bf16 %v121_v56  ;;  %v612_v58 = vunpack.c.h.bf16 %v121_v56 }
  0x9e   :  { %v2191_v16 = vadd.f32 %v2190_v3, %v1373_v53  ;;  %v1370_v27 = vmul.f32 %v602_v2, %v602_v2  ;;  %v2185_v23 = vadd.f32 %v1368_v18, %v1367_v10  ;;  %v613_v32 = vunpack.c.l.bf16 %v122_v44  ;;  %v127_v18 = vld [vmem:[%s17077_s1 + $0x380] sm:$0xff] }
  0x9f   :  { %2178 = vadd.xlane.f32.xlu0 %v2177_v12  ;;  %v614_v34 = vunpack.c.h.bf16 %v122_v44  ;;  %v1379_v37 = vmul.f32 %v611_v20, %v611_v20  ;;  %v1380_v48 = vmul.f32 %v612_v58, %v612_v58  ;;  %v607_v14 = vunpack.c.l.bf16 %v119_v1 }
  0xa0   :  { %v2192_v45 = vadd.f32 %v2191_v16, %v1374_v33  ;;  %v2186_v6 = vadd.f32 %v2185_v23, %v1369_v17  ;;  %v1381_v29 = vmul.f32 %v613_v32, %v613_v32  ;;  %v608_v35 = vunpack.c.h.bf16 %v119_v1  ;;  %v128_v16 = vld [vmem:[%s17077_s1 + $0x388] sm:$0xff] }
  0xa1   :  { %v1382_v13 = vmul.f32 %v614_v34, %v614_v34  ;;  %v2200_v36 = vadd.f32 %v1380_v48, %v1379_v37  ;;  %v609_v41 = vunpack.c.l.bf16 %v120_v52  ;;  %v610_v54 = vunpack.c.h.bf16 %v120_v52  ;;  %8736 = vmatpush2.bf16.xpose.msra.mxu0 %v11542_v63  ;;  %8777 = vmatpush2.bf16.xpose.msra.mxu1 %v11543_v47  ;;  %v130_v63 = vld [vmem:[%s17077_s1 + $0x398] sm:$0xff] }
  0xa2   :  { %2193 = vadd.xlane.f32.xlu1 %v2192_v45  ;;  %v2187_v38 = vadd.f32 %v2186_v6, %v1370_v27  ;;  %v1375_v15 = vmul.f32 %v607_v14, %v607_v14  ;;  %v1376_v60 = vmul.f32 %v608_v35, %v608_v35  ;;  %v619_v19 = vunpack.c.l.bf16 %v125_v24  ;;  %8737 = vmatprep.subr.bf16.mxu0 %v11544_v42  ;;  %v133_v27 = vld [vmem:[%s17077_s1 + $0x3b0] sm:$0xff]  ;;  %v134_v48 = vld [vmem:[%s17077_s1 + $0x3b8] sm:$0xff] }
  0xa3   :  { %v2201_v51 = vadd.f32 %v2200_v36, %v1381_v29  ;;  %v1377_v5 = vmul.f32 %v609_v41, %v609_v41  ;;  %v1378_v57 = vmul.f32 %v610_v54, %v610_v54  ;;  %v620_v28 = vunpack.c.h.bf16 %v125_v24  ;;  %8778 = vmatprep.subr.bf16.mxu1 %v11546_v50  ;;  %v131_v29 = vld [vmem:[%s17077_s1 + $0x3a0] sm:$0xff] }
  0xa4   :  { %2188 = vadd.xlane.f32.xlu0 %v2187_v38  ;;  %v2195_v8 = vadd.f32 %v1376_v60, %v1375_v15  ;;  %v621_v56 = vunpack.c.l.bf16 %v126_v49  ;;  %v622_v55 = vunpack.c.h.bf16 %v126_v49  ;;  %v1387_v25 = vmul.f32 %v619_v19, %v619_v19 }
  0xa5   :  { %v2202_v26 = vadd.f32 %v2201_v51, %v1382_v13  ;;  %v1388_v30 = vmul.f32 %v620_v28, %v620_v28  ;;  %v615_v44 = vunpack.c.l.bf16 %v123_v46  ;;  %v616_v1 = vunpack.c.h.bf16 %v123_v46 }
  0xa6   :  { %v2196_v9 = vadd.f32 %v2195_v8, %v1377_v5  ;;  %v1389_v53 = vmul.f32 %v621_v56, %v621_v56  ;;  %v1390_v33 = vmul.f32 %v622_v55, %v622_v55  ;;  %v617_v62 = vunpack.c.l.bf16 %v124_v21  ;;  %v132_v5 = vld [vmem:[%s17077_s1 + $0x3a8] sm:$0xff] }
  0xa7   :  { %2203 = vadd.xlane.f32.xlu1 %v2202_v26  ;;  %v2210_v47 = vadd.f32 %v1388_v30, %v1387_v25  ;;  %v618_v3 = vunpack.c.h.bf16 %v124_v21  ;;  %v1383_v2 = vmul.f32 %v615_v44, %v615_v44  ;;  %v1384_v10 = vmul.f32 %v616_v1, %v616_v1  ;;  %v7923_v25 = vld [vmem:[%s17078_s0] sm:$0xff]  ;;  %v7924_v26 = vld [vmem:[%s17078_s0 + $0x8] sm:$0xff]  ;;  %v137_v30 = vld [vmem:[%s17077_s1 + $0x3d0] sm:$0xff] }
  0xa8   :  { %v2197_v52 = vadd.f32 %v2196_v9, %v1378_v57  ;;  %v1385_v12 = vmul.f32 %v617_v62, %v617_v62  ;;  %v627_v17 = vunpack.c.l.bf16 %v129_v11  ;;  %v628_v20 = vunpack.c.h.bf16 %v129_v11 }
  0xa9   :  { %v2211_v58 = vadd.f32 %v2210_v47, %v1389_v53  ;;  %v1386_v24 = vmul.f32 %v618_v3, %v618_v3  ;;  %v2205_v42 = vadd.f32 %v1384_v10, %v1383_v2  ;;  %v629_v50 = vunpack.c.l.bf16 %v130_v63  ;;  %8738 = vmatpush2.bf16.xpose.msra.mxu0 %v11548_v61  ;;  %8779 = vmatpush2.bf16.xpose.msra.mxu1 %v11549_v31 }
  0xaa   :  { %2198 = vadd.xlane.f32.xlu0 %v2197_v52  ;;  %v630_v23 = vunpack.c.h.bf16 %v130_v63  ;;  %v1395_v32 = vmul.f32 %v627_v17, %v627_v17  ;;  %v1396_v34 = vmul.f32 %v628_v20, %v628_v20  ;;  %v623_v37 = vunpack.c.l.bf16 %v127_v18 }
  0xab   :  { %v2212_v14 = vadd.f32 %v2211_v58, %v1390_v33  ;;  %v2206_v49 = vadd.f32 %v2205_v42, %v1385_v12  ;;  %v1397_v45 = vmul.f32 %v629_v50, %v629_v50  ;;  %v624_v6 = vunpack.c.h.bf16 %v127_v18  ;;  %v13176_v33 = vpop.xlane.xlu1 %1948  ;;  %v138_v12 = vld [vmem:[%s17077_s1 + $0x3d8] sm:$0xff]  ;;  %v135_v42 = vld [vmem:[%s17077_s1 + $0x3c0] sm:$0xff] }
  0xac   :  { %v1398_v35 = vmul.f32 %v630_v23, %v630_v23  ;;  %v2220_v13 = vadd.f32 %v1396_v34, %v1395_v32  ;;  %v625_v36 = vunpack.c.l.bf16 %v128_v16  ;;  %v626_v41 = vunpack.c.h.bf16 %v128_v16  ;;  %v136_v32 = vld [vmem:[%s17077_s1 + $0x3c8] sm:$0xff] }
  0xad   :  { %2213 = vadd.xlane.f32.xlu1 %v2212_v14  ;;  %v2207_v54 = vadd.f32 %v2206_v49, %v1386_v24  ;;  %v1391_v46 = vmul.f32 %v623_v37, %v623_v37  ;;  %v1392_v21 = vmul.f32 %v624_v6, %v624_v6  ;;  %v635_v38 = vunpack.c.l.bf16 %v133_v27  ;;  %v139_v6 = vld [vmem:[%s17077_s1 + $0x3e0] sm:$0xff] }
  0xae   :  { %v2221_v15 = vadd.f32 %v2220_v13, %v1397_v45  ;;  %v1393_v60 = vmul.f32 %v625_v36, %v625_v36  ;;  %v1394_v19 = vmul.f32 %v626_v41, %v626_v41  ;;  %v636_v51 = vunpack.c.h.bf16 %v133_v27  ;;  %v142_v45 = vld [vmem:[%s17077_s1 + $0x3f8] sm:$0xff] }
  0xaf   :  { %2208 = vadd.xlane.f32.xlu0 %v2207_v54  ;;  %v2215_v57 = vadd.f32 %v1392_v21, %v1391_v46  ;;  %v637_v28 = vunpack.c.l.bf16 %v134_v48  ;;  %v638_v11 = vunpack.c.h.bf16 %v134_v48  ;;  %v1403_v61 = vmul.f32 %v635_v38, %v635_v38 }
  0xb0   :  { %v2222_v31 = vadd.f32 %v2221_v15, %v1398_v35  ;;  %v1404_v8 = vmul.f32 %v636_v51, %v636_v51  ;;  %v631_v56 = vunpack.c.l.bf16 %v131_v29  ;;  %v632_v55 = vunpack.c.h.bf16 %v131_v29  ;;  %v13210_v29 = vpop.xlane.xlu1 %1953  ;;  %v13212_v35 = vpop.xlane.xlu0 %1938 }
  0xb1   :  { %v2216_v44 = vadd.f32 %v2215_v57, %v1393_v60  ;;  %v1405_v1 = vmul.f32 %v637_v28, %v637_v28  ;;  %v1406_v9 = vmul.f32 %v638_v11, %v638_v11  ;;  %v633_v53 = vunpack.c.l.bf16 %v132_v5 }
  0xb2   :  { %2223 = vadd.xlane.f32.xlu1 %v2222_v31  ;;  %v2230_v62 = vadd.f32 %v1404_v8, %v1403_v61  ;;  %v634_v63 = vunpack.c.h.bf16 %v132_v5  ;;  %v1399_v47 = vmul.f32 %v631_v56, %v631_v56  ;;  %v1400_v3 = vmul.f32 %v632_v55, %v632_v55  ;;  %v140_v31 = vld [vmem:[%s17077_s1 + $0x3e8] sm:$0xff] }
  0xb3   :  { %v2217_v2 = vadd.f32 %v2216_v44, %v1394_v19  ;;  %v1401_v10 = vmul.f32 %v633_v53, %v633_v53  ;;  %v13178_v18 = vcombine.high %v7923_v25, %v7923_v25  ;;  %v13180_v52 = vcombine.high %v7924_v26, %v7924_v26 }
  0xb4   :  { %v2231_v17 = vadd.f32 %v2230_v62, %v1405_v1  ;;  %v1402_v20 = vmul.f32 %v634_v63, %v634_v63  ;;  %v2225_v58 = vadd.f32 %v1400_v3, %v1399_v47  ;;  %v10929_v24 = vcombine.low %v13034_v7, %v13022_v40  ;;  %v13226_v53 = vpop.xlane.xlu1 %1963  ;;  %v13228_v62 = vpop.xlane.xlu0 %1943 }
  0xb5   :  { %2218 = vadd.xlane.f32.xlu0 %v2217_v2  ;;  %8739 = vmatprep.mubr.bf16.mxu0 %v13178_v18  ;;  %v10930_v50 = vcombine.high %v13034_v7, %v13022_v40  ;;  %v10931_v16 = vcombine.low %v13050_v22, %v13029_v39  ;;  %v10932_v27 = vcombine.high %v13050_v22, %v13029_v39  ;;  %v643_v23 = vunpack.c.l.bf16 %v137_v30  ;;  %v141_v40 = vld [vmem:[%s17077_s1 + $0x3f0] sm:$0xff] }
  0xb6   :  { %v2232_v34 = vadd.f32 %v2231_v17, %v1406_v9  ;;  %v2226_v37 = vadd.f32 %v2225_v58, %v1401_v10  ;;  %8780 = vmatprep.mubr.bf16.mxu1 %v13180_v52  ;;  %v644_v48 = vunpack.c.h.bf16 %v137_v30  ;;  %v645_v14 = vunpack.c.l.bf16 %v138_v12  ;;  %v145_v9 = vld [vmem:[%s17077_s1 + $0x410] sm:$0xff]  ;;  %v146_v10 = vld [vmem:[%s17077_s1 + $0x418] sm:$0xff] }
  0xb7   :  { %8789 = vmatprep.subr.bf16.mxu0 %v10930_v50  ;;  %8830 = vmatprep.subr.bf16.mxu1 %v10932_v27  ;;  %v646_v7 = vunpack.c.h.bf16 %v138_v12  ;;  %v1411_v49 = vmul.f32 %v643_v23, %v643_v23  ;;  %v639_v39 = vunpack.c.l.bf16 %v135_v42  ;;  %v640_v22 = vunpack.c.h.bf16 %v135_v42 }
  0xb8   :  { %2233 = vadd.xlane.f32.xlu1 %v2232_v34  ;;  %v2227_v13 = vadd.f32 %v2226_v37, %v1402_v20  ;;  %v1412_v36 = vmul.f32 %v644_v48, %v644_v48  ;;  %v1413_v41 = vmul.f32 %v645_v14, %v645_v14  ;;  %v641_v54 = vunpack.c.l.bf16 %v136_v32  ;;  %v144_v48 = vld [vmem:[%s17077_s1 + $0x408] sm:$0xff] }
  0xb9   :  { %v1414_v46 = vmul.f32 %v646_v7, %v646_v7  ;;  %v642_v21 = vunpack.c.h.bf16 %v136_v32  ;;  %v1407_v38 = vmul.f32 %v639_v39, %v639_v39  ;;  %v1408_v15 = vmul.f32 %v640_v22, %v640_v22 }
  0xba   :  { %2228 = vadd.xlane.f32.xlu0 %v2227_v13  ;;  %v2240_v60 = vadd.f32 %v1412_v36, %v1411_v49  ;;  %v1409_v19 = vmul.f32 %v641_v54, %v641_v54  ;;  %v13214_v51 = vcombine.low %v7923_v25, %v7923_v25  ;;  %v13216_v5 = vcombine.low %v7924_v26, %v7924_v26  ;;  %v13241_v13 = vpop.xlane.xlu1 %1973  ;;  %v13243_v36 = vpop.xlane.xlu0 %1958 }
  0xbb   :  { %v1410_v57 = vmul.f32 %v642_v21, %v642_v21  ;;  %v2235_v28 = vadd.f32 %v1408_v15, %v1407_v38  ;;  %v651_v11 = vunpack.c.l.bf16 %v141_v40  ;;  %v652_v61 = vunpack.c.h.bf16 %v141_v40  ;;  %v149_v38 = vld [vmem:[%s17077_s1 + $0x430] sm:$0xff] }
  0xbc   :  { %v2241_v8 = vadd.f32 %v2240_v60, %v1413_v41  ;;  %8740 = vmatmul.mubr.bf16.vlgmr.msra.gmra.mxu0 %v13214_v51  ;;  %8781 = vmatmul.mubr.bf16.vlgmr.msra.gmra.mxu1 %v13216_v5  ;;  %v653_v56 = vunpack.c.l.bf16 %v142_v45  ;;  %v654_v55 = vunpack.c.h.bf16 %v142_v45  ;;  %v647_v30 = vunpack.c.l.bf16 %v139_v6 }
  0xbd   :  { %v2236_v25 = vadd.f32 %v2235_v28, %v1409_v19  ;;  %8790 = vmatpush1.bf16.xpose.msra.mxu0 %v10929_v24  ;;  %8831 = vmatpush1.bf16.xpose.msra.mxu1 %v10931_v16  ;;  %v1419_v26 = vmul.f32 %v651_v11, %v651_v11  ;;  %v1420_v44 = vmul.f32 %v652_v61, %v652_v61  ;;  %v648_v1 = vunpack.c.h.bf16 %v139_v6  ;;  %v143_v24 = vld [vmem:[%s17077_s1 + $0x400] sm:$0xff]  ;;  %v150_v28 = vld [vmem:[%s17077_s1 + $0x438] sm:$0xff] }
  0xbe   :  { %v2242_v63 = vadd.f32 %v2241_v8, %v1414_v46  ;;  %v1421_v47 = vmul.f32 %v653_v56, %v653_v56  ;;  %v1422_v3 = vmul.f32 %v654_v55, %v654_v55  ;;  %v649_v2 = vunpack.c.l.bf16 %v140_v31  ;;  %8821 = vmatprep.mubr.bf16.mxu0 %v13178_v18  ;;  %8862 = vmatprep.mubr.bf16.mxu1 %v13180_v52  ;;  %v147_v56 = vld [vmem:[%s17077_s1 + $0x420] sm:$0xff] }
  0xbf   :  { %v2237_v12 = vadd.f32 %v2236_v25, %v1410_v57  ;;  %v2250_v17 = vadd.f32 %v1420_v44, %v1419_v26  ;;  %v650_v20 = vunpack.c.h.bf16 %v140_v31  ;;  %v1415_v58 = vmul.f32 %v647_v30, %v647_v30  ;;  %v148_v25 = vld [vmem:[%s17077_s1 + $0x428] sm:$0xff] }
  0xc0   :  { %2243 = vadd.xlane.f32.xlu1 %v2242_v63  ;;  %v1416_v42 = vmul.f32 %v648_v1, %v648_v1  ;;  %v1417_v50 = vmul.f32 %v649_v2, %v649_v2  ;;  %v659_v16 = vunpack.c.l.bf16 %v145_v9  ;;  %v660_v27 = vunpack.c.h.bf16 %v145_v9 }
  0xc1   :  { %2238 = vadd.xlane.f32.xlu0 %v2237_v12  ;;  %v2251_v23 = vadd.f32 %v2250_v17, %v1421_v47  ;;  %v1418_v32 = vmul.f32 %v650_v20, %v650_v20  ;;  %v661_v34 = vunpack.c.l.bf16 %v146_v10  ;;  %v662_v37 = vunpack.c.h.bf16 %v146_v10  ;;  %v13270_v10 = vpop.xlane.xlu0 %1968 }
  0xc2   :  { %v2245_v14 = vadd.f32 %v1416_v42, %v1415_v58  ;;  %v1427_v40 = vmul.f32 %v659_v16, %v659_v16  ;;  %v1428_v7 = vmul.f32 %v660_v27, %v660_v27  ;;  %v655_v49 = vunpack.c.l.bf16 %v143_v24 }
  0xc3   :  { %v2252_v39 = vadd.f32 %v2251_v23, %v1422_v3  ;;  %v1429_v22 = vmul.f32 %v661_v34, %v661_v34  ;;  %v1430_v45 = vmul.f32 %v662_v37, %v662_v37  ;;  %v656_v6 = vunpack.c.h.bf16 %v143_v24  ;;  %v154_v24 = vld [vmem:[%s17077_s1 + $0x458] sm:$0xff]  ;;  %v151_v23 = vld [vmem:[%s17077_s1 + $0x440] sm:$0xff] }
  0xc4   :  { %v2246_v41 = vadd.f32 %v2245_v14, %v1417_v50  ;;  %v2260_v54 = vadd.f32 %v1428_v7, %v1427_v40  ;;  %v657_v46 = vunpack.c.l.bf16 %v144_v48  ;;  %v658_v21 = vunpack.c.h.bf16 %v144_v48 }
  0xc5   :  { %2253 = vadd.xlane.f32.xlu1 %v2252_v39  ;;  %v1423_v15 = vmul.f32 %v655_v49, %v655_v49  ;;  %v1424_v60 = vmul.f32 %v656_v6, %v656_v6  ;;  %v10925_v19 = vcombine.low %v13001_v4, %v12991_v43  ;;  %v10926_v57 = vcombine.high %v13001_v4, %v12991_v43  ;;  %v152_v39 = vld [vmem:[%s17077_s1 + $0x448] sm:$0xff] }
  0xc6   :  { %v2247_v11 = vadd.f32 %v2246_v41, %v1418_v32  ;;  %v2261_v61 = vadd.f32 %v2260_v54, %v1429_v22  ;;  %v1425_v31 = vmul.f32 %v657_v46, %v657_v46  ;;  %v1426_v8 = vmul.f32 %v658_v21, %v658_v21 }
  0xc7   :  { %v2255_v55 = vadd.f32 %v1424_v60, %v1423_v15  ;;  %8791 = vmatprep.subr.bf16.mxu0 %v10926_v57  ;;  %v10927_v30 = vcombine.low %v13006_v0, %v12996_v59  ;;  %v10928_v43 = vcombine.high %v13006_v0, %v12996_v59  ;;  %v667_v4 = vunpack.c.l.bf16 %v149_v38  ;;  %v153_v59 = vld [vmem:[%s17077_s1 + $0x450] sm:$0xff]  ;;  %v13268_v0 = vpop.xlane.xlu1 %1983  ;;  %v13283_v60 = vpop.xlane.xlu0 %1978 }
  0xc8   :  { %2248 = vadd.xlane.f32.xlu0 %v2247_v11  ;;  %v2262_v26 = vadd.f32 %v2261_v61, %v1430_v45  ;;  %8792 = vmatpush1.bf16.xpose.msra.mxu0 %v10925_v19  ;;  %v668_v44 = vunpack.c.h.bf16 %v149_v38  ;;  %v669_v1 = vunpack.c.l.bf16 %v150_v28  ;;  %v670_v9 = vunpack.c.h.bf16 %v150_v28 }
  0xc9   :  { %v2256_v63 = vadd.f32 %v2255_v55, %v1425_v31  ;;  %8832 = vmatprep.subr.bf16.mxu1 %v10928_v43  ;;  %v1435_v47 = vmul.f32 %v667_v4, %v667_v4  ;;  %v663_v3 = vunpack.c.l.bf16 %v147_v56  ;;  %v664_v2 = vunpack.c.h.bf16 %v147_v56  ;;  %v12420_v56 = vld [vmem:[%s17077_s1 + $0x2b0] sm:$0xff]  ;;  %v12421_v55 = vld [vmem:[%s17077_s1 + $0x2a0] sm:$0xff]  ;;  %v158_v4 = vld [vmem:[%s17077_s1 + $0x478] sm:$0xff] }
  0xca   :  { %2263 = vadd.xlane.f32.xlu1 %v2262_v26  ;;  %8833 = vmatpush1.bf16.xpose.msra.mxu1 %v10927_v30  ;;  %v1436_v12 = vmul.f32 %v668_v44, %v668_v44  ;;  %v1437_v17 = vmul.f32 %v669_v1, %v669_v1  ;;  %v1438_v20 = vmul.f32 %v670_v9, %v670_v9  ;;  %v665_v58 = vunpack.c.l.bf16 %v148_v25  ;;  %v157_v43 = vld [vmem:[%s17077_s1 + $0x470] sm:$0xff]  ;;  %v155_v1 = vld [vmem:[%s17077_s1 + $0x460] sm:$0xff] }
  0xcb   :  { %v2257_v42 = vadd.f32 %v2256_v63, %v1426_v8  ;;  %v666_v50 = vunpack.c.h.bf16 %v148_v25  ;;  %v1431_v16 = vmul.f32 %v663_v3, %v663_v3  ;;  %v1432_v27 = vmul.f32 %v664_v2, %v664_v2  ;;  %v13281_v15 = vpop.xlane.xlu1 %1993  ;;  %v12423_v3 = vld [vmem:[%s17077_s1 + $0x2a8] sm:$0xff] }
  0xcc   :  { %v2270_v32 = vadd.f32 %v1436_v12, %v1435_v47  ;;  %v1433_v34 = vmul.f32 %v665_v58, %v665_v58  ;;  %v675_v37 = vunpack.c.l.bf16 %v153_v59  ;;  %v676_v48 = vunpack.c.h.bf16 %v153_v59  ;;  %v12422_v47 = vld [vmem:[%s17077_s1 + $0x2b8] sm:$0xff]  ;;  %v11568_v12 = vld [vmem:[%s17077_s1 + $0x284] ss:$16 sps:$4 sm:$0xff]  }
  0xcd   :  { %2258 = vadd.xlane.f32.xlu0 %v2257_v42  ;;  %v1434_v14 = vmul.f32 %v666_v50, %v666_v50  ;;  %v2265_v40 = vadd.f32 %v1432_v27, %v1431_v16  ;;  %v677_v7 = vunpack.c.l.bf16 %v154_v24  ;;  %v678_v49 = vunpack.c.h.bf16 %v154_v24  ;;  %v156_v50 = vld [vmem:[%s17077_s1 + $0x468] sm:$0xff] }
  0xce   :  { %v2271_v22 = vadd.f32 %v2270_v32, %v1437_v17  ;;  %v1443_v45 = vmul.f32 %v675_v37, %v675_v37  ;;  %v1444_v6 = vmul.f32 %v676_v48, %v676_v48  ;;  %v671_v41 = vunpack.c.l.bf16 %v151_v23  ;;  %v11571_v17 = vld [vmem:[%s17077_s1 + $0x28c] ss:$16 sps:$4 sm:$0xff]  }
  0xcf   :  { %v2266_v54 = vadd.f32 %v2265_v40, %v1433_v34  ;;  %v1445_v46 = vmul.f32 %v677_v7, %v677_v7  ;;  %v1446_v21 = vmul.f32 %v678_v49, %v678_v49  ;;  %v672_v38 = vunpack.c.h.bf16 %v151_v23  ;;  %v13315_v32 = vpop.xlane.xlu1 %2003  ;;  %v13317_v34 = vpop.xlane.xlu0 %1988  ;;  %v161_v7 = vld [vmem:[%s17077_s1 + $0x490] sm:$0xff] }
  0xd0   :  { %v2272_v19 = vadd.f32 %v2271_v22, %v1438_v20  ;;  %v2280_v57 = vadd.f32 %v1444_v6, %v1443_v45  ;;  %v673_v28 = vunpack.c.l.bf16 %v152_v39  ;;  %v674_v11 = vunpack.c.h.bf16 %v152_v39 }
  0xd1   :  { %v2267_v61 = vadd.f32 %v2266_v54, %v1434_v14  ;;  %v1439_v31 = vmul.f32 %v671_v41, %v671_v41  ;;  %v1440_v8 = vmul.f32 %v672_v38, %v672_v38  ;;  %v10921_v30 = vcombine.low %v12421_v55, %v12420_v56 }
  0xd2   :  { %2273 = vadd.xlane.f32.xlu1 %v2272_v19  ;;  %v2281_v25 = vadd.f32 %v2280_v57, %v1445_v46  ;;  %v1441_v26 = vmul.f32 %v673_v28, %v673_v28  ;;  %v10922_v44 = vcombine.high %v12421_v55, %v12420_v56  ;;  %v1442_v9 = vmul.f32 %v674_v11, %v674_v11  ;;  %v162_v46 = vld [vmem:[%s17077_s1 + $0x498] sm:$0xff]  ;;  %v159_v19 = vld [vmem:[%s17077_s1 + $0x480] sm:$0xff] }
  0xd3   :  { %2268 = vadd.xlane.f32.xlu0 %v2267_v61  ;;  %v2275_v63 = vadd.f32 %v1440_v8, %v1439_v31  ;;  %v10923_v2 = vcombine.low %v12423_v3, %v12422_v47  ;;  %v10924_v59 = vcombine.high %v12423_v3, %v12422_v47  ;;  %v683_v58 = vunpack.c.l.bf16 %v157_v43  ;;  %v11566_v57 = vld [vmem:[%s17077_s1 + $0x280] ss:$16 sps:$4 sm:$0xff]   ;;  %v160_v8 = vld [vmem:[%s17077_s1 + $0x488] sm:$0xff] }
  0xd4   :  { %v2282_v20 = vadd.f32 %v2281_v25, %v1446_v21  ;;  %8793 = vmatprep.subr.bf16.mxu0 %v10922_v44  ;;  %v684_v24 = vunpack.c.h.bf16 %v157_v43  ;;  %v685_v42 = vunpack.c.l.bf16 %v158_v4  ;;  %v686_v27 = vunpack.c.h.bf16 %v158_v4  ;;  %v11569_v56 = vld [vmem:[%s17077_s1 + $0x288] ss:$16 sps:$4 sm:$0xff]   ;;  %v11574_v4 = vld [vmem:[%s17077_s1 + $0x264] ss:$16 sps:$4 sm:$0xff]   ;;  %v11577_v25 = vld [vmem:[%s17077_s1 + $0x26c] ss:$16 sps:$4 sm:$0xff]   ;;  %v13345_v44 = vpop.xlane.xlu0 %1998 }
  0xd5   :  { %v2276_v16 = vadd.f32 %v2275_v63, %v1441_v26  ;;  %8834 = vmatprep.subr.bf16.mxu1 %v10924_v59  ;;  %8794 = vmatpush1.bf16.xpose.msra.mxu0 %v10921_v30  ;;  %v679_v23 = vunpack.c.l.bf16 %v155_v1  ;;  %v1451_v37 = vmul.f32 %v683_v58, %v683_v58  ;;  %v680_v40 = vunpack.c.h.bf16 %v155_v1  ;;  %v13343_v26 = vpop.xlane.xlu1 %2013 }
  0xd6   :  { %2283 = vadd.xlane.f32.xlu1 %v2282_v20  ;;  %8835 = vmatpush1.bf16.xpose.msra.mxu1 %v10923_v2  ;;  %v1452_v48 = vmul.f32 %v684_v24, %v684_v24  ;;  %v1453_v14 = vmul.f32 %v685_v42, %v685_v42  ;;  %v681_v39 = vunpack.c.l.bf16 %v156_v50  ;;  %v682_v22 = vunpack.c.h.bf16 %v156_v50  ;;  %v166_v50 = vld [vmem:[%s17077_s1 + $0x4b8] sm:$0xff] }
  0xd7   :  { %v2277_v49 = vadd.f32 %v2276_v16, %v1442_v9  ;;  %8795 = vmatprep.subr.bf16.mxu0 %v11568_v12  ;;  %8836 = vmatprep.subr.bf16.mxu1 %v11571_v17  ;;  %v1454_v45 = vmul.f32 %v686_v27, %v686_v27  ;;  %v1447_v41 = vmul.f32 %v679_v23, %v679_v23  ;;  %v691_v38 = vunpack.c.l.bf16 %v161_v7  ;;  %v165_v17 = vld [vmem:[%s17077_s1 + $0x4b0] sm:$0xff] }
  0xd8   :  { %v2290_v6 = vadd.f32 %v1452_v48, %v1451_v37  ;;  %v1448_v54 = vmul.f32 %v680_v40, %v680_v40  ;;  %v1449_v21 = vmul.f32 %v681_v39, %v681_v39  ;;  %v1450_v11 = vmul.f32 %v682_v22, %v682_v22  ;;  %v164_v22 = vld [vmem:[%s17077_s1 + $0x4a8] sm:$0xff] }
  0xd9   :  { %2278 = vadd.xlane.f32.xlu0 %v2277_v49  ;;  %v692_v31 = vunpack.c.h.bf16 %v161_v7  ;;  %v693_v55 = vunpack.c.l.bf16 %v162_v46  ;;  %v694_v30 = vunpack.c.h.bf16 %v162_v46  ;;  %v1459_v43 = vmul.f32 %v691_v38, %v691_v38  ;;  %v11575_v38 = vld [vmem:[%s17077_s1 + $0x268] ss:$16 sps:$4 sm:$0xff]  }
  0xda   :  { %v2291_v28 = vadd.f32 %v2290_v6, %v1453_v14  ;;  %v2285_v61 = vadd.f32 %v1448_v54, %v1447_v41  ;;  %v687_v47 = vunpack.c.l.bf16 %v159_v19  ;;  %v688_v59 = vunpack.c.h.bf16 %v159_v19  ;;  %v163_v14 = vld [vmem:[%s17077_s1 + $0x4a0] sm:$0xff]  ;;  %v13362_v6 = vpop.xlane.xlu1 %2023  ;;  %v13364_v41 = vpop.xlane.xlu0 %2008 }
  0xdb   :  { %v1460_v63 = vmul.f32 %v692_v31, %v692_v31  ;;  %v1461_v3 = vmul.f32 %v693_v55, %v693_v55  ;;  %v1462_v2 = vmul.f32 %v694_v30, %v694_v30  ;;  %v689_v12 = vunpack.c.l.bf16 %v160_v8  ;;  %v169_v30 = vld [vmem:[%s17077_s1 + $0x4d0] sm:$0xff] }
  0xdc   :  { %v2292_v1 = vadd.f32 %v2291_v28, %v1454_v45  ;;  %v2286_v9 = vadd.f32 %v2285_v61, %v1449_v21  ;;  %v690_v24 = vunpack.c.h.bf16 %v160_v8  ;;  %v1455_v42 = vmul.f32 %v687_v47, %v687_v47  ;;  %v11572_v45 = vld [vmem:[%s17077_s1 + $0x260] ss:$16 sps:$4 sm:$0xff]   ;;  %v11580_v61 = vld [vmem:[%s17077_s1 + $0x244] ss:$16 sps:$4 sm:$0xff]  }
  0xdd   :  { %8796 = vmatpush1.bf16.xpose.msra.mxu0 %v11566_v57  ;;  %v2300_v58 = vadd.f32 %v1460_v63, %v1459_v43  ;;  %v1456_v16 = vmul.f32 %v688_v59, %v688_v59  ;;  %v1457_v27 = vmul.f32 %v689_v12, %v689_v12  ;;  %v699_v37 = vunpack.c.l.bf16 %v165_v17  ;;  %v170_v43 = vld [vmem:[%s17077_s1 + $0x4d8] sm:$0xff] }
  0xde   :  { %2293 = vadd.xlane.f32.xlu1 %v2292_v1  ;;  %v2287_v20 = vadd.f32 %v2286_v9, %v1450_v11  ;;  %8837 = vmatpush1.bf16.xpose.msra.mxu1 %v11569_v56  ;;  %v700_v48 = vunpack.c.h.bf16 %v165_v17  ;;  %v1458_v40 = vmul.f32 %v690_v24, %v690_v24  ;;  %v701_v49 = vunpack.c.l.bf16 %v166_v50  ;;  %v168_v17 = vld [vmem:[%s17077_s1 + $0x4c8] sm:$0xff] }
  0xdf   :  { %8797 = vmatprep.subr.bf16.mxu0 %v11574_v4  ;;  %8838 = vmatprep.subr.bf16.mxu1 %v11577_v25  ;;  %v2301_v23 = vadd.f32 %v2300_v58, %v1461_v3  ;;  %v2295_v7 = vadd.f32 %v1456_v16, %v1455_v42  ;;  %v702_v39 = vunpack.c.h.bf16 %v166_v50  ;;  %v1467_v46 = vmul.f32 %v699_v37, %v699_v37  ;;  %v11583_v4 = vld [vmem:[%s17077_s1 + $0x24c] ss:$16 sps:$4 sm:$0xff]   ;;  %v167_v3 = vld [vmem:[%s17077_s1 + $0x4c0] sm:$0xff]  ;;  %v13389_v58 = vpop.xlane.xlu0 %2018 }
  0xe0   :  { %2288 = vadd.xlane.f32.xlu0 %v2287_v20  ;;  %v1468_v21 = vmul.f32 %v700_v48, %v700_v48  ;;  %v1469_v57 = vmul.f32 %v701_v49, %v701_v49  ;;  %v695_v11 = vunpack.c.l.bf16 %v163_v14  ;;  %v696_v8 = vunpack.c.h.bf16 %v163_v14  ;;  %v13387_v20 = vpop.xlane.xlu1 %2033  ;;  %v11578_v14 = vld [vmem:[%s17077_s1 + $0x240] ss:$16 sps:$4 sm:$0xff]  }
  0xe1   :  { %v2302_v54 = vadd.f32 %v2301_v23, %v1462_v2  ;;  %v2296_v19 = vadd.f32 %v2295_v7, %v1457_v27  ;;  %v1470_v28 = vmul.f32 %v702_v39, %v702_v39  ;;  %v697_v56 = vunpack.c.l.bf16 %v164_v22  ;;  %v173_v39 = vld [vmem:[%s17077_s1 + $0x4f0] sm:$0xff] }
  0xe2   :  { %v2310_v31 = vadd.f32 %v1468_v21, %v1467_v46  ;;  %v698_v55 = vunpack.c.h.bf16 %v164_v22  ;;  %v1463_v1 = vmul.f32 %v695_v11, %v695_v11  ;;  %v1464_v63 = vmul.f32 %v696_v8, %v696_v8  ;;  %v11581_v22 = vld [vmem:[%s17077_s1 + $0x248] ss:$16 sps:$4 sm:$0xff]  }
  0xe3   :  { %2303 = vadd.xlane.f32.xlu1 %v2302_v54  ;;  %v2297_v25 = vadd.f32 %v2296_v19, %v1458_v40  ;;  %v1465_v47 = vmul.f32 %v697_v56, %v697_v56  ;;  %v707_v2 = vunpack.c.l.bf16 %v169_v30  ;;  %v708_v59 = vunpack.c.h.bf16 %v169_v30  ;;  %v11586_v19 = vld [vmem:[%s17077_s1 + $0x224] ss:$16 sps:$4 sm:$0xff]   ;;  %v13414_v30 = vpop.xlane.xlu0 %2028 }
  0xe4   :  { %v2311_v9 = vadd.f32 %v2310_v31, %v1469_v57  ;;  %v709_v12 = vunpack.c.l.bf16 %v170_v43  ;;  %v1466_v42 = vmul.f32 %v698_v55, %v698_v55  ;;  %v2305_v50 = vadd.f32 %v1464_v63, %v1463_v1  ;;  %v11589_v57 = vld [vmem:[%s17077_s1 + $0x22c] ss:$16 sps:$4 sm:$0xff]   ;;  %v171_v31 = vld [vmem:[%s17077_s1 + $0x4e0] sm:$0xff]  ;;  %v13412_v55 = vpop.xlane.xlu1 %2043 }
  0xe5   :  { %8798 = vmatpush1.bf16.xpose.msra.mxu0 %v11572_v45  ;;  %2298 = vadd.xlane.f32.xlu0 %v2297_v25  ;;  %v710_v16 = vunpack.c.h.bf16 %v170_v43  ;;  %v1475_v27 = vmul.f32 %v707_v2, %v707_v2  ;;  %v1476_v23 = vmul.f32 %v708_v59, %v708_v59  ;;  %v703_v48 = vunpack.c.l.bf16 %v167_v3 }
  0xe6   :  { %8839 = vmatpush1.bf16.xpose.msra.mxu1 %v11575_v38  ;;  %8799 = vmatprep.subr.bf16.mxu0 %v11580_v61  ;;  %v2312_v24 = vadd.f32 %v2311_v9, %v1470_v28  ;;  %v1477_v37 = vmul.f32 %v709_v12, %v709_v12  ;;  %v2306_v40 = vadd.f32 %v2305_v50, %v1465_v47  ;;  %v704_v7 = vunpack.c.h.bf16 %v167_v3  ;;  %v174_v38 = vld [vmem:[%s17077_s1 + $0x4f8] sm:$0xff]  ;;  %v172_v9 = vld [vmem:[%s17077_s1 + $0x4e8] sm:$0xff] }
  0xe7   :  { %8840 = vmatprep.subr.bf16.mxu1 %v11583_v4  ;;  %v705_v49 = vunpack.c.l.bf16 %v168_v17  ;;  %v1478_v45 = vmul.f32 %v710_v16, %v710_v16  ;;  %v2320_v54 = vadd.f32 %v1476_v23, %v1475_v27  ;;  %v706_v46 = vunpack.c.h.bf16 %v168_v17  ;;  %v11584_v23 = vld [vmem:[%s17077_s1 + $0x220] ss:$16 sps:$4 sm:$0xff]  }
  0xe8   :  { %2313 = vadd.xlane.f32.xlu1 %v2312_v24  ;;  %v1471_v21 = vmul.f32 %v703_v48, %v703_v48  ;;  %v2307_v28 = vadd.f32 %v2306_v40, %v1466_v42  ;;  %v1472_v11 = vmul.f32 %v704_v7, %v704_v7  ;;  %v715_v56 = vunpack.c.l.bf16 %v173_v39  ;;  %v177_v42 = vld [vmem:[%s17077_s1 + $0x510] sm:$0xff]  ;;  %v178_v7 = vld [vmem:[%s17077_s1 + $0x518] sm:$0xff] }
  0xe9   :  { %v1473_v61 = vmul.f32 %v705_v49, %v705_v49  ;;  %v2321_v8 = vadd.f32 %v2320_v54, %v1477_v37  ;;  %v1474_v43 = vmul.f32 %v706_v46, %v706_v46  ;;  %v716_v25 = vunpack.c.h.bf16 %v173_v39  ;;  %v11587_v49 = vld [vmem:[%s17077_s1 + $0x228] ss:$16 sps:$4 sm:$0xff]   ;;  %v11592_v39 = vld [vmem:[%s17077_s1 + $0x204] ss:$16 sps:$4 sm:$0xff]   ;;  %v11595_v46 = vld [vmem:[%s17077_s1 + $0x20c] ss:$16 sps:$4 sm:$0xff]  }
  0xea   :  { %2308 = vadd.xlane.f32.xlu0 %v2307_v28  ;;  %v2315_v4 = vadd.f32 %v1472_v11, %v1471_v21  ;;  %v717_v1 = vunpack.c.l.bf16 %v174_v38  ;;  %v718_v47 = vunpack.c.h.bf16 %v174_v38  ;;  %v1483_v3 = vmul.f32 %v715_v56, %v715_v56  ;;  %v175_v54 = vld [vmem:[%s17077_s1 + $0x500] sm:$0xff]  ;;  %v13440_v21 = vpop.xlane.xlu1 %2053  ;;  %v13442_v38 = vpop.xlane.xlu0 %2038 }
  0xeb   :  { %v2322_v63 = vadd.f32 %v2321_v8, %v1478_v45  ;;  %v711_v2 = vunpack.c.l.bf16 %v171_v31  ;;  %v1484_v12 = vmul.f32 %v716_v25, %v716_v25  ;;  %v712_v24 = vunpack.c.h.bf16 %v171_v31 }
  0xec   :  { %v2316_v59 = vadd.f32 %v2315_v4, %v1473_v61  ;;  %v1485_v17 = vmul.f32 %v717_v1, %v717_v1  ;;  %v713_v50 = vunpack.c.l.bf16 %v172_v9  ;;  %v714_v16 = vunpack.c.h.bf16 %v172_v9  ;;  %v176_v61 = vld [vmem:[%s17077_s1 + $0x508] sm:$0xff] }
  0xed   :  { %8800 = vmatpush1.bf16.xpose.msra.mxu0 %v11578_v14  ;;  %2323 = vadd.xlane.f32.xlu1 %v2322_v63  ;;  %v1479_v27 = vmul.f32 %v711_v2, %v711_v2  ;;  %v1486_v48 = vmul.f32 %v718_v47, %v718_v47  ;;  %v2330_v14 = vadd.f32 %v1484_v12, %v1483_v3  ;;  %v723_v45 = vunpack.c.l.bf16 %v177_v42  ;;  %v181_v2 = vld [vmem:[%s17077_s1 + $0x530] sm:$0xff] }
  0xee   :  { %8841 = vmatpush1.bf16.xpose.msra.mxu1 %v11581_v22  ;;  %8801 = vmatprep.subr.bf16.mxu0 %v11586_v19  ;;  %v2317_v37 = vadd.f32 %v2316_v59, %v1474_v43  ;;  %v1480_v40 = vmul.f32 %v712_v24, %v712_v24  ;;  %v1481_v22 = vmul.f32 %v713_v50, %v713_v50  ;;  %v724_v11 = vunpack.c.h.bf16 %v177_v42  ;;  %v182_v42 = vld [vmem:[%s17077_s1 + $0x538] sm:$0xff] }
  0xef   :  { %8842 = vmatprep.subr.bf16.mxu1 %v11589_v57  ;;  %v2331_v19 = vadd.f32 %v2330_v14, %v1485_v17  ;;  %v1482_v57 = vmul.f32 %v714_v16, %v714_v16  ;;  %v725_v31 = vunpack.c.l.bf16 %v178_v7  ;;  %v726_v8 = vunpack.c.h.bf16 %v178_v7  ;;  %v179_v7 = vld [vmem:[%s17077_s1 + $0x520] sm:$0xff] }
  0xf0   :  { %2318 = vadd.xlane.f32.xlu0 %v2317_v37  ;;  %v2325_v28 = vadd.f32 %v1480_v40, %v1479_v27  ;;  %v1491_v56 = vmul.f32 %v723_v45, %v723_v45  ;;  %v1492_v25 = vmul.f32 %v724_v11, %v724_v11  ;;  %v719_v1 = vunpack.c.l.bf16 %v175_v54  ;;  %v11590_v27 = vld [vmem:[%s17077_s1 + $0x200] ss:$16 sps:$4 sm:$0xff]   ;;  %v13458_v37 = vpop.xlane.xlu0 %2048 }
  0xf1   :  { %v2332_v43 = vadd.f32 %v2331_v19, %v1486_v48  ;;  %v1493_v9 = vmul.f32 %v725_v31, %v725_v31  ;;  %v1494_v63 = vmul.f32 %v726_v8, %v726_v8  ;;  %v720_v47 = vunpack.c.h.bf16 %v175_v54  ;;  %v11598_v19 = vld [vmem:[%s17077_s1 + $0x3e4] ss:$16 sps:$4 sm:$0xff]  }
  0xf2   :  { %v2326_v4 = vadd.f32 %v2325_v28, %v1481_v22  ;;  %v721_v3 = vunpack.c.l.bf16 %v176_v61  ;;  %v2340_v12 = vadd.f32 %v1492_v25, %v1491_v56  ;;  %v722_v17 = vunpack.c.h.bf16 %v176_v61 }
  0xf3   :  { %2333 = vadd.xlane.f32.xlu1 %v2332_v43  ;;  %v1487_v24 = vmul.f32 %v719_v1, %v719_v1  ;;  %v1488_v50 = vmul.f32 %v720_v47, %v720_v47  ;;  %v731_v14 = vunpack.c.l.bf16 %v181_v2  ;;  %v732_v40 = vunpack.c.h.bf16 %v181_v2  ;;  %v185_v47 = vld [vmem:[%s17077_s1 + $0x550] sm:$0xff] }
  0xf4   :  { %v2327_v59 = vadd.f32 %v2326_v4, %v1482_v57  ;;  %v1489_v16 = vmul.f32 %v721_v3, %v721_v3  ;;  %v2341_v48 = vadd.f32 %v2340_v12, %v1493_v9  ;;  %v733_v45 = vunpack.c.l.bf16 %v182_v42  ;;  %v11601_v57 = vld [vmem:[%s17077_s1 + $0x3ec] ss:$16 sps:$4 sm:$0xff]   ;;  %v13483_v12 = vpop.xlane.xlu0 %2058 }
  0xf5   :  { %8802 = vmatpush1.bf16.xpose.msra.mxu0 %v11584_v23  ;;  %v13456_v23 = vpop.xlane.xlu1 %2063  ;;  %v2335_v22 = vadd.f32 %v1488_v50, %v1487_v24  ;;  %v734_v54 = vunpack.c.h.bf16 %v182_v42  ;;  %v1499_v11 = vmul.f32 %v731_v14, %v731_v14  ;;  %v1500_v61 = vmul.f32 %v732_v40, %v732_v40  ;;  %v183_v50 = vld [vmem:[%s17077_s1 + $0x540] sm:$0xff]  ;;  %v184_v14 = vld [vmem:[%s17077_s1 + $0x548] sm:$0xff] }
  0xf6   :  { %8843 = vmatpush1.bf16.xpose.msra.mxu1 %v11587_v49  ;;  %8803 = vmatprep.subr.bf16.mxu0 %v11592_v39  ;;  %v11593_v49 = vld [vmem:[%s17077_s1 + $0x208] ss:$16 sps:$4 sm:$0xff]   ;;  %v1490_v39 = vmul.f32 %v722_v17, %v722_v17  ;;  %v2342_v28 = vadd.f32 %v2341_v48, %v1494_v63  ;;  %v1501_v8 = vmul.f32 %v733_v45, %v733_v45  ;;  %v727_v43 = vunpack.c.l.bf16 %v179_v7  ;;  %v11596_v40 = vld [vmem:[%s17077_s1 + $0x3e0] ss:$16 sps:$4 sm:$0xff]  }
  0xf7   :  { %8844 = vmatprep.subr.bf16.mxu1 %v11595_v46  ;;  %2328 = vadd.xlane.f32.xlu0 %v2327_v59  ;;  %v180_v46 = vld [vmem:[%s17077_s1 + $0x528] sm:$0xff]  ;;  %v2336_v31 = vadd.f32 %v2335_v22, %v1489_v16  ;;  %v1502_v56 = vmul.f32 %v734_v54, %v734_v54  ;;  %v2350_v4 = vadd.f32 %v1500_v61, %v1499_v11  ;;  %v728_v25 = vunpack.c.h.bf16 %v179_v7  ;;  %v186_v63 = vld [vmem:[%s17077_s1 + $0x558] sm:$0xff]  ;;  %v11604_v54 = vld [vmem:[%s17077_s1 + $0x3c4] ss:$16 sps:$4 sm:$0xff]  }
  0xf8   :  { %2343 = vadd.xlane.f32.xlu1 %v2342_v28  ;;  %v729_v1 = vunpack.c.l.bf16 %v180_v46  ;;  %v730_v9 = vunpack.c.h.bf16 %v180_v46  ;;  %v1495_v2 = vmul.f32 %v727_v43, %v727_v43  ;;  %v739_v16 = vunpack.c.l.bf16 %v185_v47  ;;  %v11599_v45 = vld [vmem:[%s17077_s1 + $0x3e8] ss:$16 sps:$4 sm:$0xff]   ;;  %v11607_v11 = vld [vmem:[%s17077_s1 + $0x3cc] ss:$16 sps:$4 sm:$0xff]  }
  0xf9   :  { %v2337_v3 = vadd.f32 %v2336_v31, %v1490_v39  ;;  %v13481_v59 = vpop.xlane.xlu1 %2073  ;;  %v2351_v17 = vadd.f32 %v2350_v4, %v1501_v8  ;;  %v1496_v24 = vmul.f32 %v728_v25, %v728_v25  ;;  %v741_v48 = vunpack.c.l.bf16 %v186_v63 }
  0xfa   :  { %v1497_v42 = vmul.f32 %v729_v1, %v729_v1  ;;  %v742_v22 = vunpack.c.h.bf16 %v186_v63  ;;  %v1507_v46 = vmul.f32 %v739_v16, %v739_v16  ;;  %v735_v28 = vunpack.c.l.bf16 %v183_v50  ;;  %v13511_v63 = vpop.xlane.xlu0 %2068 }
  0xfb   :  { %2338 = vadd.xlane.f32.xlu0 %v2337_v3  ;;  %v2352_v7 = vadd.f32 %v2351_v17, %v1502_v56  ;;  %v2345_v39 = vadd.f32 %v1496_v24, %v1495_v2  ;;  %v736_v31 = vunpack.c.h.bf16 %v183_v50  ;;  %v737_v8 = vunpack.c.l.bf16 %v184_v14  ;;  %v189_v56 = vld [vmem:[%s17077_s1 + $0x570] sm:$0xff]  ;;  %17089 = vst [vmem:[#allocation3_spill] sm:$0xff] %v13511_v63  ;;  %v187_v24 = vld [vmem:[%s17077_s1 + $0x560] sm:$0xff] }
  0xfc   :  { %v1510_v43 = vmul.f32 %v742_v22, %v742_v22  ;;  %v738_v25 = vunpack.c.h.bf16 %v184_v14  ;;  %v1503_v1 = vmul.f32 %v735_v28, %v735_v28  ;;  %v747_v50 = vunpack.c.l.bf16 %v189_v56  ;;  %v193_v28 = vld [vmem:[%s17077_s1 + $0x590] sm:$0xff] }
  0xfd   :  { %8804 = vmatpush1.bf16.xpose.msra.mxu0 %v11590_v27  ;;  %v740_v27 = vunpack.c.h.bf16 %v185_v47  ;;  %2353 = vadd.xlane.f32.xlu1 %v2352_v7  ;;  %v2346_v61 = vadd.f32 %v2345_v39, %v1497_v42  ;;  %v13509_v47 = vpop.xlane.xlu1 %2083  ;;  %v1504_v2 = vmul.f32 %v736_v31, %v736_v31  ;;  %v1505_v17 = vmul.f32 %v737_v8, %v737_v8 }
  0xfe   :  { %8845 = vmatpush1.bf16.xpose.msra.mxu1 %v11593_v49  ;;  %8805 = vmatprep.subr.bf16.mxu0 %v11598_v19  ;;  %v1498_v49 = vmul.f32 %v730_v9, %v730_v9  ;;  %v190_v9 = vld [vmem:[%s17077_s1 + $0x578] sm:$0xff]  ;;  %v1506_v16 = vmul.f32 %v738_v25, %v738_v25  ;;  %v1515_v39 = vmul.f32 %v747_v50, %v747_v50  ;;  %v743_v22 = vunpack.c.l.bf16 %v187_v24  ;;  %v191_v50 = vld [vmem:[%s17077_s1 + $0x580] sm:$0xff] }
  0xff   :  { %8846 = vmatprep.subr.bf16.mxu1 %v11601_v57  ;;  %v1508_v19 = vmul.f32 %v740_v27, %v740_v27  ;;  %v1509_v57 = vmul.f32 %v741_v48, %v741_v48  ;;  %v2355_v27 = vadd.f32 %v1504_v2, %v1503_v1  ;;  %v748_v48 = vunpack.c.h.bf16 %v189_v56  ;;  %v11613_v25 = vld [vmem:[%s17077_s1 + $0x3ac] ss:$16 sps:$4 sm:$0xff]  }
 0x100   :  { %v2347_v3 = vadd.f32 %v2346_v61, %v1498_v49  ;;  %v749_v14 = vunpack.c.l.bf16 %v190_v9  ;;  %v750_v49 = vunpack.c.h.bf16 %v190_v9  ;;  %v1511_v8 = vmul.f32 %v743_v22, %v743_v22 }
 0x101   :  { %v2360_v4 = vadd.f32 %v1508_v19, %v1507_v46  ;;  %v1516_v46 = vmul.f32 %v748_v48, %v748_v48  ;;  %v13528_v56 = vpop.xlane.xlu1 %2093  ;;  %vm6987_vm7 = vcmask 589312   ;;  %vm6994_vm8 = vcmask 654912  }
 0x102   :  { %2348 = vadd.xlane.f32.xlu0 %v2347_v3  ;;  %v1517_v19 = vmul.f32 %v749_v14, %v749_v14  ;;  %v1518_v9 = vmul.f32 %v750_v49, %v750_v49  ;;  %vm7001_vm9 = vcmask 720512   ;;  %vm17088_vm10 = vcmask 786112  }
 0x103   :  { %v2361_v42 = vadd.f32 %v2360_v4, %v1509_v57  ;;  %v744_v57 = vunpack.c.h.bf16 %v187_v24  ;;  %v11610_v4 = vld [vmem:[%s17077_s1 + $0x3a4] ss:$16 sps:$4 sm:$0xff]   ;;  %v2370_v3 = vadd.f32 %v1516_v46, %v1515_v39  ;;  %vm7015_vm11 = vcmask 851712  }
 0x104   :  { %vm7022_vm12 = vcmask 917312   ;;  %vm7029_vm13 = vcmask 982912   ;;  %vm7036_vm14 = vcmask 1048512   ;;  %vm7907_vm15 = vcmask 1041409  }
 0x105   :  { %8806 = vmatpush2.bf16.xpose.msra.mxu0 %v11596_v40  ;;  %v188_v40 = vld [vmem:[%s17077_s1 + $0x568] sm:$0xff]  ;;  %v2362_v7 = vadd.f32 %v2361_v42, %v1510_v43  ;;  %v13530_v43 = vpop.xlane.xlu0 %2078  ;;  %v1512_v2 = vmul.f32 %v744_v57, %v744_v57  ;;  %v755_v42 = vunpack.c.l.bf16 %v193_v28  ;;  %v751_v57 = vunpack.c.l.bf16 %v191_v50 }
 0x106   :  { %8847 = vmatpush2.bf16.xpose.msra.mxu1 %v11599_v45  ;;  %8807 = vmatprep.subr.bf16.mxu0 %v11604_v54  ;;  %v11602_v45 = vld [vmem:[%s17077_s1 + $0x3c0] ss:$16 sps:$4 sm:$0xff]   ;;  %v2356_v54 = vadd.f32 %v2355_v27, %v1505_v17  ;;  %v745_v61 = vunpack.c.l.bf16 %v188_v40  ;;  %v746_v31 = vunpack.c.h.bf16 %v188_v40  ;;  %17090 = vst [vmem:[#allocation4_spill] sm:$0xff] %v13530_v43  ;;  %v194_v17 = vld [vmem:[%s17077_s1 + $0x598] sm:$0xff]  ;;  %v2371_v27 = vadd.f32 %v2370_v3, %v1517_v19 }
 0x107   :  { %8848 = vmatprep.subr.bf16.mxu1 %v11607_v11  ;;  %v11605_v11 = vld [vmem:[%s17077_s1 + $0x3c8] ss:$16 sps:$4 sm:$0xff]   ;;  %2363 = vadd.xlane.f32.xlu1 %v2362_v7  ;;  %v2365_v14 = vadd.f32 %v1512_v2, %v1511_v8  ;;  %v756_v40 = vunpack.c.h.bf16 %v193_v28  ;;  %v757_v7 = vunpack.c.l.bf16 %v194_v17  ;;  %v758_v49 = vunpack.c.h.bf16 %v194_v17  ;;  %v197_v28 = vld [vmem:[%s17077_s1 + $0x5b0] sm:$0xff]  ;;  %v13553_v8 = vpop.xlane.xlu1 %2103 }
 0x108   :  { %v2357_v1 = vadd.f32 %v2356_v54, %v1506_v16  ;;  %v1513_v24 = vmul.f32 %v745_v61, %v745_v61  ;;  %v1514_v48 = vmul.f32 %v746_v31, %v746_v31  ;;  %v192_v16 = vld [vmem:[%s17077_s1 + $0x588] sm:$0xff]  ;;  %v1523_v39 = vmul.f32 %v755_v42, %v755_v42  ;;  %17091 = vst [vmem:[#allocation5_spill] sm:$0xff] %v13553_v8  ;;  %v198_v2 = vld [vmem:[%s17077_s1 + $0x5b8] sm:$0xff] }
 0x109   :  { %v2372_v22 = vadd.f32 %v2371_v27, %v1518_v9  ;;  %v1524_v46 = vmul.f32 %v756_v40, %v756_v40  ;;  %v1526_v61 = vmul.f32 %v758_v49, %v758_v49  ;;  %v752_v19 = vunpack.c.h.bf16 %v191_v50  ;;  %v11611_v17 = vld [vmem:[%s17077_s1 + $0x3a8] ss:$16 sps:$4 sm:$0xff]   ;;  %v11619_v27 = vld [vmem:[%s17077_s1 + $0x38c] ss:$16 sps:$4 sm:$0xff]  }
 0x10a   :  { %2358 = vadd.xlane.f32.xlu0 %v2357_v1  ;;  %v2366_v54 = vadd.f32 %v2365_v14, %v1513_v24  ;;  %v753_v31 = vunpack.c.l.bf16 %v192_v16  ;;  %v754_v9 = vunpack.c.h.bf16 %v192_v16  ;;  %v1519_v3 = vmul.f32 %v751_v57, %v751_v57  ;;  %v11616_v24 = vld [vmem:[%s17077_s1 + $0x384] ss:$16 sps:$4 sm:$0xff]  }
 0x10b   :  { %2373 = vadd.xlane.f32.xlu1 %v2372_v22  ;;  %v2380_v1 = vadd.f32 %v1524_v46, %v1523_v39  ;;  %v1520_v42 = vmul.f32 %v752_v19, %v752_v19  ;;  %v763_v14 = vunpack.c.l.bf16 %v197_v28  ;;  %v764_v40 = vunpack.c.h.bf16 %v197_v28  ;;  %v195_v16 = vld [vmem:[%s17077_s1 + $0x5a0] sm:$0xff] }
 0x10c   :  { %v1521_v50 = vmul.f32 %v753_v31, %v753_v31  ;;  %v765_v39 = vunpack.c.l.bf16 %v198_v2  ;;  %v766_v22 = vunpack.c.h.bf16 %v198_v2  ;;  %v760_v2 = vunpack.c.h.bf16 %v195_v16 }
 0x10d   :  { %8808 = vmatpush2.bf16.xpose.msra.mxu0 %v11602_v45  ;;  %v1525_v45 = vmul.f32 %v757_v7, %v757_v7  ;;  %v1522_v7 = vmul.f32 %v754_v9, %v754_v9  ;;  %v2375_v49 = vadd.f32 %v1520_v42, %v1519_v3  ;;  %v1531_v57 = vmul.f32 %v763_v14, %v763_v14 }
 0x10e   :  { %8849 = vmatpush2.bf16.xpose.msra.mxu1 %v11605_v11  ;;  %8809 = vmatprep.subr.bf16.mxu0 %v11610_v4  ;;  %v11608_v11 = vld [vmem:[%s17077_s1 + $0x3a0] ss:$16 sps:$4 sm:$0xff]   ;;  %v13555_v4 = vpop.xlane.xlu0 %2088  ;;  %v1532_v19 = vmul.f32 %v764_v40, %v764_v40  ;;  %v1533_v31 = vmul.f32 %v765_v39, %v765_v39  ;;  %v1534_v28 = vmul.f32 %v766_v22, %v766_v22  ;;  %v200_v22 = vld [vmem:[%s17077_s1 + $0x5c8] sm:$0xff] }
 0x10f   :  { %8850 = vmatprep.subr.bf16.mxu1 %v11613_v25  ;;  %17092 = vst [vmem:[#allocation6_spill] sm:$0xff] %v13555_v4  ;;  %v2367_v25 = vadd.f32 %v2366_v54, %v1514_v48  ;;  %v2381_v48 = vadd.f32 %v2380_v1, %v1525_v45  ;;  %v196_v54 = vld [vmem:[%s17077_s1 + $0x5a8] sm:$0xff]  ;;  %v2376_v45 = vadd.f32 %v2375_v49, %v1521_v50  ;;  %v13575_v1 = vpop.xlane.xlu1 %2113  ;;  %v11614_v50 = vld [vmem:[%s17077_s1 + $0x380] ss:$16 sps:$4 sm:$0xff]  }
 0x110   :  { %17093 = vst [vmem:[#allocation7_spill] sm:$0xff] %v13575_v1  ;;  %v2390_v3 = vadd.f32 %v1532_v19, %v1531_v57  ;;  %v761_v42 = vunpack.c.l.bf16 %v196_v54  ;;  %v762_v4 = vunpack.c.h.bf16 %v196_v54  ;;  %v199_v40 = vld [vmem:[%s17077_s1 + $0x5c0] sm:$0xff]  ;;  %v769_v1 = vunpack.c.l.bf16 %v200_v22 }
 0x111   :  { %2368 = vadd.xlane.f32.xlu0 %v2367_v25  ;;  %v2382_v46 = vadd.f32 %v2381_v48, %v1526_v61  ;;  %v759_v25 = vunpack.c.l.bf16 %v195_v16  ;;  %v201_v61 = vld [vmem:[%s17077_s1 + $0x5d0] sm:$0xff]  ;;  %v1528_v48 = vmul.f32 %v760_v2, %v760_v2  ;;  %v11617_v16 = vld [vmem:[%s17077_s1 + $0x388] ss:$16 sps:$4 sm:$0xff]   ;;  %v768_v43 = vunpack.c.h.bf16 %v199_v40 }
 0x112   :  { %v13577_v9 = vpop.xlane.xlu0 %2098  ;;  %v1529_v14 = vmul.f32 %v761_v42, %v761_v42  ;;  %v771_v49 = vunpack.c.l.bf16 %v201_v61  ;;  %v772_v39 = vunpack.c.h.bf16 %v201_v61  ;;  %v11622_v54 = vld [vmem:[%s17077_s1 + $0x364] ss:$16 sps:$4 sm:$0xff]   ;;  %v1530_v19 = vmul.f32 %v762_v4, %v762_v4 }
 0x113   :  { %17094 = vst [vmem:[#allocation8_spill] sm:$0xff] %v13577_v9  ;;  %2383 = vadd.xlane.f32.xlu1 %v2382_v46  ;;  %v11625_v46 = vld [vmem:[%s17077_s1 + $0x36c] ss:$16 sps:$4 sm:$0xff]   ;;  %v767_v42 = vunpack.c.l.bf16 %v199_v40  ;;  %v13603_v61 = vpop.xlane.xlu1 %2123  ;;  %v203_v40 = vld [vmem:[%s17077_s1 + $0x5e0] sm:$0xff] }
 0x114   :  { %17095 = vst [vmem:[#allocation9_spill] sm:$0xff] %v13603_v61 }
 0x115   :  { %8810 = vmatpush2.bf16.xpose.msra.mxu0 %v11608_v11  ;;  %v202_v11 = vld [vmem:[%s17077_s1 + $0x5d8] sm:$0xff] }
 0x116   :  { %8851 = vmatpush2.bf16.xpose.msra.mxu1 %v11611_v17  ;;  %8811 = vmatprep.subr.bf16.mxu0 %v11616_v24  ;;  %v2377_v17 = vadd.f32 %v2376_v45, %v1522_v7  ;;  %v1527_v24 = vmul.f32 %v759_v25, %v759_v25  ;;  %v773_v7 = vunpack.c.l.bf16 %v202_v11  ;;  %v1539_v25 = vmul.f32 %v771_v49, %v771_v49 }
 0x117   :  { %8852 = vmatprep.subr.bf16.mxu1 %v11619_v27  ;;  %v2391_v27 = vadd.f32 %v2390_v3, %v1533_v31  ;;  %v774_v31 = vunpack.c.h.bf16 %v202_v11  ;;  %v1540_v3 = vmul.f32 %v772_v39, %v772_v39  ;;  %v1536_v49 = vmul.f32 %v768_v43, %v768_v43  ;;  %v204_v43 = vld [vmem:[%s17077_s1 + $0x5e8] sm:$0xff] }
 0x118   :  { %2378 = vadd.xlane.f32.xlu0 %v2377_v17  ;;  %v2385_v45 = vadd.f32 %v1528_v48, %v1527_v24  ;;  %v1541_v2 = vmul.f32 %v773_v7, %v773_v7  ;;  %v13605_v17 = vpop.xlane.xlu0 %2108  ;;  %v770_v24 = vunpack.c.h.bf16 %v200_v22  ;;  %v206_v48 = vld [vmem:[%s17077_s1 + $0x5f8] sm:$0xff] }
 0x119   :  { %v2392_v57 = vadd.f32 %v2391_v27, %v1534_v28  ;;  %17096 = vst [vmem:[#allocation10_spill] sm:$0xff] %v13605_v17  ;;  %v205_v28 = vld [vmem:[%s17077_s1 + $0x5f0] sm:$0xff]  ;;  %v1542_v4 = vmul.f32 %v774_v31, %v774_v31  ;;  %v2400_v11 = vadd.f32 %v1540_v3, %v1539_v25  ;;  %v1535_v27 = vmul.f32 %v767_v42, %v767_v42  ;;  %v13628_v3 = vpop.xlane.xlu1 %2133  ;;  %v11631_v42 = vld [vmem:[%s17077_s1 + $0x34c] ss:$16 sps:$4 sm:$0xff]  }
 0x11a   :  { %v2386_v9 = vadd.f32 %v2385_v45, %v1529_v14  ;;  %v1537_v14 = vmul.f32 %v769_v1, %v769_v1  ;;  %v779_v7 = vunpack.c.l.bf16 %v205_v28  ;;  %v1538_v22 = vmul.f32 %v770_v24, %v770_v24  ;;  %v11623_v1 = vld [vmem:[%s17077_s1 + $0x368] ss:$16 sps:$4 sm:$0xff]   ;;  %17097 = vst [vmem:[#allocation11_spill] sm:$0xff] %v13628_v3 }
 0x11b   :  { %2393 = vadd.xlane.f32.xlu1 %v2392_v57  ;;  %v2401_v39 = vadd.f32 %v2400_v11, %v1541_v2  ;;  %v2395_v57 = vadd.f32 %v1536_v49, %v1535_v27  ;;  %v780_v45 = vunpack.c.h.bf16 %v205_v28  ;;  %v781_v31 = vunpack.c.l.bf16 %v206_v48 }
 0x11c   :  { %v775_v25 = vunpack.c.l.bf16 %v203_v40  ;;  %v13630_v2 = vpop.xlane.xlu0 %2118  ;;  %v776_v27 = vunpack.c.h.bf16 %v203_v40  ;;  %v778_v49 = vunpack.c.h.bf16 %v204_v43 }
 0x11d   :  { %8812 = vmatpush2.bf16.xpose.msra.mxu0 %v11614_v50  ;;  %v2387_v50 = vadd.f32 %v2386_v9, %v1530_v19  ;;  %v11628_v9 = vld [vmem:[%s17077_s1 + $0x344] ss:$16 sps:$4 sm:$0xff]   ;;  %v1547_v19 = vmul.f32 %v779_v7, %v779_v7  ;;  %17098 = vst [vmem:[#allocation12_spill] sm:$0xff] %v13630_v2  ;;  %v2396_v28 = vadd.f32 %v2395_v57, %v1537_v14  ;;  %v210_v14 = vld [vmem:[%s17077_s1 + $0x618] sm:$0xff] }
 0x11e   :  { %8853 = vmatpush2.bf16.xpose.msra.mxu1 %v11617_v16  ;;  %8813 = vmatprep.subr.bf16.mxu0 %v11622_v54  ;;  %v11620_v16 = vld [vmem:[%s17077_s1 + $0x360] ss:$16 sps:$4 sm:$0xff]   ;;  %v2402_v54 = vadd.f32 %v2401_v39, %v1542_v4  ;;  %v1548_v11 = vmul.f32 %v780_v45, %v780_v45  ;;  %v1549_v24 = vmul.f32 %v781_v31, %v781_v31 }
 0x11f   :  { %8854 = vmatprep.subr.bf16.mxu1 %v11625_v46  ;;  %2388 = vadd.xlane.f32.xlu0 %v2387_v50  ;;  %v782_v46 = vunpack.c.h.bf16 %v206_v48  ;;  %v209_v50 = vld [vmem:[%s17077_s1 + $0x610] sm:$0xff]  ;;  %v777_v48 = vunpack.c.l.bf16 %v204_v43  ;;  %v1543_v39 = vmul.f32 %v775_v25, %v775_v25  ;;  %v2397_v7 = vadd.f32 %v2396_v28, %v1538_v22  ;;  %v207_v45 = vld [vmem:[%s17077_s1 + $0x600] sm:$0xff] }
 0x120   :  { %2403 = vadd.xlane.f32.xlu1 %v2402_v54  ;;  %v2410_v2 = vadd.f32 %v1548_v11, %v1547_v19  ;;  %v1544_v17 = vmul.f32 %v776_v27, %v776_v27  ;;  %v787_v57 = vunpack.c.l.bf16 %v209_v50  ;;  %v1546_v43 = vmul.f32 %v778_v49, %v778_v49  ;;  %v208_v54 = vld [vmem:[%s17077_s1 + $0x608] sm:$0xff]  ;;  %v13649_v25 = vpop.xlane.xlu0 %2128 }
 0x121   :  { %v1550_v4 = vmul.f32 %v782_v46, %v782_v46  ;;  %v1545_v40 = vmul.f32 %v777_v48, %v777_v48  ;;  %v788_v22 = vunpack.c.h.bf16 %v209_v50  ;;  %v789_v46 = vunpack.c.l.bf16 %v210_v14  ;;  %17100 = vst [vmem:[#allocation14_spill] sm:$0xff] %v13649_v25 }
 0x122   :  { %v2411_v31 = vadd.f32 %v2410_v2, %v1549_v24  ;;  %v790_v19 = vunpack.c.h.bf16 %v210_v14  ;;  %v11629_v24 = vld [vmem:[%s17077_s1 + $0x348] ss:$16 sps:$4 sm:$0xff]   ;;  %v784_v48 = vunpack.c.h.bf16 %v207_v45  ;;  %v785_v49 = vunpack.c.l.bf16 %v208_v54 }
 0x123   :  { %2398 = vadd.xlane.f32.xlu0 %v2397_v7  ;;  %v1556_v11 = vmul.f32 %v788_v22, %v788_v22  ;;  %v1557_v27 = vmul.f32 %v789_v46, %v789_v46  ;;  %v11634_v7 = vld [vmem:[%s17077_s1 + $0x324] ss:$16 sps:$4 sm:$0xff]  }
 0x124   :  { %v2412_v28 = vadd.f32 %v2411_v31, %v1550_v4  ;;  %v1558_v50 = vmul.f32 %v790_v19, %v790_v19  ;;  %v11637_v4 = vld [vmem:[%s17077_s1 + $0x32c] ss:$16 sps:$4 sm:$0xff]   ;;  %v1553_v22 = vmul.f32 %v785_v49, %v785_v49 }
 0x125   :  { %8814 = vmatpush2.bf16.xpose.msra.mxu0 %v11620_v16  ;;  %v2405_v16 = vadd.f32 %v1544_v17, %v1543_v39  ;;  %v783_v17 = vunpack.c.l.bf16 %v207_v45  ;;  %v213_v39 = vld [vmem:[%s17077_s1 + $0x630] sm:$0xff]  ;;  %v214_v45 = vld [vmem:[%s17077_s1 + $0x638] sm:$0xff] }
 0x126   :  { %8855 = vmatpush2.bf16.xpose.msra.mxu1 %v11623_v1  ;;  %8815 = vmatprep.subr.bf16.mxu0 %v11628_v9  ;;  %v1555_v1 = vmul.f32 %v787_v57, %v787_v57  ;;  %v13647_v9 = vpop.xlane.xlu1 %2143  ;;  %v786_v57 = vunpack.c.h.bf16 %v208_v54  ;;  %v795_v19 = vunpack.c.l.bf16 %v213_v39  ;;  %v796_v25 = vunpack.c.h.bf16 %v213_v39 }
 0x127   :  { %8856 = vmatprep.subr.bf16.mxu1 %v11631_v42  ;;  %17099 = vst [vmem:[#allocation13_spill] sm:$0xff] %v13647_v9  ;;  %v11626_v42 = vld [vmem:[%s17077_s1 + $0x340] ss:$16 sps:$4 sm:$0xff]   ;;  %v2406_v2 = vadd.f32 %v2405_v16, %v1545_v40  ;;  %2413 = vadd.xlane.f32.xlu1 %v2412_v28  ;;  %v1551_v31 = vmul.f32 %v783_v17, %v783_v17  ;;  %v797_v54 = vunpack.c.l.bf16 %v214_v45  ;;  %v798_v28 = vunpack.c.h.bf16 %v214_v45 }
 0x128   :  { %v2420_v40 = vadd.f32 %v1556_v11, %v1555_v1  ;;  %v1552_v16 = vmul.f32 %v784_v48, %v784_v48  ;;  %v211_v9 = vld [vmem:[%s17077_s1 + $0x620] sm:$0xff]  ;;  %v1564_v48 = vmul.f32 %v796_v25, %v796_v25  ;;  %v218_v25 = vld [vmem:[%s17077_s1 + $0x658] sm:$0xff] }
 0x129   :  { %v2407_v14 = vadd.f32 %v2406_v2, %v1546_v43  ;;  %v1554_v43 = vmul.f32 %v786_v57, %v786_v57  ;;  %v212_v2 = vld [vmem:[%s17077_s1 + $0x628] sm:$0xff]  ;;  %v1565_v39 = vmul.f32 %v797_v54, %v797_v54  ;;  %v11632_v57 = vld [vmem:[%s17077_s1 + $0x320] ss:$16 sps:$4 sm:$0xff]   ;;  %v792_v45 = vunpack.c.h.bf16 %v211_v9 }
 0x12a   :  { %v2421_v46 = vadd.f32 %v2420_v40, %v1557_v27  ;;  %v2415_v1 = vadd.f32 %v1552_v16, %v1551_v31  ;;  %v13675_v11 = vpop.xlane.xlu1 %2153  ;;  %v1563_v27 = vmul.f32 %v795_v19, %v795_v19  ;;  %v217_v40 = vld [vmem:[%s17077_s1 + $0x650] sm:$0xff] }
 0x12b   :  { %2408 = vadd.xlane.f32.xlu0 %v2407_v14  ;;  %17101 = vst [vmem:[#allocation15_spill] sm:$0xff] %v13675_v11  ;;  %v791_v14 = vunpack.c.l.bf16 %v211_v9  ;;  %v11640_v16 = vld [vmem:[%s17077_s1 + $0x304] ss:$16 sps:$4 sm:$0xff]   ;;  %v11643_v9 = vld [vmem:[%s17077_s1 + $0x30c] ss:$16 sps:$4 sm:$0xff]  }
 0x12c   :  { %v2422_v17 = vadd.f32 %v2421_v46, %v1558_v50  ;;  %v2416_v49 = vadd.f32 %v2415_v1, %v1553_v22  ;;  %v2430_v31 = vadd.f32 %v1564_v48, %v1563_v27  ;;  %v11635_v50 = vld [vmem:[%s17077_s1 + $0x328] ss:$16 sps:$4 sm:$0xff]   ;;  %v1560_v1 = vmul.f32 %v792_v45, %v792_v45 }
 0x12d   :  { %8816 = vmatpush2.bf16.xpose.msra.mxu0 %v11626_v42  ;;  %v13677_v42 = vpop.xlane.xlu0 %2138  ;;  %v1559_v46 = vmul.f32 %v791_v14, %v791_v14  ;;  %v805_v27 = vunpack.c.l.bf16 %v218_v25  ;;  %v806_v45 = vunpack.c.h.bf16 %v218_v25  ;;  %v222_v25 = vld [vmem:[%s17077_s1 + $0x678] sm:$0xff] }
 0x12e   :  { %8857 = vmatpush2.bf16.xpose.msra.mxu1 %v11629_v24  ;;  %17102 = vst [vmem:[#allocation16_spill] sm:$0xff] %v13677_v42  ;;  %8817 = vmatprep.subr.bf16.mxu0 %v11634_v7  ;;  %v1566_v24 = vmul.f32 %v798_v28, %v798_v28  ;;  %v793_v7 = vunpack.c.l.bf16 %v212_v2  ;;  %v2417_v22 = vadd.f32 %v2416_v49, %v1554_v43  ;;  %v215_v28 = vld [vmem:[%s17077_s1 + $0x640] sm:$0xff]  ;;  %v216_v43 = vld [vmem:[%s17077_s1 + $0x648] sm:$0xff]  ;;  %v13703_v48 = vpop.xlane.xlu1 %2163 }
 0x12f   :  { %8858 = vmatprep.subr.bf16.mxu1 %v11637_v4  ;;  %2423 = vadd.xlane.f32.xlu1 %v2422_v17  ;;  %v794_v4 = vunpack.c.h.bf16 %v212_v2  ;;  %v2431_v19 = vadd.f32 %v2430_v31, %v1565_v39  ;;  %v803_v2 = vunpack.c.l.bf16 %v217_v40  ;;  %v804_v17 = vunpack.c.h.bf16 %v217_v40  ;;  %17103 = vst [vmem:[#allocation17_spill] sm:$0xff] %v13703_v48 }
 0x130   :  { %v1561_v54 = vmul.f32 %v793_v7, %v793_v7  ;;  %2418 = vadd.xlane.f32.xlu0 %v2417_v22  ;;  %v2425_v31 = vadd.f32 %v1560_v1, %v1559_v46  ;;  %v1573_v42 = vmul.f32 %v805_v27, %v805_v27  ;;  %v799_v40 = vunpack.c.l.bf16 %v215_v28  ;;  %v219_v1 = vld [vmem:[%s17077_s1 + $0x660] sm:$0xff] }
 0x131   :  { %v13705_v49 = vpop.xlane.xlu0 %2148  ;;  %v2432_v39 = vadd.f32 %v2431_v19, %v1566_v24  ;;  %v1562_v14 = vmul.f32 %v794_v4, %v794_v4  ;;  %v1571_v7 = vmul.f32 %v803_v2, %v803_v2  ;;  %v1572_v22 = vmul.f32 %v804_v17, %v804_v17 }
 0x132   :  { %17104 = vst [vmem:[#allocation18_spill] sm:$0xff] %v13705_v49  ;;  %v2426_v11 = vadd.f32 %v2425_v31, %v1561_v54  ;;  %v800_v3 = vunpack.c.h.bf16 %v215_v28  ;;  %v801_v61 = vunpack.c.l.bf16 %v216_v43  ;;  %v221_v49 = vld [vmem:[%s17077_s1 + $0x670] sm:$0xff]  ;;  %v802_v4 = vunpack.c.h.bf16 %v216_v43  ;;  %v11641_v54 = vld [vmem:[%s17077_s1 + $0x308] ss:$16 sps:$4 sm:$0xff]   ;;  %v13725_v27 = vpop.xlane.xlu1 %2173 }
 0x133   :  { %2433 = vadd.xlane.f32.xlu1 %v2432_v39  ;;  %v2440_v24 = vadd.f32 %v1572_v22, %v1571_v7  ;;  %v1567_v46 = vmul.f32 %v799_v40, %v799_v40  ;;  %v11646_v28 = vld [vmem:[%s17077_s1 + $0x4e4] ss:$16 sps:$4 sm:$0xff]   ;;  %v811_v17 = vunpack.c.l.bf16 %v221_v49  ;;  %17105 = vst [vmem:[#allocation19_spill] sm:$0xff] %v13725_v27  ;;  %v812_v39 = vunpack.c.h.bf16 %v221_v49  ;;  %v220_v31 = vld [vmem:[%s17077_s1 + $0x668] sm:$0xff] }
 0x134   :  { %v1569_v19 = vmul.f32 %v801_v61, %v801_v61  ;;  %v11649_v61 = vld [vmem:[%s17077_s1 + $0x4ec] ss:$16 sps:$4 sm:$0xff]   ;;  %v807_v22 = vunpack.c.l.bf16 %v219_v1  ;;  %v808_v27 = vunpack.c.h.bf16 %v219_v1  ;;  %v809_v49 = vunpack.c.l.bf16 %v220_v31 }
 0x135   :  { %8818 = vmatpush2.bf16.xpose.msra.mxu0 %v11632_v57  ;;  %v1574_v57 = vmul.f32 %v806_v45, %v806_v45  ;;  %v2441_v2 = vadd.f32 %v2440_v24, %v1573_v42  ;;  %v13727_v43 = vpop.xlane.xlu0 %2158  ;;  %v814_v42 = vunpack.c.h.bf16 %v222_v25  ;;  %v1579_v7 = vmul.f32 %v811_v17, %v811_v17 }
 0x136   :  { %8859 = vmatpush2.bf16.xpose.msra.mxu1 %v11635_v50  ;;  %8819 = vmatprep.subr.bf16.mxu0 %v11640_v16  ;;  %v11638_v50 = vld [vmem:[%s17077_s1 + $0x300] ss:$16 sps:$4 sm:$0xff]   ;;  %v2427_v16 = vadd.f32 %v2426_v11, %v1562_v14  ;;  %17106 = vst [vmem:[#allocation20_spill] sm:$0xff] %v13727_v43  ;;  %v813_v14 = vunpack.c.l.bf16 %v222_v25  ;;  %v1580_v24 = vmul.f32 %v812_v39, %v812_v39 }
 0x137   :  { %8860 = vmatprep.subr.bf16.mxu1 %v11643_v9  ;;  %v1568_v9 = vmul.f32 %v800_v3, %v800_v3  ;;  %v1570_v3 = vmul.f32 %v802_v4, %v802_v4  ;;  %v2442_v45 = vadd.f32 %v2441_v2, %v1574_v57  ;;  %v225_v4 = vld [vmem:[%s17077_s1 + $0x690] sm:$0xff]  ;;  %v1582_v25 = vmul.f32 %v814_v42, %v814_v42 }
 0x138   :  { %2428 = vadd.xlane.f32.xlu0 %v2427_v16  ;;  %v1581_v43 = vmul.f32 %v813_v14, %v813_v14  ;;  %v1575_v16 = vmul.f32 %v807_v22, %v807_v22  ;;  %v1576_v2 = vmul.f32 %v808_v27, %v808_v27  ;;  %v819_v1 = vunpack.c.l.bf16 %v225_v4  ;;  %v224_v14 = vld [vmem:[%s17077_s1 + $0x688] sm:$0xff]  ;;  %v11652_v22 = vld [vmem:[%s17077_s1 + $0x4c4] ss:$16 sps:$4 sm:$0xff]  }
 0x139   :  { %v2435_v11 = vadd.f32 %v1568_v9, %v1567_v46  ;;  %2443 = vadd.xlane.f32.xlu1 %v2442_v45  ;;  %v810_v46 = vunpack.c.h.bf16 %v220_v31  ;;  %v2450_v9 = vadd.f32 %v1580_v24, %v1579_v7  ;;  %v13746_v17 = vpop.xlane.xlu0 %2168  ;;  %v820_v39 = vunpack.c.h.bf16 %v225_v4  ;;  %v11647_v31 = vld [vmem:[%s17077_s1 + $0x4e8] ss:$16 sps:$4 sm:$0xff]  }
 0x13a   :  { %17108 = vst [vmem:[#allocation22_spill] sm:$0xff] %v13746_v17  ;;  %v1587_v7 = vmul.f32 %v819_v1, %v819_v1 }
 0x13b   :  { %v2436_v40 = vadd.f32 %v2435_v11, %v1569_v19  ;;  %v1577_v19 = vmul.f32 %v809_v49, %v809_v49  ;;  %v2451_v27 = vadd.f32 %v2450_v9, %v1581_v43  ;;  %v2445_v11 = vadd.f32 %v1576_v2, %v1575_v16  ;;  %v11655_v43 = vld [vmem:[%s17077_s1 + $0x4cc] ss:$16 sps:$4 sm:$0xff]   ;;  %v229_v2 = vld [vmem:[%s17077_s1 + $0x6b0] sm:$0xff] }
 0x13c   :  { %v1588_v4 = vmul.f32 %v820_v39, %v820_v39  ;;  %v817_v9 = vunpack.c.l.bf16 %v224_v14 }
 0x13d   :  { %8820 = vmatpush2.bf16.xpose.msra.mxu0 %v11638_v50  ;;  %v2437_v57 = vadd.f32 %v2436_v40, %v1570_v3  ;;  %v226_v50 = vld [vmem:[%s17077_s1 + $0x698] sm:$0xff]  ;;  %v1578_v3 = vmul.f32 %v810_v46, %v810_v46  ;;  %v2452_v40 = vadd.f32 %v2451_v27, %v1582_v25  ;;  %v2446_v24 = vadd.f32 %v2445_v11, %v1577_v19 }
 0x13e   :  { %8861 = vmatpush2.bf16.xpose.msra.mxu1 %v11641_v54  ;;  %9666 = vmatprep.subr.bf16.mxu0 %v11646_v28  ;;  %v223_v54 = vld [vmem:[%s17077_s1 + $0x680] sm:$0xff]  ;;  %v13744_v28 = vpop.xlane.xlu1 %2183  ;;  %v821_v45 = vunpack.c.l.bf16 %v226_v50  ;;  %v822_v42 = vunpack.c.h.bf16 %v226_v50  ;;  %v2460_v1 = vadd.f32 %v1588_v4, %v1587_v7  ;;  %v818_v25 = vunpack.c.h.bf16 %v224_v14  ;;  %v230_v27 = vld [vmem:[%s17077_s1 + $0x6b8] sm:$0xff]  ;;  %v228_v4 = vld [vmem:[%s17077_s1 + $0x6a8] sm:$0xff] }
 0x13f   :  { %9707 = vmatprep.subr.bf16.mxu1 %v11649_v61  ;;  %17107 = vst [vmem:[#allocation21_spill] sm:$0xff] %v13744_v28  ;;  %v11644_v61 = vld [vmem:[%s17077_s1 + $0x4e0] ss:$16 sps:$4 sm:$0xff]   ;;  %2438 = vadd.xlane.f32.xlu0 %v2437_v57  ;;  %v815_v49 = vunpack.c.l.bf16 %v223_v54  ;;  %v816_v57 = vunpack.c.h.bf16 %v223_v54  ;;  %v2447_v50 = vadd.f32 %v2446_v24, %v1578_v3  ;;  %v1585_v54 = vmul.f32 %v817_v9, %v817_v9 }
 0x140   :  { %v1589_v46 = vmul.f32 %v821_v45, %v821_v45  ;;  %v1590_v16 = vmul.f32 %v822_v42, %v822_v42  ;;  %2453 = vadd.xlane.f32.xlu1 %v2452_v40  ;;  %v13773_v45 = vpop.xlane.xlu0 %2178  ;;  %v827_v42 = vunpack.c.l.bf16 %v229_v2  ;;  %v828_v3 = vunpack.c.h.bf16 %v229_v2  ;;  %v227_v14 = vld [vmem:[%s17077_s1 + $0x6a0] sm:$0xff] }
 0x141   :  { %v1583_v19 = vmul.f32 %v815_v49, %v815_v49  ;;  %v1584_v11 = vmul.f32 %v816_v57, %v816_v57  ;;  %17110 = vst [vmem:[#allocation24_spill] sm:$0xff] %v13773_v45  ;;  %v1586_v7 = vmul.f32 %v818_v25, %v818_v25  ;;  %v829_v40 = vunpack.c.l.bf16 %v230_v27  ;;  %v11653_v57 = vld [vmem:[%s17077_s1 + $0x4c8] ss:$16 sps:$4 sm:$0xff]   ;;  %v11658_v25 = vld [vmem:[%s17077_s1 + $0x4a4] ss:$16 sps:$4 sm:$0xff]  }
 0x142   :  { %v13771_v39 = vpop.xlane.xlu1 %2193  ;;  %v830_v24 = vunpack.c.h.bf16 %v230_v27  ;;  %v1595_v49 = vmul.f32 %v827_v42, %v827_v42  ;;  %v824_v27 = vunpack.c.h.bf16 %v227_v14  ;;  %v826_v45 = vunpack.c.h.bf16 %v228_v4 }
 0x143   :  { %17109 = vst [vmem:[#allocation23_spill] sm:$0xff] %v13771_v39  ;;  %2448 = vadd.xlane.f32.xlu0 %v2447_v50  ;;  %v1597_v2 = vmul.f32 %v829_v40, %v829_v40 }
 0x144   :  { %8822 = vmatmul.mubr.bf16.vlgmr.msra.gmra.mxu0 %v13214_v51  ;;  %v1598_v50 = vmul.f32 %v830_v24, %v830_v24  ;;  %v13803_v40 = vpop.xlane.xlu0 %2188  ;;  %v1592_v24 = vmul.f32 %v824_v27, %v824_v27 }
 0x145   :  { %8863 = vmatmul.mubr.bf16.vlgmr.msra.gmra.mxu1 %v13216_v5  ;;  %9667 = vmatpush1.bf16.xpose.msra.mxu0 %v11644_v61  ;;  %v2461_v61 = vadd.f32 %v2460_v1, %v1589_v46  ;;  %v1596_v46 = vmul.f32 %v828_v3, %v828_v3  ;;  %v823_v1 = vunpack.c.l.bf16 %v227_v14  ;;  %17112 = vst [vmem:[#allocation26_spill] sm:$0xff] %v13803_v40 }
 0x146   :  { %9708 = vmatpush1.bf16.xpose.msra.mxu1 %v11647_v31  ;;  %9668 = vmatprep.subr.bf16.mxu0 %v11652_v22  ;;  %v2455_v31 = vadd.f32 %v1584_v11, %v1583_v19  ;;  %v11650_v22 = vld [vmem:[%s17077_s1 + $0x4c0] ss:$16 sps:$4 sm:$0xff]   ;;  %v825_v11 = vunpack.c.l.bf16 %v228_v4 }
 0x147   :  { %9709 = vmatprep.subr.bf16.mxu1 %v11655_v43  ;;  %9698 = vmatprep.mubr.bf16.mxu0 %v13178_v18  ;;  %v2462_v43 = vadd.f32 %v2461_v61, %v1590_v16  ;;  %v2470_v19 = vadd.f32 %v1596_v46, %v1595_v49  ;;  %v233_v16 = vld [vmem:[%s17077_s1 + $0x6d0] sm:$0xff]  ;;  %v11661_v61 = vld [vmem:[%s17077_s1 + $0x4ac] ss:$16 sps:$4 sm:$0xff]   ;;  %v1591_v3 = vmul.f32 %v823_v1, %v823_v1 }
 0x148   :  { %9739 = vmatprep.mubr.bf16.mxu1 %v13180_v52  ;;  %v2456_v9 = vadd.f32 %v2455_v31, %v1585_v54  ;;  %v234_v54 = vld [vmem:[%s17077_s1 + $0x6d8] sm:$0xff]  ;;  %v13801_v31 = vpop.xlane.xlu1 %2203  ;;  %v1593_v4 = vmul.f32 %v825_v11, %v825_v11  ;;  %v835_v49 = vunpack.c.l.bf16 %v233_v16  ;;  %v836_v46 = vunpack.c.h.bf16 %v233_v16 }
 0x149   :  { %2463 = vadd.xlane.f32.xlu1 %v2462_v43  ;;  %17111 = vst [vmem:[#allocation25_spill] sm:$0xff] %v13801_v31  ;;  %v2471_v14 = vadd.f32 %v2470_v19, %v1597_v2  ;;  %v231_v43 = vld [vmem:[%s17077_s1 + $0x6c0] sm:$0xff]  ;;  %v837_v17 = vunpack.c.l.bf16 %v234_v54  ;;  %v1594_v1 = vmul.f32 %v826_v45, %v826_v45  ;;  %v838_v2 = vunpack.c.h.bf16 %v234_v54  ;;  %v11659_v45 = vld [vmem:[%s17077_s1 + $0x4a8] ss:$16 sps:$4 sm:$0xff]  }
 0x14a   :  { %v2457_v42 = vadd.f32 %v2456_v9, %v1586_v7  ;;  %v232_v7 = vld [vmem:[%s17077_s1 + $0x6c8] sm:$0xff]  ;;  %v1603_v19 = vmul.f32 %v835_v49, %v835_v49  ;;  %v1604_v27 = vmul.f32 %v836_v46, %v836_v46  ;;  %v831_v40 = vunpack.c.l.bf16 %v231_v43 }
 0x14b   :  { %v2472_v9 = vadd.f32 %v2471_v14, %v1598_v50  ;;  %v1605_v11 = vmul.f32 %v837_v17, %v837_v17  ;;  %v833_v31 = vunpack.c.l.bf16 %v232_v7  ;;  %v237_v50 = vld [vmem:[%s17077_s1 + $0x6f0] sm:$0xff]  ;;  %v834_v17 = vunpack.c.h.bf16 %v232_v7 }
 0x14c   :  { %2458 = vadd.xlane.f32.xlu0 %v2457_v42  ;;  %v832_v42 = vunpack.c.h.bf16 %v231_v43  ;;  %v2480_v54 = vadd.f32 %v1604_v27, %v1603_v19  ;;  %v13823_v14 = vpop.xlane.xlu1 %2213  ;;  %v11667_v43 = vld [vmem:[%s17077_s1 + $0x48c] ss:$16 sps:$4 sm:$0xff]   ;;  %v844_v27 = vunpack.c.h.bf16 %v237_v50 }
 0x14d   :  { %9669 = vmatpush1.bf16.xpose.msra.mxu0 %v11650_v22  ;;  %v2465_v22 = vadd.f32 %v1592_v24, %v1591_v3  ;;  %2473 = vadd.xlane.f32.xlu1 %v2472_v9  ;;  %v238_v3 = vld [vmem:[%s17077_s1 + $0x6f8] sm:$0xff]  ;;  %17113 = vst [vmem:[#allocation27_spill] sm:$0xff] %v13823_v14  ;;  %v13825_v24 = vpop.xlane.xlu0 %2198  ;;  %v1601_v7 = vmul.f32 %v833_v31, %v833_v31  ;;  %v236_v14 = vld [vmem:[%s17077_s1 + $0x6e8] sm:$0xff] }
 0x14e   :  { %9710 = vmatpush1.bf16.xpose.msra.mxu1 %v11653_v57  ;;  %9670 = vmatprep.subr.bf16.mxu0 %v11658_v25  ;;  %v11656_v57 = vld [vmem:[%s17077_s1 + $0x4a0] ss:$16 sps:$4 sm:$0xff]   ;;  %v1606_v25 = vmul.f32 %v838_v2, %v838_v2  ;;  %17114 = vst [vmem:[#allocation28_spill] sm:$0xff] %v13825_v24  ;;  %v1600_v46 = vmul.f32 %v832_v42, %v832_v42  ;;  %v845_v24 = vunpack.c.l.bf16 %v238_v3 }
 0x14f   :  { %9711 = vmatprep.subr.bf16.mxu1 %v11661_v61  ;;  %v2466_v16 = vadd.f32 %v2465_v22, %v1593_v4  ;;  %v1599_v61 = vmul.f32 %v831_v40, %v831_v40  ;;  %v11664_v4 = vld [vmem:[%s17077_s1 + $0x484] ss:$16 sps:$4 sm:$0xff]   ;;  %v2481_v9 = vadd.f32 %v2480_v54, %v1605_v11  ;;  %v843_v22 = vunpack.c.l.bf16 %v237_v50 }
 0x150   :  { %v235_v40 = vld [vmem:[%s17077_s1 + $0x6e0] sm:$0xff]  ;;  %v1602_v2 = vmul.f32 %v834_v17, %v834_v17  ;;  %v1612_v11 = vmul.f32 %v844_v27, %v844_v27  ;;  %v1613_v54 = vmul.f32 %v845_v24, %v845_v24  ;;  %v241_v50 = vld [vmem:[%s17077_s1 + $0x710] sm:$0xff]  ;;  %v841_v17 = vunpack.c.l.bf16 %v236_v14 }
 0x151   :  { %v2467_v49 = vadd.f32 %v2466_v16, %v1594_v1  ;;  %v2475_v19 = vadd.f32 %v1600_v46, %v1599_v61  ;;  %v2482_v1 = vadd.f32 %v2481_v9, %v1606_v25  ;;  %v846_v16 = vunpack.c.h.bf16 %v238_v3  ;;  %v13842_v46 = vpop.xlane.xlu1 %2223  ;;  %v11662_v25 = vld [vmem:[%s17077_s1 + $0x480] ss:$16 sps:$4 sm:$0xff]  }
 0x152   :  { %v1611_v31 = vmul.f32 %v843_v22, %v843_v22  ;;  %v839_v42 = vunpack.c.l.bf16 %v235_v40  ;;  %v842_v61 = vunpack.c.h.bf16 %v236_v14  ;;  %17115 = vst [vmem:[#allocation29_spill] sm:$0xff] %v13842_v46  ;;  %v11665_v14 = vld [vmem:[%s17077_s1 + $0x488] ss:$16 sps:$4 sm:$0xff]   ;;  %v1609_v9 = vmul.f32 %v841_v17, %v841_v17 }
 0x153   :  { %2468 = vadd.xlane.f32.xlu0 %v2467_v49  ;;  %v2476_v39 = vadd.f32 %v2475_v19, %v1601_v7  ;;  %2483 = vadd.xlane.f32.xlu1 %v2482_v1  ;;  %v242_v7 = vld [vmem:[%s17077_s1 + $0x718] sm:$0xff]  ;;  %v851_v22 = vunpack.c.l.bf16 %v241_v50 }
 0x154   :  { %v1607_v49 = vmul.f32 %v839_v42, %v839_v42  ;;  %v2490_v24 = vadd.f32 %v1612_v11, %v1611_v31  ;;  %v1610_v27 = vmul.f32 %v842_v61, %v842_v61  ;;  %v240_v31 = vld [vmem:[%s17077_s1 + $0x708] sm:$0xff]  ;;  %v853_v42 = vunpack.c.l.bf16 %v242_v7 }
 0x155   :  { %9671 = vmatpush1.bf16.xpose.msra.mxu0 %v11656_v57  ;;  %v840_v57 = vunpack.c.h.bf16 %v235_v40  ;;  %v2477_v3 = vadd.f32 %v2476_v39, %v1602_v2  ;;  %v11670_v40 = vld [vmem:[%s17077_s1 + $0x464] ss:$16 sps:$4 sm:$0xff]   ;;  %v11673_v2 = vld [vmem:[%s17077_s1 + $0x46c] ss:$16 sps:$4 sm:$0xff]   ;;  %v854_v11 = vunpack.c.h.bf16 %v242_v7  ;;  %v849_v61 = vunpack.c.l.bf16 %v240_v31 }
 0x156   :  { %9712 = vmatpush1.bf16.xpose.msra.mxu1 %v11659_v45  ;;  %9672 = vmatprep.subr.bf16.mxu0 %v11664_v4  ;;  %v13844_v45 = vpop.xlane.xlu0 %2208  ;;  %v1614_v4 = vmul.f32 %v846_v16, %v846_v16  ;;  %v239_v39 = vld [vmem:[%s17077_s1 + $0x700] sm:$0xff]  ;;  %v2491_v19 = vadd.f32 %v2490_v24, %v1613_v54  ;;  %v852_v16 = vunpack.c.h.bf16 %v241_v50  ;;  %v1621_v48 = vmul.f32 %v853_v42, %v853_v42  ;;  %v245_v50 = vld [vmem:[%s17077_s1 + $0x730] sm:$0xff]  ;;  %v11679_v42 = vld [vmem:[%s17077_s1 + $0x44c] ss:$16 sps:$4 sm:$0xff]  }
 0x157   :  { %9713 = vmatprep.subr.bf16.mxu1 %v11667_v43  ;;  %17116 = vst [vmem:[#allocation30_spill] sm:$0xff] %v13844_v45  ;;  %v1608_v43 = vmul.f32 %v840_v57, %v840_v57  ;;  %2478 = vadd.xlane.f32.xlu0 %v2477_v3  ;;  %v1619_v57 = vmul.f32 %v851_v22, %v851_v22  ;;  %v847_v28 = vunpack.c.l.bf16 %v239_v39  ;;  %v848_v54 = vunpack.c.h.bf16 %v239_v39  ;;  %v11668_v22 = vld [vmem:[%s17077_s1 + $0x460] ss:$16 sps:$4 sm:$0xff]  }
 0x158   :  { %v2492_v17 = vadd.f32 %v2491_v19, %v1614_v4  ;;  %v1620_v46 = vmul.f32 %v852_v16, %v852_v16  ;;  %v1622_v3 = vmul.f32 %v854_v11, %v854_v11  ;;  %v859_v19 = vunpack.c.l.bf16 %v245_v50 }
 0x159   :  { %v2485_v1 = vadd.f32 %v1608_v43, %v1607_v49  ;;  %v13870_v49 = vpop.xlane.xlu1 %2233  ;;  %v850_v43 = vunpack.c.h.bf16 %v240_v31  ;;  %v1615_v7 = vmul.f32 %v847_v28, %v847_v28  ;;  %v11671_v28 = vld [vmem:[%s17077_s1 + $0x468] ss:$16 sps:$4 sm:$0xff]  }
 0x15a   :  { %17117 = vst [vmem:[#allocation31_spill] sm:$0xff] %v13870_v49  ;;  %v13872_v24 = vpop.xlane.xlu0 %2218  ;;  %2493 = vadd.xlane.f32.xlu1 %v2492_v17  ;;  %v2500_v4 = vadd.f32 %v1620_v46, %v1619_v57  ;;  %v243_v46 = vld [vmem:[%s17077_s1 + $0x720] sm:$0xff]  ;;  %v244_v31 = vld [vmem:[%s17077_s1 + $0x728] sm:$0xff]  ;;  %v1627_v57 = vmul.f32 %v859_v19, %v859_v19 }
 0x15b   :  { %v2486_v45 = vadd.f32 %v2485_v1, %v1609_v9  ;;  %17118 = vst [vmem:[#allocation32_spill] sm:$0xff] %v13872_v24  ;;  %v1617_v9 = vmul.f32 %v849_v61, %v849_v61  ;;  %v860_v1 = vunpack.c.h.bf16 %v245_v50  ;;  %v858_v24 = vunpack.c.h.bf16 %v244_v31 }
 0x15c   :  { %v2501_v39 = vadd.f32 %v2500_v4, %v1621_v48  ;;  %v11676_v48 = vld [vmem:[%s17077_s1 + $0x444] ss:$16 sps:$4 sm:$0xff]  }
 0x15d   :  { %9673 = vmatpush1.bf16.xpose.msra.mxu0 %v11662_v25  ;;  %v2487_v25 = vadd.f32 %v2486_v45, %v1610_v27  ;;  %v1618_v45 = vmul.f32 %v850_v43, %v850_v43  ;;  %v1628_v17 = vmul.f32 %v860_v1, %v860_v1  ;;  %v13895_v4 = vpop.xlane.xlu1 %2243 }
 0x15e   :  { %9714 = vmatpush1.bf16.xpose.msra.mxu1 %v11665_v14  ;;  %9674 = vmatprep.subr.bf16.mxu0 %v11670_v40  ;;  %v246_v14 = vld [vmem:[%s17077_s1 + $0x738] sm:$0xff]  ;;  %v1616_v40 = vmul.f32 %v848_v54, %v848_v54  ;;  %v2502_v11 = vadd.f32 %v2501_v39, %v1622_v3  ;;  %17119 = vst [vmem:[#allocation33_spill] sm:$0xff] %v13895_v4  ;;  %v13897_v43 = vpop.xlane.xlu0 %2228  ;;  %v249_v3 = vld [vmem:[%s17077_s1 + $0x750] sm:$0xff] }
 0x15f   :  { %9715 = vmatprep.subr.bf16.mxu1 %v11673_v2  ;;  %2488 = vadd.xlane.f32.xlu0 %v2487_v25  ;;  %v861_v27 = vunpack.c.l.bf16 %v246_v14  ;;  %v862_v16 = vunpack.c.h.bf16 %v246_v14  ;;  %v855_v25 = vunpack.c.l.bf16 %v243_v46  ;;  %17120 = vst [vmem:[#allocation34_spill] sm:$0xff] %v13897_v43  ;;  %v856_v14 = vunpack.c.h.bf16 %v243_v46  ;;  %v247_v46 = vld [vmem:[%s17077_s1 + $0x740] sm:$0xff] }
 0x160   :  { %v2495_v2 = vadd.f32 %v1616_v40, %v1615_v7  ;;  %2503 = vadd.xlane.f32.xlu1 %v2502_v11  ;;  %v2510_v7 = vadd.f32 %v1628_v17, %v1627_v57  ;;  %v857_v40 = vunpack.c.l.bf16 %v244_v31  ;;  %v248_v11 = vld [vmem:[%s17077_s1 + $0x748] sm:$0xff] }
 0x161   :  { %v1629_v61 = vmul.f32 %v861_v27, %v861_v27  ;;  %v1630_v50 = vmul.f32 %v862_v16, %v862_v16  ;;  %v1623_v19 = vmul.f32 %v855_v25, %v855_v25  ;;  %v867_v27 = vunpack.c.l.bf16 %v249_v3  ;;  %v11677_v17 = vld [vmem:[%s17077_s1 + $0x448] ss:$16 sps:$4 sm:$0xff]  }
 0x162   :  { %v2496_v54 = vadd.f32 %v2495_v2, %v1617_v9  ;;  %v250_v9 = vld [vmem:[%s17077_s1 + $0x758] sm:$0xff]  ;;  %v1625_v2 = vmul.f32 %v857_v40, %v857_v40  ;;  %v868_v16 = vunpack.c.h.bf16 %v249_v3  ;;  %v13920_v40 = vpop.xlane.xlu1 %2253  ;;  %v13922_v3 = vpop.xlane.xlu0 %2238 }
 0x163   :  { %v2511_v1 = vadd.f32 %v2510_v7, %v1629_v61  ;;  %v869_v31 = vunpack.c.l.bf16 %v250_v9  ;;  %v870_v57 = vunpack.c.h.bf16 %v250_v9  ;;  %v1635_v61 = vmul.f32 %v867_v27, %v867_v27  ;;  %17121 = vst [vmem:[#allocation35_spill] sm:$0xff] %v13920_v40  ;;  %17122 = vst [vmem:[#allocation36_spill] sm:$0xff] %v13922_v3 }
 0x164   :  { %v2497_v39 = vadd.f32 %v2496_v54, %v1618_v45  ;;  %v11682_v54 = vld [vmem:[%s17077_s1 + $0x424] ss:$16 sps:$4 sm:$0xff]   ;;  %v1636_v25 = vmul.f32 %v868_v16, %v868_v16  ;;  %v864_v9 = vunpack.c.h.bf16 %v247_v46  ;;  %v866_v27 = vunpack.c.h.bf16 %v248_v11 }
 0x165   :  { %9675 = vmatpush1.bf16.xpose.msra.mxu0 %v11668_v22  ;;  %v1624_v22 = vmul.f32 %v856_v14, %v856_v14  ;;  %v2512_v45 = vadd.f32 %v2511_v1, %v1630_v50  ;;  %v1637_v7 = vmul.f32 %v869_v31, %v869_v31  ;;  %v863_v14 = vunpack.c.l.bf16 %v247_v46  ;;  %v254_v31 = vld [vmem:[%s17077_s1 + $0x778] sm:$0xff] }
 0x166   :  { %9716 = vmatpush1.bf16.xpose.msra.mxu1 %v11671_v28  ;;  %9676 = vmatprep.subr.bf16.mxu0 %v11676_v48  ;;  %v11674_v28 = vld [vmem:[%s17077_s1 + $0x440] ss:$16 sps:$4 sm:$0xff]   ;;  %v1626_v48 = vmul.f32 %v858_v24, %v858_v24  ;;  %v11685_v24 = vld [vmem:[%s17077_s1 + $0x42c] ss:$16 sps:$4 sm:$0xff]   ;;  %v1638_v1 = vmul.f32 %v870_v57, %v870_v57  ;;  %v1632_v43 = vmul.f32 %v864_v9, %v864_v9  ;;  %v13939_v9 = vpop.xlane.xlu1 %2263 }
 0x167   :  { %9717 = vmatprep.subr.bf16.mxu1 %v11679_v42  ;;  %2498 = vadd.xlane.f32.xlu0 %v2497_v39  ;;  %v2505_v42 = vadd.f32 %v1624_v22, %v1623_v19  ;;  %v865_v39 = vunpack.c.l.bf16 %v248_v11  ;;  %v253_v19 = vld [vmem:[%s17077_s1 + $0x770] sm:$0xff]  ;;  %v2520_v22 = vadd.f32 %v1636_v25, %v1635_v61  ;;  %v1631_v16 = vmul.f32 %v863_v14, %v863_v14 }
 0x168   :  { %2513 = vadd.xlane.f32.xlu1 %v2512_v45  ;;  %v875_v45 = vunpack.c.l.bf16 %v253_v19  ;;  %v1634_v11 = vmul.f32 %v866_v27, %v866_v27  ;;  %v876_v57 = vunpack.c.h.bf16 %v253_v19  ;;  %v877_v61 = vunpack.c.l.bf16 %v254_v31  ;;  %17123 = vst [vmem:[#allocation37_spill] sm:$0xff] %v13939_v9  ;;  %v11683_v19 = vld [vmem:[%s17077_s1 + $0x428] ss:$16 sps:$4 sm:$0xff]  }
 0x169   :  { %v2506_v50 = vadd.f32 %v2505_v42, %v1625_v2  ;;  %v1633_v40 = vmul.f32 %v865_v39, %v865_v39  ;;  %v251_v2 = vld [vmem:[%s17077_s1 + $0x760] sm:$0xff]  ;;  %v2521_v46 = vadd.f32 %v2520_v22, %v1637_v7  ;;  %v2515_v42 = vadd.f32 %v1632_v43, %v1631_v16  ;;  %v257_v39 = vld [vmem:[%s17077_s1 + $0x790] sm:$0xff] }
 0x16a   :  { %v878_v25 = vunpack.c.h.bf16 %v254_v31  ;;  %v1643_v14 = vmul.f32 %v875_v45, %v875_v45  ;;  %v1644_v43 = vmul.f32 %v876_v57, %v876_v57  ;;  %v11688_v16 = vld [vmem:[%s17077_s1 + $0x404] ss:$16 sps:$4 sm:$0xff]   ;;  %v884_v9 = vunpack.c.h.bf16 %v257_v39 }
 0x16b   :  { %v2507_v3 = vadd.f32 %v2506_v50, %v1626_v48  ;;  %v2522_v48 = vadd.f32 %v2521_v46, %v1638_v1  ;;  %v871_v50 = vunpack.c.l.bf16 %v251_v2  ;;  %v2516_v7 = vadd.f32 %v2515_v42, %v1633_v40  ;;  %v11691_v40 = vld [vmem:[%s17077_s1 + $0x40c] ss:$16 sps:$4 sm:$0xff]  }
 0x16c   :  { %v2530_v46 = vadd.f32 %v1644_v43, %v1643_v14  ;;  %v258_v42 = vld [vmem:[%s17077_s1 + $0x798] sm:$0xff]  ;;  %v13967_v43 = vpop.xlane.xlu1 %2273 }
 0x16d   :  { %9677 = vmatpush1.bf16.xpose.msra.mxu0 %v11674_v28  ;;  %2508 = vadd.xlane.f32.xlu0 %v2507_v3  ;;  %v252_v28 = vld [vmem:[%s17077_s1 + $0x768] sm:$0xff]  ;;  %v1645_v3 = vmul.f32 %v877_v61, %v877_v61  ;;  %v1639_v27 = vmul.f32 %v871_v50, %v871_v50  ;;  %v2517_v31 = vadd.f32 %v2516_v7, %v1634_v11  ;;  %v883_v61 = vunpack.c.l.bf16 %v257_v39 }
 0x16e   :  { %9718 = vmatpush1.bf16.xpose.msra.mxu1 %v11677_v17  ;;  %9678 = vmatprep.subr.bf16.mxu0 %v11682_v54  ;;  %v13941_v17 = vpop.xlane.xlu0 %2248  ;;  %v11680_v54 = vld [vmem:[%s17077_s1 + $0x420] ss:$16 sps:$4 sm:$0xff]   ;;  %v873_v1 = vunpack.c.l.bf16 %v252_v28  ;;  %v874_v22 = vunpack.c.h.bf16 %v252_v28  ;;  %v256_v11 = vld [vmem:[%s17077_s1 + $0x788] sm:$0xff]  ;;  %v886_v14 = vunpack.c.h.bf16 %v258_v42  ;;  %17125 = vst [vmem:[#allocation39_spill] sm:$0xff] %v13967_v43 }
 0x16f   :  { %9719 = vmatprep.subr.bf16.mxu1 %v11685_v24  ;;  %17124 = vst [vmem:[#allocation38_spill] sm:$0xff] %v13941_v17  ;;  %v872_v24 = vunpack.c.h.bf16 %v251_v2  ;;  %2523 = vadd.xlane.f32.xlu1 %v2522_v48  ;;  %v1646_v2 = vmul.f32 %v878_v25, %v878_v25  ;;  %v255_v28 = vld [vmem:[%s17077_s1 + $0x780] sm:$0xff]  ;;  %v2531_v48 = vadd.f32 %v2530_v46, %v1645_v3  ;;  %v885_v25 = vunpack.c.l.bf16 %v258_v42 }
 0x170   :  { %v1641_v57 = vmul.f32 %v873_v1, %v873_v1  ;;  %v1642_v50 = vmul.f32 %v874_v22, %v874_v22  ;;  %v1651_v7 = vmul.f32 %v883_v61, %v883_v61  ;;  %v1652_v3 = vmul.f32 %v884_v9, %v884_v9  ;;  %v262_v9 = vld [vmem:[%s17077_s1 + $0x7b8] sm:$0xff] }
 0x171   :  { %v1640_v45 = vmul.f32 %v872_v24, %v872_v24  ;;  %2518 = vadd.xlane.f32.xlu0 %v2517_v31  ;;  %v879_v22 = vunpack.c.l.bf16 %v255_v28  ;;  %v1654_v39 = vmul.f32 %v886_v14, %v886_v14  ;;  %v880_v31 = vunpack.c.h.bf16 %v255_v28  ;;  %v259_v14 = vld [vmem:[%s17077_s1 + $0x7a0] sm:$0xff] }
 0x172   :  { %v13969_v24 = vpop.xlane.xlu0 %2258  ;;  %v881_v46 = vunpack.c.l.bf16 %v256_v11 }
 0x173   :  { %v2525_v17 = vadd.f32 %v1640_v45, %v1639_v27  ;;  %17126 = vst [vmem:[#allocation40_spill] sm:$0xff] %v13969_v24  ;;  %v1653_v27 = vmul.f32 %v885_v25, %v885_v25  ;;  %v11686_v45 = vld [vmem:[%s17077_s1 + $0x400] ss:$16 sps:$4 sm:$0xff]   ;;  %v1648_v61 = vmul.f32 %v880_v31, %v880_v31  ;;  %v894_v31 = vunpack.c.h.bf16 %v262_v9 }
 0x174   :  { %v1649_v28 = vmul.f32 %v881_v46, %v881_v46  ;;  %v260_v46 = vld [vmem:[%s17077_s1 + $0x7a8] sm:$0xff] }
 0x175   :  { %9679 = vmatpush1.bf16.xpose.msra.mxu0 %v11680_v54  ;;  %v2532_v54 = vadd.f32 %v2531_v48, %v1646_v2  ;;  %v2526_v1 = vadd.f32 %v2525_v17, %v1641_v57  ;;  %v1647_v2 = vmul.f32 %v879_v22, %v879_v22  ;;  %v11689_v17 = vld [vmem:[%s17077_s1 + $0x408] ss:$16 sps:$4 sm:$0xff]   ;;  %v11694_v57 = vld [vmem:[%s17077_s1 + $0x5e4] ss:$16 sps:$4 sm:$0xff]   ;;  %v11697_v48 = vld [vmem:[%s17077_s1 + $0x5ec] ss:$16 sps:$4 sm:$0xff]   ;;  %v893_v22 = vunpack.c.l.bf16 %v262_v9 }
 0x176   :  { %9720 = vmatpush1.bf16.xpose.msra.mxu1 %v11683_v19  ;;  %9680 = vmatprep.subr.bf16.mxu0 %v11688_v16  ;;  %v261_v19 = vld [vmem:[%s17077_s1 + $0x7b0] sm:$0xff]  ;;  %v2540_v16 = vadd.f32 %v1652_v3, %v1651_v7  ;;  %v889_v4 = vunpack.c.l.bf16 %v260_v46 }
 0x177   :  { %9721 = vmatprep.subr.bf16.mxu1 %v11691_v40  ;;  %2533 = vadd.xlane.f32.xlu1 %v2532_v54  ;;  %v2527_v42 = vadd.f32 %v2526_v1, %v1642_v50  ;;  %v882_v40 = vunpack.c.h.bf16 %v256_v11  ;;  %v891_v11 = vunpack.c.l.bf16 %v261_v19  ;;  %v892_v25 = vunpack.c.h.bf16 %v261_v19 }
 0x178   :  { %v2541_v50 = vadd.f32 %v2540_v16, %v1653_v27  ;;  %v2535_v3 = vadd.f32 %v1648_v61, %v1647_v2  ;;  %v14001_v27 = vpop.xlane.xlu0 %2268  ;;  %v1661_v9 = vmul.f32 %v893_v22, %v893_v22  ;;  %v1662_v61 = vmul.f32 %v894_v31, %v894_v31 }
 0x179   :  { %2528 = vadd.xlane.f32.xlu0 %v2527_v42  ;;  %v1650_v1 = vmul.f32 %v882_v40, %v882_v40  ;;  %v13999_v42 = vpop.xlane.xlu1 %2283  ;;  %17130 = vst [vmem:[#allocation44_spill] sm:$0xff] %v14001_v27  ;;  %v1659_v16 = vmul.f32 %v891_v11, %v891_v11  ;;  %v1660_v24 = vmul.f32 %v892_v25, %v892_v25  ;;  %v890_v27 = vunpack.c.h.bf16 %v260_v46 }
 0x17a   :  { %17129 = vst [vmem:[#allocation43_spill] sm:$0xff] %v13999_v42  ;;  %v2542_v19 = vadd.f32 %v2541_v50, %v1654_v39  ;;  %v2536_v2 = vadd.f32 %v2535_v3, %v1649_v28  ;;  %v888_v42 = vunpack.c.h.bf16 %v259_v14  ;;  %v265_v39 = vld [vmem:[%s17077_s1 + $0x7d0] sm:$0xff]  ;;  %v1657_v25 = vmul.f32 %v889_v4, %v889_v4  ;;  %v11695_v3 = vld [vmem:[%s17077_s1 + $0x5e8] ss:$16 sps:$4 sm:$0xff]  }
 0x17b   :  { %v2550_v43 = vadd.f32 %v1660_v24, %v1659_v16  ;;  %v1658_v4 = vmul.f32 %v890_v27, %v890_v27 }
 0x17c   :  { %v13992_v7 = vpop.f32.mrf.mxu0  ;;  %v13994_v54 = vpop.f32.mrf.mxu1  ;;  %2543 = vadd.xlane.f32.xlu1 %v2542_v19  ;;  %v2537_v28 = vadd.f32 %v2536_v2, %v1650_v1  ;;  %v1656_v11 = vmul.f32 %v888_v42, %v888_v42  ;;  %v899_v1 = vunpack.c.l.bf16 %v265_v39 }
 0x17d   :  { %17127 = vst [vmem:[#allocation41_spill] sm:$0xff] %v13992_v7  ;;  %17128 = vst [vmem:[#allocation42_spill] sm:$0xff] %v13994_v54  ;;  %9681 = vmatpush1.bf16.xpose.msra.mxu0 %v11686_v45  ;;  %v887_v54 = vunpack.c.l.bf16 %v259_v14  ;;  %v266_v45 = vld [vmem:[%s17077_s1 + $0x7d8] sm:$0xff]  ;;  %v2551_v24 = vadd.f32 %v2550_v43, %v1661_v9  ;;  %v263_v14 = vld [vmem:[%s17077_s1 + $0x7c0] sm:$0xff]  ;;  %v14025_v2 = vpop.xlane.xlu1 %2293  ;;  %v14027_v9 = vpop.xlane.xlu0 %2278 }
 0x17e   :  { %9722 = vmatpush1.bf16.xpose.msra.mxu1 %v11689_v17  ;;  %9682 = vmatprep.subr.bf16.mxu0 %v11694_v57  ;;  %v14003_v7 = vpop.f32.mrf.mxu0  ;;  %v14005_v40 = vpop.f32.mrf.mxu1  ;;  %v901_v46 = vunpack.c.l.bf16 %v266_v45  ;;  %v264_v43 = vld [vmem:[%s17077_s1 + $0x7c8] sm:$0xff]  ;;  %v902_v16 = vunpack.c.h.bf16 %v266_v45  ;;  %17133 = vst [vmem:[#allocation47_spill] sm:$0xff] %v14025_v2  ;;  %17134 = vst [vmem:[#allocation48_spill] sm:$0xff] %v14027_v9 }
 0x17f   :  { %17131 = vst [vmem:[#allocation45_spill] sm:$0xff] %v14003_v7  ;;  %17132 = vst [vmem:[#allocation46_spill] sm:$0xff] %v14005_v40  ;;  %9723 = vmatprep.subr.bf16.mxu1 %v11697_v48  ;;  %v1655_v50 = vmul.f32 %v887_v54, %v887_v54  ;;  %v11692_v48 = vld [vmem:[%s17077_s1 + $0x5e0] ss:$16 sps:$4 sm:$0xff]   ;;  %2538 = vadd.xlane.f32.xlu0 %v2537_v28  ;;  %v900_v54 = vunpack.c.h.bf16 %v265_v39  ;;  %v2552_v42 = vadd.f32 %v2551_v24, %v1662_v61  ;;  %v11703_v39 = vld [vmem:[%s17077_s1 + $0x5cc] ss:$16 sps:$4 sm:$0xff]  }
 0x180   :  { %v8745_v17 = vpop.f32.mrf.mxu0  ;;  %v8786_v57 = vpop.f32.mrf.mxu1  ;;  %v896_v61 = vunpack.c.h.bf16 %v263_v14  ;;  %v897_v45 = vunpack.c.l.bf16 %v264_v43  ;;  %v1670_v24 = vmul.f32 %v902_v16, %v902_v16  ;;  %v898_v40 = vunpack.c.h.bf16 %v264_v43 }
 0x181   :  { %v2545_v19 = vadd.f32 %v1656_v11, %v1655_v50  ;;  %v11700_v17 = vld [vmem:[%s17077_s1 + $0x5c4] ss:$16 sps:$4 sm:$0xff]   ;;  %v1667_v57 = vmul.f32 %v899_v1, %v899_v1  ;;  %v1668_v28 = vmul.f32 %v900_v54, %v900_v54  ;;  %2553 = vadd.xlane.f32.xlu1 %v2552_v42  ;;  %v270_v1 = vld [vmem:[%s17077_s1 + $0x7f8] sm:$0xff] }
 0x182   :  { %v8746_v22 = vpop.f32.mrf.mxu0  ;;  %v8787_v31 = vpop.f32.mrf.mxu1  ;;  %v269_v50 = vld [vmem:[%s17077_s1 + $0x7f0] sm:$0xff]  ;;  %v1664_v54 = vmul.f32 %v896_v61, %v896_v61  ;;  %v1666_v43 = vmul.f32 %v898_v40, %v898_v40 }
 0x183   :  { %v1669_v22 = vmul.f32 %v901_v46, %v901_v46  ;;  %v895_v31 = vunpack.c.l.bf16 %v263_v14  ;;  %v2546_v27 = vadd.f32 %v2545_v19, %v1657_v25  ;;  %v2560_v11 = vadd.f32 %v1668_v28, %v1667_v57  ;;  %v267_v14 = vld [vmem:[%s17077_s1 + $0x7e0] sm:$0xff]  ;;  %v11701_v28 = vld [vmem:[%s17077_s1 + $0x5c8] ss:$16 sps:$4 sm:$0xff]  }
 0x184   :  { %v1665_v25 = vmul.f32 %v897_v45, %v897_v45  ;;  %v907_v42 = vunpack.c.l.bf16 %v269_v50  ;;  %v908_v16 = vunpack.c.h.bf16 %v269_v50  ;;  %v909_v57 = vunpack.c.l.bf16 %v270_v1 }
 0x185   :  { %9683 = vmatpush2.bf16.xpose.msra.mxu0 %v11692_v48  ;;  %v1663_v7 = vmul.f32 %v895_v31, %v895_v31  ;;  %v2547_v48 = vadd.f32 %v2546_v27, %v1658_v4  ;;  %v2561_v46 = vadd.f32 %v2560_v11, %v1669_v22  ;;  %v268_v4 = vld [vmem:[%s17077_s1 + $0x7e8] sm:$0xff]  ;;  %v910_v31 = vunpack.c.h.bf16 %v270_v1  ;;  %v273_v11 = vld [vmem:[%s17077_s1 + $0x810] sm:$0xff]  ;;  %v274_v1 = vld [vmem:[%s17077_s1 + $0x818] sm:$0xff] }
 0x186   :  { %9724 = vmatpush2.bf16.xpose.msra.mxu1 %v11695_v3  ;;  %9684 = vmatprep.subr.bf16.mxu0 %v11700_v17  ;;  %v11698_v3 = vld [vmem:[%s17077_s1 + $0x5c0] ss:$16 sps:$4 sm:$0xff]   ;;  %v14050_v17 = vpop.xlane.xlu1 %2303  ;;  %v1675_v27 = vmul.f32 %v907_v42, %v907_v42  ;;  %v903_v61 = vunpack.c.l.bf16 %v267_v14  ;;  %v1677_v45 = vmul.f32 %v909_v57, %v909_v57  ;;  %v904_v50 = vunpack.c.h.bf16 %v267_v14 }
 0x187   :  { %9725 = vmatprep.subr.bf16.mxu1 %v11703_v39  ;;  %2548 = vadd.xlane.f32.xlu0 %v2547_v48  ;;  %v2555_v19 = vadd.f32 %v1664_v54, %v1663_v7  ;;  %17135 = vst [vmem:[#allocation49_spill] sm:$0xff] %v14050_v17  ;;  %v14052_v39 = vpop.xlane.xlu0 %2288  ;;  %v2562_v22 = vadd.f32 %v2561_v46, %v1670_v24  ;;  %v905_v48 = vunpack.c.l.bf16 %v268_v4  ;;  %v906_v54 = vunpack.c.h.bf16 %v268_v4  ;;  %v271_v46 = vld [vmem:[%s17077_s1 + $0x800] sm:$0xff] }
 0x188   :  { %17136 = vst [vmem:[#allocation50_spill] sm:$0xff] %v14052_v39  ;;  %v1676_v7 = vmul.f32 %v908_v16, %v908_v16  ;;  %v1671_v39 = vmul.f32 %v903_v61, %v903_v61  ;;  %v1678_v17 = vmul.f32 %v910_v31, %v910_v31  ;;  %v1672_v24 = vmul.f32 %v904_v50, %v904_v50  ;;  %v11704_v31 = vld [vmem:[%s17077_s1 + $0x5a0] ss:$16 sps:$4 sm:$0xff]  }
 0x189   :  { %v2556_v40 = vadd.f32 %v2555_v19, %v1665_v25  ;;  %2563 = vadd.xlane.f32.xlu1 %v2562_v22  ;;  %v1673_v25 = vmul.f32 %v905_v48, %v905_v48  ;;  %v915_v14 = vunpack.c.l.bf16 %v273_v11  ;;  %v1674_v19 = vmul.f32 %v906_v54, %v906_v54 }
 0x18a   :  { %v2570_v2 = vadd.f32 %v1676_v7, %v1675_v27  ;;  %v2565_v16 = vadd.f32 %v1672_v24, %v1671_v39  ;;  %v14069_v57 = vpop.xlane.xlu1 %2313  ;;  %v918_v22 = vunpack.c.h.bf16 %v274_v1  ;;  %v911_v7 = vunpack.c.l.bf16 %v271_v46  ;;  %v277_v24 = vld [vmem:[%s17077_s1 + $0x830] sm:$0xff] }
 0x18b   :  { %v2557_v9 = vadd.f32 %v2556_v40, %v1666_v43  ;;  %v272_v43 = vld [vmem:[%s17077_s1 + $0x808] sm:$0xff]  ;;  %17137 = vst [vmem:[#allocation51_spill] sm:$0xff] %v14069_v57  ;;  %v14071_v4 = vpop.xlane.xlu0 %2298  ;;  %v1683_v39 = vmul.f32 %v915_v14, %v915_v14  ;;  %v912_v48 = vunpack.c.h.bf16 %v271_v46  ;;  %v923_v46 = vunpack.c.l.bf16 %v277_v24 }
 0x18c   :  { %v2571_v42 = vadd.f32 %v2570_v2, %v1677_v45  ;;  %17138 = vst [vmem:[#allocation52_spill] sm:$0xff] %v14071_v4  ;;  %v917_v2 = vunpack.c.l.bf16 %v274_v1  ;;  %v2566_v61 = vadd.f32 %v2565_v16, %v1673_v25  ;;  %v11707_v45 = vld [vmem:[%s17077_s1 + $0x5a8] ss:$16 sps:$4 sm:$0xff]   ;;  %v913_v54 = vunpack.c.l.bf16 %v272_v43 }
 0x18d   :  { %9685 = vmatpush2.bf16.xpose.msra.mxu0 %v11698_v3  ;;  %2558 = vadd.xlane.f32.xlu0 %v2557_v9  ;;  %v916_v3 = vunpack.c.h.bf16 %v273_v11  ;;  %v11709_v9 = vld [vmem:[%s17077_s1 + $0x5ac] ss:$16 sps:$4 sm:$0xff]   ;;  %v1686_v11 = vmul.f32 %v918_v22, %v918_v22  ;;  %v914_v25 = vunpack.c.h.bf16 %v272_v43  ;;  %v1679_v14 = vmul.f32 %v911_v7, %v911_v7 }
 0x18e   :  { %9726 = vmatpush2.bf16.xpose.msra.mxu1 %v11701_v28  ;;  %v11706_v28 = vld [vmem:[%s17077_s1 + $0x5a4] ss:$16 sps:$4 sm:$0xff]   ;;  %v2572_v27 = vadd.f32 %v2571_v42, %v1678_v17  ;;  %v1685_v50 = vmul.f32 %v917_v2, %v917_v2  ;;  %v2567_v1 = vadd.f32 %v2566_v61, %v1674_v19  ;;  %v278_v42 = vld [vmem:[%s17077_s1 + $0x838] sm:$0xff]  ;;  %v1680_v16 = vmul.f32 %v912_v48, %v912_v48  ;;  %v14094_v22 = vpop.xlane.xlu1 %2323 }
 0x18f   :  { %v1684_v40 = vmul.f32 %v916_v3, %v916_v3  ;;  %9686 = vmatprep.subr.bf16.mxu0 %v11706_v28  ;;  %9727 = vmatprep.subr.bf16.mxu1 %v11709_v9  ;;  %v1681_v3 = vmul.f32 %v913_v54, %v913_v54  ;;  %v924_v9 = vunpack.c.h.bf16 %v277_v24  ;;  %v275_v2 = vld [vmem:[%s17077_s1 + $0x820] sm:$0xff]  ;;  %17139 = vst [vmem:[#allocation53_spill] sm:$0xff] %v14094_v22  ;;  %v14096_v19 = vpop.xlane.xlu0 %2308  ;;  %v926_v61 = vunpack.c.h.bf16 %v278_v42 }
 0x190   :  { %2573 = vadd.xlane.f32.xlu1 %v2572_v27  ;;  %17140 = vst [vmem:[#allocation54_spill] sm:$0xff] %v14096_v19  ;;  %v1682_v43 = vmul.f32 %v914_v25, %v914_v25  ;;  %v925_v27 = vunpack.c.l.bf16 %v278_v42  ;;  %v1691_v7 = vmul.f32 %v923_v46, %v923_v46  ;;  %v920_v4 = vunpack.c.h.bf16 %v275_v2  ;;  %v281_v25 = vld [vmem:[%s17077_s1 + $0x850] sm:$0xff]  ;;  %v279_v46 = vld [vmem:[%s17077_s1 + $0x840] sm:$0xff] }
 0x191   :  { %v2580_v17 = vadd.f32 %v1684_v40, %v1683_v39  ;;  %2568 = vadd.xlane.f32.xlu0 %v2567_v1  ;;  %v2575_v39 = vadd.f32 %v1680_v16, %v1679_v14  ;;  %v1694_v24 = vmul.f32 %v926_v61, %v926_v61  ;;  %v919_v1 = vunpack.c.l.bf16 %v275_v2  ;;  %v282_v14 = vld [vmem:[%s17077_s1 + $0x858] sm:$0xff] }
 0x192   :  { %v1693_v54 = vmul.f32 %v925_v27, %v925_v27  ;;  %v932_v27 = vunpack.c.h.bf16 %v281_v25  ;;  %v933_v61 = vunpack.c.l.bf16 %v282_v14 }
 0x193   :  { %v2581_v28 = vadd.f32 %v2580_v17, %v1685_v50  ;;  %v1692_v50 = vmul.f32 %v924_v9, %v924_v9  ;;  %v2576_v48 = vadd.f32 %v2575_v39, %v1681_v3  ;;  %v1687_v42 = vmul.f32 %v919_v1, %v919_v1  ;;  %v14110_v9 = vpop.xlane.xlu1 %2333  ;;  %v14112_v2 = vpop.xlane.xlu0 %2318 }
 0x194   :  { %v1688_v3 = vmul.f32 %v920_v4, %v920_v4  ;;  %17141 = vst [vmem:[#allocation55_spill] sm:$0xff] %v14110_v9  ;;  %17142 = vst [vmem:[#allocation56_spill] sm:$0xff] %v14112_v2  ;;  %v931_v39 = vunpack.c.l.bf16 %v281_v25  ;;  %v1701_v1 = vmul.f32 %v933_v61, %v933_v61  ;;  %v11710_v25 = vld [vmem:[%s17077_s1 + $0x580] ss:$16 sps:$4 sm:$0xff]   ;;  %v286_v61 = vld [vmem:[%s17077_s1 + $0x878] sm:$0xff] }
 0x195   :  { %9687 = vmatpush2.bf16.xpose.msra.mxu0 %v11704_v31  ;;  %v276_v31 = vld [vmem:[%s17077_s1 + $0x828] sm:$0xff]  ;;  %v2582_v40 = vadd.f32 %v2581_v28, %v1686_v11  ;;  %v2590_v17 = vadd.f32 %v1692_v50, %v1691_v7  ;;  %v2577_v11 = vadd.f32 %v2576_v48, %v1682_v43  ;;  %v11712_v7 = vld [vmem:[%s17077_s1 + $0x584] ss:$16 sps:$4 sm:$0xff]  }
 0x196   :  { %9728 = vmatpush2.bf16.xpose.msra.mxu1 %v11707_v45  ;;  %v921_v19 = vunpack.c.l.bf16 %v276_v31  ;;  %v922_v45 = vunpack.c.h.bf16 %v276_v31  ;;  %v280_v43 = vld [vmem:[%s17077_s1 + $0x848] sm:$0xff]  ;;  %v2585_v4 = vadd.f32 %v1688_v3, %v1687_v42  ;;  %v1699_v48 = vmul.f32 %v931_v39, %v931_v39  ;;  %v285_v42 = vld [vmem:[%s17077_s1 + $0x870] sm:$0xff]  ;;  %9688 = vmatprep.subr.bf16.mxu0 %v11712_v7 }
 0x197   :  { %2583 = vadd.xlane.f32.xlu1 %v2582_v40  ;;  %v2591_v16 = vadd.f32 %v2590_v17, %v1693_v54  ;;  %2578 = vadd.xlane.f32.xlu0 %v2577_v11  ;;  %v11715_v50 = vld [vmem:[%s17077_s1 + $0x58c] ss:$16 sps:$4 sm:$0xff]   ;;  %v1700_v54 = vmul.f32 %v932_v27, %v932_v27  ;;  %v927_v17 = vunpack.c.l.bf16 %v279_v46  ;;  %v929_v11 = vunpack.c.l.bf16 %v280_v43  ;;  %v14140_v7 = vpop.xlane.xlu0 %2328 }
 0x198   :  { %v1689_v28 = vmul.f32 %v921_v19, %v921_v19  ;;  %v1690_v40 = vmul.f32 %v922_v45, %v922_v45  ;;  %v934_v19 = vunpack.c.h.bf16 %v282_v14  ;;  %v928_v14 = vunpack.c.h.bf16 %v279_v46  ;;  %9729 = vmatprep.subr.bf16.mxu1 %v11715_v50  ;;  %v283_v46 = vld [vmem:[%s17077_s1 + $0x860] sm:$0xff]  ;;  %17144 = vst [vmem:[#allocation58_spill] sm:$0xff] %v14140_v7 }
 0x199   :  { %v2592_v31 = vadd.f32 %v2591_v16, %v1694_v24  ;;  %v11713_v24 = vld [vmem:[%s17077_s1 + $0x588] ss:$16 sps:$4 sm:$0xff]   ;;  %v2600_v3 = vadd.f32 %v1700_v54, %v1699_v48  ;;  %v930_v39 = vunpack.c.h.bf16 %v280_v43  ;;  %v1695_v27 = vmul.f32 %v927_v17, %v927_v17 }
 0x19a   :  { %v2586_v45 = vadd.f32 %v2585_v4, %v1689_v28  ;;  %v1702_v16 = vmul.f32 %v934_v19, %v934_v19  ;;  %v1697_v28 = vmul.f32 %v929_v11, %v929_v11  ;;  %v14138_v4 = vpop.xlane.xlu1 %2343  ;;  %v939_v19 = vunpack.c.l.bf16 %v285_v42 }
 0x19b   :  { %2593 = vadd.xlane.f32.xlu1 %v2592_v31  ;;  %v1696_v31 = vmul.f32 %v928_v14, %v928_v14  ;;  %17143 = vst [vmem:[#allocation57_spill] sm:$0xff] %v14138_v4  ;;  %v2601_v43 = vadd.f32 %v2600_v3, %v1701_v1  ;;  %v1698_v48 = vmul.f32 %v930_v39, %v930_v39  ;;  %v940_v17 = vunpack.c.h.bf16 %v285_v42 }
 0x19c   :  { %v2587_v2 = vadd.f32 %v2586_v45, %v1690_v40  ;;  %v941_v50 = vunpack.c.l.bf16 %v286_v61  ;;  %v284_v40 = vld [vmem:[%s17077_s1 + $0x868] sm:$0xff]  ;;  %v942_v45 = vunpack.c.h.bf16 %v286_v61  ;;  %v1707_v14 = vmul.f32 %v939_v19, %v939_v19  ;;  %v287_v19 = vld [vmem:[%s17077_s1 + $0x880] sm:$0xff] }
 0x19d   :  { %9689 = vmatpush2.bf16.xpose.msra.mxu0 %v11710_v25  ;;  %v2595_v54 = vadd.f32 %v1696_v31, %v1695_v27  ;;  %v2602_v25 = vadd.f32 %v2601_v43, %v1702_v16  ;;  %v935_v11 = vunpack.c.l.bf16 %v283_v46  ;;  %v1708_v4 = vmul.f32 %v940_v17, %v940_v17  ;;  %v290_v16 = vld [vmem:[%s17077_s1 + $0x898] sm:$0xff]  ;;  %v11718_v17 = vld [vmem:[%s17077_s1 + $0x564] ss:$16 sps:$4 sm:$0xff]  }
 0x19e   :  { %9730 = vmatpush2.bf16.xpose.msra.mxu1 %v11713_v24  ;;  %2588 = vadd.xlane.f32.xlu0 %v2587_v2  ;;  %v1709_v22 = vmul.f32 %v941_v50, %v941_v50  ;;  %v936_v7 = vunpack.c.h.bf16 %v283_v46  ;;  %v289_v2 = vld [vmem:[%s17077_s1 + $0x890] sm:$0xff]  ;;  %v937_v1 = vunpack.c.l.bf16 %v284_v40  ;;  %v938_v24 = vunpack.c.h.bf16 %v284_v40  ;;  %v14151_v61 = vpop.xlane.xlu1 %2353  ;;  %v11721_v50 = vld [vmem:[%s17077_s1 + $0x56c] ss:$16 sps:$4 sm:$0xff]  }
 0x19f   :  { %v2596_v9 = vadd.f32 %v2595_v54, %v1697_v28  ;;  %2603 = vadd.xlane.f32.xlu1 %v2602_v25  ;;  %v1703_v42 = vmul.f32 %v935_v11, %v935_v11  ;;  %v1710_v39 = vmul.f32 %v942_v45, %v942_v45  ;;  %v2610_v27 = vadd.f32 %v1708_v4, %v1707_v14  ;;  %v14153_v28 = vpop.xlane.xlu0 %2338  ;;  %v11719_v14 = vld [vmem:[%s17077_s1 + $0x568] ss:$16 sps:$4 sm:$0xff]  }
 0x1a0   :  { %v1704_v31 = vmul.f32 %v936_v7, %v936_v7  ;;  %17145 = vst [vmem:[#allocation59_spill] sm:$0xff] %v14151_v61  ;;  %17146 = vst [vmem:[#allocation60_spill] sm:$0xff] %v14153_v28  ;;  %v1705_v46 = vmul.f32 %v937_v1, %v937_v1  ;;  %v947_v43 = vunpack.c.l.bf16 %v289_v2  ;;  %v948_v4 = vunpack.c.h.bf16 %v289_v2  ;;  %v288_v7 = vld [vmem:[%s17077_s1 + $0x888] sm:$0xff]  ;;  %9690 = vmatprep.subr.bf16.mxu0 %v11718_v17 }
 0x1a1   :  { %v2597_v3 = vadd.f32 %v2596_v9, %v1698_v48  ;;  %v2611_v54 = vadd.f32 %v2610_v27, %v1709_v22  ;;  %v1706_v9 = vmul.f32 %v938_v24, %v938_v24  ;;  %v949_v40 = vunpack.c.l.bf16 %v290_v16  ;;  %v11716_v22 = vld [vmem:[%s17077_s1 + $0x560] ss:$16 sps:$4 sm:$0xff]   ;;  %9731 = vmatprep.subr.bf16.mxu1 %v11721_v50 }
 0x1a2   :  { %v2605_v48 = vadd.f32 %v1704_v31, %v1703_v42  ;;  %v950_v25 = vunpack.c.h.bf16 %v290_v16  ;;  %v1715_v45 = vmul.f32 %v947_v43, %v947_v43  ;;  %v1716_v1 = vmul.f32 %v948_v4, %v948_v4  ;;  %v293_v16 = vld [vmem:[%s17077_s1 + $0x8b0] sm:$0xff] }
 0x1a3   :  { %2598 = vadd.xlane.f32.xlu0 %v2597_v3  ;;  %v2612_v11 = vadd.f32 %v2611_v54, %v1710_v39  ;;  %v943_v24 = vunpack.c.l.bf16 %v287_v19  ;;  %v1717_v42 = vmul.f32 %v949_v40, %v949_v40  ;;  %v944_v27 = vunpack.c.h.bf16 %v287_v19  ;;  %v14179_v54 = vpop.xlane.xlu1 %2363 }
 0x1a4   :  { %v2606_v2 = vadd.f32 %v2605_v48, %v1705_v46  ;;  %v1718_v3 = vmul.f32 %v950_v25, %v950_v25  ;;  %v945_v31 = vunpack.c.l.bf16 %v288_v7  ;;  %v2620_v28 = vadd.f32 %v1716_v1, %v1715_v45  ;;  %v294_v46 = vld [vmem:[%s17077_s1 + $0x8b8] sm:$0xff]  ;;  %17147 = vst [vmem:[#allocation61_spill] sm:$0xff] %v14179_v54  ;;  %v14181_v48 = vpop.xlane.xlu0 %2348 }
 0x1a5   :  { %9691 = vmatpush2.bf16.xpose.msra.mxu0 %v11716_v22  ;;  %2613 = vadd.xlane.f32.xlu1 %v2612_v11  ;;  %v946_v61 = vunpack.c.h.bf16 %v288_v7  ;;  %v1711_v39 = vmul.f32 %v943_v24, %v943_v24  ;;  %17148 = vst [vmem:[#allocation62_spill] sm:$0xff] %v14181_v48  ;;  %v1712_v19 = vmul.f32 %v944_v27, %v944_v27  ;;  %v955_v50 = vunpack.c.l.bf16 %v293_v16 }
 0x1a6   :  { %9732 = vmatpush2.bf16.xpose.msra.mxu1 %v11719_v14  ;;  %v2607_v43 = vadd.f32 %v2606_v2, %v1706_v9  ;;  %v1713_v4 = vmul.f32 %v945_v31, %v945_v31  ;;  %v2621_v17 = vadd.f32 %v2620_v28, %v1717_v42  ;;  %v956_v40 = vunpack.c.h.bf16 %v293_v16  ;;  %v291_v9 = vld [vmem:[%s17077_s1 + $0x8a0] sm:$0xff]  ;;  %v292_v14 = vld [vmem:[%s17077_s1 + $0x8a8] sm:$0xff] }
 0x1a7   :  { %v1714_v7 = vmul.f32 %v946_v61, %v946_v61  ;;  %v2615_v25 = vadd.f32 %v1712_v19, %v1711_v39  ;;  %v957_v45 = vunpack.c.l.bf16 %v294_v46  ;;  %v958_v22 = vunpack.c.h.bf16 %v294_v46  ;;  %v297_v61 = vld [vmem:[%s17077_s1 + $0x8d0] sm:$0xff]  ;;  %v298_v39 = vld [vmem:[%s17077_s1 + $0x8d8] sm:$0xff] }
 0x1a8   :  { %2608 = vadd.xlane.f32.xlu0 %v2607_v43  ;;  %v2622_v11 = vadd.f32 %v2621_v17, %v1718_v3  ;;  %v1723_v2 = vmul.f32 %v955_v50, %v955_v50  ;;  %v1724_v1 = vmul.f32 %v956_v40, %v956_v40  ;;  %v951_v42 = vunpack.c.l.bf16 %v291_v9  ;;  %v14195_v3 = vpop.xlane.xlu1 %2373  ;;  %v14197_v46 = vpop.xlane.xlu0 %2358 }
 0x1a9   :  { %v2616_v24 = vadd.f32 %v2615_v25, %v1713_v4  ;;  %v1725_v27 = vmul.f32 %v957_v45, %v957_v45  ;;  %v1726_v28 = vmul.f32 %v958_v22, %v958_v22  ;;  %v952_v16 = vunpack.c.h.bf16 %v291_v9  ;;  %17149 = vst [vmem:[#allocation63_spill] sm:$0xff] %v14195_v3  ;;  %17150 = vst [vmem:[#allocation64_spill] sm:$0xff] %v14197_v46  ;;  %v295_v9 = vld [vmem:[%s17077_s1 + $0x8c0] sm:$0xff] }
 0x1aa   :  { %2623 = vadd.xlane.f32.xlu1 %v2622_v11  ;;  %v2630_v31 = vadd.f32 %v1724_v1, %v1723_v2  ;;  %v953_v43 = vunpack.c.l.bf16 %v292_v14  ;;  %v954_v48 = vunpack.c.h.bf16 %v292_v14  ;;  %v1719_v4 = vmul.f32 %v951_v42, %v951_v42  ;;  %v296_v14 = vld [vmem:[%s17077_s1 + $0x8c8] sm:$0xff] }
 0x1ab   :  { %v2617_v19 = vadd.f32 %v2616_v24, %v1714_v7  ;;  %v1720_v50 = vmul.f32 %v952_v16, %v952_v16  ;;  %v963_v25 = vunpack.c.l.bf16 %v297_v61  ;;  %v964_v45 = vunpack.c.h.bf16 %v297_v61  ;;  %v11724_v24 = vld [vmem:[%s17077_s1 + $0x544] ss:$16 sps:$4 sm:$0xff]   ;;  %v11722_v61 = vld [vmem:[%s17077_s1 + $0x540] ss:$16 sps:$4 sm:$0xff]  }
 0x1ac   :  { %v2631_v17 = vadd.f32 %v2630_v31, %v1725_v27  ;;  %v1721_v40 = vmul.f32 %v953_v43, %v953_v43  ;;  %v965_v22 = vunpack.c.l.bf16 %v298_v39  ;;  %v1722_v2 = vmul.f32 %v954_v48, %v954_v48  ;;  %v11727_v27 = vld [vmem:[%s17077_s1 + $0x54c] ss:$16 sps:$4 sm:$0xff]   ;;  %v11725_v48 = vld [vmem:[%s17077_s1 + $0x548] ss:$16 sps:$4 sm:$0xff]   ;;  %9692 = vmatprep.subr.bf16.mxu0 %v11724_v24 }
 0x1ad   :  { %2618 = vadd.xlane.f32.xlu0 %v2617_v19  ;;  %v2625_v1 = vadd.f32 %v1720_v50, %v1719_v4  ;;  %v966_v7 = vunpack.c.h.bf16 %v298_v39  ;;  %v1731_v42 = vmul.f32 %v963_v25, %v963_v25  ;;  %v1732_v31 = vmul.f32 %v964_v45, %v964_v45  ;;  %v301_v4 = vld [vmem:[%s17077_s1 + $0x8f0] sm:$0xff]  ;;  %v14222_v50 = vpop.xlane.xlu0 %2368  ;;  %9733 = vmatprep.subr.bf16.mxu1 %v11727_v27  ;;  %v300_v27 = vld [vmem:[%s17077_s1 + $0x8e8] sm:$0xff] }
 0x1ae   :  { %v2632_v11 = vadd.f32 %v2631_v17, %v1726_v28  ;;  %v1733_v16 = vmul.f32 %v965_v22, %v965_v22  ;;  %v959_v43 = vunpack.c.l.bf16 %v295_v9  ;;  %v960_v39 = vunpack.c.h.bf16 %v295_v9  ;;  %v14220_v17 = vpop.xlane.xlu1 %2383  ;;  %17152 = vst [vmem:[#allocation66_spill] sm:$0xff] %v14222_v50  ;;  %9693 = vmatpush2.bf16.xpose.msra.mxu0 %v11722_v61  ;;  %9734 = vmatpush2.bf16.xpose.msra.mxu1 %v11725_v48 }
 0x1af   :  { %v2626_v28 = vadd.f32 %v2625_v1, %v1721_v40  ;;  %v961_v19 = vunpack.c.l.bf16 %v296_v14  ;;  %17151 = vst [vmem:[#allocation65_spill] sm:$0xff] %v14220_v17  ;;  %v1734_v25 = vmul.f32 %v966_v7, %v966_v7  ;;  %v2640_v45 = vadd.f32 %v1732_v31, %v1731_v42  ;;  %v299_v17 = vld [vmem:[%s17077_s1 + $0x8e0] sm:$0xff] }
 0x1b0   :  { %2633 = vadd.xlane.f32.xlu1 %v2632_v11  ;;  %v962_v22 = vunpack.c.h.bf16 %v296_v14  ;;  %v1727_v46 = vmul.f32 %v959_v43, %v959_v43  ;;  %v302_v11 = vld [vmem:[%s17077_s1 + $0x8f8] sm:$0xff]  ;;  %v1728_v9 = vmul.f32 %v960_v39, %v960_v39  ;;  %v971_v24 = vunpack.c.l.bf16 %v301_v4 }
 0x1b1   :  { %v2627_v40 = vadd.f32 %v2626_v28, %v1722_v2  ;;  %v1729_v1 = vmul.f32 %v961_v19, %v961_v19  ;;  %v2641_v50 = vadd.f32 %v2640_v45, %v1733_v16  ;;  %v972_v42 = vunpack.c.h.bf16 %v301_v4  ;;  %v305_v16 = vld [vmem:[%s17077_s1 + $0x910] sm:$0xff] }
 0x1b2   :  { %v1730_v7 = vmul.f32 %v962_v22, %v962_v22  ;;  %v2635_v14 = vadd.f32 %v1728_v9, %v1727_v46  ;;  %v973_v31 = vunpack.c.l.bf16 %v302_v11  ;;  %v974_v2 = vunpack.c.h.bf16 %v302_v11  ;;  %v14236_v48 = vpop.xlane.xlu1 %2393  ;;  %v14238_v46 = vpop.xlane.xlu0 %2378 }
 0x1b3   :  { %2628 = vadd.xlane.f32.xlu0 %v2627_v40  ;;  %v2642_v43 = vadd.f32 %v2641_v50, %v1734_v25  ;;  %v1739_v61 = vmul.f32 %v971_v24, %v971_v24  ;;  %v967_v28 = vunpack.c.l.bf16 %v299_v17  ;;  %v1740_v19 = vmul.f32 %v972_v42, %v972_v42  ;;  %17153 = vst [vmem:[#allocation67_spill] sm:$0xff] %v14236_v48  ;;  %v303_v24 = vld [vmem:[%s17077_s1 + $0x900] sm:$0xff] }
 0x1b4   :  { %v2636_v39 = vadd.f32 %v2635_v14, %v1729_v1  ;;  %v1741_v3 = vmul.f32 %v973_v31, %v973_v31  ;;  %v968_v54 = vunpack.c.h.bf16 %v299_v17  ;;  %17154 = vst [vmem:[#allocation68_spill] sm:$0xff] %v14238_v46  ;;  %v969_v4 = vunpack.c.l.bf16 %v300_v27  ;;  %v306_v17 = vld [vmem:[%s17077_s1 + $0x918] sm:$0xff]  ;;  %v309_v46 = vld [vmem:[%s17077_s1 + $0x930] sm:$0xff] }
 0x1b5   :  { %2643 = vadd.xlane.f32.xlu1 %v2642_v43  ;;  %v970_v45 = vunpack.c.h.bf16 %v300_v27  ;;  %v1735_v22 = vmul.f32 %v967_v28, %v967_v28  ;;  %v1742_v25 = vmul.f32 %v974_v2, %v974_v2  ;;  %v2650_v11 = vadd.f32 %v1740_v19, %v1739_v61  ;;  %v11733_v43 = vld [vmem:[%s17077_s1 + $0x52c] ss:$16 sps:$4 sm:$0xff]  }
 0x1b6   :  { %v2637_v50 = vadd.f32 %v2636_v39, %v1730_v7  ;;  %v1736_v40 = vmul.f32 %v968_v54, %v968_v54  ;;  %v1737_v9 = vmul.f32 %v969_v4, %v969_v4  ;;  %v979_v1 = vunpack.c.l.bf16 %v305_v16  ;;  %v304_v7 = vld [vmem:[%s17077_s1 + $0x908] sm:$0xff]  ;;  %v11730_v54 = vld [vmem:[%s17077_s1 + $0x524] ss:$16 sps:$4 sm:$0xff]   ;;  %9735 = vmatprep.subr.bf16.mxu1 %v11733_v43 }
 0x1b7   :  { %v2651_v14 = vadd.f32 %v2650_v11, %v1741_v3  ;;  %v1738_v42 = vmul.f32 %v970_v45, %v970_v45  ;;  %v980_v27 = vunpack.c.h.bf16 %v305_v16  ;;  %v981_v2 = vunpack.c.l.bf16 %v306_v17  ;;  %v11728_v3 = vld [vmem:[%s17077_s1 + $0x520] ss:$16 sps:$4 sm:$0xff]   ;;  %v11731_v39 = vld [vmem:[%s17077_s1 + $0x528] ss:$16 sps:$4 sm:$0xff]   ;;  %9694 = vmatprep.subr.bf16.mxu0 %v11730_v54 }
 0x1b8   :  { %2638 = vadd.xlane.f32.xlu0 %v2637_v50  ;;  %v2645_v31 = vadd.f32 %v1736_v40, %v1735_v22  ;;  %v982_v61 = vunpack.c.h.bf16 %v306_v17  ;;  %v1747_v28 = vmul.f32 %v979_v1, %v979_v1  ;;  %v975_v45 = vunpack.c.l.bf16 %v303_v24  ;;  %v14261_v22 = vpop.xlane.xlu1 %2403  ;;  %v14263_v50 = vpop.xlane.xlu0 %2388  ;;  %9695 = vmatpush2.bf16.xpose.msra.mxu0 %v11728_v3  ;;  %v307_v3 = vld [vmem:[%s17077_s1 + $0x920] sm:$0xff] }
 0x1b9   :  { %v2652_v19 = vadd.f32 %v2651_v14, %v1742_v25  ;;  %v1748_v4 = vmul.f32 %v980_v27, %v980_v27  ;;  %17155 = vst [vmem:[#allocation69_spill] sm:$0xff] %v14261_v22  ;;  %17156 = vst [vmem:[#allocation70_spill] sm:$0xff] %v14263_v50  ;;  %v1749_v11 = vmul.f32 %v981_v2, %v981_v2  ;;  %v976_v17 = vunpack.c.h.bf16 %v303_v24  ;;  %v310_v27 = vld [vmem:[%s17077_s1 + $0x938] sm:$0xff]  ;;  %v313_v50 = vld [vmem:[%s17077_s1 + $0x950] sm:$0xff] }
 0x1ba   :  { %v2646_v16 = vadd.f32 %v2645_v31, %v1737_v9  ;;  %v1750_v40 = vmul.f32 %v982_v61, %v982_v61  ;;  %v977_v1 = vunpack.c.l.bf16 %v304_v7  ;;  %9736 = vmatpush2.bf16.xpose.msra.mxu1 %v11731_v39  ;;  %v978_v14 = vunpack.c.h.bf16 %v304_v7  ;;  %v308_v7 = vld [vmem:[%s17077_s1 + $0x928] sm:$0xff] }
 0x1bb   :  { %2653 = vadd.xlane.f32.xlu1 %v2652_v19  ;;  %v2660_v9 = vadd.f32 %v1748_v4, %v1747_v28  ;;  %v1743_v31 = vmul.f32 %v975_v45, %v975_v45  ;;  %v1744_v54 = vmul.f32 %v976_v17, %v976_v17  ;;  %v987_v2 = vunpack.c.l.bf16 %v309_v46 }
 0x1bc   :  { %v2647_v25 = vadd.f32 %v2646_v16, %v1738_v42  ;;  %v1745_v43 = vmul.f32 %v977_v1, %v977_v1  ;;  %v988_v61 = vunpack.c.h.bf16 %v309_v46  ;;  %v1746_v39 = vmul.f32 %v978_v14, %v978_v14  ;;  %v14277_v17 = vpop.xlane.xlu1 %2413 }
 0x1bd   :  { %v2661_v24 = vadd.f32 %v2660_v9, %v1749_v11  ;;  %v2655_v19 = vadd.f32 %v1744_v54, %v1743_v31  ;;  %v989_v42 = vunpack.c.l.bf16 %v310_v27  ;;  %v990_v28 = vunpack.c.h.bf16 %v310_v27  ;;  %17157 = vst [vmem:[#allocation71_spill] sm:$0xff] %v14277_v17  ;;  %v14279_v11 = vpop.xlane.xlu0 %2398 }
 0x1be   :  { %2648 = vadd.xlane.f32.xlu0 %v2647_v25  ;;  %v1755_v4 = vmul.f32 %v987_v2, %v987_v2  ;;  %v1756_v45 = vmul.f32 %v988_v61, %v988_v61  ;;  %17158 = vst [vmem:[#allocation72_spill] sm:$0xff] %v14279_v11  ;;  %v983_v9 = vunpack.c.l.bf16 %v307_v3  ;;  %v984_v31 = vunpack.c.h.bf16 %v307_v3 }
 0x1bf   :  { %v2662_v16 = vadd.f32 %v2661_v24, %v1750_v40  ;;  %v2656_v46 = vadd.f32 %v2655_v19, %v1745_v43  ;;  %v1757_v1 = vmul.f32 %v989_v42, %v989_v42  ;;  %v1758_v25 = vmul.f32 %v990_v28, %v990_v28  ;;  %v314_v40 = vld [vmem:[%s17077_s1 + $0x958] sm:$0xff]  ;;  %v311_v42 = vld [vmem:[%s17077_s1 + $0x940] sm:$0xff] }
 0x1c0   :  { %v2670_v14 = vadd.f32 %v1756_v45, %v1755_v4  ;;  %v985_v54 = vunpack.c.l.bf16 %v308_v7  ;;  %v986_v27 = vunpack.c.h.bf16 %v308_v7  ;;  %v1751_v2 = vmul.f32 %v983_v9, %v983_v9  ;;  %v11736_v9 = vld [vmem:[%s17077_s1 + $0x504] ss:$16 sps:$4 sm:$0xff]  }
 0x1c1   :  { %2663 = vadd.xlane.f32.xlu1 %v2662_v16  ;;  %v2657_v24 = vadd.f32 %v2656_v46, %v1746_v39  ;;  %v1752_v43 = vmul.f32 %v984_v31, %v984_v31  ;;  %v995_v3 = vunpack.c.l.bf16 %v313_v50  ;;  %v996_v28 = vunpack.c.h.bf16 %v313_v50  ;;  %v312_v16 = vld [vmem:[%s17077_s1 + $0x948] sm:$0xff]  ;;  %v14293_v46 = vpop.xlane.xlu1 %2423  ;;  %9696 = vmatprep.subr.bf16.mxu0 %v11736_v9 }
 0x1c2   :  { %v2671_v61 = vadd.f32 %v2670_v14, %v1757_v1  ;;  %v1753_v19 = vmul.f32 %v985_v54, %v985_v54  ;;  %v997_v7 = vunpack.c.l.bf16 %v314_v40  ;;  %v1754_v45 = vmul.f32 %v986_v27, %v986_v27  ;;  %17159 = vst [vmem:[#allocation73_spill] sm:$0xff] %v14293_v46  ;;  %v14295_v1 = vpop.xlane.xlu0 %2408  ;;  %v11739_v50 = vld [vmem:[%s17077_s1 + $0x50c] ss:$16 sps:$4 sm:$0xff]   ;;  %v11737_v27 = vld [vmem:[%s17077_s1 + $0x508] ss:$16 sps:$4 sm:$0xff]  }
 0x1c3   :  { %2658 = vadd.xlane.f32.xlu0 %v2657_v24  ;;  %v2665_v11 = vadd.f32 %v1752_v43, %v1751_v2  ;;  %v998_v39 = vunpack.c.h.bf16 %v314_v40  ;;  %17160 = vst [vmem:[#allocation74_spill] sm:$0xff] %v14295_v1  ;;  %v1763_v14 = vmul.f32 %v995_v3, %v995_v3  ;;  %v1764_v31 = vmul.f32 %v996_v28, %v996_v28  ;;  %v317_v43 = vld [vmem:[%s17077_s1 + $0x970] sm:$0xff]  ;;  %v318_v46 = vld [vmem:[%s17077_s1 + $0x978] sm:$0xff] }
 0x1c4   :  { %v2672_v4 = vadd.f32 %v2671_v61, %v1758_v25  ;;  %v1765_v54 = vmul.f32 %v997_v7, %v997_v7  ;;  %v991_v24 = vunpack.c.l.bf16 %v311_v42  ;;  %v11734_v25 = vld [vmem:[%s17077_s1 + $0x500] ss:$16 sps:$4 sm:$0xff]   ;;  %v992_v2 = vunpack.c.h.bf16 %v311_v42  ;;  %9737 = vmatprep.subr.bf16.mxu1 %v11739_v50  ;;  %v316_v50 = vld [vmem:[%s17077_s1 + $0x968] sm:$0xff] }
 0x1c5   :  { %v2666_v40 = vadd.f32 %v2665_v11, %v1753_v19  ;;  %v993_v61 = vunpack.c.l.bf16 %v312_v16  ;;  %v1766_v3 = vmul.f32 %v998_v39, %v998_v39  ;;  %v2680_v28 = vadd.f32 %v1764_v31, %v1763_v14  ;;  %9697 = vmatpush2.bf16.xpose.msra.mxu0 %v11734_v25  ;;  %v315_v19 = vld [vmem:[%s17077_s1 + $0x960] sm:$0xff]  ;;  %9738 = vmatpush2.bf16.xpose.msra.mxu1 %v11737_v27 }
 0x1c6   :  { %2673 = vadd.xlane.f32.xlu1 %v2672_v4  ;;  %v994_v7 = vunpack.c.h.bf16 %v312_v16  ;;  %v1759_v1 = vmul.f32 %v991_v24, %v991_v24  ;;  %v1760_v4 = vmul.f32 %v992_v2, %v992_v2  ;;  %v1003_v9 = vunpack.c.l.bf16 %v317_v43  ;;  %v14321_v24 = vpop.xlane.xlu1 %2433 }
 0x1c7   :  { %v2667_v17 = vadd.f32 %v2666_v40, %v1754_v45  ;;  %v1761_v11 = vmul.f32 %v993_v61, %v993_v61  ;;  %v2681_v42 = vadd.f32 %v2680_v28, %v1765_v54  ;;  %v1004_v14 = vunpack.c.h.bf16 %v317_v43  ;;  %17161 = vst [vmem:[#allocation75_spill] sm:$0xff] %v14321_v24  ;;  %v14323_v45 = vpop.xlane.xlu0 %2418 }
 0x1c8   :  { %v1762_v39 = vmul.f32 %v994_v7, %v994_v7  ;;  %v2675_v16 = vadd.f32 %v1760_v4, %v1759_v1  ;;  %v1005_v31 = vunpack.c.l.bf16 %v318_v46  ;;  %17162 = vst [vmem:[#allocation76_spill] sm:$0xff] %v14323_v45  ;;  %v1006_v40 = vunpack.c.h.bf16 %v318_v46  ;;  %v321_v1 = vld [vmem:[%s17077_s1 + $0x990] sm:$0xff]  ;;  %v322_v46 = vld [vmem:[%s17077_s1 + $0x998] sm:$0xff] }
 0x1c9   :  { %2668 = vadd.xlane.f32.xlu0 %v2667_v17  ;;  %v2682_v25 = vadd.f32 %v2681_v42, %v1766_v3  ;;  %v1771_v2 = vmul.f32 %v1003_v9, %v1003_v9  ;;  %v999_v61 = vunpack.c.l.bf16 %v315_v19  ;;  %v1772_v54 = vmul.f32 %v1004_v14, %v1004_v14  ;;  %v320_v14 = vld [vmem:[%s17077_s1 + $0x988] sm:$0xff] }
 0x1ca   :  { %v2676_v27 = vadd.f32 %v2675_v16, %v1761_v11  ;;  %v1773_v28 = vmul.f32 %v1005_v31, %v1005_v31  ;;  %v1000_v17 = vunpack.c.h.bf16 %v315_v19  ;;  %v1001_v43 = vunpack.c.l.bf16 %v316_v50  ;;  %v319_v19 = vld [vmem:[%s17077_s1 + $0x980] sm:$0xff]  ;;  %v14340_v31 = vpop.xlane.xlu1 %2443 }
 0x1cb   :  { %2683 = vadd.xlane.f32.xlu1 %v2682_v25  ;;  %v1002_v7 = vunpack.c.h.bf16 %v316_v50  ;;  %v1767_v4 = vmul.f32 %v999_v61, %v999_v61  ;;  %v1774_v24 = vmul.f32 %v1006_v40, %v1006_v40  ;;  %v2690_v48 = vadd.f32 %v1772_v54, %v1771_v2  ;;  %17163 = vst [vmem:[#allocation77_spill] sm:$0xff] %v14340_v31  ;;  %v14342_v50 = vpop.xlane.xlu0 %2428  ;;  %v11742_v25 = vld [vmem:[%s17077_s1 + $0x6e4] ss:$16 sps:$4 sm:$0xff]   ;;  %v11740_v2 = vld [vmem:[%s17077_s1 + $0x6e0] ss:$16 sps:$4 sm:$0xff]  }
 0x1cc   :  { %v2677_v22 = vadd.f32 %v2676_v27, %v1762_v39  ;;  %v1768_v45 = vmul.f32 %v1000_v17, %v1000_v17  ;;  %9699 = vmatmul.mubr.bf16.vlgmr.msra.gmra.mxu0 %v13214_v51  ;;  %v1769_v3 = vmul.f32 %v1001_v43, %v1001_v43  ;;  %v1011_v11 = vunpack.c.l.bf16 %v321_v1  ;;  %9740 = vmatmul.mubr.bf16.vlgmr.msra.gmra.mxu1 %v13216_v5  ;;  %v11743_v61 = vld [vmem:[%s17077_s1 + $0x6e8] ss:$16 sps:$4 sm:$0xff]  }
 0x1cd   :  { %9780 = vmatprep.mubr.bf16.mxu0 %v13178_v18  ;;  %v2691_v42 = vadd.f32 %v2690_v48, %v1773_v28  ;;  %v1770_v9 = vmul.f32 %v1002_v7, %v1002_v7  ;;  %v1012_v16 = vunpack.c.h.bf16 %v321_v1  ;;  %17164 = vst [vmem:[#allocation78_spill] sm:$0xff] %v14342_v50  ;;  %9821 = vmatprep.mubr.bf16.mxu1 %v13180_v52  ;;  %v1013_v48 = vunpack.c.l.bf16 %v322_v46 }
 0x1ce   :  { %2678 = vadd.xlane.f32.xlu0 %v2677_v22  ;;  %v2685_v39 = vadd.f32 %v1768_v45, %v1767_v4  ;;  %v11745_v22 = vld [vmem:[%s17077_s1 + $0x6ec] ss:$16 sps:$4 sm:$0xff]   ;;  %v1014_v45 = vunpack.c.h.bf16 %v322_v46  ;;  %v1779_v40 = vmul.f32 %v1011_v11, %v1011_v11  ;;  %v1007_v17 = vunpack.c.l.bf16 %v319_v19  ;;  %9748 = vmatprep.subr.bf16.mxu0 %v11742_v25  ;;  %v325_v46 = vld [vmem:[%s17077_s1 + $0x9b0] sm:$0xff] }
 0x1cf   :  { %v2692_v27 = vadd.f32 %v2691_v42, %v1774_v24  ;;  %v1780_v28 = vmul.f32 %v1012_v16, %v1012_v16  ;;  %9789 = vmatprep.subr.bf16.mxu1 %v11745_v22  ;;  %v1781_v1 = vmul.f32 %v1013_v48, %v1013_v48  ;;  %v1008_v7 = vunpack.c.h.bf16 %v319_v19  ;;  %9749 = vmatpush1.bf16.xpose.msra.mxu0 %v11740_v2  ;;  %v323_v22 = vld [vmem:[%s17077_s1 + $0x9a0] sm:$0xff]  ;;  %v14366_v48 = vpop.xlane.xlu1 %2453 }
 0x1d0   :  { %v2686_v54 = vadd.f32 %v2685_v39, %v1769_v3  ;;  %v1782_v43 = vmul.f32 %v1014_v45, %v1014_v45  ;;  %v1009_v4 = vunpack.c.l.bf16 %v320_v14  ;;  %9790 = vmatpush1.bf16.xpose.msra.mxu1 %v11743_v61  ;;  %v1010_v31 = vunpack.c.h.bf16 %v320_v14  ;;  %v326_v3 = vld [vmem:[%s17077_s1 + $0x9b8] sm:$0xff]  ;;  %17165 = vst [vmem:[#allocation79_spill] sm:$0xff] %v14366_v48  ;;  %v324_v61 = vld [vmem:[%s17077_s1 + $0x9a8] sm:$0xff] }
 0x1d1   :  { %2693 = vadd.xlane.f32.xlu1 %v2692_v27  ;;  %v2700_v50 = vadd.f32 %v1780_v28, %v1779_v40  ;;  %v1775_v24 = vmul.f32 %v1007_v17, %v1007_v17  ;;  %v1776_v42 = vmul.f32 %v1008_v7, %v1008_v7  ;;  %v1019_v16 = vunpack.c.l.bf16 %v325_v46  ;;  %v329_v28 = vld [vmem:[%s17077_s1 + $0x9d0] sm:$0xff] }
 0x1d2   :  { %v2687_v11 = vadd.f32 %v2686_v54, %v1770_v9  ;;  %v1777_v39 = vmul.f32 %v1009_v4, %v1009_v4  ;;  %v1020_v25 = vunpack.c.h.bf16 %v325_v46  ;;  %v14368_v9 = vpop.xlane.xlu0 %2438  ;;  %v1778_v14 = vmul.f32 %v1010_v31, %v1010_v31  ;;  %v330_v31 = vld [vmem:[%s17077_s1 + $0x9d8] sm:$0xff]  ;;  %v11746_v46 = vld [vmem:[%s17077_s1 + $0x6c0] ss:$16 sps:$4 sm:$0xff]  }
 0x1d3   :  { %v2701_v19 = vadd.f32 %v2700_v50, %v1781_v1  ;;  %17166 = vst [vmem:[#allocation80_spill] sm:$0xff] %v14368_v9  ;;  %v2695_v45 = vadd.f32 %v1776_v42, %v1775_v24  ;;  %v1021_v40 = vunpack.c.l.bf16 %v326_v3  ;;  %v1022_v2 = vunpack.c.h.bf16 %v326_v3 }
 0x1d4   :  { %2688 = vadd.xlane.f32.xlu0 %v2687_v11  ;;  %v1787_v50 = vmul.f32 %v1019_v16, %v1019_v16  ;;  %v1788_v54 = vmul.f32 %v1020_v25, %v1020_v25  ;;  %v1015_v4 = vunpack.c.l.bf16 %v323_v22  ;;  %v1016_v24 = vunpack.c.h.bf16 %v323_v22  ;;  %v11754_v16 = vld [vmem:[%s17077_s1 + $0x6a4] ss:$16 sps:$4 sm:$0xff]  }
 0x1d5   :  { %v2702_v27 = vadd.f32 %v2701_v19, %v1782_v43  ;;  %v2696_v17 = vadd.f32 %v2695_v45, %v1777_v39  ;;  %v1789_v1 = vmul.f32 %v1021_v40, %v1021_v40  ;;  %v1790_v7 = vmul.f32 %v1022_v2, %v1022_v2  ;;  %v11748_v43 = vld [vmem:[%s17077_s1 + $0x6c4] ss:$16 sps:$4 sm:$0xff]   ;;  %v11749_v39 = vld [vmem:[%s17077_s1 + $0x6c8] ss:$16 sps:$4 sm:$0xff]   ;;  %v11751_v19 = vld [vmem:[%s17077_s1 + $0x6cc] ss:$16 sps:$4 sm:$0xff]  }
 0x1d6   :  { %v2710_v11 = vadd.f32 %v1788_v54, %v1787_v50  ;;  %v1017_v3 = vunpack.c.l.bf16 %v324_v61  ;;  %v1018_v42 = vunpack.c.h.bf16 %v324_v61  ;;  %v1783_v45 = vmul.f32 %v1015_v4, %v1015_v4  ;;  %9750 = vmatprep.subr.bf16.mxu0 %v11748_v43  ;;  %v327_v61 = vld [vmem:[%s17077_s1 + $0x9c0] sm:$0xff]  ;;  %v14399_v50 = vpop.xlane.xlu0 %2448  ;;  %9791 = vmatprep.subr.bf16.mxu1 %v11751_v19  ;;  %v11757_v54 = vld [vmem:[%s17077_s1 + $0x6ac] ss:$16 sps:$4 sm:$0xff]  }
 0x1d7   :  { %2703 = vadd.xlane.f32.xlu1 %v2702_v27  ;;  %v2697_v25 = vadd.f32 %v2696_v17, %v1778_v14  ;;  %v1784_v2 = vmul.f32 %v1016_v24, %v1016_v24  ;;  %v14397_v27 = vpop.xlane.xlu1 %2463  ;;  %17168 = vst [vmem:[#allocation82_spill] sm:$0xff] %v14399_v50  ;;  %v1027_v14 = vunpack.c.l.bf16 %v329_v28  ;;  %v1028_v17 = vunpack.c.h.bf16 %v329_v28  ;;  %9751 = vmatpush1.bf16.xpose.msra.mxu0 %v11746_v46 }
 0x1d8   :  { %v2711_v40 = vadd.f32 %v2710_v11, %v1789_v1  ;;  %v1785_v22 = vmul.f32 %v1017_v3, %v1017_v3  ;;  %17167 = vst [vmem:[#allocation81_spill] sm:$0xff] %v14397_v27  ;;  %v1029_v4 = vunpack.c.l.bf16 %v330_v31  ;;  %v328_v1 = vld [vmem:[%s17077_s1 + $0x9c8] sm:$0xff]  ;;  %v1786_v11 = vmul.f32 %v1018_v42, %v1018_v42  ;;  %9792 = vmatpush1.bf16.xpose.msra.mxu1 %v11749_v39 }
 0x1d9   :  { %2698 = vadd.xlane.f32.xlu0 %v2697_v25  ;;  %v2705_v24 = vadd.f32 %v1784_v2, %v1783_v45  ;;  %v1030_v3 = vunpack.c.h.bf16 %v330_v31  ;;  %9752 = vmatprep.subr.bf16.mxu0 %v11754_v16  ;;  %v1795_v19 = vmul.f32 %v1027_v14, %v1027_v14  ;;  %v1796_v50 = vmul.f32 %v1028_v17, %v1028_v17  ;;  %v11752_v31 = vld [vmem:[%s17077_s1 + $0x6a0] ss:$16 sps:$4 sm:$0xff]   ;;  %v334_v16 = vld [vmem:[%s17077_s1 + $0x9f8] sm:$0xff]  ;;  %v332_v14 = vld [vmem:[%s17077_s1 + $0x9e8] sm:$0xff] }
 0x1da   :  { %v2712_v43 = vadd.f32 %v2711_v40, %v1790_v7  ;;  %v1797_v27 = vmul.f32 %v1029_v4, %v1029_v4  ;;  %v1023_v9 = vunpack.c.l.bf16 %v327_v61  ;;  %9793 = vmatprep.subr.bf16.mxu1 %v11757_v54  ;;  %v1024_v28 = vunpack.c.h.bf16 %v327_v61  ;;  %v333_v7 = vld [vmem:[%s17077_s1 + $0x9f0] sm:$0xff]  ;;  %v14418_v40 = vpop.xlane.xlu0 %2458 }
 0x1db   :  { %v2706_v25 = vadd.f32 %v2705_v24, %v1785_v22  ;;  %v1025_v48 = vunpack.c.l.bf16 %v328_v1  ;;  %v1798_v57 = vmul.f32 %v1030_v3, %v1030_v3  ;;  %v2720_v49 = vadd.f32 %v1796_v50, %v1795_v19  ;;  %v14416_v45 = vpop.xlane.xlu1 %2473  ;;  %v331_v22 = vld [vmem:[%s17077_s1 + $0x9e0] sm:$0xff]  ;;  %v337_v19 = vld [vmem:[%s17077_s1 + $0xa10] sm:$0xff] }
 0x1dc   :  { %2713 = vadd.xlane.f32.xlu1 %v2712_v43  ;;  %v1026_v63 = vunpack.c.h.bf16 %v328_v1  ;;  %v1791_v8 = vmul.f32 %v1023_v9, %v1023_v9  ;;  %v1792_v42 = vmul.f32 %v1024_v28, %v1024_v28  ;;  %v11755_v9 = vld [vmem:[%s17077_s1 + $0x6a8] ss:$16 sps:$4 sm:$0xff]   ;;  %v1035_v50 = vunpack.c.l.bf16 %v333_v7 }
 0x1dd   :  { %v2707_v46 = vadd.f32 %v2706_v25, %v1786_v11  ;;  %v1793_v39 = vmul.f32 %v1025_v48, %v1025_v48  ;;  %v2721_v2 = vadd.f32 %v2720_v49, %v1797_v27  ;;  %v1036_v54 = vunpack.c.h.bf16 %v333_v7 }
 0x1de   :  { %v1794_v61 = vmul.f32 %v1026_v63, %v1026_v63  ;;  %v2715_v48 = vadd.f32 %v1792_v42, %v1791_v8  ;;  %v1037_v4 = vunpack.c.l.bf16 %v334_v16  ;;  %v1038_v1 = vunpack.c.h.bf16 %v334_v16  ;;  %v11763_v16 = vld [vmem:[%s17077_s1 + $0x68c] ss:$16 sps:$4 sm:$0xff]  }
 0x1df   :  { %2708 = vadd.xlane.f32.xlu0 %v2707_v46  ;;  %v2722_v17 = vadd.f32 %v2721_v2, %v1798_v57  ;;  %9753 = vmatpush1.bf16.xpose.msra.mxu0 %v11752_v31  ;;  %v1803_v11 = vmul.f32 %v1035_v50, %v1035_v50  ;;  %v1804_v49 = vmul.f32 %v1036_v54, %v1036_v54  ;;  %v1031_v27 = vunpack.c.l.bf16 %v331_v22  ;;  %v11760_v57 = vld [vmem:[%s17077_s1 + $0x684] ss:$16 sps:$4 sm:$0xff]   ;;  %v338_v46 = vld [vmem:[%s17077_s1 + $0xa18] sm:$0xff]  ;;  %v14438_v42 = vpop.xlane.xlu1 %2483 }
 0x1e0   :  { %v2716_v43 = vadd.f32 %v2715_v48, %v1793_v39  ;;  %9794 = vmatpush1.bf16.xpose.msra.mxu1 %v11755_v9  ;;  %v1805_v24 = vmul.f32 %v1037_v4, %v1037_v4  ;;  %v1806_v3 = vmul.f32 %v1038_v1, %v1038_v1  ;;  %v1032_v63 = vunpack.c.h.bf16 %v331_v22  ;;  %17169 = vst [vmem:[#allocation83_spill] sm:$0xff] %v14438_v42  ;;  %v14440_v39 = vpop.xlane.xlu0 %2468  ;;  %v11758_v22 = vld [vmem:[%s17077_s1 + $0x680] ss:$16 sps:$4 sm:$0xff]  }
 0x1e1   :  { %2723 = vadd.xlane.f32.xlu1 %v2722_v17  ;;  %v1033_v8 = vunpack.c.l.bf16 %v332_v14  ;;  %v2730_v28 = vadd.f32 %v1804_v49, %v1803_v11  ;;  %v1034_v7 = vunpack.c.h.bf16 %v332_v14  ;;  %v1799_v31 = vmul.f32 %v1031_v27, %v1031_v27  ;;  %17170 = vst [vmem:[#allocation84_spill] sm:$0xff] %v14440_v39  ;;  %9754 = vmatprep.subr.bf16.mxu0 %v11760_v57  ;;  %v335_v54 = vld [vmem:[%s17077_s1 + $0xa00] sm:$0xff]  ;;  %v11761_v14 = vld [vmem:[%s17077_s1 + $0x688] ss:$16 sps:$4 sm:$0xff]  }
 0x1e2   :  { %v2717_v25 = vadd.f32 %v2716_v43, %v1794_v61  ;;  %v1800_v9 = vmul.f32 %v1032_v63, %v1032_v63  ;;  %v1043_v48 = vunpack.c.l.bf16 %v337_v19  ;;  %v1044_v50 = vunpack.c.h.bf16 %v337_v19  ;;  %9795 = vmatprep.subr.bf16.mxu1 %v11763_v16  ;;  %v336_v11 = vld [vmem:[%s17077_s1 + $0xa08] sm:$0xff] }
 0x1e3   :  { %v1801_v2 = vmul.f32 %v1033_v8, %v1033_v8  ;;  %v2731_v61 = vadd.f32 %v2730_v28, %v1805_v24  ;;  %v1802_v17 = vmul.f32 %v1034_v7, %v1034_v7  ;;  %v1045_v1 = vunpack.c.l.bf16 %v338_v46 }
 0x1e4   :  { %2718 = vadd.xlane.f32.xlu0 %v2717_v25  ;;  %v2725_v4 = vadd.f32 %v1800_v9, %v1799_v31  ;;  %v1046_v43 = vunpack.c.h.bf16 %v338_v46  ;;  %v1811_v27 = vmul.f32 %v1043_v48, %v1043_v48  ;;  %v1812_v24 = vmul.f32 %v1044_v50, %v1044_v50  ;;  %v341_v31 = vld [vmem:[%s17077_s1 + $0xa30] sm:$0xff]  ;;  %v14463_v46 = vpop.xlane.xlu1 %2493  ;;  %v14465_v9 = vpop.xlane.xlu0 %2478 }
 0x1e5   :  { %v2732_v49 = vadd.f32 %v2731_v61, %v1806_v3  ;;  %v1813_v8 = vmul.f32 %v1045_v1, %v1045_v1  ;;  %v1039_v57 = vunpack.c.l.bf16 %v335_v54  ;;  %v1040_v28 = vunpack.c.h.bf16 %v335_v54  ;;  %v342_v3 = vld [vmem:[%s17077_s1 + $0xa38] sm:$0xff]  ;;  %17171 = vst [vmem:[#allocation85_spill] sm:$0xff] %v14463_v46  ;;  %17172 = vst [vmem:[#allocation86_spill] sm:$0xff] %v14465_v9  ;;  %v339_v54 = vld [vmem:[%s17077_s1 + $0xa20] sm:$0xff] }
 0x1e6   :  { %v2726_v63 = vadd.f32 %v2725_v4, %v1801_v2  ;;  %v1814_v19 = vmul.f32 %v1046_v43, %v1046_v43  ;;  %v2740_v25 = vadd.f32 %v1812_v24, %v1811_v27  ;;  %v1041_v16 = vunpack.c.l.bf16 %v336_v11 }
 0x1e7   :  { %9755 = vmatpush1.bf16.xpose.msra.mxu0 %v11758_v22  ;;  %2733 = vadd.xlane.f32.xlu1 %v2732_v49  ;;  %v1042_v7 = vunpack.c.h.bf16 %v336_v11  ;;  %v1807_v22 = vmul.f32 %v1039_v57, %v1039_v57  ;;  %v1808_v48 = vmul.f32 %v1040_v28, %v1040_v28  ;;  %v1051_v4 = vunpack.c.l.bf16 %v341_v31  ;;  %v340_v11 = vld [vmem:[%s17077_s1 + $0xa28] sm:$0xff]  ;;  %v11766_v28 = vld [vmem:[%s17077_s1 + $0x664] ss:$16 sps:$4 sm:$0xff]  }
 0x1e8   :  { %9796 = vmatpush1.bf16.xpose.msra.mxu1 %v11761_v14  ;;  %v2727_v2 = vadd.f32 %v2726_v63, %v1802_v17  ;;  %v2741_v61 = vadd.f32 %v2740_v25, %v1813_v8  ;;  %v1809_v50 = vmul.f32 %v1041_v16, %v1041_v16  ;;  %v1052_v1 = vunpack.c.h.bf16 %v341_v31  ;;  %v11764_v25 = vld [vmem:[%s17077_s1 + $0x660] ss:$16 sps:$4 sm:$0xff]   ;;  %v11767_v16 = vld [vmem:[%s17077_s1 + $0x668] ss:$16 sps:$4 sm:$0xff]   ;;  %9756 = vmatprep.subr.bf16.mxu0 %v11766_v28 }
 0x1e9   :  { %v1053_v43 = vunpack.c.l.bf16 %v342_v3  ;;  %v1810_v27 = vmul.f32 %v1042_v7, %v1042_v7  ;;  %v2735_v14 = vadd.f32 %v1808_v48, %v1807_v22  ;;  %v1054_v17 = vunpack.c.h.bf16 %v342_v3  ;;  %v345_v3 = vld [vmem:[%s17077_s1 + $0xa50] sm:$0xff]  ;;  %v14487_v22 = vpop.xlane.xlu0 %2488 }
 0x1ea   :  { %2728 = vadd.xlane.f32.xlu0 %v2727_v2  ;;  %v2742_v49 = vadd.f32 %v2741_v61, %v1814_v19  ;;  %v1819_v24 = vmul.f32 %v1051_v4, %v1051_v4  ;;  %v1820_v63 = vmul.f32 %v1052_v1, %v1052_v1  ;;  %v1047_v57 = vunpack.c.l.bf16 %v339_v54  ;;  %v14485_v2 = vpop.xlane.xlu1 %2503  ;;  %17174 = vst [vmem:[#allocation88_spill] sm:$0xff] %v14487_v22  ;;  %v11769_v61 = vld [vmem:[%s17077_s1 + $0x66c] ss:$16 sps:$4 sm:$0xff]   ;;  %v343_v22 = vld [vmem:[%s17077_s1 + $0xa40] sm:$0xff] }
 0x1eb   :  { %v1821_v8 = vmul.f32 %v1053_v43, %v1053_v43  ;;  %v2736_v19 = vadd.f32 %v2735_v14, %v1809_v50  ;;  %v1048_v7 = vunpack.c.h.bf16 %v339_v54  ;;  %v1049_v31 = vunpack.c.l.bf16 %v340_v11  ;;  %17173 = vst [vmem:[#allocation87_spill] sm:$0xff] %v14485_v2  ;;  %v346_v50 = vld [vmem:[%s17077_s1 + $0xa58] sm:$0xff]  ;;  %9797 = vmatprep.subr.bf16.mxu1 %v11769_v61 }
 0x1ec   :  { %2743 = vadd.xlane.f32.xlu1 %v2742_v49  ;;  %v1822_v48 = vmul.f32 %v1054_v17, %v1054_v17  ;;  %v2750_v4 = vadd.f32 %v1820_v63, %v1819_v24  ;;  %v1050_v1 = vunpack.c.h.bf16 %v340_v11  ;;  %v1815_v43 = vmul.f32 %v1047_v57, %v1047_v57 }
 0x1ed   :  { %v2737_v54 = vadd.f32 %v2736_v19, %v1810_v27  ;;  %v1816_v49 = vmul.f32 %v1048_v7, %v1048_v7  ;;  %v1817_v14 = vmul.f32 %v1049_v31, %v1049_v31  ;;  %v1059_v9 = vunpack.c.l.bf16 %v345_v3  ;;  %v344_v27 = vld [vmem:[%s17077_s1 + $0xa48] sm:$0xff] }
 0x1ee   :  { %v2751_v2 = vadd.f32 %v2750_v4, %v1821_v8  ;;  %v1818_v11 = vmul.f32 %v1050_v1, %v1050_v1  ;;  %v1060_v24 = vunpack.c.h.bf16 %v345_v3  ;;  %v1061_v63 = vunpack.c.l.bf16 %v346_v50  ;;  %v349_v8 = vld [vmem:[%s17077_s1 + $0xa70] sm:$0xff] }
 0x1ef   :  { %9757 = vmatpush1.bf16.xpose.msra.mxu0 %v11764_v25  ;;  %2738 = vadd.xlane.f32.xlu0 %v2737_v54  ;;  %v2745_v17 = vadd.f32 %v1816_v49, %v1815_v43  ;;  %v1062_v28 = vunpack.c.h.bf16 %v346_v50  ;;  %v1827_v19 = vmul.f32 %v1059_v9, %v1059_v9  ;;  %v1055_v7 = vunpack.c.l.bf16 %v343_v22  ;;  %v11770_v9 = vld [vmem:[%s17077_s1 + $0x640] ss:$16 sps:$4 sm:$0xff]  }
 0x1f0   :  { %9798 = vmatpush1.bf16.xpose.msra.mxu1 %v11767_v16  ;;  %v2752_v57 = vadd.f32 %v2751_v2, %v1822_v48  ;;  %v1828_v46 = vmul.f32 %v1060_v24, %v1060_v24  ;;  %v1829_v61 = vmul.f32 %v1061_v63, %v1061_v63  ;;  %v1056_v25 = vunpack.c.h.bf16 %v343_v22  ;;  %v14506_v3 = vpop.xlane.xlu0 %2498  ;;  %v11772_v2 = vld [vmem:[%s17077_s1 + $0x644] ss:$16 sps:$4 sm:$0xff]   ;;  %v11773_v22 = vld [vmem:[%s17077_s1 + $0x648] ss:$16 sps:$4 sm:$0xff]  }
 0x1f1   :  { %v2746_v31 = vadd.f32 %v2745_v17, %v1817_v14  ;;  %v14504_v16 = vpop.xlane.xlu1 %2513  ;;  %17176 = vst [vmem:[#allocation90_spill] sm:$0xff] %v14506_v3  ;;  %v1057_v4 = vunpack.c.l.bf16 %v344_v27  ;;  %v1058_v1 = vunpack.c.h.bf16 %v344_v27  ;;  %v1823_v43 = vmul.f32 %v1055_v7, %v1055_v7  ;;  %v350_v14 = vld [vmem:[%s17077_s1 + $0xa78] sm:$0xff]  ;;  %v347_v27 = vld [vmem:[%s17077_s1 + $0xa60] sm:$0xff]  ;;  %9758 = vmatprep.subr.bf16.mxu0 %v11772_v2 }
 0x1f2   :  { %17175 = vst [vmem:[#allocation89_spill] sm:$0xff] %v14504_v16  ;;  %2753 = vadd.xlane.f32.xlu1 %v2752_v57  ;;  %v1830_v50 = vmul.f32 %v1062_v28, %v1062_v28  ;;  %v2760_v54 = vadd.f32 %v1828_v46, %v1827_v19  ;;  %v1824_v49 = vmul.f32 %v1056_v25, %v1056_v25  ;;  %v11775_v17 = vld [vmem:[%s17077_s1 + $0x64c] ss:$16 sps:$4 sm:$0xff]   ;;  %v1067_v63 = vunpack.c.l.bf16 %v349_v8 }
 0x1f3   :  { %v2747_v48 = vadd.f32 %v2746_v31, %v1818_v11  ;;  %v1825_v24 = vmul.f32 %v1057_v4, %v1057_v4  ;;  %v1826_v57 = vmul.f32 %v1058_v1, %v1058_v1  ;;  %v1068_v28 = vunpack.c.h.bf16 %v349_v8  ;;  %v348_v19 = vld [vmem:[%s17077_s1 + $0xa68] sm:$0xff]  ;;  %9799 = vmatprep.subr.bf16.mxu1 %v11775_v17 }
 0x1f4   :  { %v2761_v11 = vadd.f32 %v2760_v54, %v1829_v61  ;;  %v2755_v46 = vadd.f32 %v1824_v49, %v1823_v43  ;;  %v1069_v7 = vunpack.c.l.bf16 %v350_v14  ;;  %v1070_v31 = vunpack.c.h.bf16 %v350_v14  ;;  %v353_v54 = vld [vmem:[%s17077_s1 + $0xa90] sm:$0xff]  ;;  %v354_v14 = vld [vmem:[%s17077_s1 + $0xa98] sm:$0xff] }
 0x1f5   :  { %2748 = vadd.xlane.f32.xlu0 %v2747_v48  ;;  %v1835_v25 = vmul.f32 %v1067_v63, %v1067_v63  ;;  %v1836_v16 = vmul.f32 %v1068_v28, %v1068_v28  ;;  %v1063_v39 = vunpack.c.l.bf16 %v347_v27  ;;  %v1064_v43 = vunpack.c.h.bf16 %v347_v27  ;;  %v351_v63 = vld [vmem:[%s17077_s1 + $0xa80] sm:$0xff] }
 0x1f6   :  { %v2762_v4 = vadd.f32 %v2761_v11, %v1830_v50  ;;  %v2756_v3 = vadd.f32 %v2755_v46, %v1825_v24  ;;  %v14531_v61 = vpop.xlane.xlu0 %2508  ;;  %v1837_v1 = vmul.f32 %v1069_v7, %v1069_v7  ;;  %v1838_v8 = vmul.f32 %v1070_v31, %v1070_v31  ;;  %v11776_v27 = vld [vmem:[%s17077_s1 + $0x620] ss:$16 sps:$4 sm:$0xff]   ;;  %v11781_v46 = vld [vmem:[%s17077_s1 + $0x62c] ss:$16 sps:$4 sm:$0xff]  }
 0x1f7   :  { %9759 = vmatpush1.bf16.xpose.msra.mxu0 %v11770_v9  ;;  %17178 = vst [vmem:[#allocation92_spill] sm:$0xff] %v14531_v61  ;;  %v1065_v48 = vunpack.c.l.bf16 %v348_v19  ;;  %v2770_v9 = vadd.f32 %v1836_v16, %v1835_v25  ;;  %v1831_v50 = vmul.f32 %v1063_v39, %v1063_v39  ;;  %v1832_v17 = vmul.f32 %v1064_v43, %v1064_v43  ;;  %v11778_v39 = vld [vmem:[%s17077_s1 + $0x624] ss:$16 sps:$4 sm:$0xff]   ;;  %v352_v25 = vld [vmem:[%s17077_s1 + $0xa88] sm:$0xff] }
 0x1f8   :  { %9800 = vmatpush1.bf16.xpose.msra.mxu1 %v11773_v22  ;;  %v14529_v2 = vpop.xlane.xlu1 %2523  ;;  %2763 = vadd.xlane.f32.xlu1 %v2762_v4  ;;  %v2757_v49 = vadd.f32 %v2756_v3, %v1826_v57  ;;  %v1066_v22 = vunpack.c.h.bf16 %v348_v19  ;;  %v1075_v3 = vunpack.c.l.bf16 %v353_v54  ;;  %v1076_v16 = vunpack.c.h.bf16 %v353_v54  ;;  %v11779_v57 = vld [vmem:[%s17077_s1 + $0x628] ss:$16 sps:$4 sm:$0xff]  }
 0x1f9   :  { %17177 = vst [vmem:[#allocation91_spill] sm:$0xff] %v14529_v2  ;;  %v1833_v24 = vmul.f32 %v1065_v48, %v1065_v48  ;;  %v2771_v11 = vadd.f32 %v2770_v9, %v1837_v1  ;;  %v2765_v19 = vadd.f32 %v1832_v17, %v1831_v50  ;;  %v1077_v7 = vunpack.c.l.bf16 %v354_v14  ;;  %9760 = vmatprep.subr.bf16.mxu0 %v11778_v39 }
 0x1fa   :  { %2758 = vadd.xlane.f32.xlu0 %v2757_v49  ;;  %v1834_v28 = vmul.f32 %v1066_v22, %v1066_v22  ;;  %v1078_v31 = vunpack.c.h.bf16 %v354_v14  ;;  %v1843_v1 = vmul.f32 %v1075_v3, %v1075_v3  ;;  %v1844_v43 = vmul.f32 %v1076_v16, %v1076_v16  ;;  %v14559_v54 = vpop.xlane.xlu0 %2518  ;;  %9801 = vmatprep.subr.bf16.mxu1 %v11781_v46 }
 0x1fb   :  { %v2772_v4 = vadd.f32 %v2771_v11, %v1838_v8  ;;  %17180 = vst [vmem:[#allocation94_spill] sm:$0xff] %v14559_v54  ;;  %v2766_v49 = vadd.f32 %v2765_v19, %v1833_v24  ;;  %v1845_v9 = vmul.f32 %v1077_v7, %v1077_v7  ;;  %v1071_v22 = vunpack.c.l.bf16 %v351_v63  ;;  %v357_v8 = vld [vmem:[%s17077_s1 + $0xab0] sm:$0xff]  ;;  %v358_v11 = vld [vmem:[%s17077_s1 + $0xab8] sm:$0xff] }
 0x1fc   :  { %v1846_v61 = vmul.f32 %v1078_v31, %v1078_v31  ;;  %v2780_v50 = vadd.f32 %v1844_v43, %v1843_v1  ;;  %v1072_v14 = vunpack.c.h.bf16 %v351_v63  ;;  %v1073_v17 = vunpack.c.l.bf16 %v352_v25  ;;  %v356_v63 = vld [vmem:[%s17077_s1 + $0xaa8] sm:$0xff]  ;;  %v11784_v31 = vld [vmem:[%s17077_s1 + $0x604] ss:$16 sps:$4 sm:$0xff]  }
 0x1fd   :  { %2773 = vadd.xlane.f32.xlu1 %v2772_v4  ;;  %v1074_v2 = vunpack.c.h.bf16 %v352_v25  ;;  %v2767_v3 = vadd.f32 %v2766_v49, %v1834_v28  ;;  %v1839_v24 = vmul.f32 %v1071_v22, %v1071_v22  ;;  %v1084_v19 = vunpack.c.h.bf16 %v357_v8  ;;  %v11782_v28 = vld [vmem:[%s17077_s1 + $0x600] ss:$16 sps:$4 sm:$0xff]   ;;  %v11785_v25 = vld [vmem:[%s17077_s1 + $0x608] ss:$16 sps:$4 sm:$0xff]  }
 0x1fe   :  { %v2781_v16 = vadd.f32 %v2780_v50, %v1845_v9  ;;  %v1840_v39 = vmul.f32 %v1072_v14, %v1072_v14  ;;  %v1841_v46 = vmul.f32 %v1073_v17, %v1073_v17  ;;  %v1085_v7 = vunpack.c.l.bf16 %v358_v11  ;;  %v11787_v50 = vld [vmem:[%s17077_s1 + $0x60c] ss:$16 sps:$4 sm:$0xff]  }
 0x1ff   :  { %9761 = vmatpush1.bf16.xpose.msra.mxu0 %v11776_v27  ;;  %v355_v27 = vld [vmem:[%s17077_s1 + $0xaa0] sm:$0xff]  ;;  %2768 = vadd.xlane.f32.xlu0 %v2767_v3  ;;  %v1842_v1 = vmul.f32 %v1074_v2, %v1074_v2  ;;  %v1086_v49 = vunpack.c.h.bf16 %v358_v11  ;;  %v1852_v17 = vmul.f32 %v1084_v19, %v1084_v19  ;;  %v361_v2 = vld [vmem:[%s17077_s1 + $0xad0] sm:$0xff] }
 0x200   :  { %v14557_v48 = vpop.xlane.xlu1 %2533  ;;  %9802 = vmatpush1.bf16.xpose.msra.mxu1 %v11779_v57  ;;  %v1083_v57 = vunpack.c.l.bf16 %v357_v8  ;;  %v2782_v4 = vadd.f32 %v2781_v16, %v1846_v61  ;;  %v2775_v43 = vadd.f32 %v1840_v39, %v1839_v24  ;;  %v1853_v8 = vmul.f32 %v1085_v7, %v1085_v7  ;;  %9762 = vmatprep.subr.bf16.mxu0 %v11784_v31 }
 0x201   :  { %17179 = vst [vmem:[#allocation93_spill] sm:$0xff] %v14557_v48  ;;  %v1079_v3 = vunpack.c.l.bf16 %v355_v27  ;;  %v1080_v48 = vunpack.c.h.bf16 %v355_v27  ;;  %v1081_v61 = vunpack.c.l.bf16 %v356_v63  ;;  %9803 = vmatprep.subr.bf16.mxu1 %v11787_v50  ;;  %v1854_v11 = vmul.f32 %v1086_v49, %v1086_v49  ;;  %v359_v27 = vld [vmem:[%s17077_s1 + $0xac0] sm:$0xff] }
 0x202   :  { %v14584_v22 = vpop.xlane.xlu0 %2528  ;;  %v1851_v14 = vmul.f32 %v1083_v57, %v1083_v57  ;;  %2783 = vadd.xlane.f32.xlu1 %v2782_v4  ;;  %v2776_v54 = vadd.f32 %v2775_v43, %v1841_v46  ;;  %v1082_v16 = vunpack.c.h.bf16 %v356_v63  ;;  %v362_v57 = vld [vmem:[%s17077_s1 + $0xad8] sm:$0xff]  ;;  %v1091_v4 = vunpack.c.l.bf16 %v361_v2 }
 0x203   :  { %17182 = vst [vmem:[#allocation96_spill] sm:$0xff] %v14584_v22  ;;  %v1847_v39 = vmul.f32 %v1079_v3, %v1079_v3  ;;  %v1848_v7 = vmul.f32 %v1080_v48, %v1080_v48  ;;  %v1849_v46 = vmul.f32 %v1081_v61, %v1081_v61  ;;  %v1092_v63 = vunpack.c.h.bf16 %v361_v2  ;;  %v11788_v61 = vld [vmem:[%s17077_s1 + $0x7e0] ss:$16 sps:$4 sm:$0xff]   ;;  %v11790_v2 = vld [vmem:[%s17077_s1 + $0x7e4] ss:$16 sps:$4 sm:$0xff]  }
 0x204   :  { %v2790_v24 = vadd.f32 %v1852_v17, %v1851_v14  ;;  %v2777_v19 = vadd.f32 %v2776_v54, %v1842_v1  ;;  %v1850_v43 = vmul.f32 %v1082_v16, %v1082_v16  ;;  %v1093_v50 = vunpack.c.l.bf16 %v362_v57  ;;  %v360_v14 = vld [vmem:[%s17077_s1 + $0xac8] sm:$0xff]  ;;  %v14605_v3 = vpop.f32.mrf.mxu0 }
 0x205   :  { %v14582_v9 = vpop.xlane.xlu1 %2543  ;;  %v2785_v49 = vadd.f32 %v1848_v7, %v1847_v39  ;;  %v1859_v1 = vmul.f32 %v1091_v4, %v1091_v4  ;;  %v1087_v17 = vunpack.c.l.bf16 %v359_v27  ;;  %17185 = vst [vmem:[#allocation99_spill] sm:$0xff] %v14605_v3  ;;  %v1860_v16 = vmul.f32 %v1092_v63, %v1092_v63  ;;  %v11793_v7 = vld [vmem:[%s17077_s1 + $0x7ec] ss:$16 sps:$4 sm:$0xff]  }
 0x206   :  { %17181 = vst [vmem:[#allocation95_spill] sm:$0xff] %v14582_v9  ;;  %v2791_v31 = vadd.f32 %v2790_v24, %v1853_v8  ;;  %2778 = vadd.xlane.f32.xlu0 %v2777_v19  ;;  %v14607_v8 = vpop.f32.mrf.mxu1  ;;  %v11791_v24 = vld [vmem:[%s17077_s1 + $0x7e8] ss:$16 sps:$4 sm:$0xff]   ;;  %v1861_v39 = vmul.f32 %v1093_v50, %v1093_v50  ;;  %v365_v19 = vld [vmem:[%s17077_s1 + $0xaf0] sm:$0xff]  ;;  %v1090_v4 = vunpack.c.h.bf16 %v360_v14  ;;  %v363_v50 = vld [vmem:[%s17077_s1 + $0xae0] sm:$0xff] }
 0x207   :  { %9763 = vmatpush1.bf16.xpose.msra.mxu0 %v11782_v28  ;;  %17186 = vst [vmem:[#allocation100_spill] sm:$0xff] %v14607_v8  ;;  %v1855_v8 = vmul.f32 %v1087_v17, %v1087_v17  ;;  %v1099_v63 = vunpack.c.l.bf16 %v365_v19  ;;  %v1100_v17 = vunpack.c.h.bf16 %v365_v19 }
 0x208   :  { %9804 = vmatpush1.bf16.xpose.msra.mxu1 %v11785_v25  ;;  %v14603_v54 = vpop.xlane.xlu0 %2538  ;;  %v2792_v48 = vadd.f32 %v2791_v31, %v1854_v11  ;;  %v1094_v25 = vunpack.c.h.bf16 %v362_v57  ;;  %v2786_v11 = vadd.f32 %v2785_v49, %v1849_v46  ;;  %v1088_v57 = vunpack.c.h.bf16 %v359_v27  ;;  %9764 = vmatprep.subr.bf16.mxu0 %v11790_v2  ;;  %v366_v27 = vld [vmem:[%s17077_s1 + $0xaf8] sm:$0xff]  ;;  %v364_v2 = vld [vmem:[%s17077_s1 + $0xae8] sm:$0xff] }
 0x209   :  { %17184 = vst [vmem:[#allocation98_spill] sm:$0xff] %v14603_v54  ;;  %v1089_v31 = vunpack.c.l.bf16 %v360_v14  ;;  %9805 = vmatprep.subr.bf16.mxu1 %v11793_v7  ;;  %v14630_v14 = vpop.f32.mrf.mxu0 }
 0x20a   :  { %v14601_v28 = vpop.xlane.xlu1 %2553  ;;  %2793 = vadd.xlane.f32.xlu1 %v2792_v48  ;;  %v2787_v3 = vadd.f32 %v2786_v11, %v1850_v43  ;;  %v1862_v54 = vmul.f32 %v1094_v25, %v1094_v25  ;;  %v1856_v46 = vmul.f32 %v1088_v57, %v1088_v57  ;;  %17187 = vst [vmem:[#allocation101_spill] sm:$0xff] %v14630_v14  ;;  %v14632_v48 = vpop.f32.mrf.mxu1  ;;  %v1101_v57 = vunpack.c.l.bf16 %v366_v27 }
 0x20b   :  { %17183 = vst [vmem:[#allocation97_spill] sm:$0xff] %v14601_v28  ;;  %v2800_v28 = vadd.f32 %v1860_v16, %v1859_v1  ;;  %v1857_v49 = vmul.f32 %v1089_v31, %v1089_v31  ;;  %17188 = vst [vmem:[#allocation102_spill] sm:$0xff] %v14632_v48  ;;  %v1858_v25 = vmul.f32 %v1090_v4, %v1090_v4  ;;  %v8827_v7 = vpop.f32.mrf.mxu0  ;;  %v1096_v4 = vunpack.c.h.bf16 %v363_v50 }
 0x20c   :  { %2788 = vadd.xlane.f32.xlu0 %v2787_v3  ;;  %v2795_v1 = vadd.f32 %v1856_v46, %v1855_v8  ;;  %v8868_v31 = vpop.f32.mrf.mxu1  ;;  %v1868_v3 = vmul.f32 %v1100_v17, %v1100_v17  ;;  %v369_v8 = vld [vmem:[%s17077_s1 + $0xb10] sm:$0xff]  ;;  %v1097_v46 = vunpack.c.l.bf16 %v364_v2 }
 0x20d   :  { %v2801_v43 = vadd.f32 %v2800_v28, %v1861_v39  ;;  %v1095_v28 = vunpack.c.l.bf16 %v363_v50  ;;  %v1869_v39 = vmul.f32 %v1101_v57, %v1101_v57  ;;  %v370_v50 = vld [vmem:[%s17077_s1 + $0xb18] sm:$0xff] }
 0x20e   :  { %v2796_v48 = vadd.f32 %v2795_v1, %v1857_v49  ;;  %v11797_v49 = vld [vmem:[%s17077_s1 + $0x7c8] ss:$16 sps:$4 sm:$0xff]   ;;  %v1098_v1 = vunpack.c.h.bf16 %v364_v2  ;;  %v11799_v57 = vld [vmem:[%s17077_s1 + $0x7cc] ss:$16 sps:$4 sm:$0xff]   ;;  %v1865_v7 = vmul.f32 %v1097_v46, %v1097_v46 }
 0x20f   :  { %9765 = vmatpush2.bf16.xpose.msra.mxu0 %v11788_v61  ;;  %v1102_v61 = vunpack.c.h.bf16 %v366_v27  ;;  %v2802_v14 = vadd.f32 %v2801_v43, %v1862_v54  ;;  %v11794_v27 = vld [vmem:[%s17077_s1 + $0x7c0] ss:$16 sps:$4 sm:$0xff]   ;;  %v11796_v54 = vld [vmem:[%s17077_s1 + $0x7c4] ss:$16 sps:$4 sm:$0xff]   ;;  %v1863_v17 = vmul.f32 %v1095_v28, %v1095_v28  ;;  %v1110_v28 = vunpack.c.h.bf16 %v370_v50 }
 0x210   :  { %9806 = vmatpush2.bf16.xpose.msra.mxu1 %v11791_v24  ;;  %v14639_v16 = vpop.xlane.xlu0 %2548  ;;  %v1867_v24 = vmul.f32 %v1099_v63, %v1099_v63  ;;  %v2797_v63 = vadd.f32 %v2796_v48, %v1858_v25  ;;  %9766 = vmatprep.subr.bf16.mxu0 %v11796_v54  ;;  %v367_v48 = vld [vmem:[%s17077_s1 + $0xb00] sm:$0xff]  ;;  %v1866_v2 = vmul.f32 %v1098_v1, %v1098_v1 }
 0x211   :  { %17190 = vst [vmem:[#allocation104_spill] sm:$0xff] %v14639_v16  ;;  %v1870_v19 = vmul.f32 %v1102_v61, %v1102_v61  ;;  %2803 = vadd.xlane.f32.xlu1 %v2802_v14  ;;  %v1864_v61 = vmul.f32 %v1096_v4, %v1096_v4  ;;  %v1107_v16 = vunpack.c.l.bf16 %v369_v8  ;;  %v1108_v14 = vunpack.c.h.bf16 %v369_v8  ;;  %9807 = vmatprep.subr.bf16.mxu1 %v11799_v57  ;;  %v368_v4 = vld [vmem:[%s17077_s1 + $0xb08] sm:$0xff] }
 0x212   :  { %v14637_v11 = vpop.xlane.xlu1 %2563  ;;  %v2810_v43 = vadd.f32 %v1868_v3, %v1867_v24  ;;  %2798 = vadd.xlane.f32.xlu0 %v2797_v63  ;;  %v1109_v3 = vunpack.c.l.bf16 %v370_v50  ;;  %v1105_v57 = vunpack.c.l.bf16 %v368_v4  ;;  %v1106_v50 = vunpack.c.h.bf16 %v368_v4 }
 0x213   :  { %17189 = vst [vmem:[#allocation103_spill] sm:$0xff] %v14637_v11  ;;  %v8828_v11 = vpop.f32.mrf.mxu0  ;;  %v2805_v24 = vadd.f32 %v1864_v61, %v1863_v17  ;;  %v1876_v54 = vmul.f32 %v1108_v14, %v1108_v14  ;;  %v1104_v17 = vunpack.c.h.bf16 %v367_v48  ;;  %v373_v61 = vld [vmem:[%s17077_s1 + $0xb30] sm:$0xff] }
 0x214   :  { %v8869_v11 = vpop.f32.mrf.mxu1  ;;  %v2811_v31 = vadd.f32 %v2810_v43, %v1869_v39  ;;  %v1875_v39 = vmul.f32 %v1107_v16, %v1107_v16  ;;  %v1877_v43 = vmul.f32 %v1109_v3, %v1109_v3  ;;  %v11802_v3 = vld [vmem:[%s17077_s1 + $0x7a4] ss:$16 sps:$4 sm:$0xff]   ;;  %v1116_v4 = vunpack.c.h.bf16 %v373_v61 }
 0x215   :  { %v2806_v63 = vadd.f32 %v2805_v24, %v1865_v7  ;;  %v1878_v11 = vmul.f32 %v1110_v28, %v1110_v28  ;;  %v11800_v7 = vld [vmem:[%s17077_s1 + $0x7a0] ss:$16 sps:$4 sm:$0xff]   ;;  %v1872_v14 = vmul.f32 %v1104_v17, %v1104_v17  ;;  %v1115_v28 = vunpack.c.l.bf16 %v373_v61 }
 0x216   :  { %v14662_v25 = vpop.xlane.xlu0 %2558  ;;  %v2812_v8 = vadd.f32 %v2811_v31, %v1870_v19  ;;  %v2820_v1 = vadd.f32 %v1876_v54, %v1875_v39  ;;  %v372_v39 = vld [vmem:[%s17077_s1 + $0xb28] sm:$0xff] }
 0x217   :  { %17191 = vst [vmem:[#allocation105_spill] sm:$0xff] %v14662_v25  ;;  %9767 = vmatpush2.bf16.xpose.msra.mxu0 %v11794_v27  ;;  %v1103_v25 = vunpack.c.l.bf16 %v367_v48  ;;  %v374_v27 = vld [vmem:[%s17077_s1 + $0xb38] sm:$0xff]  ;;  %v2807_v19 = vadd.f32 %v2806_v63, %v1866_v2  ;;  %v1873_v48 = vmul.f32 %v1105_v57, %v1105_v57  ;;  %v1883_v57 = vmul.f32 %v1115_v28, %v1115_v28 }
 0x218   :  { %9808 = vmatpush2.bf16.xpose.msra.mxu1 %v11797_v49  ;;  %2813 = vadd.xlane.f32.xlu1 %v2812_v8  ;;  %v371_v49 = vld [vmem:[%s17077_s1 + $0xb20] sm:$0xff]  ;;  %v2821_v31 = vadd.f32 %v2820_v1, %v1877_v43  ;;  %v11805_v2 = vld [vmem:[%s17077_s1 + $0x7ac] ss:$16 sps:$4 sm:$0xff]   ;;  %v1117_v8 = vunpack.c.l.bf16 %v374_v27  ;;  %v1874_v43 = vmul.f32 %v1106_v50, %v1106_v50  ;;  %v1118_v17 = vunpack.c.h.bf16 %v374_v27 }
 0x219   :  { %v14667_v46 = vpop.xlane.xlu1 %2573  ;;  %v1871_v16 = vmul.f32 %v1103_v25, %v1103_v25  ;;  %v11803_v25 = vld [vmem:[%s17077_s1 + $0x7a8] ss:$16 sps:$4 sm:$0xff]   ;;  %2808 = vadd.xlane.f32.xlu0 %v2807_v19  ;;  %9768 = vmatprep.subr.bf16.mxu0 %v11802_v3  ;;  %v1111_v22 = vunpack.c.l.bf16 %v371_v49  ;;  %v1112_v19 = vunpack.c.h.bf16 %v371_v49  ;;  %v1113_v9 = vunpack.c.l.bf16 %v372_v39  ;;  %v375_v49 = vld [vmem:[%s17077_s1 + $0xb40] sm:$0xff] }
 0x21a   :  { %17192 = vst [vmem:[#allocation106_spill] sm:$0xff] %v14667_v46  ;;  %v14681_v24 = vpop.xlane.xlu0 %2568  ;;  %v2822_v63 = vadd.f32 %v2821_v31, %v1878_v11  ;;  %9809 = vmatprep.subr.bf16.mxu1 %v11805_v2  ;;  %v1885_v46 = vmul.f32 %v1117_v8, %v1117_v8  ;;  %v1886_v11 = vmul.f32 %v1118_v17, %v1118_v17  ;;  %v378_v31 = vld [vmem:[%s17077_s1 + $0xb58] sm:$0xff] }
 0x21b   :  { %17193 = vst [vmem:[#allocation107_spill] sm:$0xff] %v14681_v24  ;;  %v2815_v1 = vadd.f32 %v1872_v14, %v1871_v16  ;;  %v1884_v24 = vmul.f32 %v1116_v4, %v1116_v4  ;;  %v1114_v16 = vunpack.c.h.bf16 %v372_v39  ;;  %v1879_v27 = vmul.f32 %v1111_v22, %v1111_v22  ;;  %v11806_v22 = vld [vmem:[%s17077_s1 + $0x780] ss:$16 sps:$4 sm:$0xff]  }
 0x21c   :  { %2823 = vadd.xlane.f32.xlu1 %v2822_v63  ;;  %v1880_v3 = vmul.f32 %v1112_v19, %v1112_v19  ;;  %v1125_v39 = vunpack.c.l.bf16 %v378_v31  ;;  %v11809_v63 = vld [vmem:[%s17077_s1 + $0x788] ss:$16 sps:$4 sm:$0xff]   ;;  %v1126_v17 = vunpack.c.h.bf16 %v378_v31 }
 0x21d   :  { %v2816_v61 = vadd.f32 %v2815_v1, %v1873_v48  ;;  %v2830_v50 = vadd.f32 %v1884_v24, %v1883_v57  ;;  %v11808_v24 = vld [vmem:[%s17077_s1 + $0x784] ss:$16 sps:$4 sm:$0xff]  }
 0x21e   :  { %v2825_v4 = vadd.f32 %v1880_v3, %v1879_v27  ;;  %v381_v27 = vld [vmem:[%s17077_s1 + $0xb70] sm:$0xff] }
 0x21f   :  { %9769 = vmatpush2.bf16.xpose.msra.mxu0 %v11800_v7  ;;  %v2817_v14 = vadd.f32 %v2816_v61, %v1874_v43  ;;  %v1881_v7 = vmul.f32 %v1113_v9, %v1113_v9  ;;  %v1882_v9 = vmul.f32 %v1114_v16, %v1114_v16  ;;  %v11811_v43 = vld [vmem:[%s17077_s1 + $0x78c] ss:$16 sps:$4 sm:$0xff]   ;;  %v1119_v61 = vunpack.c.l.bf16 %v375_v49 }
 0x220   :  { %v14695_v54 = vpop.xlane.xlu1 %2583  ;;  %9810 = vmatpush2.bf16.xpose.msra.mxu1 %v11803_v25  ;;  %v14706_v48 = vpop.xlane.xlu0 %2578  ;;  %v2831_v25 = vadd.f32 %v2830_v50, %v1885_v46  ;;  %v376_v46 = vld [vmem:[%s17077_s1 + $0xb48] sm:$0xff]  ;;  %9770 = vmatprep.subr.bf16.mxu0 %v11808_v24  ;;  %v1893_v50 = vmul.f32 %v1125_v39, %v1125_v39  ;;  %v1120_v16 = vunpack.c.h.bf16 %v375_v49  ;;  %v1131_v24 = vunpack.c.l.bf16 %v381_v27 }
 0x221   :  { %17194 = vst [vmem:[#allocation108_spill] sm:$0xff] %v14695_v54  ;;  %v377_v54 = vld [vmem:[%s17077_s1 + $0xb50] sm:$0xff]  ;;  %17195 = vst [vmem:[#allocation109_spill] sm:$0xff] %v14706_v48  ;;  %2818 = vadd.xlane.f32.xlu0 %v2817_v14  ;;  %v2826_v19 = vadd.f32 %v2825_v4, %v1881_v7  ;;  %9811 = vmatprep.subr.bf16.mxu1 %v11811_v43  ;;  %v1121_v14 = vunpack.c.l.bf16 %v376_v46  ;;  %v1122_v3 = vunpack.c.h.bf16 %v376_v46  ;;  %v382_v7 = vld [vmem:[%s17077_s1 + $0xb78] sm:$0xff]  ;;  %v1132_v46 = vunpack.c.h.bf16 %v381_v27 }
 0x222   :  { %v1123_v2 = vunpack.c.l.bf16 %v377_v54  ;;  %v1124_v8 = vunpack.c.h.bf16 %v377_v54  ;;  %v2832_v1 = vadd.f32 %v2831_v25, %v1886_v11  ;;  %v1887_v48 = vmul.f32 %v1119_v61, %v1119_v61  ;;  %v379_v4 = vld [vmem:[%s17077_s1 + $0xb60] sm:$0xff]  ;;  %v380_v43 = vld [vmem:[%s17077_s1 + $0xb68] sm:$0xff] }
 0x223   :  { %v1894_v11 = vmul.f32 %v1126_v17, %v1126_v17  ;;  %v1888_v25 = vmul.f32 %v1120_v16, %v1120_v16  ;;  %v1889_v49 = vmul.f32 %v1121_v14, %v1121_v14  ;;  %v1134_v17 = vunpack.c.h.bf16 %v382_v7  ;;  %v11814_v61 = vld [vmem:[%s17077_s1 + $0x764] ss:$16 sps:$4 sm:$0xff]   ;;  %v11817_v16 = vld [vmem:[%s17077_s1 + $0x76c] ss:$16 sps:$4 sm:$0xff]  }
 0x224   :  { %v14708_v28 = vpop.xlane.xlu1 %2593  ;;  %v1891_v57 = vmul.f32 %v1123_v2, %v1123_v2  ;;  %v1892_v54 = vmul.f32 %v1124_v8, %v1124_v8  ;;  %2833 = vadd.xlane.f32.xlu1 %v2832_v1  ;;  %v1133_v1 = vunpack.c.l.bf16 %v382_v7 }
 0x225   :  { %17196 = vst [vmem:[#allocation110_spill] sm:$0xff] %v14708_v28  ;;  %v2827_v28 = vadd.f32 %v2826_v19, %v1882_v9  ;;  %v1890_v9 = vmul.f32 %v1122_v3, %v1122_v3  ;;  %v2835_v39 = vadd.f32 %v1888_v25, %v1887_v48  ;;  %v1127_v48 = vunpack.c.l.bf16 %v379_v4  ;;  %v385_v25 = vld [vmem:[%s17077_s1 + $0xb90] sm:$0xff] }
 0x226   :  { %v2840_v31 = vadd.f32 %v1892_v54, %v1891_v57  ;;  %v11812_v57 = vld [vmem:[%s17077_s1 + $0x760] ss:$16 sps:$4 sm:$0xff]   ;;  %v1900_v54 = vmul.f32 %v1132_v46, %v1132_v46  ;;  %v1901_v27 = vmul.f32 %v1133_v1, %v1133_v1  ;;  %v1902_v14 = vmul.f32 %v1134_v17, %v1134_v17 }
 0x227   :  { %9771 = vmatpush2.bf16.xpose.msra.mxu0 %v11806_v22  ;;  %v14731_v2 = vpop.xlane.xlu0 %2588  ;;  %2828 = vadd.xlane.f32.xlu0 %v2827_v28  ;;  %v2836_v19 = vadd.f32 %v2835_v39, %v1889_v49  ;;  %v1128_v3 = vunpack.c.h.bf16 %v379_v4  ;;  %v1130_v49 = vunpack.c.h.bf16 %v380_v43 }
 0x228   :  { %17197 = vst [vmem:[#allocation111_spill] sm:$0xff] %v14731_v2  ;;  %9812 = vmatpush2.bf16.xpose.msra.mxu1 %v11809_v63  ;;  %v14736_v8 = vpop.xlane.xlu1 %2603  ;;  %v2841_v22 = vadd.f32 %v2840_v31, %v1893_v50  ;;  %v1899_v63 = vmul.f32 %v1131_v24, %v1131_v24  ;;  %v11815_v50 = vld [vmem:[%s17077_s1 + $0x768] ss:$16 sps:$4 sm:$0xff]   ;;  %v1129_v31 = vunpack.c.l.bf16 %v380_v43  ;;  %9772 = vmatprep.subr.bf16.mxu0 %v11814_v61  ;;  %v1139_v61 = vunpack.c.l.bf16 %v385_v25 }
 0x229   :  { %17198 = vst [vmem:[#allocation112_spill] sm:$0xff] %v14736_v8  ;;  %v1895_v24 = vmul.f32 %v1127_v48, %v1127_v48  ;;  %9813 = vmatprep.subr.bf16.mxu1 %v11817_v16  ;;  %v1896_v46 = vmul.f32 %v1128_v3, %v1128_v3  ;;  %v1898_v43 = vmul.f32 %v1130_v49, %v1130_v49  ;;  %v384_v48 = vld [vmem:[%s17077_s1 + $0xb88] sm:$0xff]  ;;  %v11820_v49 = vld [vmem:[%s17077_s1 + $0x744] ss:$16 sps:$4 sm:$0xff]  }
 0x22a   :  { %v2842_v28 = vadd.f32 %v2841_v22, %v1894_v11  ;;  %v2837_v11 = vadd.f32 %v2836_v19, %v1890_v9  ;;  %v2850_v7 = vadd.f32 %v1900_v54, %v1899_v63  ;;  %v386_v22 = vld [vmem:[%s17077_s1 + $0xb98] sm:$0xff]  ;;  %v1897_v4 = vmul.f32 %v1129_v31, %v1129_v31  ;;  %v383_v9 = vld [vmem:[%s17077_s1 + $0xb80] sm:$0xff] }
 0x22b   :  { %v2845_v63 = vadd.f32 %v1896_v46, %v1895_v24  ;;  %v1141_v19 = vunpack.c.l.bf16 %v386_v22  ;;  %v1142_v54 = vunpack.c.h.bf16 %v386_v22  ;;  %v1907_v3 = vmul.f32 %v1139_v61, %v1139_v61  ;;  %v11821_v61 = vld [vmem:[%s17077_s1 + $0x748] ss:$16 sps:$4 sm:$0xff]  }
 0x22c   :  { %2843 = vadd.xlane.f32.xlu1 %v2842_v28  ;;  %v14759_v39 = vpop.xlane.xlu0 %2598  ;;  %2838 = vadd.xlane.f32.xlu0 %v2837_v11  ;;  %v2851_v17 = vadd.f32 %v2850_v7, %v1901_v27  ;;  %v1140_v28 = vunpack.c.h.bf16 %v385_v25  ;;  %v1135_v25 = vunpack.c.l.bf16 %v383_v9  ;;  %v389_v7 = vld [vmem:[%s17077_s1 + $0xbb0] sm:$0xff]  ;;  %v1136_v24 = vunpack.c.h.bf16 %v383_v9 }
 0x22d   :  { %17199 = vst [vmem:[#allocation113_spill] sm:$0xff] %v14759_v39  ;;  %v2846_v31 = vadd.f32 %v2845_v63, %v1897_v4  ;;  %v1909_v27 = vmul.f32 %v1141_v19, %v1141_v19  ;;  %v1910_v11 = vmul.f32 %v1142_v54, %v1142_v54  ;;  %v1137_v22 = vunpack.c.l.bf16 %v384_v48  ;;  %v390_v4 = vld [vmem:[%s17077_s1 + $0xbb8] sm:$0xff] }
 0x22e   :  { %v14761_v1 = vpop.xlane.xlu1 %2613  ;;  %v2852_v16 = vadd.f32 %v2851_v17, %v1902_v14  ;;  %v1138_v46 = vunpack.c.h.bf16 %v384_v48  ;;  %v1903_v19 = vmul.f32 %v1135_v25, %v1135_v25  ;;  %v1904_v48 = vmul.f32 %v1136_v24, %v1136_v24 }
 0x22f   :  { %17200 = vst [vmem:[#allocation114_spill] sm:$0xff] %v14761_v1  ;;  %9773 = vmatpush2.bf16.xpose.msra.mxu0 %v11812_v57  ;;  %v1908_v57 = vmul.f32 %v1140_v28, %v1140_v28  ;;  %v11823_v28 = vld [vmem:[%s17077_s1 + $0x74c] ss:$16 sps:$4 sm:$0xff]   ;;  %v2847_v63 = vadd.f32 %v2846_v31, %v1898_v43  ;;  %v1149_v39 = vunpack.c.l.bf16 %v390_v4 }
 0x230   :  { %9814 = vmatpush2.bf16.xpose.msra.mxu1 %v11815_v50  ;;  %v11818_v50 = vld [vmem:[%s17077_s1 + $0x740] ss:$16 sps:$4 sm:$0xff]   ;;  %2853 = vadd.xlane.f32.xlu1 %v2852_v16  ;;  %v1905_v16 = vmul.f32 %v1137_v22, %v1137_v22  ;;  %v388_v43 = vld [vmem:[%s17077_s1 + $0xba8] sm:$0xff]  ;;  %v1906_v25 = vmul.f32 %v1138_v46, %v1138_v46 }
 0x231   :  { %v2860_v14 = vadd.f32 %v1908_v57, %v1907_v3  ;;  %v14781_v17 = vpop.xlane.xlu0 %2608  ;;  %9774 = vmatprep.subr.bf16.mxu0 %v11820_v49  ;;  %v387_v3 = vld [vmem:[%s17077_s1 + $0xba0] sm:$0xff]  ;;  %9815 = vmatprep.subr.bf16.mxu1 %v11823_v28  ;;  %v1147_v57 = vunpack.c.l.bf16 %v389_v7  ;;  %v2855_v49 = vadd.f32 %v1904_v48, %v1903_v19  ;;  %v1917_v22 = vmul.f32 %v1149_v39, %v1149_v39 }
 0x232   :  { %17201 = vst [vmem:[#allocation115_spill] sm:$0xff] %v14781_v17  ;;  %2848 = vadd.xlane.f32.xlu0 %v2847_v63  ;;  %v1148_v17 = vunpack.c.h.bf16 %v389_v7  ;;  %v1143_v2 = vunpack.c.l.bf16 %v387_v3  ;;  %v1144_v63 = vunpack.c.h.bf16 %v387_v3  ;;  %v393_v7 = vld [vmem:[%s17077_s1 + $0xbd0] sm:$0xff]  ;;  %v1146_v46 = vunpack.c.h.bf16 %v388_v43  ;;  %v11827_v3 = vld [vmem:[%s17077_s1 + $0x728] ss:$16 sps:$4 sm:$0xff]  }
 0x233   :  { %v14789_v54 = vpop.xlane.xlu1 %2623  ;;  %v2861_v9 = vadd.f32 %v2860_v14, %v1909_v27  ;;  %v1150_v27 = vunpack.c.h.bf16 %v390_v4  ;;  %v1915_v14 = vmul.f32 %v1147_v57, %v1147_v57  ;;  %v2856_v28 = vadd.f32 %v2855_v49, %v1905_v16  ;;  %v394_v4 = vld [vmem:[%s17077_s1 + $0xbd8] sm:$0xff] }
 0x234   :  { %17202 = vst [vmem:[#allocation116_spill] sm:$0xff] %v14789_v54  ;;  %v1916_v24 = vmul.f32 %v1148_v17, %v1148_v17  ;;  %v1145_v54 = vunpack.c.l.bf16 %v388_v43  ;;  %v1911_v19 = vmul.f32 %v1143_v2, %v1143_v2  ;;  %v11824_v17 = vld [vmem:[%s17077_s1 + $0x720] ss:$16 sps:$4 sm:$0xff]   ;;  %v1912_v48 = vmul.f32 %v1144_v63, %v1144_v63  ;;  %v11829_v57 = vld [vmem:[%s17077_s1 + $0x72c] ss:$16 sps:$4 sm:$0xff]  }
 0x235   :  { %v2862_v31 = vadd.f32 %v2861_v9, %v1910_v11  ;;  %v2857_v9 = vadd.f32 %v2856_v28, %v1906_v25  ;;  %v391_v2 = vld [vmem:[%s17077_s1 + $0xbc0] sm:$0xff]  ;;  %v1914_v49 = vmul.f32 %v1146_v46, %v1146_v46  ;;  %v1158_v28 = vunpack.c.h.bf16 %v394_v4  ;;  %v397_v46 = vld [vmem:[%s17077_s1 + $0xbf0] sm:$0xff] }
 0x236   :  { %v14800_v1 = vpop.xlane.xlu0 %2618  ;;  %v2870_v11 = vadd.f32 %v1916_v24, %v1915_v14  ;;  %v1913_v16 = vmul.f32 %v1145_v54, %v1145_v54  ;;  %v2865_v25 = vadd.f32 %v1912_v48, %v1911_v19  ;;  %v1157_v54 = vunpack.c.l.bf16 %v394_v4  ;;  %v392_v14 = vld [vmem:[%s17077_s1 + $0xbc8] sm:$0xff] }
 0x237   :  { %9775 = vmatpush2.bf16.xpose.msra.mxu0 %v11818_v50  ;;  %2863 = vadd.xlane.f32.xlu1 %v2862_v31  ;;  %17203 = vst [vmem:[#allocation117_spill] sm:$0xff] %v14800_v1  ;;  %v1918_v50 = vmul.f32 %v1150_v27, %v1150_v27  ;;  %v1155_v31 = vunpack.c.l.bf16 %v393_v7  ;;  %v1156_v27 = vunpack.c.h.bf16 %v393_v7  ;;  %v1151_v1 = vunpack.c.l.bf16 %v391_v2 }
 0x238   :  { %9816 = vmatpush2.bf16.xpose.msra.mxu1 %v11821_v61  ;;  %v11826_v61 = vld [vmem:[%s17077_s1 + $0x724] ss:$16 sps:$4 sm:$0xff]   ;;  %v2871_v43 = vadd.f32 %v2870_v11, %v1917_v22  ;;  %2858 = vadd.xlane.f32.xlu0 %v2857_v9  ;;  %v1925_v22 = vmul.f32 %v1157_v54, %v1157_v54  ;;  %v1152_v11 = vunpack.c.h.bf16 %v391_v2  ;;  %v1153_v19 = vunpack.c.l.bf16 %v392_v14  ;;  %v398_v2 = vld [vmem:[%s17077_s1 + $0xbf8] sm:$0xff] }
 0x239   :  { %v14805_v39 = vpop.xlane.xlu1 %2633  ;;  %9776 = vmatprep.subr.bf16.mxu0 %v11826_v61  ;;  %9817 = vmatprep.subr.bf16.mxu1 %v11829_v57  ;;  %v1923_v63 = vmul.f32 %v1155_v31, %v1155_v31  ;;  %v1924_v8 = vmul.f32 %v1156_v27, %v1156_v27  ;;  %v1154_v61 = vunpack.c.h.bf16 %v392_v14  ;;  %v1919_v9 = vmul.f32 %v1151_v1, %v1151_v1  ;;  %v11830_v1 = vld [vmem:[%s17077_s1 + $0x700] ss:$16 sps:$4 sm:$0xff]   ;;  %v396_v27 = vld [vmem:[%s17077_s1 + $0xbe8] sm:$0xff] }
 0x23a   :  { %17204 = vst [vmem:[#allocation118_spill] sm:$0xff] %v14805_v39  ;;  %v2872_v24 = vadd.f32 %v2871_v43, %v1918_v50  ;;  %v2866_v39 = vadd.f32 %v2865_v25, %v1913_v16  ;;  %v1926_v48 = vmul.f32 %v1158_v28, %v1158_v28  ;;  %v1920_v16 = vmul.f32 %v1152_v11, %v1152_v11  ;;  %v11833_v54 = vld [vmem:[%s17077_s1 + $0x708] ss:$16 sps:$4 sm:$0xff]   ;;  %v11835_v14 = vld [vmem:[%s17077_s1 + $0x70c] ss:$16 sps:$4 sm:$0xff]  }
 0x23b   :  { %v1921_v57 = vmul.f32 %v1153_v19, %v1153_v19  ;;  %v1163_v43 = vunpack.c.l.bf16 %v397_v46  ;;  %v1922_v31 = vmul.f32 %v1154_v61, %v1154_v61  ;;  %v1164_v25 = vunpack.c.h.bf16 %v397_v46 }
 0x23c   :  { %v14828_v7 = vpop.xlane.xlu0 %2628  ;;  %2873 = vadd.xlane.f32.xlu1 %v2872_v24  ;;  %v2867_v4 = vadd.f32 %v2866_v39, %v1914_v49  ;;  %v11832_v39 = vld [vmem:[%s17077_s1 + $0x704] ss:$16 sps:$4 sm:$0xff]   ;;  %v2875_v49 = vadd.f32 %v1920_v16, %v1919_v9  ;;  %v2896_v24 = vmax.f32 %v13228_v62, 1e-24  ;;  %v1165_v28 = vunpack.c.l.bf16 %v398_v2 }
 0x23d   :  { %17205 = vst [vmem:[#allocation119_spill] sm:$0xff] %v14828_v7  ;;  %v1932_v19 = vmul.f32 %v1164_v25, %v1164_v25  ;;  %v1161_v7 = vunpack.c.l.bf16 %v396_v27 }
 0x23e   :  { %v14830_v50 = vpop.xlane.xlu1 %2643  ;;  %2868 = vadd.xlane.f32.xlu0 %v2867_v4  ;;  %v2876_v46 = vadd.f32 %v2875_v49, %v1921_v57  ;;  %v1933_v4 = vmul.f32 %v1165_v28, %v1165_v28  ;;  %12028 = vrsqrt.f32 %v2896_v24  ;;  %v12425_v24 = vmov 839922192  }
 0x23f   :  { %9777 = vmatpush2.bf16.xpose.msra.mxu0 %v11824_v17  ;;  %17206 = vst [vmem:[#allocation120_spill] sm:$0xff] %v14830_v50  ;;  %v2880_v17 = vadd.f32 %v1924_v8, %v1923_v63  ;;  %v1166_v63 = vunpack.c.h.bf16 %v398_v2  ;;  %v1162_v2 = vunpack.c.h.bf16 %v396_v27 }
 0x240   :  { %9818 = vmatpush2.bf16.xpose.msra.mxu1 %v11827_v3  ;;  %v395_v3 = vld [vmem:[%s17077_s1 + $0xbe0] sm:$0xff]  ;;  %9778 = vmatprep.subr.bf16.mxu0 %v11832_v39  ;;  %v2877_v62 = vadd.f32 %v2876_v46, %v1922_v31  ;;  %v1929_v39 = vmul.f32 %v1161_v7, %v1161_v7  ;;  %v11841_v7 = vld [vmem:[%s17077_s1 + $0x8ec] ss:$16 sps:$4 sm:$0xff]  }
 0x241   :  { %v2881_v8 = vadd.f32 %v2880_v17, %v1925_v22  ;;  %v1931_v22 = vmul.f32 %v1163_v43, %v1163_v43  ;;  %v1159_v61 = vunpack.c.l.bf16 %v395_v3  ;;  %v14854_v9 = vpop.xlane.xlu0 %2638  ;;  %9819 = vmatprep.subr.bf16.mxu1 %v11835_v14  ;;  %v1934_v17 = vmul.f32 %v1166_v63, %v1166_v63  ;;  %v11838_v31 = vld [vmem:[%s17077_s1 + $0x8e4] ss:$16 sps:$4 sm:$0xff]  }
 0x242   :  { %v1160_v16 = vunpack.c.h.bf16 %v395_v3  ;;  %2878 = vadd.xlane.f32.xlu0 %v2877_v62  ;;  %v1930_v49 = vmul.f32 %v1162_v2, %v1162_v2  ;;  %v2898_v3 = vmax.f32 %v13210_v29, 1e-24  ;;  %v2895_v14 = vmax.f32 %v13212_v35, 1e-24  ;;  %v11839_v29 = vld [vmem:[%s17077_s1 + $0x8e8] ss:$16 sps:$4 sm:$0xff]  }
 0x243   :  { %v2882_v11 = vadd.f32 %v2881_v8, %v1926_v48  ;;  %v2890_v42 = vadd.f32 %v1932_v19, %v1931_v22  ;;  %v1927_v43 = vmul.f32 %v1159_v61, %v1159_v61  ;;  %v2897_v48 = vmax.f32 %v13176_v33, 1e-24 }
 0x244   :  { %v14856_v50 = vpop.xlane.xlu1 %2653  ;;  %v1928_v57 = vmul.f32 %v1160_v16, %v1160_v16  ;;  %v12424_v35 = vmov 0   ;;  %v3472_v63 = vunpack.c.l.s4 %v12425_v24  ;;  %v17084_v22 = vlaneseq }
 0x245   :  { %2883 = vadd.xlane.f32.xlu1 %v2882_v11  ;;  %v2891_v8 = vadd.f32 %v2890_v42, %v1933_v4  ;;  %12030 = vrsqrt.f32 %v2897_v48  ;;  %v11836_v42 = vld [vmem:[%s17077_s1 + $0x8e0] ss:$16 sps:$4 sm:$0xff]   ;;  %11480 = vset.pattern.permute.xlu0 %v12424_v35  ;;  %v12426_v11 = vmov 1985246804   ;;  %v2904_v19 = vmax.f32 %v13268_v0, 1e-24 }
 0x246   :  { %v2885_v25 = vadd.f32 %v1928_v57, %v1927_v43  ;;  %11481 = vset.pattern.permute.xlu1 %v12424_v35  ;;  %v3479_v46 = vunpack.c.l.s4 %v12426_v11  ;;  %12032 = vrsqrt.f32 %v2895_v14  ;;  %v2899_v61 = vmax.f32 %v13243_v36, 1e-24  ;;  %v11844_v0 = vld [vmem:[%s17077_s1 + $0x8c4] ss:$16 sps:$4 sm:$0xff]   ;;  %v11847_v48 = vld [vmem:[%s17077_s1 + $0x8cc] ss:$16 sps:$4 sm:$0xff]  }
 0x247   :  { %9779 = vmatpush2.bf16.xpose.msra.mxu0 %v11830_v1  ;;  %v2892_v1 = vadd.f32 %v2891_v8, %v1934_v17  ;;  %v14861_v28 = vpop.xlane.xlu0 %2648  ;;  %12034 = vrsqrt.f32 %v2898_v3  ;;  %v3473_v17 = vunpack.c.0.s8 %v3472_v63  ;;  %v14884_v16 = vshrl.u32 %v17084_v22, 7  ;;  %v11845_v8 = vld [vmem:[%s17077_s1 + $0x8c8] ss:$16 sps:$4 sm:$0xff]   ;;  %v11848_v11 = vld [vmem:[%s17077_s1 + $0x8a0] ss:$16 sps:$4 sm:$0xff]  }
 0x248   :  { %9820 = vmatpush2.bf16.xpose.msra.mxu1 %v11833_v54  ;;  %v2886_v33 = vadd.f32 %v2885_v25, %v1929_v39  ;;  %10630 = vmatprep.subr.bf16.mxu0 %v11838_v31  ;;  %v3480_v62 = vunpack.c.0.s8 %v3479_v46  ;;  %12036 = vrsqrt.f32 %v2904_v19  ;;  %v2906_v36 = vmax.f32 %v13281_v15, 1e-24  ;;  %v11842_v39 = vld [vmem:[%s17077_s1 + $0x8c0] ss:$16 sps:$4 sm:$0xff]  }
 0x249   :  { %2893 = vadd.xlane.f32.xlu1 %v2892_v1  ;;  %10671 = vmatprep.subr.bf16.mxu1 %v11841_v7  ;;  %17207 = vst [vmem:[#allocation121_spill] sm:$0xff] %v14884_v16  ;;  %v2900_v43 = vmax.f32 %v13226_v53, 1e-24  ;;  %12038 = vrsqrt.f32 %v2899_v61  ;;  %v2908_v15 = vmax.f32 %v13315_v32, 1e-24 }
 0x24a   :  { %v14866_v27 = vpop.xlane.xlu1 %2663  ;;  %v2887_v54 = vadd.f32 %v2886_v33, %v1930_v49  ;;  %v14905_v49 = vsub.s32 %v3473_v17, %v14884_v16  ;;  %v14908_v53 = vsub.s32 %v3480_v62, %v14884_v16  ;;  %12040 = vrsqrt.f32 %v2906_v36  ;;  %v11850_v32 = vld [vmem:[%s17077_s1 + $0x8a4] ss:$16 sps:$4 sm:$0xff]  }
 0x24b   :  { %v12029_v57 = vpop.eup %12028  ;;  %12042 = vrsqrt.f32 %v2900_v43  ;;  %v2901_v3 = vmax.f32 %v13270_v10, 1e-24  ;;  %v11853_v10 = vld [vmem:[%s17077_s1 + $0x8ac] ss:$16 sps:$4 sm:$0xff]   ;;  %v2903_v46 = vmax.f32 %v13283_v60, 1e-24 }
 0x24c   :  { %2888 = vadd.xlane.f32.xlu0 %v2887_v54  ;;  %v14881_v4 = vpop.xlane.xlu0 %2658  ;;  %v3491_v14 = vrot.slane %v12029_v57, %v14905_v49  ;;  %v3498_v1 = vrot.slane %v12029_v57, %v14908_v53  ;;  %12044 = vrsqrt.f32 %v2908_v15  ;;  %v2912_v61 = vmax.f32 %v13362_v6, 1e-24 }
 0x24d   :  { %12046 = vrsqrt.f32 %v2901_v3  ;;  %v2905_v60 = vmax.f32 %v13317_v34, 1e-24  ;;  %v2914_v6 = vmax.f32 %v13387_v20, 1e-24  ;;  %v11856_v34 = vld [vmem:[%s17077_s1 + $0x884] ss:$16 sps:$4 sm:$0xff]  }
 0x24e   :  { %9781 = vmatmul.mubr.bf16.vlgmr.msra.gmra.mxu0 %v13214_v51  ;;  %v6160_v7 = vcombine.low %v3491_v14, %v3498_v1 }
 0x24f   :  { %9822 = vmatmul.mubr.bf16.vlgmr.msra.gmra.mxu1 %v13216_v5  ;;  %10631 = vmatpush1.bf16.xpose.msra.mxu0 %v11836_v42  ;;  %v14886_v2 = vpop.xlane.xlu1 %2673  ;;  %v2902_v42 = vmax.f32 %v13241_v13, 1e-24 }
 0x250   :  { %10672 = vmatpush1.bf16.xpose.msra.mxu1 %v11839_v29  ;;  %10662 = vmatprep.mubr.bf16.mxu0 %v13178_v18  ;;  %v2910_v29 = vmax.f32 %v13343_v26, 1e-24  ;;  %v11851_v26 = vld [vmem:[%s17077_s1 + $0x8a8] ss:$16 sps:$4 sm:$0xff]  }
 0x251   :  { %10703 = vmatprep.mubr.bf16.mxu1 %v13180_v52  ;;  %10632 = vmatprep.subr.bf16.mxu0 %v11844_v0  ;;  %12048 = vrsqrt.f32 %v2902_v42 }
 0x252   :  { %10673 = vmatprep.subr.bf16.mxu1 %v11847_v48  ;;  %v14911_v25 = vpop.xlane.xlu0 %2668  ;;  %v12031_v33 = vpop.eup %12030  ;;  %12050 = vrsqrt.f32 %v2910_v29  ;;  %v11854_v29 = vld [vmem:[%s17077_s1 + $0x880] ss:$16 sps:$4 sm:$0xff]  }
 0x253   :  { %17208 = vst [vmem:[#allocation122_spill] sm:$0xff] %v14911_v25  ;;  %v12033_v35 = vpop.eup %12032  ;;  %v3505_v54 = vrot.slane %v12031_v33, %v14905_v49  ;;  %v3512_v24 = vrot.slane %v12031_v33, %v14908_v53  ;;  %12052 = vrsqrt.f32 %v2903_v46 }
 0x254   :  { %v14916_v31 = vpop.xlane.xlu1 %2683  ;;  %v12035_v13 = vpop.eup %12034  ;;  %v3477_v17 = vrot.slane %v12033_v35, %v14905_v49  ;;  %v3484_v62 = vrot.slane %v12033_v35, %v14908_v53  ;;  %12054 = vrsqrt.f32 %v2912_v61  ;;  %v11859_v35 = vld [vmem:[%s17077_s1 + $0x88c] ss:$16 sps:$4 sm:$0xff]  }
 0x255   :  { %17209 = vst [vmem:[#allocation123_spill] sm:$0xff] %v14916_v31  ;;  %v12037_v0 = vpop.eup %12036  ;;  %v6161_v36 = vcombine.low %v3505_v54, %v3512_v24  ;;  %v3519_v43 = vrot.slane %v12035_v13, %v14905_v49  ;;  %v3526_v48 = vrot.slane %v12035_v13, %v14908_v53  ;;  %12056 = vrsqrt.f32 %v2905_v60 }
 0x256   :  { %v12039_v57 = vpop.eup %12038  ;;  %v3610_v1 = vrot.slane %v12037_v0, %v14908_v53  ;;  %12058 = vrsqrt.f32 %v2914_v6  ;;  %v2916_v54 = vmax.f32 %v13412_v55, 1e-24  ;;  %v2918_v55 = vmax.f32 %v13440_v21, 1e-24  ;;  %v11865_v6 = vld [vmem:[%s17077_s1 + $0x86c] ss:$16 sps:$4 sm:$0xff]  }
 0x257   :  { %10633 = vmatpush1.bf16.xpose.msra.mxu0 %v11842_v39  ;;  %v14928_v63 = vpop.xlane.xlu0 %2678  ;;  %v6159_v39 = vcombine.low %v3477_v17, %v3484_v62  ;;  %v12041_v3 = vpop.eup %12040  ;;  %v6162_v14 = vcombine.low %v3519_v43, %v3526_v48  ;;  %v3533_v33 = vrot.slane %v12039_v57, %v14905_v49  ;;  %v3540_v42 = vrot.slane %v12039_v57, %v14908_v53 }
 0x258   :  { %10674 = vmatpush1.bf16.xpose.msra.mxu1 %v11845_v8  ;;  %10634 = vmatprep.subr.bf16.mxu0 %v11850_v32  ;;  %17210 = vst [vmem:[#allocation124_spill] sm:$0xff] %v14928_v63  ;;  %v3603_v8 = vrot.slane %v12037_v0, %v14905_v49  ;;  %v12043_v20 = vpop.eup %12042  ;;  %v3631_v24 = vrot.slane %v12041_v3, %v14905_v49  ;;  %v2909_v48 = vmax.f32 %v13364_v41, 1e-24  ;;  %v11860_v41 = vld [vmem:[%s17077_s1 + $0x860] ss:$16 sps:$4 sm:$0xff]  }
 0x259   :  { %10675 = vmatprep.subr.bf16.mxu1 %v11853_v10  ;;  %v11857_v10 = vld [vmem:[%s17077_s1 + $0x888] ss:$16 sps:$4 sm:$0xff]   ;;  %v3638_v13 = vrot.slane %v12041_v3, %v14908_v53  ;;  %v6163_v46 = vcombine.low %v3533_v33, %v3540_v42  ;;  %v3547_v61 = vrot.slane %v12043_v20, %v14905_v49  ;;  %v3554_v17 = vrot.slane %v12043_v20, %v14908_v53 }
 0x25a   :  { %6355 = vperm.xlu1 %11481, %v6160_v7   ;;  %v14937_v19 = vpop.xlane.xlu1 %2693  ;;  %v2907_v7 = vmax.f32 %v13345_v44, 1e-24  ;;  %v2911_v33 = vmax.f32 %v13389_v58, 1e-24  ;;  %v2920_v42 = vmax.f32 %v13456_v23, 1e-24 }
 0x25b   :  { %17211 = vst [vmem:[#allocation125_spill] sm:$0xff] %v14937_v19  ;;  %v6170_v57 = vcombine.low %v3631_v24, %v3638_v13  ;;  %v2913_v23 = vmax.f32 %v13414_v30, 1e-24 }
 0x25c   :  { %12060 = vrsqrt.f32 %v2907_v7 }
 0x25d   :  { %v14947_v15 = vpop.xlane.xlu0 %2688  ;;  %12062 = vrsqrt.f32 %v2916_v54 }
 0x25e   :  { %6358 = vperm.xlu1 %11481, %v6161_v36   ;;  %17212 = vst [vmem:[#allocation126_spill] sm:$0xff] %v14947_v15  ;;  %v11862_v36 = vld [vmem:[%s17077_s1 + $0x864] ss:$16 sps:$4 sm:$0xff]   ;;  %12064 = vrsqrt.f32 %v2918_v55 }
 0x25f   :  { %10635 = vmatpush1.bf16.xpose.msra.mxu0 %v11848_v11  ;;  %v12045_v11 = vpop.eup %12044  ;;  %12066 = vrsqrt.f32 %v2909_v48 }
 0x260   :  { %10676 = vmatpush1.bf16.xpose.msra.mxu1 %v11851_v26  ;;  %v14952_v32 = vpop.xlane.xlu1 %2703  ;;  %10636 = vmatprep.subr.bf16.mxu0 %v11856_v34  ;;  %v6168_v26 = vcombine.low %v3603_v8, %v3610_v1  ;;  %v12047_v62 = vpop.eup %12046  ;;  %v3659_v60 = vrot.slane %v12045_v11, %v14905_v49  ;;  %v3666_v8 = vrot.slane %v12045_v11, %v14908_v53  ;;  %v11863_v1 = vld [vmem:[%s17077_s1 + $0x868] ss:$16 sps:$4 sm:$0xff]   ;;  %12068 = vrsqrt.f32 %v2911_v33  ;;  %v11868_v11 = vld [vmem:[%s17077_s1 + $0x844] ss:$16 sps:$4 sm:$0xff]  }
 0x261   :  { %17213 = vst [vmem:[#allocation127_spill] sm:$0xff] %v14952_v32  ;;  %10677 = vmatprep.subr.bf16.mxu1 %v11859_v35  ;;  %v12049_v43 = vpop.eup %12048  ;;  %v3561_v3 = vrot.slane %v12047_v62, %v14905_v49  ;;  %12070 = vrsqrt.f32 %v2920_v42 }
 0x262   :  { %6352 = vperm.xlu0 %11480, %v6159_v39   ;;  %6361 = vperm.xlu1 %11481, %v6162_v14   ;;  %v14972_v44 = vpop.xlane.xlu0 %2698  ;;  %v12051_v21 = vpop.eup %12050  ;;  %v6164_v39 = vcombine.low %v3547_v61, %v3554_v17  ;;  %v3568_v14 = vrot.slane %v12047_v62, %v14908_v53  ;;  %v3582_v35 = vrot.slane %v12049_v43, %v14908_v53  ;;  %v11871_v62 = vld [vmem:[%s17077_s1 + $0x84c] ss:$16 sps:$4 sm:$0xff]   ;;  %12072 = vrsqrt.f32 %v2913_v23 }
 0x263   :  { %17214 = vst [vmem:[#allocation128_spill] sm:$0xff] %v14972_v44  ;;  %v12053_v34 = vpop.eup %12052  ;;  %v3687_v20 = vrot.slane %v12051_v21, %v14905_v49  ;;  %v6172_v24 = vcombine.low %v3659_v60, %v3666_v8  ;;  %v11869_v60 = vld [vmem:[%s17077_s1 + $0x848] ss:$16 sps:$4 sm:$0xff]   ;;  %v2924_v8 = vmax.f32 %v13509_v47, 1e-24 }
 0x264   :  { %v12055_v54 = vpop.eup %12054  ;;  %v6165_v58 = vcombine.low %v3561_v3, %v3568_v14  ;;  %v3596_v48 = vrot.slane %v12053_v34, %v14908_v53  ;;  %v11874_v47 = vld [vmem:[%s17077_s1 + $0x824] ss:$16 sps:$4 sm:$0xff]  }
 0x265   :  { %v14975_v0 = vpop.xlane.xlu1 %2713  ;;  %v3722_v30 = vrot.slane %v12055_v54, %v14908_v53 }
 0x266   :  { %6379 = vperm.xlu0 %11480, %v6168_v26   ;;  %6364 = vperm.xlu1 %11481, %v6163_v46   ;;  %17215 = vst [vmem:[#allocation129_spill] sm:$0xff] %v14975_v0  ;;  %v12057_v26 = vpop.eup %12056  ;;  %v2922_v46 = vmax.f32 %v13481_v59, 1e-24  ;;  %v11866_v59 = vld [vmem:[%s17077_s1 + $0x840] ss:$16 sps:$4 sm:$0xff]  }
 0x267   :  { %10637 = vmatpush1.bf16.xpose.msra.mxu0 %v11854_v29  ;;  %v3694_v29 = vrot.slane %v12051_v21, %v14908_v53  ;;  %v12059_v55 = vpop.eup %12058  ;;  %v3617_v42 = vrot.slane %v12057_v26, %v14905_v49 }
 0x268   :  { %10678 = vmatpush1.bf16.xpose.msra.mxu1 %v11857_v10  ;;  %10638 = vmatprep.subr.bf16.mxu0 %v11862_v36  ;;  %v3575_v10 = vrot.slane %v12049_v43, %v14905_v49  ;;  %v15000_v7 = vpop.xlane.xlu0 %2708  ;;  %v3715_v36 = vrot.slane %v12055_v54, %v14905_v49  ;;  %v3589_v43 = vrot.slane %v12053_v34, %v14905_v49  ;;  %12074 = vrsqrt.f32 %v2922_v46  ;;  %v11872_v46 = vld [vmem:[%s17077_s1 + $0x820] ss:$16 sps:$4 sm:$0xff]  }
 0x269   :  { %10679 = vmatprep.subr.bf16.mxu1 %v11865_v6  ;;  %17216 = vst [vmem:[#allocation130_spill] sm:$0xff] %v15000_v7  ;;  %v6174_v61 = vcombine.low %v3687_v20, %v3694_v29  ;;  %v2915_v6 = vmax.f32 %v13442_v38, 1e-24  ;;  %v3743_v3 = vrot.slane %v12059_v55, %v14905_v49  ;;  %v3750_v14 = vrot.slane %v12059_v55, %v14908_v53  ;;  %v17222_v55 = vld [vmem:[#allocation5_spill] sm:$0xff] }
 0x26a   :  { %6385 = vperm.xlu0 %11480, %v6170_v57   ;;  %6367 = vperm.xlu1 %11481, %v6164_v39   ;;  %v15002_v13 = vpop.xlane.xlu1 %2723  ;;  %v6166_v17 = vcombine.low %v3575_v10, %v3582_v35  ;;  %v12061_v39 = vpop.eup %12060  ;;  %v6167_v33 = vcombine.low %v3589_v43, %v3596_v48  ;;  %v3624_v34 = vrot.slane %v12057_v26, %v14908_v53  ;;  %v2917_v38 = vmax.f32 %v13458_v37, 1e-24 }
 0x26b   :  { %17217 = vst [vmem:[#allocation131_spill] sm:$0xff] %v15002_v13  ;;  %12076 = vrsqrt.f32 %v2915_v6  ;;  %v2926_v29 = vmax.f32 %v13528_v56, 1e-24  ;;  %v6178_v10 = vcombine.low %v3743_v3, %v3750_v14  ;;  %v3645_v23 = vrot.slane %v12061_v39, %v14905_v49 }
 0x26c   :  { %12078 = vrsqrt.f32 %v2924_v8  ;;  %v6169_v37 = vcombine.low %v3617_v42, %v3624_v34 }
 0x26d   :  { %v15016_v57 = vpop.xlane.xlu0 %2718  ;;  %12080 = vrsqrt.f32 %v2917_v38 }
 0x26e   :  { %6391 = vperm.xlu0 %11480, %v6172_v24   ;;  %6370 = vperm.xlu1 %11481, %v6165_v58   ;;  %17218 = vst [vmem:[#allocation132_spill] sm:$0xff] %v15016_v57  ;;  %v11877_v24 = vld [vmem:[%s17077_s1 + $0x82c] ss:$16 sps:$4 sm:$0xff]   ;;  %12082 = vrsqrt.f32 %v2926_v29 }
 0x26f   :  { %10639 = vmatpush1.bf16.xpose.msra.mxu0 %v11860_v41  ;;  %v12063_v41 = vpop.eup %12062 }
 0x270   :  { %10680 = vmatpush1.bf16.xpose.msra.mxu1 %v11863_v1  ;;  %10640 = vmatprep.subr.bf16.mxu0 %v11868_v11  ;;  %v15025_v21 = vpop.xlane.xlu1 %2733  ;;  %v6176_v1 = vcombine.low %v3715_v36, %v3722_v30  ;;  %v12065_v20 = vpop.eup %12064  ;;  %v3771_v35 = vrot.slane %v12063_v41, %v14905_v49  ;;  %v3778_v58 = vrot.slane %v12063_v41, %v14908_v53  ;;  %v2928_v36 = vmax.f32 %v17222_v55, 1e-24  ;;  %v11880_v41 = vld [vmem:[%s17077_s1 + $0x804] ss:$16 sps:$4 sm:$0xff]  }
 0x271   :  { %10681 = vmatprep.subr.bf16.mxu1 %v11871_v62  ;;  %17219 = vst [vmem:[#allocation133_spill] sm:$0xff] %v15025_v21  ;;  %v3652_v11 = vrot.slane %v12061_v39, %v14908_v53  ;;  %v12067_v56 = vpop.eup %12066  ;;  %v3799_v30 = vrot.slane %v12065_v20, %v14905_v49  ;;  %v3806_v43 = vrot.slane %v12065_v20, %v14908_v53 }
 0x272   :  { %6397 = vperm.xlu0 %11480, %v6174_v61   ;;  %6373 = vperm.xlu1 %11481, %v6166_v17   ;;  %v11875_v61 = vld [vmem:[%s17077_s1 + $0x828] ss:$16 sps:$4 sm:$0xff]   ;;  %v2919_v17 = vmax.f32 %v13483_v12, 1e-24  ;;  %v12069_v62 = vpop.eup %12068  ;;  %v3673_v6 = vrot.slane %v12067_v56, %v14905_v49  ;;  %v3680_v39 = vrot.slane %v12067_v56, %v14908_v53  ;;  %v17224_v12 = vld [vmem:[#allocation3_spill] sm:$0xff] }
 0x273   :  { %v15038_v54 = vpop.xlane.xlu0 %2728  ;;  %v12071_v48 = vpop.eup %12070  ;;  %v2921_v3 = vmax.f32 %v17224_v12, 1e-24  ;;  %v6182_v34 = vcombine.low %v3799_v30, %v3806_v43 }
 0x274   :  { %17220 = vst [vmem:[#allocation134_spill] sm:$0xff] %v15038_v54  ;;  %12084 = vrsqrt.f32 %v2919_v17  ;;  %v3827_v38 = vrot.slane %v12071_v48, %v14905_v49  ;;  %v6173_v29 = vcombine.low %v3673_v6, %v3680_v39  ;;  %v17231_v6 = vld [vmem:[#allocation6_spill] sm:$0xff] }
 0x275   :  { %v15046_v26 = vpop.xlane.xlu1 %2743  ;;  %12086 = vrsqrt.f32 %v2928_v36  ;;  %v2925_v39 = vmax.f32 %v17231_v6, 1e-24 }
 0x276   :  { %6403 = vperm.xlu0 %11480, %v6176_v1   ;;  %6376 = vperm.xlu1 %11481, %v6167_v33   ;;  %17221 = vst [vmem:[#allocation135_spill] sm:$0xff] %v15046_v26  ;;  %v12073_v1 = vpop.eup %12072  ;;  %v17226_v33 = vld [vmem:[#allocation7_spill] sm:$0xff]  ;;  %12088 = vrsqrt.f32 %v2921_v3 }
 0x277   :  { %10641 = vmatpush1.bf16.xpose.msra.mxu0 %v11866_v59  ;;  %v6180_v59 = vcombine.low %v3771_v35, %v3778_v58  ;;  %v2930_v42 = vmax.f32 %v17226_v33, 1e-24  ;;  %v12075_v20 = vpop.eup %12074  ;;  %v3701_v35 = vrot.slane %v12069_v62, %v14905_v49  ;;  %v11881_v58 = vld [vmem:[%s17077_s1 + $0x808] ss:$16 sps:$4 sm:$0xff]   ;;  %v11886_v3 = vld [vmem:[%s17077_s1 + $0x9e4] ss:$16 sps:$4 sm:$0xff]  }
 0x278   :  { %10682 = vmatpush1.bf16.xpose.msra.mxu1 %v11869_v60  ;;  %10642 = vmatprep.subr.bf16.mxu0 %v11874_v47  ;;  %v6171_v60 = vcombine.low %v3645_v23, %v3652_v11  ;;  %v15060_v8 = vpop.xlane.xlu0 %2738  ;;  %v11883_v47 = vld [vmem:[%s17077_s1 + $0x80c] ss:$16 sps:$4 sm:$0xff]   ;;  %v12077_v56 = vpop.eup %12076  ;;  %v3855_v17 = vrot.slane %v12075_v20, %v14905_v49  ;;  %v17232_v33 = vld [vmem:[#allocation11_spill] sm:$0xff] }
 0x279   :  { %10683 = vmatprep.subr.bf16.mxu1 %v11877_v24  ;;  %17223 = vst [vmem:[#allocation5_spill] sm:$0xff] %v15060_v8  ;;  %v3708_v24 = vrot.slane %v12069_v62, %v14908_v53  ;;  %v17227_v23 = vld [vmem:[#allocation4_spill] sm:$0xff]  ;;  %12090 = vrsqrt.f32 %v2930_v42  ;;  %v3862_v62 = vrot.slane %v12075_v20, %v14908_v53  ;;  %v12079_v36 = vpop.eup %12078  ;;  %v2934_v42 = vmax.f32 %v17232_v33, 1e-24 }
 0x27a   :  { %6409 = vperm.xlu0 %11480, %v6178_v10   ;;  %6382 = vperm.xlu1 %11481, %v6169_v37   ;;  %v3834_v10 = vrot.slane %v12071_v48, %v14908_v53  ;;  %v11878_v37 = vld [vmem:[%s17077_s1 + $0x800] ss:$16 sps:$4 sm:$0xff]   ;;  %v2923_v11 = vmax.f32 %v17227_v23, 1e-24  ;;  %v3729_v48 = vrot.slane %v12073_v1, %v14905_v49  ;;  %v11887_v23 = vld [vmem:[%s17077_s1 + $0x9e8] ss:$16 sps:$4 sm:$0xff]  }
 0x27b   :  { %v15063_v14 = vpop.xlane.xlu1 %2753  ;;  %v6175_v43 = vcombine.low %v3701_v35, %v3708_v24  ;;  %v3757_v35 = vrot.slane %v12077_v56, %v14905_v49  ;;  %v3764_v24 = vrot.slane %v12077_v56, %v14908_v53 }
 0x27c   :  { %17225 = vst [vmem:[#allocation3_spill] sm:$0xff] %v15063_v14  ;;  %v6184_v30 = vcombine.low %v3827_v38, %v3834_v10  ;;  %12092 = vrsqrt.f32 %v2923_v11  ;;  %v3890_v10 = vrot.slane %v12079_v36, %v14908_v53  ;;  %v17234_v11 = vld [vmem:[#allocation8_spill] sm:$0xff] }
 0x27e   :  { %6415 = vperm.xlu0 %11480, %v6180_v59   ;;  %6388 = vperm.xlu1 %11481, %v6171_v60   ;;  %v15086_v55 = vpop.xlane.xlu0 %2748  ;;  %v3736_v59 = vrot.slane %v12073_v1, %v14908_v53  ;;  %v6186_v1 = vcombine.low %v3855_v17, %v3862_v62  ;;  %v17236_v62 = vld [vmem:[#allocation13_spill] sm:$0xff] }
 0x27f   :  { %10643 = vmatpush1.bf16.xpose.msra.mxu0 %v11872_v46  ;;  %v17228_v46 = vld [vmem:[#allocation9_spill] sm:$0xff]  ;;  %17229 = vst [vmem:[#allocation7_spill] sm:$0xff] %v15086_v55 }
 0x280   :  { %10684 = vmatpush1.bf16.xpose.msra.mxu1 %v11875_v61  ;;  %10644 = vmatprep.subr.bf16.mxu0 %v11880_v41  ;;  %v2932_v61 = vmax.f32 %v17228_v46, 1e-24  ;;  %v12081_v41 = vpop.eup %12080  ;;  %v2927_v46 = vmax.f32 %v17234_v11, 1e-24 }
 0x281   :  { %10685 = vmatprep.subr.bf16.mxu1 %v11883_v47  ;;  %v15090_v60 = vpop.xlane.xlu1 %2763  ;;  %v11889_v47 = vld [vmem:[%s17077_s1 + $0x9ec] ss:$16 sps:$4 sm:$0xff]   ;;  %v12083_v20 = vpop.eup %12082  ;;  %v3792_v33 = vrot.slane %v12081_v41, %v14908_v53 }
 0x282   :  { %6421 = vperm.xlu0 %11480, %v6182_v34   ;;  %6394 = vperm.xlu1 %11481, %v6173_v29   ;;  %17230 = vst [vmem:[#allocation4_spill] sm:$0xff] %v15090_v60  ;;  %12094 = vrsqrt.f32 %v2932_v61  ;;  %v3883_v34 = vrot.slane %v12079_v36, %v14905_v49  ;;  %v6177_v29 = vcombine.low %v3729_v48, %v3736_v59  ;;  %v12085_v17 = vpop.eup %12084  ;;  %v2936_v36 = vmax.f32 %v17236_v62, 1e-24 }
 0x283   :  { %12096 = vrsqrt.f32 %v2925_v39  ;;  %v12087_v59 = vpop.eup %12086  ;;  %v6179_v39 = vcombine.low %v3757_v35, %v3764_v24 }
 0x284   :  { %12098 = vrsqrt.f32 %v2934_v42  ;;  %v6188_v6 = vcombine.low %v3883_v34, %v3890_v10  ;;  %v17237_v42 = vld [vmem:[#allocation10_spill] sm:$0xff]  ;;  %v12089_v34 = vpop.eup %12088  ;;  %v17238_v10 = vld [vmem:[#allocation15_spill] sm:$0xff] }
 0x285   :  { %12100 = vrsqrt.f32 %v2927_v46  ;;  %v2938_v35 = vmax.f32 %v17238_v10, 1e-24  ;;  %v11895_v46 = vld [vmem:[%s17077_s1 + $0x9cc] ss:$16 sps:$4 sm:$0xff]  }
 0x286   :  { %6427 = vperm.xlu0 %11480, %v6184_v30   ;;  %6400 = vperm.xlu1 %11481, %v6175_v43   ;;  %v15117_v61 = vpop.xlane.xlu1 %2773  ;;  %v3911_v30 = vrot.slane %v12083_v20, %v14905_v49  ;;  %v3918_v43 = vrot.slane %v12083_v20, %v14908_v53  ;;  %v11892_v20 = vld [vmem:[%s17077_s1 + $0x9c4] ss:$16 sps:$4 sm:$0xff]   ;;  %12102 = vrsqrt.f32 %v2936_v36  ;;  %v12091_v62 = vpop.eup %12090  ;;  %v3820_v36 = vrot.slane %v12085_v17, %v14908_v53 }
 0x287   :  { %10645 = vmatpush1.bf16.xpose.msra.mxu0 %v11878_v37  ;;  %v15108_v37 = vpop.xlane.xlu0 %2758  ;;  %17235 = vst [vmem:[#allocation6_spill] sm:$0xff] %v15117_v61 }
 0x288   :  { %10686 = vmatpush1.bf16.xpose.msra.mxu1 %v11881_v58  ;;  %10646 = vmatprep.subr.bf16.mxu0 %v11886_v3  ;;  %17233 = vst [vmem:[#allocation9_spill] sm:$0xff] %v15108_v37  ;;  %v11884_v58 = vld [vmem:[%s17077_s1 + $0x9e0] ss:$16 sps:$4 sm:$0xff]   ;;  %v3785_v3 = vrot.slane %v12081_v41, %v14905_v49  ;;  %v6190_v24 = vcombine.low %v3911_v30, %v3918_v43  ;;  %v11893_v43 = vld [vmem:[%s17077_s1 + $0x9c8] ss:$16 sps:$4 sm:$0xff]  }
 0x289   :  { %10687 = vmatprep.subr.bf16.mxu1 %v11889_v47  ;;  %v3939_v41 = vrot.slane %v12087_v59, %v14905_v49  ;;  %v11890_v30 = vld [vmem:[%s17077_s1 + $0x9c0] ss:$16 sps:$4 sm:$0xff]   ;;  %v17383_v37 = vld [vmem:[#allocation104_spill] sm:$0xff] }
 0x28a   :  { %6433 = vperm.xlu0 %11480, %v6186_v1   ;;  %6406 = vperm.xlu1 %11481, %v6177_v29   ;;  %v2929_v29 = vmax.f32 %v17237_v42, 1e-24 }
 0x28c   :  { %v15093_v12 = vpop.f32.mrf.mxu0  ;;  %v15100_v38 = vpop.f32.mrf.mxu1  ;;  %12104 = vrsqrt.f32 %v2929_v29 }
 0x28d   :  { %12106 = vrsqrt.f32 %v2938_v35 }
 0x28e   :  { %v15119_v56 = vpop.f32.mrf.mxu0  ;;  %v15124_v48 = vpop.f32.mrf.mxu1  ;;  %6439 = vperm.xlu0 %11480, %v6188_v6   ;;  %6412 = vperm.xlu1 %11481, %v6179_v39   ;;  %v6181_v6 = vcombine.low %v3785_v3, %v3792_v33  ;;  %v3946_v39 = vrot.slane %v12087_v59, %v14908_v53  ;;  %v17241_v3 = vld [vmem:[#allocation12_spill] sm:$0xff] }
 0x28f   :  { %10647 = vmatpush2.bf16.xpose.msra.mxu0 %v11884_v58  ;;  %v15134_v58 = vpop.xlane.xlu0 %2768  ;;  %v2931_v33 = vmax.f32 %v17241_v3, 1e-24  ;;  %v12093_v59 = vpop.eup %12092 }
 0x290   :  { %v9704_v1 = vpop.f32.mrf.mxu0  ;;  %10688 = vmatpush2.bf16.xpose.msra.mxu1 %v11887_v23  ;;  %v9745_v47 = vpop.f32.mrf.mxu1  ;;  %17239 = vst [vmem:[#allocation11_spill] sm:$0xff] %v15134_v58  ;;  %10648 = vmatprep.subr.bf16.mxu0 %v11892_v20  ;;  %v3974_v20 = vrot.slane %v12091_v62, %v14908_v53 }
 0x291   :  { %v3813_v1 = vrot.slane %v12085_v17, %v14905_v49  ;;  %v15142_v47 = vpop.xlane.xlu1 %2783  ;;  %10689 = vmatprep.subr.bf16.mxu1 %v11895_v46  ;;  %v17242_v17 = vld [vmem:[#allocation17_spill] sm:$0xff]  ;;  %v12095_v10 = vpop.eup %12094  ;;  %v3848_v46 = vrot.slane %v12089_v34, %v14908_v53  ;;  %12108 = vrsqrt.f32 %v2931_v33  ;;  %v3869_v33 = vrot.slane %v12093_v59, %v14905_v49 }
 0x292   :  { %v9705_v11 = vpop.f32.mrf.mxu0  ;;  %v9746_v23 = vpop.f32.mrf.mxu1  ;;  %17240 = vst [vmem:[#allocation8_spill] sm:$0xff] %v15142_v47  ;;  %6445 = vperm.xlu0 %11480, %v6190_v24   ;;  %6418 = vperm.xlu1 %11481, %v6181_v6   ;;  %v2940_v42 = vmax.f32 %v17242_v17, 1e-24  ;;  %v3841_v47 = vrot.slane %v12089_v34, %v14905_v49  ;;  %v17244_v24 = vld [vmem:[#allocation14_spill] sm:$0xff]  ;;  %v3876_v17 = vrot.slane %v12093_v59, %v14908_v53 }
 0x293   :  { %v3967_v11 = vrot.slane %v12091_v62, %v14905_v49  ;;  %v6192_v23 = vcombine.low %v3939_v41, %v3946_v39  ;;  %v6183_v22 = vcombine.low %v3813_v1, %v3820_v36  ;;  %v15156_v29 = vpop.xlane.xlu0 %2778  ;;  %v2933_v35 = vmax.f32 %v17244_v24, 1e-24  ;;  %v11898_v41 = vld [vmem:[%s17077_s1 + $0x9a4] ss:$16 sps:$4 sm:$0xff]   ;;  %v12097_v62 = vpop.eup %12096 }
 0x294   :  { %17243 = vst [vmem:[#allocation13_spill] sm:$0xff] %v15156_v29  ;;  %12110 = vrsqrt.f32 %v2940_v42  ;;  %v17246_v39 = vld [vmem:[#allocation19_spill] sm:$0xff]  ;;  %v3995_v36 = vrot.slane %v12095_v10, %v14905_v49  ;;  %v6185_v3 = vcombine.low %v3841_v47, %v3848_v46  ;;  %v6187_v29 = vcombine.low %v3869_v33, %v3876_v17  ;;  %v11907_v17 = vld [vmem:[%s17077_s1 + $0x98c] ss:$16 sps:$4 sm:$0xff]  }
 0x295   :  { %v15159_v6 = vpop.xlane.xlu1 %2793  ;;  %v2942_v1 = vmax.f32 %v17246_v39, 1e-24  ;;  %v6194_v34 = vcombine.low %v3967_v11, %v3974_v20  ;;  %v11896_v42 = vld [vmem:[%s17077_s1 + $0x9a0] ss:$16 sps:$4 sm:$0xff]   ;;  %v11899_v11 = vld [vmem:[%s17077_s1 + $0x9a8] ss:$16 sps:$4 sm:$0xff]   ;;  %12112 = vrsqrt.f32 %v2933_v35  ;;  %v3904_v35 = vrot.slane %v12097_v62, %v14908_v53 }
 0x296   :  { %6451 = vperm.xlu0 %11480, %v6192_v23   ;;  %6424 = vperm.xlu1 %11481, %v6183_v22   ;;  %17245 = vst [vmem:[#allocation10_spill] sm:$0xff] %v15159_v6  ;;  %v4002_v22 = vrot.slane %v12095_v10, %v14908_v53  ;;  %v17247_v20 = vld [vmem:[#allocation16_spill] sm:$0xff]  ;;  %v17248_v10 = vld [vmem:[#allocation21_spill] sm:$0xff] }
 0x297   :  { %10649 = vmatpush2.bf16.xpose.msra.mxu0 %v11890_v30  ;;  %v11901_v30 = vld [vmem:[%s17077_s1 + $0x9ac] ss:$16 sps:$4 sm:$0xff]   ;;  %v2935_v23 = vmax.f32 %v17247_v20, 1e-24  ;;  %12114 = vrsqrt.f32 %v2942_v1  ;;  %v2944_v46 = vmax.f32 %v17248_v10, 1e-24 }
 0x298   :  { %10690 = vmatpush2.bf16.xpose.msra.mxu1 %v11893_v43  ;;  %v12099_v43 = vpop.eup %12098  ;;  %10650 = vmatprep.subr.bf16.mxu0 %v11898_v41  ;;  %v15182_v41 = vpop.xlane.xlu0 %2788  ;;  %v6196_v6 = vcombine.low %v3995_v36, %v4002_v22  ;;  %v17251_v1 = vld [vmem:[#allocation18_spill] sm:$0xff]  ;;  %v17252_v36 = vld [vmem:[#allocation23_spill] sm:$0xff] }
 0x299   :  { %10691 = vmatprep.subr.bf16.mxu1 %v11901_v30  ;;  %v12101_v47 = vpop.eup %12100  ;;  %v4023_v59 = vrot.slane %v12099_v43, %v14905_v49  ;;  %v4030_v24 = vrot.slane %v12099_v43, %v14908_v53  ;;  %17249 = vst [vmem:[#allocation15_spill] sm:$0xff] %v15182_v41  ;;  %v3897_v30 = vrot.slane %v12097_v62, %v14905_v49  ;;  %12116 = vrsqrt.f32 %v2935_v23  ;;  %v11904_v43 = vld [vmem:[%s17077_s1 + $0x984] ss:$16 sps:$4 sm:$0xff]  }
 0x29a   :  { %6457 = vperm.xlu0 %11480, %v6194_v34   ;;  %6430 = vperm.xlu1 %11481, %v6185_v3   ;;  %v12103_v39 = vpop.eup %12102  ;;  %v15186_v20 = vpop.xlane.xlu1 %2803  ;;  %v2937_v34 = vmax.f32 %v17251_v1, 1e-24  ;;  %12118 = vrsqrt.f32 %v2944_v46  ;;  %v2946_v22 = vmax.f32 %v17252_v36, 1e-24  ;;  %v3932_v23 = vrot.slane %v12101_v47, %v14908_v53  ;;  %v11902_v46 = vld [vmem:[%s17077_s1 + $0x980] ss:$16 sps:$4 sm:$0xff]  }
 0x29b   :  { %17250 = vst [vmem:[#allocation12_spill] sm:$0xff] %v15186_v20  ;;  %v12105_v3 = vpop.eup %12104  ;;  %v6198_v33 = vcombine.low %v4023_v59, %v4030_v24  ;;  %v4051_v62 = vrot.slane %v12103_v39, %v14905_v49  ;;  %v11905_v59 = vld [vmem:[%s17077_s1 + $0x988] ss:$16 sps:$4 sm:$0xff]  }
 0x29c   :  { %v15200_v10 = vpop.xlane.xlu0 %2798  ;;  %12120 = vrsqrt.f32 %v2937_v34  ;;  %v17254_v24 = vld [vmem:[#allocation20_spill] sm:$0xff]  ;;  %v3960_v34 = vrot.slane %v12105_v3, %v14908_v53 }
 0x29d   :  { %17253 = vst [vmem:[#allocation17_spill] sm:$0xff] %v15200_v10  ;;  %12122 = vrsqrt.f32 %v2946_v22  ;;  %v11910_v22 = vld [vmem:[%s17077_s1 + $0x964] ss:$16 sps:$4 sm:$0xff]  }
 0x29e   :  { %6463 = vperm.xlu0 %11480, %v6196_v6   ;;  %6436 = vperm.xlu1 %11481, %v6187_v29   ;;  %v4058_v6 = vrot.slane %v12103_v39, %v14908_v53  ;;  %v3925_v29 = vrot.slane %v12101_v47, %v14905_v49 }
 0x29f   :  { %10651 = vmatpush2.bf16.xpose.msra.mxu0 %v11896_v42  ;;  %v12107_v42 = vpop.eup %12106 }
 0x2a0   :  { %10692 = vmatpush2.bf16.xpose.msra.mxu1 %v11899_v11  ;;  %v6189_v11 = vcombine.low %v3897_v30, %v3904_v35  ;;  %10652 = vmatprep.subr.bf16.mxu0 %v11904_v43  ;;  %v2939_v30 = vmax.f32 %v17254_v24, 1e-24  ;;  %v12109_v47 = vpop.eup %12108  ;;  %v17256_v35 = vld [vmem:[#allocation25_spill] sm:$0xff]  ;;  %v4079_v43 = vrot.slane %v12107_v42, %v14905_v49  ;;  %v4086_v36 = vrot.slane %v12107_v42, %v14908_v53  ;;  %v17258_v42 = vld [vmem:[#allocation27_spill] sm:$0xff] }
 0x2a1   :  { %10693 = vmatprep.subr.bf16.mxu1 %v11907_v17  ;;  %v15209_v39 = vpop.xlane.xlu1 %2813  ;;  %v2948_v1 = vmax.f32 %v17256_v35, 1e-24  ;;  %v12111_v20 = vpop.eup %12110  ;;  %v6200_v10 = vcombine.low %v4051_v62, %v4058_v6  ;;  %v6191_v41 = vcombine.low %v3925_v29, %v3932_v23  ;;  %v3953_v17 = vrot.slane %v12105_v3, %v14905_v49  ;;  %v11913_v23 = vld [vmem:[%s17077_s1 + $0x96c] ss:$16 sps:$4 sm:$0xff]  }
 0x2a2   :  { %6469 = vperm.xlu0 %11480, %v6198_v33   ;;  %6442 = vperm.xlu1 %11481, %v6189_v11   ;;  %17255 = vst [vmem:[#allocation14_spill] sm:$0xff] %v15209_v39  ;;  %12124 = vrsqrt.f32 %v2939_v30  ;;  %v17257_v33 = vld [vmem:[#allocation22_spill] sm:$0xff]  ;;  %v12113_v24 = vpop.eup %12112  ;;  %v2950_v62 = vmax.f32 %v17258_v42, 1e-24  ;;  %v4107_v6 = vrot.slane %v12111_v20, %v14905_v49  ;;  %v4114_v29 = vrot.slane %v12111_v20, %v14908_v53  ;;  %v15223_v3 = vpop.xlane.xlu0 %2808  ;;  %v11908_v20 = vld [vmem:[%s17077_s1 + $0x960] ss:$16 sps:$4 sm:$0xff]  }
 0x2a3   :  { %v2941_v11 = vmax.f32 %v17257_v33, 1e-24  ;;  %12126 = vrsqrt.f32 %v2948_v1  ;;  %17259 = vst [vmem:[#allocation19_spill] sm:$0xff] %v15223_v3  ;;  %v3988_v30 = vrot.slane %v12109_v47, %v14908_v53  ;;  %v11911_v1 = vld [vmem:[%s17077_s1 + $0x968] ss:$16 sps:$4 sm:$0xff]  }
 0x2a4   :  { %v17261_v33 = vld [vmem:[#allocation24_spill] sm:$0xff] }
 0x2a5   :  { %v15230_v35 = vpop.xlane.xlu1 %2823  ;;  %12128 = vrsqrt.f32 %v2941_v11  ;;  %v17263_v11 = vld [vmem:[#allocation26_spill] sm:$0xff] }
 0x2a6   :  { %6475 = vperm.xlu0 %11480, %v6200_v10   ;;  %6448 = vperm.xlu1 %11481, %v6191_v41   ;;  %v12115_v10 = vpop.eup %12114  ;;  %v6202_v41 = vcombine.low %v4079_v43, %v4086_v36  ;;  %17260 = vst [vmem:[#allocation16_spill] sm:$0xff] %v15230_v35  ;;  %v2943_v43 = vmax.f32 %v17261_v33, 1e-24  ;;  %12130 = vrsqrt.f32 %v2950_v62  ;;  %v4009_v35 = vrot.slane %v12113_v24, %v14905_v49  ;;  %v17265_v62 = vld [vmem:[#allocation31_spill] sm:$0xff] }
 0x2a7   :  { %10653 = vmatpush2.bf16.xpose.msra.mxu0 %v11902_v46  ;;  %v6193_v46 = vcombine.low %v3953_v17, %v3960_v34  ;;  %v12117_v36 = vpop.eup %12116  ;;  %v6204_v34 = vcombine.low %v4107_v6, %v4114_v29  ;;  %v4142_v3 = vrot.slane %v12115_v10, %v14908_v53  ;;  %v2945_v58 = vmax.f32 %v17263_v11, 1e-24  ;;  %v11916_v29 = vld [vmem:[%s17077_s1 + $0x944] ss:$16 sps:$4 sm:$0xff]  }
 0x2a8   :  { %10694 = vmatpush2.bf16.xpose.msra.mxu1 %v11905_v59  ;;  %v3981_v59 = vrot.slane %v12109_v47, %v14905_v49  ;;  %10654 = vmatprep.subr.bf16.mxu0 %v11910_v22  ;;  %v17262_v47 = vld [vmem:[#allocation29_spill] sm:$0xff]  ;;  %v4135_v22 = vrot.slane %v12115_v10, %v14905_v49  ;;  %v12119_v42 = vpop.eup %12118  ;;  %12132 = vrsqrt.f32 %v2943_v43  ;;  %v4044_v43 = vrot.slane %v12117_v36, %v14908_v53 }
 0x2a9   :  { %10695 = vmatprep.subr.bf16.mxu1 %v11913_v23  ;;  %v2952_v17 = vmax.f32 %v17262_v47, 1e-24  ;;  %v4016_v23 = vrot.slane %v12113_v24, %v14908_v53  ;;  %v12121_v10 = vpop.eup %12120  ;;  %v4163_v24 = vrot.slane %v12119_v42, %v14905_v49  ;;  %v15262_v47 = vadd.f32 %v15100_v38, %v15093_v12 }
 0x2aa   :  { %6481 = vperm.xlu0 %11480, %v6202_v41   ;;  %6454 = vperm.xlu1 %11481, %v6193_v46   ;;  %v6195_v39 = vcombine.low %v3981_v59, %v3988_v30  ;;  %v15245_v33 = vpop.xlane.xlu0 %2818  ;;  %v2954_v41 = vmax.f32 %v17265_v62, 1e-24  ;;  %v4170_v46 = vrot.slane %v12119_v42, %v14908_v53  ;;  %v11919_v59 = vld [vmem:[%s17077_s1 + $0x94c] ss:$16 sps:$4 sm:$0xff]   ;;  %v12123_v30 = vpop.eup %12122 }
 0x2ab   :  { %17264 = vst [vmem:[#allocation21_spill] sm:$0xff] %v15245_v33  ;;  %12134 = vrsqrt.f32 %v2952_v17  ;;  %17267 = vst [vmem:[#allocation23_spill] sm:$0xff] %v15262_v47  ;;  %v11914_v17 = vld [vmem:[%s17077_s1 + $0x940] ss:$16 sps:$4 sm:$0xff]   ;;  %v4191_v12 = vrot.slane %v12123_v30, %v14905_v49  ;;  %v4198_v38 = vrot.slane %v12123_v30, %v14908_v53  ;;  %v11922_v30 = vld [vmem:[%s17077_s1 + $0x924] ss:$16 sps:$4 sm:$0xff]  }
 0x2ac   :  { %12136 = vrsqrt.f32 %v2945_v58  ;;  %v17269_v58 = vld [vmem:[#allocation33_spill] sm:$0xff]  ;;  %v6208_v42 = vcombine.low %v4163_v24, %v4170_v46  ;;  %v17273_v24 = vld [vmem:[#allocation30_spill] sm:$0xff]  ;;  %v17280_v47 = vld [vmem:[#allocation39_spill] sm:$0xff] }
 0x2ad   :  { %v15248_v6 = vpop.xlane.xlu1 %2833  ;;  %12138 = vrsqrt.f32 %v2954_v41  ;;  %v15282_v41 = vadd.f32 %v15124_v48, %v15119_v56  ;;  %v2949_v46 = vmax.f32 %v17273_v24, 1e-24  ;;  %v11925_v56 = vld [vmem:[%s17077_s1 + $0x92c] ss:$16 sps:$4 sm:$0xff]  }
 0x2ae   :  { %6487 = vperm.xlu0 %11480, %v6204_v34   ;;  %6460 = vperm.xlu1 %11481, %v6195_v39   ;;  %17266 = vst [vmem:[#allocation18_spill] sm:$0xff] %v15248_v6  ;;  %v4037_v39 = vrot.slane %v12117_v36, %v14905_v49  ;;  %v11917_v34 = vld [vmem:[%s17077_s1 + $0x948] ss:$16 sps:$4 sm:$0xff]  }
 0x2af   :  { %10655 = vmatpush2.bf16.xpose.msra.mxu0 %v11908_v20  ;;  %v6206_v20 = vcombine.low %v4135_v22, %v4142_v3  ;;  %v17268_v3 = vld [vmem:[#allocation28_spill] sm:$0xff]  ;;  %v12125_v36 = vpop.eup %12124  ;;  %v2956_v22 = vmax.f32 %v17269_v58, 1e-24  ;;  %17272 = vst [vmem:[#allocation22_spill] sm:$0xff] %v15282_v41 }
 0x2b0   :  { %10696 = vmatpush2.bf16.xpose.msra.mxu1 %v11911_v1  ;;  %v6197_v1 = vcombine.low %v4009_v35, %v4016_v23  ;;  %10656 = vmatprep.subr.bf16.mxu0 %v11916_v29  ;;  %v2947_v35 = vmax.f32 %v17268_v3, 1e-24  ;;  %v15274_v23 = vpop.xlane.xlu0 %2828  ;;  %v12127_v11 = vpop.eup %12126  ;;  %v6199_v62 = vcombine.low %v4037_v39, %v4044_v43  ;;  %v4065_v29 = vrot.slane %v12121_v10, %v14905_v49 }
 0x2b1   :  { %10697 = vmatprep.subr.bf16.mxu1 %v11919_v59  ;;  %17270 = vst [vmem:[#allocation20_spill] sm:$0xff] %v15274_v23  ;;  %v4072_v59 = vrot.slane %v12121_v10, %v14908_v53  ;;  %v17274_v10 = vld [vmem:[#allocation35_spill] sm:$0xff]  ;;  %v6210_v39 = vcombine.low %v4191_v12, %v4198_v38  ;;  %v4219_v43 = vrot.slane %v12127_v11, %v14905_v49  ;;  %v17276_v12 = vld [vmem:[#allocation32_spill] sm:$0xff] }
 0x2b2   :  { %6493 = vperm.xlu0 %11480, %v6206_v20   ;;  %6466 = vperm.xlu1 %11481, %v6197_v1   ;;  %12140 = vrsqrt.f32 %v2947_v35  ;;  %v12129_v20 = vpop.eup %12128  ;;  %v2958_v1 = vmax.f32 %v17274_v10, 1e-24  ;;  %v4093_v35 = vrot.slane %v12125_v36, %v14905_v49  ;;  %v4100_v58 = vrot.slane %v12125_v36, %v14908_v53 }
 0x2b3   :  { %12142 = vrsqrt.f32 %v2956_v22  ;;  %v12131_v48 = vpop.eup %12130  ;;  %v11920_v22 = vld [vmem:[%s17077_s1 + $0x920] ss:$16 sps:$4 sm:$0xff]   ;;  %v2951_v38 = vmax.f32 %v17276_v12, 1e-24 }
 0x2b4   :  { %12144 = vrsqrt.f32 %v2949_v46  ;;  %v4247_v36 = vrot.slane %v12131_v48, %v14905_v49  ;;  %v4254_v24 = vrot.slane %v12131_v48, %v14908_v53  ;;  %v11928_v48 = vld [vmem:[%s17077_s1 + $0x904] ss:$16 sps:$4 sm:$0xff]  }
 0x2b5   :  { %v15278_v3 = vpop.xlane.xlu1 %2843  ;;  %12146 = vrsqrt.f32 %v2958_v1  ;;  %v17279_v1 = vld [vmem:[#allocation34_spill] sm:$0xff] }
 0x2b6   :  { %17271 = vst [vmem:[#allocation25_spill] sm:$0xff] %v15278_v3  ;;  %6499 = vperm.xlu0 %11480, %v6208_v42   ;;  %6472 = vperm.xlu1 %11481, %v6199_v62   ;;  %v15296_v42 = vpop.xlane.xlu0 %2838  ;;  %12148 = vrsqrt.f32 %v2951_v38 }
 0x2b7   :  { %10657 = vmatpush2.bf16.xpose.msra.mxu0 %v11914_v17  ;;  %v6201_v17 = vcombine.low %v4065_v29, %v4072_v59  ;;  %17275 = vst [vmem:[#allocation27_spill] sm:$0xff] %v15296_v42  ;;  %v17278_v29 = vld [vmem:[#allocation37_spill] sm:$0xff] }
 0x2b8   :  { %10698 = vmatpush2.bf16.xpose.msra.mxu1 %v11917_v34  ;;  %v4226_v34 = vrot.slane %v12127_v11, %v14908_v53  ;;  %10658 = vmatprep.subr.bf16.mxu0 %v11922_v30  ;;  %v12133_v11 = vpop.eup %12132  ;;  %v2960_v59 = vmax.f32 %v17278_v29, 1e-24  ;;  %v11923_v30 = vld [vmem:[%s17077_s1 + $0x928] ss:$16 sps:$4 sm:$0xff]   ;;  %v2953_v29 = vmax.f32 %v17279_v1, 1e-24 }
 0x2b9   :  { %10699 = vmatprep.subr.bf16.mxu1 %v11925_v56  ;;  %v15302_v62 = vpop.xlane.xlu1 %2853  ;;  %v12135_v10 = vpop.eup %12134  ;;  %v6203_v56 = vcombine.low %v4093_v35, %v4100_v58 }
 0x2ba   :  { %6505 = vperm.xlu0 %11480, %v6210_v39   ;;  %6478 = vperm.xlu1 %11481, %v6201_v17   ;;  %17277 = vst [vmem:[#allocation24_spill] sm:$0xff] %v15302_v62  ;;  %v6212_v46 = vcombine.low %v4219_v43, %v4226_v34  ;;  %v4121_v39 = vrot.slane %v12129_v20, %v14905_v49  ;;  %v12137_v12 = vpop.eup %12136  ;;  %12150 = vrsqrt.f32 %v2960_v59  ;;  %v2962_v43 = vmax.f32 %v17280_v47, 1e-24  ;;  %v11926_v47 = vld [vmem:[%s17077_s1 + $0x900] ss:$16 sps:$4 sm:$0xff]  }
 0x2bb   :  { %v4128_v17 = vrot.slane %v12129_v20, %v14908_v53  ;;  %v12139_v41 = vpop.eup %12138  ;;  %v6214_v34 = vcombine.low %v4247_v36, %v4254_v24  ;;  %v4275_v35 = vrot.slane %v12135_v10, %v14905_v49  ;;  %v15318_v58 = vpop.xlane.xlu0 %2848  ;;  %v11931_v20 = vld [vmem:[%s17077_s1 + $0x90c] ss:$16 sps:$4 sm:$0xff]   ;;  %v4282_v38 = vrot.slane %v12135_v10, %v14908_v53  ;;  %v17284_v10 = vld [vmem:[#allocation43_spill] sm:$0xff] }
 0x2bc   :  { %17281 = vst [vmem:[#allocation29_spill] sm:$0xff] %v15318_v58  ;;  %v4156_v59 = vrot.slane %v12133_v11, %v14908_v53  ;;  %12152 = vrsqrt.f32 %v2953_v29  ;;  %v17283_v36 = vld [vmem:[#allocation36_spill] sm:$0xff]  ;;  %v4310_v1 = vrot.slane %v12139_v41, %v14908_v53  ;;  %v4177_v29 = vrot.slane %v12137_v12, %v14905_v49 }
 0x2bd   :  { %v2955_v24 = vmax.f32 %v17283_v36, 1e-24  ;;  %12154 = vrsqrt.f32 %v2962_v43  ;;  %v6216_v58 = vcombine.low %v4275_v35, %v4282_v38  ;;  %v17286_v43 = vld [vmem:[#allocation38_spill] sm:$0xff]  ;;  %v17288_v38 = vld [vmem:[#allocation47_spill] sm:$0xff] }
 0x2be   :  { %6511 = vperm.xlu0 %11480, %v6212_v46   ;;  %6484 = vperm.xlu1 %11481, %v6203_v56   ;;  %v4149_v56 = vrot.slane %v12133_v11, %v14905_v49  ;;  %v11929_v11 = vld [vmem:[%s17077_s1 + $0x908] ss:$16 sps:$4 sm:$0xff]   ;;  %v2957_v36 = vmax.f32 %v17286_v43, 1e-24 }
 0x2bf   :  { %10659 = vmatpush2.bf16.xpose.msra.mxu0 %v11920_v22  ;;  %v6205_v22 = vcombine.low %v4121_v39, %v4128_v17  ;;  %v2964_v39 = vmax.f32 %v17284_v10, 1e-24  ;;  %v4303_v17 = vrot.slane %v12139_v41, %v14905_v49  ;;  %12156 = vrsqrt.f32 %v2955_v24  ;;  %v11934_v10 = vld [vmem:[%s17077_s1 + $0xae4] ss:$16 sps:$4 sm:$0xff]  }
 0x2c0   :  { %10700 = vmatpush2.bf16.xpose.msra.mxu1 %v11923_v30  ;;  %v15324_v46 = vpop.xlane.xlu1 %2863  ;;  %10660 = vmatprep.subr.bf16.mxu0 %v11928_v48  ;;  %v12141_v30 = vpop.eup %12140 }
 0x2c1   :  { %17282 = vst [vmem:[#allocation26_spill] sm:$0xff] %v15324_v46  ;;  %10701 = vmatprep.subr.bf16.mxu1 %v11931_v20  ;;  %v12143_v48 = vpop.eup %12142  ;;  %v6207_v20 = vcombine.low %v4149_v56, %v4156_v59  ;;  %12158 = vrsqrt.f32 %v2964_v39  ;;  %v2966_v56 = vmax.f32 %v17288_v38, 1e-24  ;;  %v6218_v59 = vcombine.low %v4303_v17, %v4310_v1  ;;  %v11932_v39 = vld [vmem:[%s17077_s1 + $0xae0] ss:$16 sps:$4 sm:$0xff]   ;;  %v17289_v17 = vld [vmem:[#allocation40_spill] sm:$0xff] }
 0x2c2   :  { %6517 = vperm.xlu0 %11480, %v6214_v34   ;;  %6490 = vperm.xlu1 %11481, %v6205_v22   ;;  %v4184_v34 = vrot.slane %v12137_v12, %v14908_v53  ;;  %v15340_v22 = vpop.xlane.xlu0 %2858  ;;  %v12145_v35 = vpop.eup %12144  ;;  %v4331_v12 = vrot.slane %v12143_v48, %v14905_v49  ;;  %v4205_v43 = vrot.slane %v12141_v30, %v14905_v49  ;;  %12160 = vrsqrt.f32 %v2957_v36 }
 0x2c3   :  { %17285 = vst [vmem:[#allocation31_spill] sm:$0xff] %v15340_v22  ;;  %v2959_v1 = vmax.f32 %v17289_v17, 1e-24  ;;  %12162 = vrsqrt.f32 %v2966_v56  ;;  %v4233_v36 = vrot.slane %v12145_v35, %v14905_v49  ;;  %v11935_v56 = vld [vmem:[%s17077_s1 + $0xae8] ss:$16 sps:$4 sm:$0xff]  }
 0x2c4   :  { %v6209_v24 = vcombine.low %v4177_v29, %v4184_v34  ;;  %v17290_v29 = vld [vmem:[#allocation49_spill] sm:$0xff] }
 0x2c5   :  { %v15343_v41 = vpop.xlane.xlu1 %2873  ;;  %v2968_v34 = vmax.f32 %v17290_v29, 1e-24  ;;  %12164 = vrsqrt.f32 %v2959_v1 }
 0x2c6   :  { %6523 = vperm.xlu0 %11480, %v6216_v58   ;;  %6496 = vperm.xlu1 %11481, %v6207_v20   ;;  %17287 = vst [vmem:[#allocation28_spill] sm:$0xff] %v15343_v41  ;;  %v12147_v58 = vpop.eup %12146  ;;  %v4338_v20 = vrot.slane %v12143_v48, %v14908_v53  ;;  %v4212_v41 = vrot.slane %v12141_v30, %v14908_v53 }
 0x2c7   :  { %10661 = vmatpush2.bf16.xpose.msra.mxu0 %v11926_v47  ;;  %v11937_v47 = vld [vmem:[%s17077_s1 + $0xaec] ss:$16 sps:$4 sm:$0xff]   ;;  %v15361_v48 = vpop.xlane.xlu0 %2868  ;;  %v4359_v38 = vrot.slane %v12147_v58, %v14905_v49  ;;  %v4366_v30 = vrot.slane %v12147_v58, %v14908_v53  ;;  %12166 = vrsqrt.f32 %v2968_v34 }
 0x2c8   :  { %10702 = vmatpush2.bf16.xpose.msra.mxu1 %v11929_v11  ;;  %10712 = vmatprep.subr.bf16.mxu0 %v11934_v10  ;;  %v12149_v11 = vpop.eup %12148  ;;  %17291 = vst [vmem:[#allocation33_spill] sm:$0xff] %v15361_v48  ;;  %v6220_v42 = vcombine.low %v4331_v12, %v4338_v20  ;;  %v17293_v58 = vld [vmem:[#allocation44_spill] sm:$0xff] }
 0x2c9   :  { %10753 = vmatprep.subr.bf16.mxu1 %v11937_v47  ;;  %v12151_v10 = vpop.eup %12150  ;;  %v6211_v47 = vcombine.low %v4205_v43, %v4212_v41  ;;  %v11940_v41 = vld [vmem:[%s17077_s1 + $0xac4] ss:$16 sps:$4 sm:$0xff]   ;;  %v6222_v43 = vcombine.low %v4359_v38, %v4366_v30  ;;  %v4261_v29 = vrot.slane %v12149_v11, %v14905_v49  ;;  %v11938_v38 = vld [vmem:[%s17077_s1 + $0xac0] ss:$16 sps:$4 sm:$0xff]   ;;  %v17296_v30 = vld [vmem:[#allocation48_spill] sm:$0xff] }
 0x2ca   :  { %6529 = vperm.xlu0 %11480, %v6218_v59   ;;  %6502 = vperm.xlu1 %11481, %v6209_v24   ;;  %v4240_v59 = vrot.slane %v12145_v35, %v14908_v53  ;;  %v2961_v24 = vmax.f32 %v17293_v58, 1e-24  ;;  %v12153_v12 = vpop.eup %12152  ;;  %v17294_v35 = vld [vmem:[#allocation51_spill] sm:$0xff]  ;;  %v4387_v17 = vrot.slane %v12151_v10, %v14905_v49  ;;  %v4394_v1 = vrot.slane %v12151_v10, %v14908_v53 }
 0x2cb   :  { %v2970_v20 = vmax.f32 %v17294_v35, 1e-24  ;;  %v15387_v34 = vpop.xlane.xlu0 %2878  ;;  %v2963_v58 = vmax.f32 %v17296_v30, 1e-24 }
 0x2cc   :  { %17295 = vst [vmem:[#allocation35_spill] sm:$0xff] %v15387_v34  ;;  %12168 = vrsqrt.f32 %v2961_v24  ;;  %v4289_v24 = vrot.slane %v12153_v12, %v14905_v49 }
 0x2cd   :  { %12170 = vrsqrt.f32 %v2970_v20  ;;  %v17299_v20 = vld [vmem:[#allocation55_spill] sm:$0xff] }
 0x2ce   :  { %v15365_v46 = vpop.xlane.xlu1 %2883  ;;  %10663 = vmatmul.mubr.bf16.vlgmr.msra.gmra.mxu0 %v13214_v51  ;;  %6535 = vperm.xlu0 %11480, %v6220_v42   ;;  %v6213_v42 = vcombine.low %v4233_v36, %v4240_v59  ;;  %v17298_v59 = vld [vmem:[#allocation53_spill] sm:$0xff]  ;;  %12172 = vrsqrt.f32 %v2963_v58  ;;  %v2974_v30 = vmax.f32 %v17299_v20, 1e-24  ;;  %v17302_v58 = vld [vmem:[#allocation50_spill] sm:$0xff] }
 0x2cf   :  { %17292 = vst [vmem:[#allocation30_spill] sm:$0xff] %v15365_v46  ;;  %10713 = vmatpush1.bf16.xpose.msra.mxu0 %v11932_v39  ;;  %10744 = vmatprep.mubr.bf16.mxu0 %v13178_v18  ;;  %v11943_v18 = vld [vmem:[%s17077_s1 + $0xacc] ss:$16 sps:$4 sm:$0xff]   ;;  %v12155_v39 = vpop.eup %12154 }
 0x2d0   :  { %6508 = vperm.xlu1 %11481, %v6211_v47   ;;  %10704 = vmatmul.mubr.bf16.vlgmr.msra.gmra.mxu1 %v13216_v5  ;;  %v4268_v47 = vrot.slane %v12149_v11, %v14908_v53  ;;  %v12157_v10 = vpop.eup %12156  ;;  %v2972_v11 = vmax.f32 %v17298_v59, 1e-24  ;;  %v4422_v35 = vrot.slane %v12155_v39, %v14908_v53 }
 0x2d1   :  { %10754 = vmatpush1.bf16.xpose.msra.mxu1 %v11935_v56  ;;  %10714 = vmatprep.subr.bf16.mxu0 %v11940_v41  ;;  %v4415_v56 = vrot.slane %v12155_v39, %v14905_v49  ;;  %v12159_v46 = vpop.eup %12158  ;;  %v6224_v41 = vcombine.low %v4387_v17, %v4394_v1  ;;  %v4317_v20 = vrot.slane %v12157_v10, %v14905_v49 }
 0x2d2   :  { %10755 = vmatprep.subr.bf16.mxu1 %v11943_v18  ;;  %6541 = vperm.xlu0 %11480, %v6222_v43   ;;  %v15393_v36 = vpop.xlane.xlu1 %2893  ;;  %v6215_v18 = vcombine.low %v4261_v29, %v4268_v47  ;;  %v4296_v43 = vrot.slane %v12153_v12, %v14908_v53  ;;  %v12161_v17 = vpop.eup %12160  ;;  %12174 = vrsqrt.f32 %v2972_v11  ;;  %v4443_v1 = vrot.slane %v12159_v46, %v14905_v49  ;;  %v11949_v47 = vld [vmem:[%s17077_s1 + $0xaac] ss:$16 sps:$4 sm:$0xff]   ;;  %v11944_v11 = vld [vmem:[%s17077_s1 + $0xaa0] ss:$16 sps:$4 sm:$0xff]  }
 0x2d3   :  { %17297 = vst [vmem:[#allocation32_spill] sm:$0xff] %v15393_v36  ;;  %10785 = vmatprep.mubr.bf16.mxu1 %v13180_v52  ;;  %v11946_v52 = vld [vmem:[%s17077_s1 + $0xaa4] ss:$16 sps:$4 sm:$0xff]   ;;  %v6226_v12 = vcombine.low %v4415_v56, %v4422_v35  ;;  %v4450_v29 = vrot.slane %v12159_v46, %v14908_v53  ;;  %12176 = vrsqrt.f32 %v2974_v30  ;;  %v17305_v36 = vld [vmem:[#allocation52_spill] sm:$0xff] }
 0x2d4   :  { %6514 = vperm.xlu1 %11481, %v6213_v42   ;;  %v11941_v42 = vld [vmem:[%s17077_s1 + $0xac8] ss:$16 sps:$4 sm:$0xff]   ;;  %v17303_v46 = vld [vmem:[#allocation57_spill] sm:$0xff] }
 0x2d5   :  { %v15410_v39 = vpop.xlane.xlu0 %2888  ;;  %v2976_v56 = vmax.f32 %v17303_v46, 1e-24  ;;  %v6228_v30 = vcombine.low %v4443_v1, %v4450_v29  ;;  %v17307_v46 = vld [vmem:[#allocation54_spill] sm:$0xff] }
 0x2d6   :  { %6547 = vperm.xlu0 %11480, %v6224_v41   ;;  %v15405_v59 = vpop.permute.xlu1 %6355  ;;  %17301 = vst [vmem:[#allocation34_spill] sm:$0xff] %v15410_v39  ;;  %v2965_v41 = vmax.f32 %v17302_v58, 1e-24 }
 0x2d7   :  { %10715 = vmatpush1.bf16.xpose.msra.mxu0 %v11938_v38  ;;  %17300 = vst [vmem:[#allocation37_spill] sm:$0xff] %v15405_v59  ;;  %v12163_v38 = vpop.eup %12162  ;;  %v4324_v59 = vrot.slane %v12157_v10, %v14908_v53  ;;  %v4345_v10 = vrot.slane %v12161_v17, %v14905_v49 }
 0x2d8   :  { %6520 = vperm.xlu1 %11481, %v6215_v18   ;;  %v6217_v18 = vcombine.low %v4289_v24, %v4296_v43  ;;  %10716 = vmatprep.subr.bf16.mxu0 %v11946_v52  ;;  %v12165_v58 = vpop.eup %12164  ;;  %v4471_v24 = vrot.slane %v12163_v38, %v14905_v49  ;;  %v4478_v43 = vrot.slane %v12163_v38, %v14908_v53  ;;  %12178 = vrsqrt.f32 %v2965_v41 }
 0x2d9   :  { %10756 = vmatpush1.bf16.xpose.msra.mxu1 %v11941_v42  ;;  %v4352_v42 = vrot.slane %v12161_v17, %v14908_v53  ;;  %v12167_v52 = vpop.eup %12166  ;;  %v6219_v39 = vcombine.low %v4317_v20, %v4324_v59  ;;  %12180 = vrsqrt.f32 %v2976_v56  ;;  %v17309_v59 = vld [vmem:[#allocation59_spill] sm:$0xff] }
 0x2da   :  { %10757 = vmatprep.subr.bf16.mxu1 %v11949_v47  ;;  %6553 = vperm.xlu0 %11480, %v6226_v12   ;;  %v15424_v35 = vpop.permute.xlu1 %6358  ;;  %v2967_v47 = vmax.f32 %v17305_v36, 1e-24  ;;  %v11947_v12 = vld [vmem:[%s17077_s1 + $0xaa8] ss:$16 sps:$4 sm:$0xff]   ;;  %v11952_v36 = vld [vmem:[%s17077_s1 + $0xa84] ss:$16 sps:$4 sm:$0xff]   ;;  %v12169_v17 = vpop.eup %12168  ;;  %v6230_v29 = vcombine.low %v4471_v24, %v4478_v43  ;;  %v4499_v20 = vrot.slane %v12167_v52, %v14905_v49 }
 0x2db   :  { %17304 = vst [vmem:[#allocation39_spill] sm:$0xff] %v15424_v35  ;;  %v2969_v35 = vmax.f32 %v17307_v46, 1e-24  ;;  %v2978_v1 = vmax.f32 %v17309_v59, 1e-24  ;;  %v6221_v41 = vcombine.low %v4345_v10, %v4352_v42  ;;  %v12171_v56 = vpop.eup %12170  ;;  %v4380_v46 = vrot.slane %v12165_v58, %v14908_v53  ;;  %v17311_v43 = vld [vmem:[#allocation61_spill] sm:$0xff] }
 0x2dc   :  { %6526 = vperm.xlu1 %11481, %v6217_v18   ;;  %12182 = vrsqrt.f32 %v2967_v47  ;;  %v11950_v24 = vld [vmem:[%s17077_s1 + $0xa80] ss:$16 sps:$4 sm:$0xff]   ;;  %v2980_v10 = vmax.f32 %v17311_v43, 1e-24  ;;  %v17313_v47 = vld [vmem:[#allocation56_spill] sm:$0xff]  ;;  %v17315_v43 = vld [vmem:[#allocation58_spill] sm:$0xff] }
 0x2dd   :  { %v15434_v18 = vpop.permute.xlu0 %6352  ;;  %12184 = vrsqrt.f32 %v2969_v35  ;;  %v2971_v59 = vmax.f32 %v17313_v47, 1e-24  ;;  %v4408_v35 = vrot.slane %v12169_v17, %v14908_v53 }
 0x2de   :  { %17306 = vst [vmem:[#allocation36_spill] sm:$0xff] %v15434_v18  ;;  %6559 = vperm.xlu0 %11480, %v6228_v30   ;;  %v15437_v38 = vpop.permute.xlu1 %6361  ;;  %v4506_v30 = vrot.slane %v12167_v52, %v14908_v53  ;;  %v12173_v52 = vpop.eup %12172  ;;  %12186 = vrsqrt.f32 %v2978_v1  ;;  %v2973_v1 = vmax.f32 %v17315_v43, 1e-24 }
 0x2df   :  { %10717 = vmatpush1.bf16.xpose.msra.mxu0 %v11944_v11  ;;  %17308 = vst [vmem:[#allocation43_spill] sm:$0xff] %v15437_v38  ;;  %v11955_v11 = vld [vmem:[%s17077_s1 + $0xa8c] ss:$16 sps:$4 sm:$0xff]   ;;  %12188 = vrsqrt.f32 %v2980_v10  ;;  %v4436_v10 = vrot.slane %v12173_v52, %v14908_v53 }
 0x2e0   :  { %6532 = vperm.xlu1 %11481, %v6219_v39   ;;  %v4373_v39 = vrot.slane %v12165_v58, %v14905_v49  ;;  %10718 = vmatprep.subr.bf16.mxu0 %v11952_v36  ;;  %v4527_v58 = vrot.slane %v12171_v56, %v14905_v49  ;;  %v12175_v36 = vpop.eup %12174  ;;  %12190 = vrsqrt.f32 %v2971_v59 }
 0x2e1   :  { %10758 = vmatpush1.bf16.xpose.msra.mxu1 %v11947_v12  ;;  %v15450_v38 = vpop.permute.xlu0 %6379  ;;  %v4534_v12 = vrot.slane %v12171_v56, %v14908_v53  ;;  %v12177_v56 = vpop.eup %12176  ;;  %12192 = vrsqrt.f32 %v2973_v1 }
 0x2e2   :  { %17310 = vst [vmem:[#allocation38_spill] sm:$0xff] %v15450_v38  ;;  %10759 = vmatprep.subr.bf16.mxu1 %v11955_v11  ;;  %6565 = vperm.xlu0 %11480, %v6230_v29   ;;  %v15456_v42 = vpop.permute.xlu1 %6364  ;;  %v6232_v38 = vcombine.low %v4499_v20, %v4506_v30  ;;  %v6223_v18 = vcombine.low %v4373_v39, %v4380_v46  ;;  %v11953_v29 = vld [vmem:[%s17077_s1 + $0xa88] ss:$16 sps:$4 sm:$0xff]   ;;  %v11958_v20 = vld [vmem:[%s17077_s1 + $0xa64] ss:$16 sps:$4 sm:$0xff]  }
 0x2e3   :  { %17312 = vst [vmem:[#allocation47_spill] sm:$0xff] %v15456_v42  ;;  %v4401_v11 = vrot.slane %v12169_v17, %v14905_v49  ;;  %v17317_v17 = vld [vmem:[#allocation63_spill] sm:$0xff]  ;;  %v6234_v39 = vcombine.low %v4527_v58, %v4534_v12  ;;  %v4555_v46 = vrot.slane %v12175_v36, %v14905_v49  ;;  %v17319_v12 = vld [vmem:[#allocation60_spill] sm:$0xff] }
 0x2e4   :  { %6538 = vperm.xlu1 %11481, %v6221_v41   ;;  %v2982_v30 = vmax.f32 %v17317_v17, 1e-24  ;;  %v11956_v58 = vld [vmem:[%s17077_s1 + $0xa60] ss:$16 sps:$4 sm:$0xff]   ;;  %v17320_v17 = vld [vmem:[#allocation62_spill] sm:$0xff] }
 0x2e5   :  { %v15466_v41 = vpop.permute.xlu0 %6385  ;;  %v12179_v43 = vpop.eup %12178  ;;  %v2977_v59 = vmax.f32 %v17320_v17, 1e-24 }
 0x2e6   :  { %17314 = vst [vmem:[#allocation40_spill] sm:$0xff] %v15466_v41  ;;  %6571 = vperm.xlu0 %11480, %v6232_v38   ;;  %v15469_v47 = vpop.permute.xlu1 %6367  ;;  %v4562_v41 = vrot.slane %v12175_v36, %v14908_v53  ;;  %v6225_v38 = vcombine.low %v4401_v11, %v4408_v35  ;;  %v2975_v36 = vmax.f32 %v17319_v12, 1e-24  ;;  %12194 = vrsqrt.f32 %v2982_v30  ;;  %v17322_v35 = vld [vmem:[#allocation65_spill] sm:$0xff] }
 0x2e7   :  { %10719 = vmatpush1.bf16.xpose.msra.mxu0 %v11950_v24  ;;  %17316 = vst [vmem:[#allocation49_spill] sm:$0xff] %v15469_v47  ;;  %v11961_v24 = vld [vmem:[%s17077_s1 + $0xa6c] ss:$16 sps:$4 sm:$0xff]   ;;  %v4457_v1 = vrot.slane %v12179_v43, %v14905_v49 }
 0x2e8   :  { %6544 = vperm.xlu1 %11481, %v6223_v18   ;;  %v4429_v18 = vrot.slane %v12173_v52, %v14905_v49  ;;  %10720 = vmatprep.subr.bf16.mxu0 %v11958_v20  ;;  %v12181_v52 = vpop.eup %12180  ;;  %v4583_v20 = vrot.slane %v12177_v56, %v14905_v49  ;;  %v6236_v42 = vcombine.low %v4555_v46, %v4562_v41  ;;  %12196 = vrsqrt.f32 %v2975_v36 }
 0x2e9   :  { %10760 = vmatpush1.bf16.xpose.msra.mxu1 %v11953_v29  ;;  %v15482_v47 = vpop.permute.xlu0 %6391  ;;  %v2984_v29 = vmax.f32 %v17322_v35, 1e-24  ;;  %v12183_v12 = vpop.eup %12182  ;;  %v17325_v35 = vld [vmem:[#allocation67_spill] sm:$0xff] }
 0x2ea   :  { %17318 = vst [vmem:[#allocation44_spill] sm:$0xff] %v15482_v47  ;;  %10761 = vmatprep.subr.bf16.mxu1 %v11961_v24  ;;  %6577 = vperm.xlu0 %11480, %v6234_v39   ;;  %v15489_v11 = vpop.permute.xlu1 %6370  ;;  %v4590_v47 = vrot.slane %v12177_v56, %v14908_v53  ;;  %v6227_v34 = vcombine.low %v4429_v18, %v4436_v10  ;;  %v11959_v39 = vld [vmem:[%s17077_s1 + $0xa68] ss:$16 sps:$4 sm:$0xff]   ;;  %v11964_v56 = vld [vmem:[%s17077_s1 + $0xa44] ss:$16 sps:$4 sm:$0xff]   ;;  %v12185_v46 = vpop.eup %12184 }
 0x2eb   :  { %17321 = vst [vmem:[#allocation51_spill] sm:$0xff] %v15489_v11  ;;  %v4464_v24 = vrot.slane %v12179_v43, %v14908_v53  ;;  %v2986_v11 = vmax.f32 %v17325_v35, 1e-24  ;;  %12198 = vrsqrt.f32 %v2984_v29  ;;  %v4611_v10 = vrot.slane %v12181_v52, %v14905_v49  ;;  %v12187_v36 = vpop.eup %12186  ;;  %v17327_v29 = vld [vmem:[#allocation66_spill] sm:$0xff]  ;;  %v17329_v35 = vld [vmem:[#allocation68_spill] sm:$0xff] }
 0x2ec   :  { %6550 = vperm.xlu1 %11481, %v6225_v38   ;;  %v17323_v38 = vld [vmem:[#allocation64_spill] sm:$0xff]  ;;  %v6238_v18 = vcombine.low %v4583_v20, %v4590_v47  ;;  %v4618_v43 = vrot.slane %v12181_v52, %v14908_v53  ;;  %12200 = vrsqrt.f32 %v2977_v59  ;;  %v2981_v47 = vmax.f32 %v17327_v29, 1e-24  ;;  %v11962_v52 = vld [vmem:[%s17077_s1 + $0xa40] ss:$16 sps:$4 sm:$0xff]  }
 0x2ed   :  { %v2979_v17 = vmax.f32 %v17323_v38, 1e-24  ;;  %v15500_v30 = vpop.permute.xlu0 %6397  ;;  %v4492_v38 = vrot.slane %v12183_v12, %v14908_v53  ;;  %v2983_v59 = vmax.f32 %v17329_v35, 1e-24  ;;  %v4639_v29 = vrot.slane %v12187_v36, %v14905_v49  ;;  %v17333_v35 = vld [vmem:[#allocation71_spill] sm:$0xff] }
 0x2ee   :  { %17324 = vst [vmem:[#allocation48_spill] sm:$0xff] %v15500_v30  ;;  %6583 = vperm.xlu0 %11480, %v6236_v42   ;;  %v15503_v41 = vpop.permute.xlu1 %6373  ;;  %v6229_v42 = vcombine.low %v4457_v1, %v4464_v24  ;;  %v12189_v24 = vpop.eup %12188  ;;  %v4646_v30 = vrot.slane %v12187_v36, %v14908_v53 }
 0x2ef   :  { %10721 = vmatpush1.bf16.xpose.msra.mxu0 %v11956_v58  ;;  %17326 = vst [vmem:[#allocation53_spill] sm:$0xff] %v15503_v41  ;;  %v11967_v58 = vld [vmem:[%s17077_s1 + $0xa4c] ss:$16 sps:$4 sm:$0xff]   ;;  %12202 = vrsqrt.f32 %v2979_v17  ;;  %v6240_v41 = vcombine.low %v4611_v10, %v4618_v43 }
 0x2f0   :  { %6556 = vperm.xlu1 %11481, %v6227_v34   ;;  %v4485_v34 = vrot.slane %v12183_v12, %v14905_v49  ;;  %10722 = vmatprep.subr.bf16.mxu0 %v11964_v56  ;;  %12204 = vrsqrt.f32 %v2986_v11  ;;  %v17332_v17 = vld [vmem:[#allocation70_spill] sm:$0xff]  ;;  %v4520_v11 = vrot.slane %v12185_v46, %v14908_v53 }
 0x2f1   :  { %10762 = vmatpush1.bf16.xpose.msra.mxu1 %v11959_v39  ;;  %v15516_v20 = vpop.permute.xlu0 %6403  ;;  %v17331_v39 = vld [vmem:[#allocation69_spill] sm:$0xff]  ;;  %v2985_v56 = vmax.f32 %v17332_v17, 1e-24  ;;  %12206 = vrsqrt.f32 %v2981_v47  ;;  %v17335_v17 = vld [vmem:[#allocation72_spill] sm:$0xff]  ;;  %v4674_v47 = vrot.slane %v12189_v24, %v14908_v53 }
 0x2f2   :  { %17328 = vst [vmem:[#allocation55_spill] sm:$0xff] %v15516_v20  ;;  %10763 = vmatprep.subr.bf16.mxu1 %v11967_v58  ;;  %6589 = vperm.xlu0 %11480, %v6238_v18   ;;  %v15522_v1 = vpop.permute.xlu1 %6376  ;;  %v2988_v12 = vmax.f32 %v17331_v39, 1e-24  ;;  %v6231_v48 = vcombine.low %v4485_v34, %v4492_v38  ;;  %v4513_v58 = vrot.slane %v12185_v46, %v14905_v49  ;;  %v11965_v18 = vld [vmem:[%s17077_s1 + $0xa48] ss:$16 sps:$4 sm:$0xff]   ;;  %12208 = vrsqrt.f32 %v2983_v59 }
 0x2f3   :  { %17330 = vst [vmem:[#allocation50_spill] sm:$0xff] %v15522_v1  ;;  %v2990_v39 = vmax.f32 %v17333_v35, 1e-24  ;;  %v2987_v36 = vmax.f32 %v17335_v17, 1e-24  ;;  %v6242_v34 = vcombine.low %v4639_v29, %v4646_v30  ;;  %v4667_v38 = vrot.slane %v12189_v24, %v14905_v49  ;;  %v17339_v17 = vld [vmem:[#allocation74_spill] sm:$0xff] }
 0x2f4   :  { %6562 = vperm.xlu1 %11481, %v6229_v42   ;;  %v12191_v42 = vpop.eup %12190  ;;  %v11970_v46 = vld [vmem:[%s17077_s1 + $0xa24] ss:$16 sps:$4 sm:$0xff]   ;;  %12210 = vrsqrt.f32 %v2988_v12  ;;  %v11968_v24 = vld [vmem:[%s17077_s1 + $0xa20] ss:$16 sps:$4 sm:$0xff]  }
 0x2f5   :  { %v15534_v1 = vpop.permute.xlu0 %6409  ;;  %v12193_v43 = vpop.eup %12192  ;;  %12212 = vrsqrt.f32 %v2985_v56  ;;  %v4548_v35 = vrot.slane %v12191_v42, %v14908_v53  ;;  %v17337_v12 = vld [vmem:[#allocation73_spill] sm:$0xff]  ;;  %v2989_v56 = vmax.f32 %v17339_v17, 1e-24  ;;  %v6244_v62 = vcombine.low %v4667_v38, %v4674_v47  ;;  %v17345_v38 = vld [vmem:[#allocation78_spill] sm:$0xff] }
 0x2f6   :  { %17334 = vst [vmem:[#allocation57_spill] sm:$0xff] %v15534_v1  ;;  %6595 = vperm.xlu0 %11480, %v6240_v41   ;;  %v15537_v10 = vpop.permute.xlu1 %6382  ;;  %v12195_v59 = vpop.eup %12194  ;;  %v6233_v41 = vcombine.low %v4513_v58, %v4520_v11  ;;  %12214 = vrsqrt.f32 %v2990_v39  ;;  %v2992_v30 = vmax.f32 %v17337_v12, 1e-24  ;;  %v17342_v39 = vld [vmem:[#allocation76_spill] sm:$0xff]  ;;  %v17343_v17 = vld [vmem:[#allocation77_spill] sm:$0xff] }
 0x2f7   :  { %10723 = vmatpush1.bf16.xpose.msra.mxu0 %v11962_v52  ;;  %17336 = vst [vmem:[#allocation52_spill] sm:$0xff] %v15537_v10  ;;  %v11973_v52 = vld [vmem:[%s17077_s1 + $0xa2c] ss:$16 sps:$4 sm:$0xff]   ;;  %12216 = vrsqrt.f32 %v2987_v36  ;;  %v12197_v11 = vpop.eup %12196  ;;  %v4695_v12 = vrot.slane %v12195_v59, %v14905_v49  ;;  %v4702_v10 = vrot.slane %v12195_v59, %v14908_v53  ;;  %v4569_v36 = vrot.slane %v12193_v43, %v14905_v49 }
 0x2f8   :  { %6568 = vperm.xlu1 %11481, %v6231_v48   ;;  %v4541_v48 = vrot.slane %v12191_v42, %v14905_v49  ;;  %10724 = vmatprep.subr.bf16.mxu0 %v11970_v46  ;;  %v2991_v46 = vmax.f32 %v17342_v39, 1e-24  ;;  %v12199_v22 = vpop.eup %12198  ;;  %12218 = vrsqrt.f32 %v2992_v30  ;;  %v2993_v47 = vmax.f32 %v17345_v38, 1e-24 }
 0x2f9   :  { %10764 = vmatpush1.bf16.xpose.msra.mxu1 %v11965_v18  ;;  %v15550_v29 = vpop.permute.xlu0 %6415  ;;  %v17341_v18 = vld [vmem:[#allocation75_spill] sm:$0xff]  ;;  %12220 = vrsqrt.f32 %v2989_v56  ;;  %v6246_v30 = vcombine.low %v4695_v12, %v4702_v10  ;;  %v11979_v56 = vld [vmem:[%s17077_s1 + $0xa0c] ss:$16 sps:$4 sm:$0xff]   ;;  %v4597_v38 = vrot.slane %v12197_v11, %v14905_v49 }
 0x2fa   :  { %17338 = vst [vmem:[#allocation54_spill] sm:$0xff] %v15550_v29  ;;  %10765 = vmatprep.subr.bf16.mxu1 %v11973_v52  ;;  %6601 = vperm.xlu0 %11480, %v6242_v34   ;;  %v15556_v58 = vpop.permute.xlu1 %6388  ;;  %v2994_v42 = vmax.f32 %v17341_v18, 1e-24  ;;  %v6235_v3 = vcombine.low %v4541_v48, %v4548_v35  ;;  %v4576_v52 = vrot.slane %v12193_v43, %v14908_v53  ;;  %v11971_v34 = vld [vmem:[%s17077_s1 + $0xa28] ss:$16 sps:$4 sm:$0xff]  }
 0x2fb   :  { %17340 = vst [vmem:[#allocation59_spill] sm:$0xff] %v15556_v58  ;;  %v2996_v18 = vmax.f32 %v17343_v17, 1e-24  ;;  %v11976_v43 = vld [vmem:[%s17077_s1 + $0xa04] ss:$16 sps:$4 sm:$0xff]   ;;  %v4723_v17 = vrot.slane %v12199_v22, %v14905_v49 }
 0x2fc   :  { %6574 = vperm.xlu1 %11481, %v6233_v41   ;;  %v15567_v41 = vpop.eup %12200  ;;  %12222 = vrsqrt.f32 %v2994_v42 }
 0x2fd   :  { %v15570_v39 = vpop.permute.xlu0 %6421  ;;  %v15572_v59 = vpop.eup %12202  ;;  %12224 = vrsqrt.f32 %v2991_v46  ;;  %v17349_v46 = vld [vmem:[#allocation80_spill] sm:$0xff] }
 0x2fe   :  { %17344 = vst [vmem:[#allocation61_spill] sm:$0xff] %v15570_v39  ;;  %6607 = vperm.xlu0 %11480, %v6244_v62   ;;  %v15575_v48 = vpop.permute.xlu1 %6394  ;;  %v12205_v35 = vpop.eup %12204  ;;  %v6237_v62 = vcombine.low %v4569_v36, %v4576_v52  ;;  %12226 = vrsqrt.f32 %v2996_v18  ;;  %v2995_v36 = vmax.f32 %v17349_v46, 1e-24 }
 0x2ff   :  { %10725 = vmatpush1.bf16.xpose.msra.mxu0 %v11968_v24  ;;  %17346 = vst [vmem:[#allocation56_spill] sm:$0xff] %v15575_v48  ;;  %v4730_v24 = vrot.slane %v12199_v22, %v14908_v53  ;;  %v17347_v48 = vld [vmem:[#allocation79_spill] sm:$0xff]  ;;  %v15593_v12 = vpop.eup %12206  ;;  %12228 = vrsqrt.f32 %v2993_v47  ;;  %v4751_v58 = vrot.slane %v12205_v35, %v14905_v49  ;;  %v4758_v23 = vrot.slane %v12205_v35, %v14908_v53 }
 0x300   :  { %6580 = vperm.xlu1 %11481, %v6235_v3   ;;  %v4604_v3 = vrot.slane %v12197_v11, %v14908_v53  ;;  %10726 = vmatprep.subr.bf16.mxu0 %v11976_v43  ;;  %v2998_v42 = vmax.f32 %v17347_v48, 1e-24  ;;  %v11974_v22 = vld [vmem:[%s17077_s1 + $0xa00] ss:$16 sps:$4 sm:$0xff]   ;;  %v15598_v11 = vpop.eup %12208  ;;  %v17352_v48 = vld [vmem:[#allocation82_spill] sm:$0xff]  ;;  %v4625_v47 = vrot.slane %v15567_v41, %v14905_v49 }
 0x301   :  { %10766 = vmatpush1.bf16.xpose.msra.mxu1 %v11971_v34  ;;  %v15588_v10 = vpop.permute.xlu0 %6427  ;;  %v17351_v34 = vld [vmem:[#allocation81_spill] sm:$0xff]  ;;  %v2997_v43 = vmax.f32 %v17352_v48, 1e-24 }
 0x302   :  { %17348 = vst [vmem:[#allocation58_spill] sm:$0xff] %v15588_v10  ;;  %10767 = vmatprep.subr.bf16.mxu1 %v11979_v56  ;;  %6613 = vperm.xlu0 %11480, %v6246_v30   ;;  %v15596_v52 = vpop.permute.xlu1 %6400  ;;  %v3000_v18 = vmax.f32 %v17351_v34, 1e-24  ;;  %v12211_v56 = vpop.eup %12210  ;;  %v6248_v10 = vcombine.low %v4723_v17, %v4730_v24  ;;  %v6239_v39 = vcombine.low %v4597_v38, %v4604_v3  ;;  %12230 = vrsqrt.f32 %v2998_v42 }
 0x303   :  { %17350 = vst [vmem:[#allocation63_spill] sm:$0xff] %v15596_v52  ;;  %v4632_v30 = vrot.slane %v15567_v41, %v14908_v53  ;;  %v15611_v46 = vpop.eup %12212  ;;  %v3002_v34 = vmax.f32 %v14416_v45, 1e-24  ;;  %12232 = vrsqrt.f32 %v2995_v36  ;;  %v2999_v17 = vmax.f32 %v14418_v40, 1e-24 }
 0x304   :  { %6586 = vperm.xlu1 %11481, %v6237_v62   ;;  %v11977_v62 = vld [vmem:[%s17077_s1 + $0xa08] ss:$16 sps:$4 sm:$0xff]   ;;  %v12215_v35 = vpop.eup %12214  ;;  %v11982_v41 = vld [vmem:[%s17077_s1 + $0xbe4] ss:$16 sps:$4 sm:$0xff]   ;;  %12234 = vrsqrt.f32 %v3000_v18  ;;  %v6250_v3 = vcombine.low %v4751_v58, %v4758_v23  ;;  %v4779_v45 = vrot.slane %v12211_v56, %v14905_v49  ;;  %v4786_v42 = vrot.slane %v12211_v56, %v14908_v53  ;;  %v11985_v40 = vld [vmem:[%s17077_s1 + $0xbec] ss:$16 sps:$4 sm:$0xff]  }
 0x305   :  { %v15614_v48 = vpop.permute.xlu0 %6433  ;;  %v15622_v38 = vpop.eup %12216  ;;  %12236 = vrsqrt.f32 %v2997_v43  ;;  %v17355_v23 = vld [vmem:[#allocation83_spill] sm:$0xff]  ;;  %v17357_v56 = vld [vmem:[#allocation84_spill] sm:$0xff] }
 0x306   :  { %17353 = vst [vmem:[#allocation60_spill] sm:$0xff] %v15614_v48  ;;  %6619 = vperm.xlu0 %11480, %v6248_v10   ;;  %v15617_v24 = vpop.permute.xlu1 %6406  ;;  %v6241_v10 = vcombine.low %v4625_v47, %v4632_v30  ;;  %12238 = vrsqrt.f32 %v3002_v34  ;;  %v3004_v58 = vmax.f32 %v17355_v23, 1e-24  ;;  %v11980_v18 = vld [vmem:[%s17077_s1 + $0xbe0] ss:$16 sps:$4 sm:$0xff]   ;;  %v15639_v43 = vpop.eup %12218  ;;  %v6252_v23 = vcombine.low %v4779_v45, %v4786_v42 }
 0x307   :  { %10727 = vmatpush1.bf16.xpose.msra.mxu0 %v11974_v22  ;;  %17354 = vst [vmem:[#allocation62_spill] sm:$0xff] %v15617_v24  ;;  %v4660_v22 = vrot.slane %v15572_v59, %v14908_v53  ;;  %12240 = vrsqrt.f32 %v2999_v17  ;;  %v3001_v47 = vmax.f32 %v17357_v56, 1e-24  ;;  %v17359_v34 = vld [vmem:[#allocation85_spill] sm:$0xff]  ;;  %v4814_v48 = vrot.slane %v12215_v35, %v14908_v53  ;;  %v11983_v45 = vld [vmem:[%s17077_s1 + $0xbe8] ss:$16 sps:$4 sm:$0xff]  }
 0x308   :  { %6592 = vperm.xlu1 %11481, %v6239_v39   ;;  %v4653_v39 = vrot.slane %v15572_v59, %v14905_v49  ;;  %10728 = vmatprep.subr.bf16.mxu0 %v11982_v41  ;;  %v3006_v41 = vmax.f32 %v17359_v34, 1e-24  ;;  %12242 = vrsqrt.f32 %v3004_v58  ;;  %v11988_v58 = vld [vmem:[%s17077_s1 + $0xbc4] ss:$16 sps:$4 sm:$0xff]  }
 0x309   :  { %10768 = vmatpush1.bf16.xpose.msra.mxu1 %v11977_v62  ;;  %v15634_v36 = vpop.permute.xlu0 %6439  ;;  %v15644_v62 = vpop.eup %12220  ;;  %12244 = vrsqrt.f32 %v3001_v47  ;;  %v4835_v47 = vrot.slane %v15639_v43, %v14905_v49 }
 0x30a   :  { %17356 = vst [vmem:[#allocation65_spill] sm:$0xff] %v15634_v36  ;;  %10769 = vmatprep.subr.bf16.mxu1 %v11985_v40  ;;  %6625 = vperm.xlu0 %11480, %v6250_v3   ;;  %v15642_v30 = vpop.permute.xlu1 %6412  ;;  %v4807_v36 = vrot.slane %v12215_v35, %v14905_v49  ;;  %v15649_v6 = vpop.eup %12222  ;;  %v6243_v17 = vcombine.low %v4653_v39, %v4660_v22  ;;  %v17361_v35 = vld [vmem:[#allocation86_spill] sm:$0xff]  ;;  %12246 = vrsqrt.f32 %v3006_v41  ;;  %v11986_v41 = vld [vmem:[%s17077_s1 + $0xbc0] ss:$16 sps:$4 sm:$0xff]  }
 0x30b   :  { %17358 = vst [vmem:[#allocation64_spill] sm:$0xff] %v15642_v30  ;;  %v4681_v3 = vrot.slane %v15593_v12, %v14905_v49  ;;  %v15660_v34 = vpop.eup %12224  ;;  %v3003_v29 = vmax.f32 %v17361_v35, 1e-24 }
 0x30c   :  { %6598 = vperm.xlu1 %11481, %v6241_v10   ;;  %v4688_v10 = vrot.slane %v15593_v12, %v14908_v53  ;;  %v15665_v22 = vpop.eup %12226  ;;  %v17363_v12 = vld [vmem:[#allocation87_spill] sm:$0xff]  ;;  %v6254_v33 = vcombine.low %v4807_v36, %v4814_v48  ;;  %v17367_v36 = vld [vmem:[#allocation89_spill] sm:$0xff] }
 0x30d   :  { %v15663_v1 = vpop.permute.xlu0 %6445  ;;  %v15675_v35 = vpop.eup %12228  ;;  %12248 = vrsqrt.f32 %v3003_v29 }
 0x30e   :  { %v9782_v59 = vpop.f32.mrf.mxu0  ;;  %17362 = vst [vmem:[#allocation66_spill] sm:$0xff] %v15663_v1  ;;  %6631 = vperm.xlu0 %11480, %v6252_v23   ;;  %v4842_v23 = vrot.slane %v15639_v43, %v14908_v53 }
 0x30f   :  { %v9823_v40 = vpop.f32.mrf.mxu1  ;;  %10729 = vmatpush2.bf16.xpose.msra.mxu0 %v11980_v18  ;;  %v17366_v18 = vld [vmem:[#allocation88_spill] sm:$0xff] }
 0x310   :  { %v15655_v56 = vadd.f32 %v9823_v40, %v9782_v59  ;;  %v9784_v42 = vpop.f32.mrf.mxu0  ;;  %v3008_v59 = vmax.f32 %v17363_v12, 1e-24  ;;  %v15668_v40 = vpop.permute.xlu1 %6418  ;;  %6604 = vperm.xlu1 %11481, %v6243_v17   ;;  %v3005_v1 = vmax.f32 %v17366_v18, 1e-24  ;;  %v6245_v17 = vcombine.low %v4681_v3, %v4688_v10  ;;  %10730 = vmatprep.subr.bf16.mxu0 %v11988_v58  ;;  %v17368_v10 = vld [vmem:[#allocation90_spill] sm:$0xff] }
 0x311   :  { %v9825_v39 = vpop.f32.mrf.mxu1  ;;  %17364 = vst [vmem:[#allocation68_spill] sm:$0xff] %v15668_v40  ;;  %10770 = vmatpush2.bf16.xpose.msra.mxu1 %v11983_v45  ;;  %v3010_v18 = vmax.f32 %v17367_v36, 1e-24  ;;  %v15690_v43 = vpop.permute.xlu0 %6451  ;;  %v17370_v45 = vld [vmem:[#allocation91_spill] sm:$0xff] }
 0x312   :  { %17360 = vst [vmem:[#allocation67_spill] sm:$0xff] %v15655_v56  ;;  %v15670_v56 = vadd.f32 %v9825_v39, %v9784_v42  ;;  %v9786_v30 = vpop.f32.mrf.mxu0  ;;  %v4709_v42 = vrot.slane %v15598_v11, %v14905_v49  ;;  %v4716_v39 = vrot.slane %v15598_v11, %v14908_v53  ;;  %v15695_v3 = vpop.eup %12230  ;;  %12250 = vrsqrt.f32 %v3008_v59  ;;  %6637 = vperm.xlu0 %11480, %v6254_v33  }
 0x313   :  { %v9827_v12 = vpop.f32.mrf.mxu1  ;;  %v11991_v30 = vld [vmem:[%s17077_s1 + $0xbcc] ss:$16 sps:$4 sm:$0xff]   ;;  %v15700_v29 = vpop.eup %12232  ;;  %12252 = vrsqrt.f32 %v3005_v1  ;;  %v3012_v58 = vmax.f32 %v17370_v45, 1e-24  ;;  %v6256_v59 = vcombine.low %v4835_v47, %v4842_v23  ;;  %v4737_v33 = vrot.slane %v15611_v46, %v14905_v49  ;;  %v11989_v1 = vld [vmem:[%s17077_s1 + $0xbc8] ss:$16 sps:$4 sm:$0xff]  }
 0x314   :  { %17365 = vst [vmem:[#allocation69_spill] sm:$0xff] %v15670_v56  ;;  %v9787_v48 = vpop.f32.mrf.mxu0  ;;  %10771 = vmatprep.subr.bf16.mxu1 %v11991_v30  ;;  %v3007_v56 = vmax.f32 %v17368_v10, 1e-24  ;;  %v15698_v11 = vpop.permute.xlu1 %6424  ;;  %6610 = vperm.xlu1 %11481, %v6245_v17   ;;  %v4870_v30 = vrot.slane %v15649_v6, %v14908_v53  ;;  %v4744_v17 = vrot.slane %v15611_v46, %v14908_v53  ;;  %12254 = vrsqrt.f32 %v3010_v18  ;;  %v17371_v45 = vld [vmem:[#allocation92_spill] sm:$0xff]  ;;  %v17372_v23 = vld [vmem:[#allocation93_spill] sm:$0xff]  ;;  %v17374_v18 = vld [vmem:[#allocation94_spill] sm:$0xff] }
 0x315   :  { %v9828_v12 = vpop.f32.mrf.mxu1  ;;  %17369 = vst [vmem:[#allocation70_spill] sm:$0xff] %v15698_v11  ;;  %v4863_v48 = vrot.slane %v15649_v6, %v14905_v49  ;;  %v15707_v36 = vpop.eup %12234  ;;  %v3009_v11 = vmax.f32 %v17371_v45, 1e-24  ;;  %v11994_v46 = vld [vmem:[%s17077_s1 + $0xba4] ss:$16 sps:$4 sm:$0xff]  }
 0x316   :  { %v6247_v12 = vcombine.low %v4709_v42, %v4716_v39  ;;  %v15716_v10 = vpop.eup %12236  ;;  %v15719_v6 = vpop.permute.xlu0 %6457  ;;  %12256 = vrsqrt.f32 %v3007_v56  ;;  %v3014_v42 = vmax.f32 %v17372_v23, 1e-24  ;;  %6643 = vperm.xlu0 %11480, %v6256_v59   ;;  %v3011_v45 = vmax.f32 %v17374_v18, 1e-24  ;;  %v11997_v59 = vld [vmem:[%s17077_s1 + $0xbac] ss:$16 sps:$4 sm:$0xff]  }
 0x317   :  { %10731 = vmatpush2.bf16.xpose.msra.mxu0 %v11986_v41  ;;  %v15721_v47 = vpop.eup %12238  ;;  %v6258_v20 = vcombine.low %v4863_v48, %v4870_v30  ;;  %v4891_v41 = vrot.slane %v15665_v22, %v14905_v49  ;;  %v4898_v56 = vrot.slane %v15665_v22, %v14908_v53  ;;  %12258 = vrsqrt.f32 %v3012_v58  ;;  %v17375_v48 = vld [vmem:[#allocation95_spill] sm:$0xff] }
 0x318   :  { %v15724_v39 = vpop.permute.xlu1 %6430  ;;  %6616 = vperm.xlu1 %11481, %v6247_v12   ;;  %v15729_v40 = vpop.eup %12240  ;;  %v6249_v12 = vcombine.low %v4737_v33, %v4744_v17  ;;  %v4765_v23 = vrot.slane %v15622_v38, %v14905_v49  ;;  %10732 = vmatprep.subr.bf16.mxu0 %v11994_v46  ;;  %12260 = vrsqrt.f32 %v3009_v11  ;;  %v3016_v30 = vmax.f32 %v17375_v48, 1e-24  ;;  %v11992_v58 = vld [vmem:[%s17077_s1 + $0xba0] ss:$16 sps:$4 sm:$0xff]   ;;  %v17377_v17 = vld [vmem:[#allocation96_spill] sm:$0xff] }
 0x319   :  { %17373 = vst [vmem:[#allocation71_spill] sm:$0xff] %v15724_v39  ;;  %v4772_v39 = vrot.slane %v15622_v38, %v14908_v53  ;;  %10772 = vmatpush2.bf16.xpose.msra.mxu1 %v11989_v1  ;;  %v17376_v18 = vlaneseq  ;;  %v15752_v33 = vpop.eup %12242  ;;  %12262 = vrsqrt.f32 %v3014_v42  ;;  %v3013_v38 = vmax.f32 %v17377_v17, 1e-24  ;;  %v17379_v46 = vld [vmem:[#allocation97_spill] sm:$0xff] }
 0x31a   :  { %v15747_v22 = vpop.permute.xlu0 %6463  ;;  %10773 = vmatprep.subr.bf16.mxu1 %v11997_v59  ;;  %6649 = vperm.xlu0 %11480, %v6258_v20   ;;  %v15757_v11 = vpop.eup %12244  ;;  %12264 = vrsqrt.f32 %v3011_v45  ;;  %v3018_v48 = vmax.f32 %v17379_v46, 1e-24  ;;  %v4926_v59 = vrot.slane %v15695_v3, %v14908_v53  ;;  %v6260_v52 = vcombine.low %v4891_v41, %v4898_v56  ;;  %v11995_v45 = vld [vmem:[%s17077_s1 + $0xba8] ss:$16 sps:$4 sm:$0xff]   ;;  %v17381_v56 = vld [vmem:[#allocation103_spill] sm:$0xff] }
 0x31b   :  { %v15745_v24 = vand.u32 127, %v17376_v18  ;;  %v4919_v18 = vrot.slane %v15695_v3, %v14905_v49  ;;  %v6251_v61 = vcombine.low %v4765_v23, %v4772_v39  ;;  %v4793_v42 = vrot.slane %v15644_v62, %v14905_v49  ;;  %v17380_v39 = vld [vmem:[#allocation98_spill] sm:$0xff] }
 0x31c   :  { %v15755_v1 = vpop.permute.xlu1 %6436  ;;  %6622 = vperm.xlu1 %11481, %v6249_v12   ;;  %v4800_v20 = vrot.slane %v15644_v62, %v14908_v53  ;;  %v15771_v12 = vpop.eup %12246  ;;  %12266 = vrsqrt.f32 %v3016_v30  ;;  %v3015_v41 = vmax.f32 %v17380_v39, 1e-24  ;;  %v12000_v30 = vld [vmem:[%s17077_s1 + $0xb84] ss:$16 sps:$4 sm:$0xff]   ;;  %v4954_v39 = vrot.slane %v15707_v36, %v14908_v53 }
 0x31d   :  { %17378 = vst [vmem:[#allocation72_spill] sm:$0xff] %v15755_v1  ;;  %v6933_v17 = vadd.s32 4294967288, %v15745_v24  ;;  %v15776_v3 = vpop.eup %12248  ;;  %12268 = vrsqrt.f32 %v3013_v38  ;;  %v4947_v38 = vrot.slane %v15707_v36, %v14905_v49  ;;  %v6940_v55 = vadd.s32 4294967280, %v15745_v24 }
 0x31e   :  { %v15774_v46 = vpop.permute.xlu0 %6469  ;;  %6655 = vperm.xlu0 %11480, %v6260_v52   ;;  %v12003_v52 = vld [vmem:[%s17077_s1 + $0xb8c] ss:$16 sps:$4 sm:$0xff]   ;;  %12270 = vrsqrt.f32 %v3018_v48  ;;  %v6253_v23 = vcombine.low %v4793_v42, %v4800_v20  ;;  %v15808_v14 = vsub.s32 %v15745_v24, %v14884_v16  ;;  %v11998_v42 = vld [vmem:[%s17077_s1 + $0xb80] ss:$16 sps:$4 sm:$0xff]   ;;  %v6989_v21 = vadd.s32 4294967224, %v15745_v24 }
 0x31f   :  { %10733 = vmatpush2.bf16.xpose.msra.mxu0 %v11992_v58  ;;  %v15785_v1 = vpop.eup %12250  ;;  %v6262_v58 = vcombine.low %v4919_v18, %v4926_v59  ;;  %v4828_v18 = vrot.slane %v15660_v34, %v14908_v53  ;;  %v17384_v59 = vld [vmem:[#allocation106_spill] sm:$0xff]  ;;  %v15803_v36 = vsub.s32 %v6933_v17, %v14884_v16  ;;  %12272 = vrsqrt.f32 %v3015_v41  ;;  %v17385_v20 = vld [vmem:[#allocation108_spill] sm:$0xff] }
 0x320   :  { %v15780_v62 = vpop.permute.xlu1 %6442  ;;  %6628 = vperm.xlu1 %11481, %v6251_v61   ;;  %v15795_v61 = vpop.eup %12252  ;;  %10734 = vmatprep.subr.bf16.mxu0 %v12000_v30  ;;  %v6947_v17 = vadd.s32 4294967272, %v15745_v24  ;;  %v4982_v41 = vrot.slane %v15721_v47, %v14908_v53  ;;  %v5003_v7 = vrot.slane %v15752_v33, %v14905_v49  ;;  %v4940_v31 = vrot.slane %v15729_v40, %v14908_v53 }
 0x321   :  { %17382 = vst [vmem:[#allocation73_spill] sm:$0xff] %v15780_v62  ;;  %v4821_v62 = vrot.slane %v15660_v34, %v14905_v49  ;;  %10774 = vmatpush2.bf16.xpose.msra.mxu1 %v11995_v45  ;;  %v15815_v34 = vpop.eup %12254  ;;  %v7124_v8 = vrot.slane %v15690_v43, %v15803_v36  ;;  %v6264_v45 = vcombine.low %v4947_v38, %v4954_v39  ;;  %v12001_v43 = vld [vmem:[%s17077_s1 + $0xb88] ss:$16 sps:$4 sm:$0xff]  }
 0x322   :  { %v15810_v48 = vpop.permute.xlu0 %6475  ;;  %10775 = vmatprep.subr.bf16.mxu1 %v12003_v52  ;;  %6661 = vperm.xlu0 %11480, %v6262_v58   ;;  %v4975_v52 = vrot.slane %v15721_v47, %v14905_v49  ;;  %v4849_v58 = vrot.slane %v15675_v35, %v14905_v49  ;;  %v6954_v47 = vadd.s32 4294967264, %v15745_v24 }
 0x323   :  { %v15819_v60 = vpop.eup %12256  ;;  %v6255_v26 = vcombine.low %v4821_v62, %v4828_v18  ;;  %v6961_v18 = vadd.s32 4294967256, %v15745_v24 }
 0x324   :  { %v6449_v30 = vpop.permute.xlu1 %6448  ;;  %6634 = vperm.xlu1 %11481, %v6253_v23   ;;  %v4856_v23 = vrot.slane %v15675_v35, %v14908_v53  ;;  %v15835_v57 = vpop.eup %12258  ;;  %v15848_v35 = vsub.s32 %v6947_v17, %v14884_v16  ;;  %v6266_v13 = vcombine.low %v4975_v52, %v4982_v41  ;;  %v5010_v17 = vrot.slane %v15752_v33, %v14908_v53 }
 0x325   :  { %v7120_v54 = vrot.slane %v6449_v30, %v15808_v14  ;;  %v15838_v30 = vsub.s32 %v6940_v55, %v14884_v16  ;;  %v15845_v39 = vpop.eup %12260  ;;  %v4884_v52 = vrot.slane %v15700_v29, %v14908_v53  ;;  %v15873_v33 = vsub.s32 %v6989_v21, %v14884_v16 }
 0x326   :  { %v15843_v38 = vpop.permute.xlu0 %6481  ;;  %6667 = vperm.xlu0 %11480, %v6264_v45   ;;  %v4877_v45 = vrot.slane %v15700_v29, %v14905_v49  ;;  %v7134_v0 = vrot.slane %v15719_v6, %v15848_v35  ;;  %v6257_v15 = vcombine.low %v4849_v58, %v4856_v23  ;;  %v15876_v41 = vsub.s32 %v6954_v47, %v14884_v16  ;;  %v12004_v6 = vld [vmem:[%s17077_s1 + $0xb60] ss:$16 sps:$4 sm:$0xff]  }
 0x327   :  { %v7125_v62 = vsel %vm6938_vm0, %v7124_v8, %v7120_v54  ;;  %10735 = vmatpush2.bf16.xpose.msra.mxu0 %v11998_v42  ;;  %v12006_v54 = vld [vmem:[%s17077_s1 + $0xb64] ss:$16 sps:$4 sm:$0xff]   ;;  %v15856_v8 = vpop.eup %12262  ;;  %v15888_v21 = vsub.s32 %v6961_v18, %v14884_v16  ;;  %v6975_v58 = vadd.s32 4294967240, %v15745_v24 }
 0x328   :  { %v6455_v55 = vpop.permute.xlu1 %6454  ;;  %6640 = vperm.xlu1 %11481, %v6255_v26   ;;  %v12009_v26 = vld [vmem:[%s17077_s1 + $0xb6c] ss:$16 sps:$4 sm:$0xff]   ;;  %v15866_v44 = vpop.eup %12264  ;;  %10736 = vmatprep.subr.bf16.mxu0 %v12006_v54  ;;  %v6268_v54 = vcombine.low %v5003_v7, %v5010_v17  ;;  %v6259_v19 = vcombine.low %v4877_v45, %v4884_v52  ;;  %v7003_v45 = vadd.s32 4294967208, %v15745_v24 }
 0x329   :  { %v7129_v42 = vrot.slane %v6455_v55, %v15838_v30  ;;  %10776 = vmatpush2.bf16.xpose.msra.mxu1 %v12001_v43  ;;  %v6968_v55 = vadd.s32 4294967248, %v15745_v24  ;;  %v15885_v29 = vpop.eup %12266  ;;  %v7144_v18 = vrot.slane %v15747_v22, %v15888_v21 }
 0x32a   :  { %v15880_v63 = vpop.permute.xlu0 %6487  ;;  %10777 = vmatprep.subr.bf16.mxu1 %v12009_v26  ;;  %6673 = vperm.xlu0 %11480, %v6266_v13   ;;  %v15892_v47 = vpop.eup %12268  ;;  %v5038_v26 = vrot.slane %v15771_v12, %v14908_v53  ;;  %v4905_v13 = vrot.slane %v15716_v10, %v14905_v49 }
 0x32b   :  { %v7130_v32 = vsel %vm6945_vm1, %v7129_v42, %v7125_v62  ;;  %v5031_v42 = vrot.slane %v15771_v12, %v14905_v49  ;;  %v15911_v7 = vsub.s32 %v6968_v55, %v14884_v16  ;;  %v6982_v12 = vadd.s32 4294967232, %v15745_v24 }
 0x32c   :  { %v6461_v23 = vpop.permute.xlu1 %6460  ;;  %v7135_v43 = vsel %vm6952_vm2, %v7134_v0, %v7130_v32  ;;  %6646 = vperm.xlu1 %11481, %v6257_v15   ;;  %v4912_v15 = vrot.slane %v15716_v10, %v14908_v53  ;;  %v12007_v32 = vld [vmem:[%s17077_s1 + $0xb68] ss:$16 sps:$4 sm:$0xff]   ;;  %v15908_v0 = vpop.eup %12270  ;;  %v15919_v10 = vsub.s32 %v6975_v58, %v14884_v16  ;;  %v5059_v55 = vrot.slane %v15785_v1, %v14905_v49 }
 0x32d   :  { %v7139_v62 = vrot.slane %v6461_v23, %v15876_v41  ;;  %v6270_v25 = vcombine.low %v5031_v42, %v5038_v26  ;;  %v5066_v58 = vrot.slane %v15785_v1, %v14908_v53  ;;  %v15942_v1 = vsub.s32 %v6982_v12, %v14884_v16 }
 0x32e   :  { %v15915_v17 = vpop.permute.xlu0 %6493  ;;  %6679 = vperm.xlu0 %11480, %v6268_v54   ;;  %v4933_v54 = vrot.slane %v15729_v40, %v14905_v49  ;;  %v6996_v42 = vadd.s32 4294967216, %v15745_v24  ;;  %v7017_v40 = vadd.s32 4294967192, %v15745_v24 }
 0x32f   :  { %v7140_v22 = vsel %vm6959_vm3, %v7139_v62, %v7135_v43  ;;  %10737 = vmatpush2.bf16.xpose.msra.mxu0 %v12004_v6  ;;  %v12012_v43 = vld [vmem:[%s17077_s1 + $0xb44] ss:$16 sps:$4 sm:$0xff]   ;;  %v15927_v62 = vpop.eup %12272 }
 0x330   :  { %v6467_v52 = vpop.permute.xlu1 %6466  ;;  %v7145_v23 = vsel %vm6966_vm4, %v7144_v18, %v7140_v22  ;;  %6652 = vperm.xlu1 %11481, %v6259_v19   ;;  %v12015_v19 = vld [vmem:[%s17077_s1 + $0xb4c] ss:$16 sps:$4 sm:$0xff]   ;;  %v7154_v18 = vrot.slane %v15774_v46, %v15919_v10  ;;  %v6261_v22 = vcombine.low %v4905_v13, %v4912_v15  ;;  %10738 = vmatprep.subr.bf16.mxu0 %v12012_v43  ;;  %v12010_v46 = vld [vmem:[%s17077_s1 + $0xb40] ss:$16 sps:$4 sm:$0xff]  }
 0x331   :  { %v7149_v6 = vrot.slane %v6467_v52, %v15911_v7  ;;  %10778 = vmatpush2.bf16.xpose.msra.mxu1 %v12007_v32  ;;  %v15952_v13 = vsub.s32 %v7003_v45, %v14884_v16  ;;  %v5087_v43 = vrot.slane %v15815_v34, %v14905_v49  ;;  %v7164_v45 = vrot.slane %v15810_v48, %v15873_v33 }
 0x332   :  { %v15946_v52 = vpop.permute.xlu0 %6499  ;;  %10779 = vmatprep.subr.bf16.mxu1 %v12015_v19  ;;  %6685 = vperm.xlu0 %11480, %v6270_v25   ;;  %v6263_v19 = vcombine.low %v4933_v54, %v4940_v31  ;;  %v4961_v25 = vrot.slane %v15757_v11, %v14905_v49  ;;  %v17386_v31 = vmax.f32 %v17381_v56, 1e-24  ;;  %v5122_v56 = vrot.slane %v15835_v57, %v14908_v53 }
 0x333   :  { %v7150_v26 = vsel %vm6973_vm5, %v7149_v6, %v7145_v23  ;;  %v6272_v23 = vcombine.low %v5059_v55, %v5066_v58  ;;  %v5094_v6 = vrot.slane %v15815_v34, %v14908_v53  ;;  %v12013_v55 = vld [vmem:[%s17077_s1 + $0xb48] ss:$16 sps:$4 sm:$0xff]   ;;  %v15971_v58 = vsub.s32 %v6996_v42, %v14884_v16 }
 0x334   :  { %v6473_v15 = vpop.permute.xlu1 %6472  ;;  %v7155_v32 = vsel %vm6980_vm6, %v7154_v18, %v7150_v26  ;;  %6658 = vperm.xlu1 %11481, %v6261_v22   ;;  %v4968_v18 = vrot.slane %v15757_v11, %v14908_v53  ;;  %v7010_v34 = vadd.s32 4294967200, %v15745_v24  ;;  %12274 = vrsqrt.f32 %v17386_v31 }
 0x335   :  { %v7159_v12 = vrot.slane %v6473_v15, %v15942_v1  ;;  %v15980_v11 = vsub.s32 %v7017_v40, %v14884_v16  ;;  %v5115_v42 = vrot.slane %v15835_v57, %v14905_v49  ;;  %v12018_v15 = vld [vmem:[%s17077_s1 + $0xb24] ss:$16 sps:$4 sm:$0xff]   ;;  %v4989_v40 = vrot.slane %v15776_v3, %v14905_v49 }
 0x336   :  { %v15975_v48 = vpop.permute.xlu0 %6505  ;;  %6691 = vperm.xlu0 %11480, %v6272_v23   ;;  %v7174_v23 = vrot.slane %v15843_v38, %v15952_v13  ;;  %v16001_v57 = vsub.s32 %v7010_v34, %v14884_v16  ;;  %v12016_v38 = vld [vmem:[%s17077_s1 + $0xb20] ss:$16 sps:$4 sm:$0xff]   ;;  %v5150_v34 = vrot.slane %v15856_v8, %v14908_v53  ;;  %v17387_v31 = vmax.f32 %v17384_v59, 1e-24  ;;  %v17388_v59 = vld [vmem:[#allocation110_spill] sm:$0xff] }
 0x337   :  { %v7160_v22 = vsel %vm6987_vm7, %v7159_v12, %v7155_v32  ;;  %10739 = vmatpush2.bf16.xpose.msra.mxu0 %v12010_v46  ;;  %v6274_v32 = vcombine.low %v5087_v43, %v5094_v6  ;;  %v12021_v12 = vld [vmem:[%s17077_s1 + $0xb2c] ss:$16 sps:$4 sm:$0xff]   ;;  %v7024_v43 = vadd.s32 4294967184, %v15745_v24 }
 0x338   :  { %v6479_v54 = vpop.permute.xlu1 %6478  ;;  %v7165_v26 = vsel %vm6994_vm8, %v7164_v45, %v7160_v22  ;;  %6664 = vperm.xlu1 %11481, %v6263_v19   ;;  %v6265_v45 = vcombine.low %v4961_v25, %v4968_v18  ;;  %v4996_v19 = vrot.slane %v15776_v3, %v14908_v53  ;;  %10740 = vmatprep.subr.bf16.mxu0 %v12018_v15  ;;  %v7031_v25 = vadd.s32 4294967176, %v15745_v24 }
 0x339   :  { %v7169_v46 = vrot.slane %v6479_v54, %v15971_v58  ;;  %10780 = vmatpush2.bf16.xpose.msra.mxu1 %v12013_v55  ;;  %v5143_v55 = vrot.slane %v15856_v8, %v14905_v49  ;;  %12276 = vrsqrt.f32 %v17387_v31  ;;  %v7184_v24 = vrot.slane %v15880_v63, %v15980_v11  ;;  %v12019_v8 = vld [vmem:[%s17077_s1 + $0xb28] ss:$16 sps:$4 sm:$0xff]  }
 0x33a   :  { %v16005_v22 = vpop.permute.xlu0 %6511  ;;  %10781 = vmatprep.subr.bf16.mxu1 %v12021_v12  ;;  %6697 = vperm.xlu0 %11480, %v6274_v32   ;;  %v6267_v15 = vcombine.low %v4989_v40, %v4996_v19  ;;  %v5024_v32 = vrot.slane %v15795_v61, %v14908_v53  ;;  %v3026_v12 = vmax.f32 %v17388_v59, 1e-24  ;;  %v17390_v31 = vmax.f32 %v17383_v37, 1e-24 }
 0x33b   :  { %v7170_v6 = vsel %vm7001_vm9, %v7169_v46, %v7165_v26  ;;  %v6276_v26 = vcombine.low %v5115_v42, %v5122_v56  ;;  %v5017_v46 = vrot.slane %v15795_v61, %v14905_v49  ;;  %v17389_v56 = vmax.f32 %v17385_v20, 1e-24 }
 0x33c   :  { %v6485_v3 = vpop.permute.xlu1 %6484  ;;  %v7175_v18 = vsel %vm17088_vm10, %v7174_v23, %v7170_v6  ;;  %6670 = vperm.xlu1 %11481, %v6265_v45   ;;  %v16030_v23 = vsub.s32 %v7024_v43, %v14884_v16  ;;  %v16038_v61 = vsub.s32 %v7031_v25, %v14884_v16  ;;  %v6278_v19 = vcombine.low %v5143_v55, %v5150_v34  ;;  %v12024_v43 = vld [vmem:[%s17077_s1 + $0xb04] ss:$16 sps:$4 sm:$0xff]  }
 0x33d   :  { %v7179_v54 = vrot.slane %v6485_v3, %v16001_v57  ;;  %12278 = vrsqrt.f32 %v17389_v56  ;;  %v5178_v20 = vrot.slane %v15885_v29, %v14908_v53  ;;  %v5045_v25 = vrot.slane %v15819_v60, %v14905_v49  ;;  %v12027_v3 = vld [vmem:[%s17077_s1 + $0xb0c] ss:$16 sps:$4 sm:$0xff]  }
 0x33e   :  { %v16033_v63 = vpop.permute.xlu0 %6517  ;;  %6703 = vperm.xlu0 %11480, %v6276_v26   ;;  %v6269_v55 = vcombine.low %v5017_v46, %v5024_v32  ;;  %v5052_v34 = vrot.slane %v15819_v60, %v14908_v53  ;;  %12280 = vrsqrt.f32 %v17390_v31 }
 0x33f   :  { %v7180_v42 = vsel %vm7015_vm11, %v7179_v54, %v7175_v18  ;;  %10741 = vmatpush2.bf16.xpose.msra.mxu0 %v12016_v38  ;;  %v5171_v38 = vrot.slane %v15885_v29, %v14905_v49  ;;  %v7194_v18 = vrot.slane %v15915_v17, %v16038_v61  ;;  %v17391_v29 = vld [vmem:[#allocation105_spill] sm:$0xff]  ;;  %12282 = vrsqrt.f32 %v3026_v12 }
 0x340   :  { %v6491_v40 = vpop.permute.xlu1 %6490  ;;  %v7185_v45 = vsel %vm7022_vm12, %v7184_v24, %v7180_v42  ;;  %6676 = vperm.xlu1 %11481, %v6267_v15   ;;  %10742 = vmatprep.subr.bf16.mxu0 %v12024_v43  ;;  %v3019_v54 = vmax.f32 %v17391_v29, 1e-24  ;;  %v12022_v17 = vld [vmem:[%s17077_s1 + $0xb00] ss:$16 sps:$4 sm:$0xff]   ;;  %v17392_v15 = vld [vmem:[#allocation112_spill] sm:$0xff]  ;;  %v5199_v42 = vrot.slane %v15908_v0, %v14905_v49  ;;  %v5206_v12 = vrot.slane %v15908_v0, %v14908_v53  ;;  %v17395_v0 = vld [vmem:[#allocation114_spill] sm:$0xff] }
 0x341   :  { %v7189_v6 = vrot.slane %v6491_v40, %v16030_v23  ;;  %10782 = vmatpush2.bf16.xpose.msra.mxu1 %v12019_v8  ;;  %v3028_v60 = vmax.f32 %v17392_v15, 1e-24  ;;  %v12275_v32 = vpop.eup %12274  ;;  %v7203_v8 = vrot.slane %v15946_v52, %v15803_v36  ;;  %v6280_v56 = vcombine.low %v5171_v38, %v5178_v20  ;;  %v12025_v52 = vld [vmem:[%s17077_s1 + $0xb08] ss:$16 sps:$4 sm:$0xff]   ;;  %v17394_v43 = vld [vmem:[#allocation107_spill] sm:$0xff]  ;;  %v17396_v15 = vld [vmem:[#allocation109_spill] sm:$0xff] }
 0x342   :  { %v16062_v24 = vpop.permute.xlu0 %6523  ;;  %10783 = vmatprep.subr.bf16.mxu1 %v12027_v3  ;;  %6709 = vperm.xlu0 %11480, %v6278_v19   ;;  %v6271_v40 = vcombine.low %v5045_v25, %v5052_v34  ;;  %v5080_v19 = vrot.slane %v15845_v39, %v14908_v53  ;;  %12284 = vrsqrt.f32 %v3019_v54  ;;  %v3030_v38 = vmax.f32 %v17395_v0, 1e-24 }
 0x343   :  { %v7190_v26 = vsel %vm7029_vm13, %v7189_v6, %v7185_v45  ;;  %v5073_v45 = vrot.slane %v15845_v39, %v14905_v49  ;;  %v3021_v6 = vmax.f32 %v17394_v43, 1e-24  ;;  %12286 = vrsqrt.f32 %v3028_v60 }
 0x344   :  { %v16069_v46 = vsel %vm7036_vm14, %v7194_v18, %v7190_v26  ;;  %v6497_v37 = vpop.permute.xlu1 %6496  ;;  %6682 = vperm.xlu1 %11481, %v6269_v55   ;;  %v6282_v25 = vcombine.low %v5199_v42, %v5206_v12  ;;  %v5227_v55 = vrot.slane %v12275_v32, %v14905_v49  ;;  %v5234_v34 = vrot.slane %v12275_v32, %v14908_v53  ;;  %v17397_v32 = vld [vmem:[#allocation116_spill] sm:$0xff] }
 0x345   :  { %17393 = vst [vmem:[#allocation74_spill] sm:$0xff] %v16069_v46  ;;  %v7199_v59 = vrot.slane %v6497_v37, %v15808_v14  ;;  %v7213_v29 = vrot.slane %v15975_v48, %v15848_v35  ;;  %v6273_v54 = vcombine.low %v5073_v45, %v5080_v19  ;;  %v5101_v26 = vrot.slane %v15866_v44, %v14905_v49  ;;  %v17458_v46 = vld [vmem:[#allocation25_spill] sm:$0xff] }
 0x346   :  { %v16087_v18 = vpop.permute.xlu0 %6529  ;;  %6715 = vperm.xlu0 %11480, %v6280_v56   ;;  %v12277_v31 = vpop.eup %12276  ;;  %12288 = vrsqrt.f32 %v3021_v6  ;;  %v3023_v60 = vmax.f32 %v17396_v15, 1e-24  ;;  %v5129_v45 = vrot.slane %v15892_v47, %v14905_v49  ;;  %v7223_v19 = vrot.slane %v16005_v22, %v15888_v21 }
 0x347   :  { %v7204_v3 = vsel %vm6938_vm0, %v7203_v8, %v7199_v59  ;;  %10743 = vmatpush2.bf16.xpose.msra.mxu0 %v12022_v17  ;;  %v5108_v17 = vrot.slane %v15866_v44, %v14908_v53  ;;  %12290 = vrsqrt.f32 %v3030_v38  ;;  %v3032_v59 = vmax.f32 %v17397_v32, 1e-24 }
 0x348   :  { %v6503_v20 = vpop.permute.xlu1 %6502  ;;  %6688 = vperm.xlu1 %11481, %v6271_v40   ;;  %v5255_v44 = vrot.slane %v12277_v31, %v14905_v49  ;;  %v5262_v40 = vrot.slane %v12277_v31, %v14908_v53  ;;  %v5136_v6 = vrot.slane %v15892_v47, %v14908_v53  ;;  %12292 = vrsqrt.f32 %v3023_v60 }
 0x349   :  { %v7208_v39 = vrot.slane %v6503_v20, %v15838_v30  ;;  %10784 = vmatpush2.bf16.xpose.msra.mxu1 %v12025_v52  ;;  %v6284_v52 = vcombine.low %v5227_v55, %v5234_v34  ;;  %v6275_v43 = vcombine.low %v5101_v26, %v5108_v17  ;;  %12294 = vrsqrt.f32 %v3032_v59 }
 0x34a   :  { %v16101_v8 = vpop.permute.xlu0 %6535  ;;  %6721 = vperm.xlu0 %11480, %v6282_v25   ;;  %v12279_v12 = vpop.eup %12278  ;;  %v17399_v25 = vld [vmem:[#allocation118_spill] sm:$0xff]  ;;  %v7233_v26 = vrot.slane %v16033_v63, %v15919_v10  ;;  %v6277_v17 = vcombine.low %v5129_v45, %v5136_v6  ;;  %v5157_v15 = vrot.slane %v15927_v62, %v14905_v49  ;;  %v5164_v60 = vrot.slane %v15927_v62, %v14908_v53 }
 0x34b   :  { %v7209_v37 = vsel %vm6945_vm1, %v7208_v39, %v7204_v3  ;;  %v17398_v3 = vld [vmem:[#allocation111_spill] sm:$0xff]  ;;  %v12281_v39 = vpop.eup %12280  ;;  %v3034_v31 = vmax.f32 %v17399_v25, 1e-24 }
 0x34c   :  { %v6509_v48 = vpop.permute.xlu1 %6508  ;;  %v7214_v42 = vsel %vm6952_vm2, %v7213_v29, %v7209_v37  ;;  %6694 = vperm.xlu1 %11481, %v6273_v54   ;;  %v3025_v0 = vmax.f32 %v17398_v3, 1e-24  ;;  %v12283_v34 = vpop.eup %12282  ;;  %v5283_v29 = vrot.slane %v12279_v12, %v14905_v49  ;;  %v5290_v54 = vrot.slane %v12279_v12, %v14908_v53  ;;  %v17400_v37 = vld [vmem:[#allocation113_spill] sm:$0xff] }
 0x34d   :  { %v7218_v56 = vrot.slane %v6509_v48, %v15876_v41  ;;  %v3027_v32 = vmax.f32 %v17400_v37, 1e-24  ;;  %v5311_v45 = vrot.slane %v12283_v34, %v14905_v49  ;;  %v5185_v6 = vrot.slane %v12281_v39, %v14905_v49 }
 0x34e   :  { %10745 = vmatmul.mubr.bf16.vlgmr.msra.gmra.mxu0 %v13214_v51  ;;  %v16117_v20 = vpop.permute.xlu0 %6541  ;;  %6727 = vperm.xlu0 %11480, %v6284_v52   ;;  %v6286_v51 = vcombine.low %v5255_v44, %v5262_v40  ;;  %12296 = vrsqrt.f32 %v3025_v0  ;;  %v6288_v62 = vcombine.low %v5283_v29, %v5290_v54  ;;  %v7243_v52 = vrot.slane %v16062_v24, %v15873_v33  ;;  %v17403_v0 = vld [vmem:[#allocation115_spill] sm:$0xff] }
 0x34f   :  { %v7219_v38 = vsel %vm6959_vm3, %v7218_v56, %v7214_v42  ;;  %v12285_v42 = vpop.eup %12284  ;;  %12298 = vrsqrt.f32 %v3034_v31  ;;  %v5192_v3 = vrot.slane %v12281_v39, %v14908_v53 }
 0x350   :  { %v6515_v22 = vpop.permute.xlu1 %6514  ;;  %v7224_v55 = vsel %vm6966_vm4, %v7223_v19, %v7219_v38  ;;  %6700 = vperm.xlu1 %11481, %v6275_v43   ;;  %10786 = vmatmul.mubr.bf16.vlgmr.msra.gmra.mxu1 %v13216_v5  ;;  %v17402_v5 = vld [vmem:[#allocation120_spill] sm:$0xff]  ;;  %v12287_v44 = vpop.eup %12286  ;;  %v5318_v19 = vrot.slane %v12283_v34, %v14908_v53  ;;  %v6279_v43 = vcombine.low %v5157_v15, %v5164_v60  ;;  %12300 = vrsqrt.f32 %v3027_v32  ;;  %v17405_v60 = vld [vmem:[#allocation117_spill] sm:$0xff] }
 0x351   :  { %v7228_v47 = vrot.slane %v6515_v22, %v15911_v7  ;;  %v3036_v12 = vmax.f32 %v17402_v5, 1e-24  ;;  %v3029_v38 = vmax.f32 %v17403_v0, 1e-24  ;;  %v5339_v29 = vrot.slane %v12287_v44, %v14905_v49 }
 0x352   :  { %v16133_v48 = vpop.permute.xlu0 %6547  ;;  %6733 = vperm.xlu0 %11480, %v6286_v51   ;;  %v6290_v39 = vcombine.low %v5311_v45, %v5318_v19  ;;  %v5346_v54 = vrot.slane %v12287_v44, %v14908_v53  ;;  %v5213_v15 = vrot.slane %v12285_v42, %v14905_v49  ;;  %v3031_v37 = vmax.f32 %v17405_v60, 1e-24 }
 0x353   :  { %v7229_v59 = vsel %vm6973_vm5, %v7228_v47, %v7224_v55  ;;  %17401 = vst [vmem:[#allocation75_spill] sm:$0xff] %v16133_v48  ;;  %v12289_v22 = vpop.eup %12288  ;;  %12302 = vrsqrt.f32 %v3036_v12  ;;  %v3038_v55 = vmax.f32 %v14856_v50, 1e-24  ;;  %v5220_v50 = vrot.slane %v12285_v42, %v14908_v53 }
 0x354   :  { %v6521_v63 = vpop.permute.xlu1 %6520  ;;  %v7234_v56 = vsel %vm6980_vm6, %v7233_v26, %v7229_v59  ;;  %6706 = vperm.xlu1 %11481, %v6277_v17   ;;  %v12291_v47 = vpop.eup %12290  ;;  %v7253_v26 = vrot.slane %v16087_v18, %v15952_v13  ;;  %v6281_v17 = vcombine.low %v5185_v6, %v5192_v3  ;;  %12304 = vrsqrt.f32 %v3029_v38 }
 0x355   :  { %v7238_v40 = vrot.slane %v6521_v63, %v15942_v1  ;;  %v12293_v5 = vpop.eup %12292  ;;  %12306 = vrsqrt.f32 %v3038_v55  ;;  %v3040_v12 = vmax.f32 %v14866_v27, 1e-24  ;;  %v6292_v42 = vcombine.low %v5339_v29, %v5346_v54 }
 0x356   :  { %v16146_v31 = vpop.permute.xlu0 %6553  ;;  %6739 = vperm.xlu0 %11480, %v6288_v62   ;;  %v5374_v62 = vrot.slane %v12291_v47, %v14908_v53  ;;  %v7263_v45 = vrot.slane %v16101_v8, %v15980_v11  ;;  %v6283_v19 = vcombine.low %v5213_v15, %v5220_v50  ;;  %v5248_v27 = vrot.slane %v12289_v22, %v14908_v53 }
 0x357   :  { %v7239_v25 = vsel %vm6987_vm7, %v7238_v40, %v7234_v56  ;;  %17404 = vst [vmem:[#allocation76_spill] sm:$0xff] %v16146_v31  ;;  %v12295_v56 = vpop.eup %12294  ;;  %v5367_v40 = vrot.slane %v12291_v47, %v14905_v49  ;;  %12308 = vrsqrt.f32 %v3031_v37  ;;  %v3042_v55 = vmax.f32 %v14886_v2, 1e-24 }
 0x358   :  { %v6527_v34 = vpop.permute.xlu1 %6526  ;;  %v7244_v24 = vsel %vm6994_vm8, %v7243_v52, %v7239_v25  ;;  %6712 = vperm.xlu1 %11481, %v6279_v43   ;;  %v5241_v52 = vrot.slane %v12289_v22, %v14905_v49  ;;  %v17407_v43 = vld [vmem:[#allocation119_spill] sm:$0xff]  ;;  %v3035_v25 = vmax.f32 %v14854_v9, 1e-24  ;;  %12310 = vrsqrt.f32 %v3040_v12 }
 0x359   :  { %v7248_v51 = vrot.slane %v6527_v34, %v15971_v58  ;;  %v3033_v6 = vmax.f32 %v17407_v43, 1e-24  ;;  %v6294_v47 = vcombine.low %v5367_v40, %v5374_v62  ;;  %v7273_v29 = vrot.slane %v16117_v20, %v16038_v61 }
 0x35a   :  { %v16159_v59 = vpop.permute.xlu0 %6559  ;;  %6745 = vperm.xlu0 %11480, %v6290_v39   ;;  %v5402_v39 = vrot.slane %v12295_v56, %v14908_v53  ;;  %v6285_v9 = vcombine.low %v5241_v52, %v5248_v27  ;;  %v5269_v54 = vrot.slane %v12293_v5, %v14905_v49  ;;  %v5276_v2 = vrot.slane %v12293_v5, %v14908_v53  ;;  %v17412_v5 = vld [vmem:[#allocation123_spill] sm:$0xff] }
 0x35b   :  { %v7249_v32 = vsel %vm7001_vm9, %v7248_v51, %v7244_v24  ;;  %17406 = vst [vmem:[#allocation77_spill] sm:$0xff] %v16159_v59  ;;  %v12297_v38 = vpop.eup %12296  ;;  %v5395_v51 = vrot.slane %v12295_v56, %v14905_v49  ;;  %12312 = vrsqrt.f32 %v3033_v6  ;;  %v3039_v60 = vmax.f32 %v14881_v4, 1e-24  ;;  %v17417_v6 = vld [vmem:[#allocation124_spill] sm:$0xff] }
 0x35c   :  { %v6533_v63 = vpop.permute.xlu1 %6532  ;;  %v7254_v18 = vsel %vm17088_vm10, %v7253_v26, %v7249_v32  ;;  %6718 = vperm.xlu1 %11481, %v6281_v17   ;;  %v12299_v24 = vpop.eup %12298  ;;  %v3037_v26 = vmax.f32 %v14861_v28, 1e-24  ;;  %12314 = vrsqrt.f32 %v3035_v25  ;;  %v3044_v12 = vmax.f32 %v17412_v5, 1e-24 }
 0x35d   :  { %v7258_v44 = vrot.slane %v6533_v63, %v16001_v57  ;;  %v12301_v50 = vpop.eup %12300  ;;  %12316 = vrsqrt.f32 %v3042_v55  ;;  %v6296_v28 = vcombine.low %v5395_v51, %v5402_v39  ;;  %v5423_v63 = vrot.slane %v12299_v24, %v14905_v49 }
 0x35e   :  { %v16172_v0 = vpop.permute.xlu0 %6565  ;;  %6751 = vperm.xlu0 %11480, %v6292_v42   ;;  %v5430_v56 = vrot.slane %v12299_v24, %v14908_v53  ;;  %v5304_v4 = vrot.slane %v12297_v38, %v14908_v53  ;;  %12318 = vrsqrt.f32 %v3037_v26  ;;  %v17413_v42 = vld [vmem:[#allocation122_spill] sm:$0xff]  ;;  %v5332_v24 = vrot.slane %v12301_v50, %v14908_v53  ;;  %v17422_v26 = vld [vmem:[#allocation129_spill] sm:$0xff] }
 0x35f   :  { %v7259_v3 = vsel %vm7015_vm11, %v7258_v44, %v7254_v18  ;;  %17408 = vst [vmem:[#allocation78_spill] sm:$0xff] %v16172_v0  ;;  %v6287_v18 = vcombine.low %v5269_v54, %v5276_v2  ;;  %v5297_v44 = vrot.slane %v12297_v38, %v14905_v49  ;;  %v3041_v40 = vmax.f32 %v17413_v42, 1e-24  ;;  %v17452_v0 = vld [vmem:[#allocation68_spill] sm:$0xff] }
 0x360   :  { %v6539_v8 = vpop.permute.xlu1 %6538  ;;  %v7264_v34 = vsel %vm7022_vm12, %v7263_v45, %v7259_v3  ;;  %6724 = vperm.xlu1 %11481, %v6283_v19   ;;  %v12303_v32 = vpop.eup %12302  ;;  %12320 = vrsqrt.f32 %v3039_v60  ;;  %v17415_v19 = vld [vmem:[#allocation125_spill] sm:$0xff]  ;;  %v3043_v3 = vmax.f32 %v17417_v6, 1e-24  ;;  %v6298_v55 = vcombine.low %v5423_v63, %v5430_v56  ;;  %v17423_v63 = vld [vmem:[#allocation128_spill] sm:$0xff] }
 0x361   :  { %v7268_v22 = vrot.slane %v6539_v8, %v16030_v23  ;;  %v12305_v45 = vpop.eup %12304  ;;  %v3046_v52 = vmax.f32 %v17415_v19, 1e-24  ;;  %12322 = vrsqrt.f32 %v3044_v12  ;;  %v5451_v25 = vrot.slane %v12303_v32, %v14905_v49 }
 0x362   :  { %v16186_v15 = vpop.permute.xlu0 %6571  ;;  %6757 = vperm.xlu0 %11480, %v6294_v47   ;;  %v12307_v43 = vpop.eup %12306  ;;  %v5458_v38 = vrot.slane %v12303_v32, %v14908_v53  ;;  %v6289_v8 = vcombine.low %v5297_v44, %v5304_v4  ;;  %12324 = vrsqrt.f32 %v3041_v40  ;;  %v5353_v12 = vrot.slane %v12305_v45, %v14905_v49  ;;  %v17425_v4 = vld [vmem:[#allocation131_spill] sm:$0xff] }
 0x363   :  { %v7269_v17 = vsel %vm7029_vm13, %v7268_v22, %v7264_v34  ;;  %17409 = vst [vmem:[#allocation79_spill] sm:$0xff] %v16186_v15  ;;  %v5325_v34 = vrot.slane %v12301_v50, %v14905_v49  ;;  %v17418_v22 = vld [vmem:[#allocation127_spill] sm:$0xff]  ;;  %12326 = vrsqrt.f32 %v3046_v52  ;;  %v5479_v50 = vrot.slane %v12307_v43, %v14905_v49  ;;  %v17427_v52 = vld [vmem:[#allocation130_spill] sm:$0xff] }
 0x364   :  { %v16190_v37 = vsel %vm7036_vm14, %v7273_v29, %v7269_v17  ;;  %v16192_v20 = vpop.permute.xlu1 %6544  ;;  %6730 = vperm.xlu1 %11481, %v6285_v9   ;;  %v3048_v47 = vmax.f32 %v17418_v22, 1e-24  ;;  %v12309_v39 = vpop.eup %12308  ;;  %v17420_v29 = vld [vmem:[#allocation126_spill] sm:$0xff]  ;;  %12328 = vrsqrt.f32 %v3043_v3  ;;  %v3050_v17 = vmax.f32 %v17422_v26, 1e-24 }
 0x365   :  { %17410 = vst [vmem:[#allocation80_spill] sm:$0xff] %v16190_v37  ;;  %17411 = vst [vmem:[#allocation81_spill] sm:$0xff] %v16192_v20  ;;  %v3045_v9 = vmax.f32 %v17420_v29, 1e-24  ;;  %v12311_v2 = vpop.eup %12310  ;;  %v6300_v60 = vcombine.low %v5451_v25, %v5458_v38  ;;  %v6291_v32 = vcombine.low %v5325_v34, %v5332_v24  ;;  %v5486_v5 = vrot.slane %v12307_v43, %v14908_v53  ;;  %v17428_v34 = vld [vmem:[#allocation133_spill] sm:$0xff]  ;;  %v17429_v29 = vld [vmem:[#allocation132_spill] sm:$0xff] }
 0x366   :  { %v16200_v62 = vpop.permute.xlu0 %6577  ;;  %6763 = vperm.xlu0 %11480, %v6296_v28   ;;  %v5360_v28 = vrot.slane %v12305_v45, %v14908_v53  ;;  %12330 = vrsqrt.f32 %v3048_v47  ;;  %v3052_v42 = vmax.f32 %v17425_v4, 1e-24  ;;  %v3049_v43 = vmax.f32 %v17427_v52, 1e-24 }
 0x367   :  { %17414 = vst [vmem:[#allocation82_spill] sm:$0xff] %v16200_v62  ;;  %12332 = vrsqrt.f32 %v3045_v9  ;;  %v5507_v45 = vrot.slane %v12311_v2, %v14905_v49  ;;  %v5514_v6 = vrot.slane %v12311_v2, %v14908_v53  ;;  %v6302_v25 = vcombine.low %v5479_v50, %v5486_v5 }
 0x368   :  { %v16203_v27 = vpop.permute.xlu1 %6550  ;;  %6736 = vperm.xlu1 %11481, %v6287_v18   ;;  %v3047_v18 = vmax.f32 %v17423_v63, 1e-24  ;;  %v12313_v44 = vpop.eup %12312  ;;  %12334 = vrsqrt.f32 %v3050_v17  ;;  %v6293_v38 = vcombine.low %v5353_v12, %v5360_v28  ;;  %v3054_v24 = vmax.f32 %v17428_v34, 1e-24  ;;  %v17431_v17 = vld [vmem:[#allocation135_spill] sm:$0xff] }
 0x369   :  { %17416 = vst [vmem:[#allocation83_spill] sm:$0xff] %v16203_v27  ;;  %v16227_v19 = vpop.eup %12314  ;;  %v3051_v9 = vmax.f32 %v17429_v29, 1e-24  ;;  %v5409_v28 = vrot.slane %v12313_v44, %v14905_v49  ;;  %v5416_v63 = vrot.slane %v12313_v44, %v14908_v53 }
 0x36a   :  { %v16211_v51 = vpop.permute.xlu0 %6583  ;;  %6769 = vperm.xlu0 %11480, %v6298_v55   ;;  %v12317_v3 = vpop.eup %12316  ;;  %v5381_v55 = vrot.slane %v12309_v39, %v14905_v49  ;;  %12336 = vrsqrt.f32 %v3047_v18  ;;  %v17432_v18 = vld [vmem:[#allocation134_spill] sm:$0xff]  ;;  %v5437_v29 = vrot.slane %v16227_v19, %v14905_v49 }
 0x36b   :  { %17419 = vst [vmem:[#allocation84_spill] sm:$0xff] %v16211_v51  ;;  %v16237_v47 = vpop.eup %12318  ;;  %12338 = vrsqrt.f32 %v3052_v42  ;;  %v5535_v50 = vrot.slane %v12317_v3, %v14905_v49  ;;  %v5542_v12 = vrot.slane %v12317_v3, %v14908_v53  ;;  %v3053_v4 = vmax.f32 %v17432_v18, 1e-24  ;;  %v17435_v3 = vld [vmem:[#allocation3_spill] sm:$0xff]  ;;  %v17437_v18 = vld [vmem:[#allocation4_spill] sm:$0xff] }
 0x36c   :  { %v16214_v54 = vpop.permute.xlu1 %6556  ;;  %6742 = vperm.xlu1 %11481, %v6289_v8   ;;  %v5388_v8 = vrot.slane %v12309_v39, %v14908_v53  ;;  %12340 = vrsqrt.f32 %v3049_v43  ;;  %v6304_v39 = vcombine.low %v5507_v45, %v5514_v6  ;;  %v17433_v43 = vld [vmem:[#allocation5_spill] sm:$0xff] }
 0x36d   :  { %17421 = vst [vmem:[#allocation85_spill] sm:$0xff] %v16214_v54  ;;  %v16242_v2 = vpop.eup %12320  ;;  %12342 = vrsqrt.f32 %v3054_v24  ;;  %v3055_v45 = vmax.f32 %v17433_v43, 1e-24  ;;  %v6306_v34 = vcombine.low %v5535_v50, %v5542_v12  ;;  %v6297_v24 = vcombine.low %v5409_v28, %v5416_v63  ;;  %v17439_v12 = vld [vmem:[#allocation9_spill] sm:$0xff] }
 0x36e   :  { %v16222_v56 = vpop.permute.xlu0 %6589  ;;  %6775 = vperm.xlu0 %11480, %v6300_v60   ;;  %v3056_v60 = vmax.f32 %v17431_v17, 1e-24  ;;  %v6295_v5 = vcombine.low %v5381_v55, %v5388_v8  ;;  %12344 = vrsqrt.f32 %v3051_v9  ;;  %v5444_v9 = vrot.slane %v16227_v19, %v14908_v53  ;;  %v17436_v17 = vld [vmem:[#allocation7_spill] sm:$0xff] }
 0x36f   :  { %17424 = vst [vmem:[#allocation86_spill] sm:$0xff] %v16222_v56  ;;  %v3060_v43 = vmax.f32 %v17437_v18, 1e-24  ;;  %v3059_v28 = vmax.f32 %v17439_v12, 1e-24 }
 0x370   :  { %v16225_v40 = vpop.permute.xlu1 %6562  ;;  %6748 = vperm.xlu1 %11481, %v6291_v32   ;;  %v12323_v32 = vpop.eup %12322  ;;  %12346 = vrsqrt.f32 %v3056_v60 }
 0x371   :  { %17426 = vst [vmem:[#allocation87_spill] sm:$0xff] %v16225_v40  ;;  %v16252_v52 = vpop.eup %12324  ;;  %v5563_v44 = vrot.slane %v12323_v32, %v14905_v49  ;;  %v5570_v55 = vrot.slane %v12323_v32, %v14908_v53  ;;  %12348 = vrsqrt.f32 %v3053_v4 }
 0x372   :  { %v16235_v22 = vpop.permute.xlu0 %6595  ;;  %6781 = vperm.xlu0 %11480, %v6302_v25   ;;  %v12327_v25 = vpop.eup %12326  ;;  %12350 = vrsqrt.f32 %v3055_v45  ;;  %v5465_v45 = vrot.slane %v16237_v47, %v14905_v49 }
 0x373   :  { %v16260_v8 = vpop.eup %12328  ;;  %v6308_v63 = vcombine.low %v5563_v44, %v5570_v55  ;;  %v5591_v19 = vrot.slane %v12327_v25, %v14905_v49 }
 0x374   :  { %v16240_v26 = vpop.permute.xlu1 %6568  ;;  %6754 = vperm.xlu1 %11481, %v6293_v38   ;;  %v3058_v38 = vmax.f32 %v17435_v3, 1e-24  ;;  %v6299_v3 = vcombine.low %v5437_v29, %v5444_v9  ;;  %v17442_v29 = vld [vmem:[#allocation11_spill] sm:$0xff] }
 0x375   :  { %17430 = vst [vmem:[#allocation88_spill] sm:$0xff] %v16240_v26  ;;  %v3061_v9 = vmax.f32 %v17442_v29, 1e-24 }
 0x376   :  { %v16250_v42 = vpop.permute.xlu0 %6601  ;;  %6787 = vperm.xlu0 %11480, %v6304_v39   ;;  %v3057_v39 = vmax.f32 %v17436_v17, 1e-24  ;;  %12352 = vrsqrt.f32 %v3058_v38  ;;  %v5598_v17 = vrot.slane %v12327_v25, %v14908_v53  ;;  %v17441_v38 = vld [vmem:[#allocation63_spill] sm:$0xff]  ;;  %v17443_v25 = vld [vmem:[#allocation62_spill] sm:$0xff] }
 0x377   :  { %v7041_v12 = vrot.slane %v17441_v38, %v15808_v14  ;;  %v7050_v16 = vrot.slane %v17443_v25, %v15838_v30  ;;  %v17446_v25 = vld [vmem:[#allocation16_spill] sm:$0xff] }
 0x378   :  { %v16255_v6 = vpop.permute.xlu1 %6574  ;;  %6760 = vperm.xlu1 %11481, %v6295_v5   ;;  %v12331_v5 = vpop.eup %12330  ;;  %12354 = vrsqrt.f32 %v3057_v39  ;;  %v17445_v39 = vld [vmem:[#allocation55_spill] sm:$0xff]  ;;  %v6310_v29 = vcombine.low %v5591_v19, %v5598_v17  ;;  %v17448_v17 = vld [vmem:[#allocation64_spill] sm:$0xff] }
 0x379   :  { %17434 = vst [vmem:[#allocation89_spill] sm:$0xff] %v16255_v6  ;;  %v16272_v50 = vpop.eup %12332  ;;  %12356 = vrsqrt.f32 %v3060_v43  ;;  %v5619_v38 = vrot.slane %v12331_v5, %v14905_v49  ;;  %v5626_v51 = vrot.slane %v12331_v5, %v14908_v53  ;;  %v17447_v5 = vld [vmem:[#allocation21_spill] sm:$0xff] }
 0x37a   :  { %v16267_v60 = vpop.permute.xlu0 %6607  ;;  %6793 = vperm.xlu0 %11480, %v6306_v34   ;;  %v16276_v4 = vpop.eup %12334  ;;  %v5472_v34 = vrot.slane %v16237_v47, %v14908_v53  ;;  %12358 = vrsqrt.f32 %v3059_v28  ;;  %v3072_v28 = vmax.f32 %v17446_v25, 1e-24  ;;  %v3071_v15 = vmax.f32 %v17447_v5, 1e-24 }
 0x37b   :  { %v16288_v55 = vpop.eup %12336  ;;  %v5647_v25 = vrot.slane %v16276_v4, %v14905_v49 }
 0x37c   :  { %v16270_v32 = vpop.permute.xlu1 %6580  ;;  %6766 = vperm.xlu1 %11481, %v6297_v24   ;;  %v17440_v24 = vld [vmem:[#allocation6_spill] sm:$0xff]  ;;  %v16295_v47 = vpop.eup %12338  ;;  %v6301_v62 = vcombine.low %v5465_v45, %v5472_v34  ;;  %v7060_v45 = vrot.slane %v17448_v17, %v15876_v41 }
 0x37d   :  { %17438 = vst [vmem:[#allocation90_spill] sm:$0xff] %v16270_v32  ;;  %v3062_v18 = vmax.f32 %v17440_v24, 1e-24  ;;  %v7045_v24 = vrot.slane %v17445_v39, %v15803_v36  ;;  %v16301_v43 = vpop.eup %12340  ;;  %v5682_v26 = vrot.slane %v16295_v47, %v14908_v53 }
 0x37e   :  { %v16286_v44 = vpop.permute.xlu0 %6613  ;;  %6799 = vperm.xlu0 %11480, %v6308_v63   ;;  %v5493_v63 = vrot.slane %v16242_v2, %v14905_v49  ;;  %v16311_v32 = vpop.eup %12342 }
 0x37f   :  { %12360 = vrsqrt.f32 %v3062_v18  ;;  %v17449_v18 = vld [vmem:[#allocation57_spill] sm:$0xff] }
 0x380   :  { %v16293_v56 = vpop.permute.xlu1 %6586  ;;  %6772 = vperm.xlu1 %11481, %v6299_v3   ;;  %v5500_v3 = vrot.slane %v16242_v2, %v14908_v53  ;;  %12362 = vrsqrt.f32 %v3061_v9  ;;  %v16317_v2 = vpop.eup %12344  ;;  %v5654_v9 = vrot.slane %v16276_v4, %v14908_v53  ;;  %v5675_v4 = vrot.slane %v16295_v47, %v14905_v49 }
 0x381   :  { %17444 = vst [vmem:[#allocation91_spill] sm:$0xff] %v16293_v56  ;;  %v7046_v56 = vsel %vm6938_vm0, %v7045_v24, %v7041_v12  ;;  %v7055_v12 = vrot.slane %v17449_v18, %v15848_v35  ;;  %v6312_v24 = vcombine.low %v5619_v38, %v5626_v51  ;;  %v16325_v5 = vpop.eup %12346  ;;  %12364 = vrsqrt.f32 %v3072_v28  ;;  %v17450_v51 = vld [vmem:[#allocation54_spill] sm:$0xff] }
 0x382   :  { %v16309_v39 = vpop.permute.xlu0 %6619  ;;  %v7051_v19 = vsel %vm6945_vm1, %v7050_v16, %v7046_v56  ;;  %6805 = vperm.xlu0 %11480, %v6310_v29   ;;  %v6303_v56 = vcombine.low %v5493_v63, %v5500_v3  ;;  %v5528_v29 = vrot.slane %v16252_v52, %v14908_v53  ;;  %v7065_v38 = vrot.slane %v17450_v51, %v15888_v21  ;;  %v16339_v6 = vpop.eup %12348  ;;  %v17451_v63 = vld [vmem:[#allocation18_spill] sm:$0xff] }
 0x383   :  { %v7056_v17 = vsel %vm6952_vm2, %v7055_v12, %v7051_v19  ;;  %v3074_v3 = vmax.f32 %v17451_v63, 1e-24  ;;  %v7361_v28 = vrot.slane %v16235_v22, %v15803_v36  ;;  %v16347_v19 = vpop.eup %12350  ;;  %v5549_v63 = vrot.slane %v16260_v8, %v14905_v49 }
 0x384   :  { %v6593_v34 = vpop.permute.xlu1 %6592  ;;  %6778 = vperm.xlu1 %11481, %v6301_v62   ;;  %v5521_v62 = vrot.slane %v16252_v52, %v14905_v49  ;;  %v7070_v52 = vrot.slane %v17452_v0, %v15911_v7  ;;  %v16356_v0 = vpop.eup %12352  ;;  %12366 = vrsqrt.f32 %v3071_v15 }
 0x385   :  { %v7357_v16 = vrot.slane %v6593_v34, %v15808_v14  ;;  %v7061_v34 = vsel %vm6959_vm3, %v7060_v45, %v7056_v17  ;;  %v5556_v45 = vrot.slane %v16260_v8, %v14908_v53  ;;  %v17453_v17 = vld [vmem:[#allocation61_spill] sm:$0xff]  ;;  %v16367_v8 = vpop.eup %12354  ;;  %12368 = vrsqrt.f32 %v3074_v3 }
 0x386   :  { %v16335_v18 = vpop.permute.xlu0 %6625  ;;  %6811 = vperm.xlu0 %11480, %v6312_v24   ;;  %v6314_v24 = vcombine.low %v5647_v25, %v5654_v9  ;;  %v7075_v59 = vrot.slane %v17453_v17, %v15919_v10  ;;  %v7066_v47 = vsel %vm6966_vm4, %v7065_v38, %v7061_v34  ;;  %v17455_v25 = vld [vmem:[#allocation70_spill] sm:$0xff]  ;;  %v6316_v34 = vcombine.low %v5675_v4, %v5682_v26  ;;  %v17456_v17 = vld [vmem:[#allocation20_spill] sm:$0xff] }
 0x387   :  { %v7362_v22 = vsel %vm6938_vm0, %v7361_v28, %v7357_v16  ;;  %v7071_v15 = vsel %vm6973_vm5, %v7070_v52, %v7066_v47  ;;  %v7080_v9 = vrot.slane %v17455_v25, %v15942_v1  ;;  %v7371_v16 = vrot.slane %v16250_v42, %v15848_v35 }
 0x388   :  { %v6599_v51 = vpop.permute.xlu1 %6598  ;;  %6784 = vperm.xlu1 %11481, %v6303_v56   ;;  %v6305_v56 = vcombine.low %v5521_v62, %v5528_v29  ;;  %v16374_v29 = vpop.eup %12356  ;;  %v6307_v28 = vcombine.low %v5549_v63, %v5556_v45  ;;  %v5703_v3 = vrot.slane %v16311_v32, %v14905_v49  ;;  %v5577_v42 = vrot.slane %v16272_v50, %v14905_v49 }
 0x389   :  { %v7366_v12 = vrot.slane %v6599_v51, %v15838_v30  ;;  %v17454_v51 = vld [vmem:[#allocation58_spill] sm:$0xff]  ;;  %v7076_v26 = vsel %vm6980_vm6, %v7075_v59, %v7071_v15  ;;  %v5731_v45 = vrot.slane %v16325_v5, %v14905_v49  ;;  %v5759_v20 = vrot.slane %v16356_v0, %v14905_v49 }
 0x38a   :  { %v7085_v40 = vrot.slane %v17454_v51, %v15873_v33  ;;  %v16365_v54 = vpop.permute.xlu0 %6631  ;;  %6817 = vperm.xlu0 %11480, %v6314_v24   ;;  %v5584_v24 = vrot.slane %v16272_v50, %v14908_v53  ;;  %v7081_v47 = vsel %vm6987_vm7, %v7080_v9, %v7076_v26  ;;  %v7381_v50 = vrot.slane %v16267_v60, %v15888_v21 }
 0x38b   :  { %v7367_v31 = vsel %vm6945_vm1, %v7366_v12, %v7362_v22  ;;  %v16379_v12 = vpop.eup %12358  ;;  %v5710_v22 = vrot.slane %v16311_v32, %v14908_v53  ;;  %v5605_v9 = vrot.slane %v16288_v55, %v14905_v49  ;;  %v5612_v60 = vrot.slane %v16288_v55, %v14908_v53 }
 0x38c   :  { %v6605_v62 = vpop.permute.xlu1 %6604  ;;  %6790 = vperm.xlu1 %11481, %v6305_v56   ;;  %v7372_v52 = vsel %vm6952_vm2, %v7371_v16, %v7367_v31  ;;  %v5738_v31 = vrot.slane %v16325_v5, %v14908_v53  ;;  %v16396_v32 = vpop.eup %12360  ;;  %v17457_v5 = vld [vmem:[#allocation71_spill] sm:$0xff]  ;;  %v6309_v59 = vcombine.low %v5577_v42, %v5584_v24  ;;  %v7086_v48 = vsel %vm6994_vm8, %v7085_v40, %v7081_v47 }
 0x38d   :  { %v7376_v38 = vrot.slane %v6605_v62, %v15876_v41  ;;  %v16404_v16 = vpop.eup %12362  ;;  %v7090_v62 = vrot.slane %v17457_v5, %v15971_v58 }
 0x38e   :  { %v10664_v56 = vpop.f32.mrf.mxu0  ;;  %v16390_v63 = vpop.permute.xlu0 %6637  ;;  %6823 = vperm.xlu0 %11480, %v6316_v34   ;;  %v6318_v34 = vcombine.low %v5703_v3, %v5710_v22  ;;  %v7391_v3 = vrot.slane %v16286_v44, %v15919_v10  ;;  %v17459_v44 = vld [vmem:[#allocation72_spill] sm:$0xff] }
 0x38f   :  { %v7377_v4 = vsel %vm6959_vm3, %v7376_v38, %v7372_v52  ;;  %v16422_v55 = vpop.eup %12364  ;;  %v7100_v47 = vrot.slane %v17459_v44, %v16001_v57 }
 0x390   :  { %v6611_v15 = vpop.permute.xlu1 %6610  ;;  %6796 = vperm.xlu1 %11481, %v6307_v28   ;;  %v10666_v25 = vpop.f32.mrf.mxu0  ;;  %v7382_v26 = vsel %vm6966_vm4, %v7381_v50, %v7377_v4  ;;  %v3076_v4 = vmax.f32 %v17458_v46, 1e-24  ;;  %v5766_v46 = vrot.slane %v16356_v0, %v14908_v53 }
 0x391   :  { %v7386_v38 = vrot.slane %v6611_v15, %v15911_v7  ;;  %v10705_v52 = vpop.f32.mrf.mxu1  ;;  %v6320_v15 = vcombine.low %v5731_v45, %v5738_v31  ;;  %v6311_v31 = vcombine.low %v5605_v9, %v5612_v60 }
 0x392   :  { %v16414_v28 = vadd.f32 %v10705_v52, %v10664_v56  ;;  %v10668_v51 = vpop.f32.mrf.mxu0  ;;  %v16418_v27 = vpop.permute.xlu0 %6643  ;;  %6829 = vperm.xlu0 %11480, %v6318_v34   ;;  %v7091_v56 = vsel %vm7001_vm9, %v7090_v62, %v7086_v48  ;;  %v17460_v48 = vld [vmem:[#allocation24_spill] sm:$0xff]  ;;  %v5787_v52 = vrot.slane %v16374_v29, %v14905_v49  ;;  %12370 = vrsqrt.f32 %v3076_v4 }
 0x393   :  { %v7387_v5 = vsel %vm6973_vm5, %v7386_v38, %v7382_v26  ;;  %v10707_v37 = vpop.f32.mrf.mxu1  ;;  %v7440_v22 = vrot.slane %v16418_v27, %v15803_v36  ;;  %v3078_v62 = vmax.f32 %v17460_v48, 1e-24  ;;  %v17461_v38 = vld [vmem:[#allocation60_spill] sm:$0xff]  ;;  %v7401_v34 = vrot.slane %v16309_v39, %v15873_v33 }
 0x394   :  { %v6617_v40 = vpop.permute.xlu1 %6616  ;;  %6802 = vperm.xlu1 %11481, %v6309_v59   ;;  %v16429_v42 = vadd.f32 %v10707_v37, %v10666_v25  ;;  %v10669_v24 = vpop.f32.mrf.mxu0  ;;  %v7392_v50 = vsel %vm6980_vm6, %v7391_v3, %v7387_v5  ;;  %v5633_v59 = vrot.slane %v16301_v43, %v14905_v49  ;;  %v5640_v37 = vrot.slane %v16301_v43, %v14908_v53 }
 0x395   :  { %v7396_v45 = vrot.slane %v6617_v40, %v15942_v1  ;;  %v10709_v51 = vpop.f32.mrf.mxu1  ;;  %v16442_v25 = vpop.eup %12366  ;;  %v7095_v9 = vrot.slane %v17461_v38, %v15952_v13  ;;  %v5794_v3 = vrot.slane %v16374_v29, %v14908_v53  ;;  %v5661_v4 = vrot.slane %v16317_v2, %v14905_v49  ;;  %v17462_v29 = vld [vmem:[#allocation65_spill] sm:$0xff] }
 0x396   :  { %v16448_v60 = vpop.permute.xlu0 %6649  ;;  %6835 = vperm.xlu0 %11480, %v6320_v15   ;;  %v16458_v40 = vpop.eup %12368  ;;  %v5668_v39 = vrot.slane %v16317_v2, %v14908_v53  ;;  %v6313_v44 = vcombine.low %v5633_v59, %v5640_v37  ;;  %12372 = vrsqrt.f32 %v3078_v62  ;;  %v7411_v2 = vrot.slane %v16335_v18, %v15952_v13 }
 0x397   :  { %v7397_v0 = vsel %vm6987_vm7, %v7396_v45, %v7392_v50  ;;  %v10710_v26 = vpop.f32.mrf.mxu1  ;;  %v7450_v43 = vrot.slane %v16448_v60, %v15848_v35  ;;  %v7096_v24 = vsel %vm17088_vm10, %v7095_v9, %v7091_v56  ;;  %v7105_v50 = vrot.slane %v17462_v29, %v15980_v11  ;;  %v17463_v56 = vld [vmem:[#allocation73_spill] sm:$0xff] }
 0x398   :  { %v6623_v5 = vpop.permute.xlu1 %6622  ;;  %6808 = vperm.xlu1 %11481, %v6311_v31   ;;  %v7101_v51 = vsel %vm7015_vm11, %v7100_v47, %v7096_v24  ;;  %v7402_v15 = vsel %vm6994_vm8, %v7401_v34, %v7397_v0  ;;  %v6322_v31 = vcombine.low %v5759_v20, %v5766_v46  ;;  %v7110_v48 = vrot.slane %v17463_v56, %v16030_v23  ;;  %v17464_v26 = vld [vmem:[#allocation31_spill] sm:$0xff]  ;;  %v17467_v56 = vld [vmem:[#allocation66_spill] sm:$0xff] }
 0x399   :  { %v7406_v45 = vrot.slane %v6623_v5, %v15971_v58  ;;  %v3079_v5 = vmax.f32 %v17464_v26, 1e-24  ;;  %v6324_v47 = vcombine.low %v5787_v52, %v5794_v3  ;;  %v7106_v59 = vsel %vm7022_vm12, %v7105_v50, %v7101_v51  ;;  %v17466_v3 = vld [vmem:[#allocation26_spill] sm:$0xff] }
 0x39a   :  { %v16473_v9 = vpop.permute.xlu0 %6655  ;;  %6841 = vperm.xlu0 %11480, %v6322_v31   ;;  %v6315_v62 = vcombine.low %v5661_v4, %v5668_v39  ;;  %v5815_v0 = vrot.slane %v16396_v32, %v14905_v49  ;;  %v5822_v18 = vrot.slane %v16396_v32, %v14908_v53  ;;  %v5689_v24 = vrot.slane %v16339_v6, %v14905_v49 }
 0x39b   :  { %v7407_v38 = vsel %vm7001_vm9, %v7406_v45, %v7402_v15  ;;  %v7460_v20 = vrot.slane %v16473_v9, %v15888_v21  ;;  %v5696_v45 = vrot.slane %v16339_v6, %v14908_v53  ;;  %v17465_v52 = vmax.f32 %v17456_v17, 1e-24 }
 0x39c   :  { %v6629_v46 = vpop.permute.xlu1 %6628  ;;  %6814 = vperm.xlu1 %11481, %v6313_v44   ;;  %v7412_v34 = vsel %vm17088_vm10, %v7411_v2, %v7407_v38  ;;  %v3080_v51 = vmax.f32 %v17466_v3, 1e-24  ;;  %v7111_v4 = vsel %vm7029_vm13, %v7110_v48, %v7106_v59  ;;  %v7421_v32 = vrot.slane %v16365_v54, %v15980_v11  ;;  %v17468_v2 = vld [vmem:[#allocation27_spill] sm:$0xff] }
 0x39d   :  { %v7416_v37 = vrot.slane %v6629_v46, %v16001_v57  ;;  %12374 = vrsqrt.f32 %v17465_v52  ;;  %v5717_v17 = vrot.slane %v16347_v19, %v14905_v49  ;;  %v5955_v29 = vrot.slane %v16422_v55, %v14905_v49 }
 0x39e   :  { %v16496_v15 = vpop.permute.xlu0 %6661  ;;  %12376 = vrsqrt.f32 %v3079_v5  ;;  %6847 = vperm.xlu0 %11480, %v6324_v47   ;;  %v5962_v50 = vrot.slane %v16422_v55, %v14908_v53  ;;  %v5724_v54 = vrot.slane %v16347_v19, %v14908_v53  ;;  %v7115_v48 = vrot.slane %v17467_v56, %v16038_v61  ;;  %v17469_v47 = vld [vmem:[#allocation33_spill] sm:$0xff] }
 0x39f   :  { %v7417_v39 = vsel %vm7015_vm11, %v7416_v37, %v7412_v34  ;;  %v7470_v31 = vrot.slane %v16496_v15, %v15919_v10  ;;  %v6326_v26 = vcombine.low %v5815_v0, %v5822_v18  ;;  %v6317_v5 = vcombine.low %v5689_v24, %v5696_v45  ;;  %v12371_v24 = vpop.eup %12370 }
 0x3a0   :  { %v6635_v6 = vpop.permute.xlu1 %6634  ;;  %6820 = vperm.xlu1 %11481, %v6315_v62   ;;  %v7422_v38 = vsel %vm7022_vm12, %v7421_v32, %v7417_v39  ;;  %v3075_v46 = vmax.f32 %v17468_v2, 1e-24  ;;  %12378 = vrsqrt.f32 %v3080_v51  ;;  %v3081_v59 = vmax.f32 %v17469_v47, 1e-24 }
 0x3a1   :  { %v7426_v44 = vrot.slane %v6635_v6, %v16030_v23  ;;  %v7116_v55 = vsel %vm7036_vm14, %v7115_v48, %v7111_v4  ;;  %v17470_v19 = vrot.slane %v16390_v63, %v16038_v61  ;;  %v6336_v3 = vcombine.low %v5955_v29, %v5962_v50  ;;  %v17471_v6 = vld [vmem:[#allocation29_spill] sm:$0xff] }
 0x3a2   :  { %v16517_v62 = vpop.permute.xlu0 %6667  ;;  %6853 = vperm.xlu0 %11480, %v6326_v26   ;;  %v6319_v51 = vcombine.low %v5717_v17, %v5724_v54  ;;  %v5983_v4 = vrot.slane %v16458_v40, %v14905_v49  ;;  %v5990_v63 = vrot.slane %v16458_v40, %v14908_v53  ;;  %v5745_v39 = vrot.slane %v16367_v8, %v14905_v49  ;;  %v17472_v54 = vld [vmem:[#allocation28_spill] sm:$0xff] }
 0x3a3   :  { %v7427_v37 = vsel %vm7029_vm13, %v7426_v44, %v7422_v38  ;;  %v7480_v0 = vrot.slane %v16517_v62, %v15873_v33  ;;  %v5752_v32 = vrot.slane %v16367_v8, %v14908_v53  ;;  %v3077_v44 = vmax.f32 %v17471_v6, 1e-24  ;;  %v12373_v50 = vpop.eup %12372  ;;  %v17475_v6 = vld [vmem:[#allocation8_spill] sm:$0xff] }
 0x3a4   :  { %v7432_v34 = vsel %vm7036_vm14, %v17470_v19, %v7427_v37  ;;  %v6641_v18 = vpop.permute.xlu1 %6640  ;;  %6826 = vperm.xlu1 %11481, %v6317_v5   ;;  %v3082_v56 = vmax.f32 %v17472_v54, 1e-24  ;;  %12380 = vrsqrt.f32 %v3081_v59  ;;  %v5773_v8 = vrot.slane %v16379_v12, %v14905_v49 }
 0x3a5   :  { %v16527_v45 = vsel %vm7907_vm15, %v7432_v34, %v7116_v55  ;;  %v7436_v52 = vrot.slane %v6641_v18, %v15808_v14  ;;  %v6011_v27 = vrot.slane %v12371_v24, %v14905_v49  ;;  %v5780_v26 = vrot.slane %v16379_v12, %v14908_v53  ;;  %v17473_v55 = vld [vmem:[#allocation13_spill] sm:$0xff] }
 0x3a6   :  { %v16543_v17 = vpop.permute.xlu0 %6673  ;;  %6883 = vperm.xlu0 %11480, %v6336_v3   ;;  %12382 = vrsqrt.f32 %v3075_v46  ;;  %v6338_v5 = vcombine.low %v5983_v4, %v5990_v63  ;;  %v6321_v2 = vcombine.low %v5745_v39, %v5752_v32  ;;  %v3063_v19 = vmax.f32 %v17473_v55, 1e-24  ;;  %v17477_v55 = vld [vmem:[#allocation15_spill] sm:$0xff] }
 0x3a7   :  { %v7441_v29 = vsel %vm6938_vm0, %v7440_v22, %v7436_v52  ;;  %v7490_v40 = vrot.slane %v16543_v17, %v15952_v13  ;;  %v6018_v22 = vrot.slane %v12371_v24, %v14908_v53  ;;  %12384 = vrsqrt.f32 %v3077_v44  ;;  %v17474_v24 = vld [vmem:[#allocation35_spill] sm:$0xff] }
 0x3a8   :  { %v6647_v48 = vpop.permute.xlu1 %6646  ;;  %6832 = vperm.xlu1 %11481, %v6319_v51   ;;  %12386 = vrsqrt.f32 %v3082_v56  ;;  %v3083_v52 = vmax.f32 %v17474_v24, 1e-24  ;;  %v6323_v4 = vcombine.low %v5773_v8, %v5780_v26  ;;  %v6039_v63 = vrot.slane %v12373_v50, %v14905_v49  ;;  %v17476_v56 = vld [vmem:[#allocation30_spill] sm:$0xff] }
 0x3a9   :  { %v7445_v38 = vrot.slane %v6647_v48, %v15838_v30  ;;  %v6340_v51 = vcombine.low %v6011_v27, %v6018_v22  ;;  %v6046_v39 = vrot.slane %v12373_v50, %v14908_v53  ;;  %v5801_v32 = vrot.slane %v16404_v16, %v14905_v49  ;;  %v17478_v24 = vld [vmem:[#allocation34_spill] sm:$0xff] }
 0x3aa   :  { %v16556_v59 = vpop.permute.xlu0 %6679  ;;  %v16558_v37 = vpop.eup %12374  ;;  %6889 = vperm.xlu0 %11480, %v6338_v5   ;;  %v5808_v60 = vrot.slane %v16404_v16, %v14908_v53  ;;  %12388 = vrsqrt.f32 %v3063_v19  ;;  %v3084_v48 = vmax.f32 %v17476_v56, 1e-24  ;;  %v3065_v19 = vmax.f32 %v17477_v55, 1e-24 }
 0x3ab   :  { %v7446_v47 = vsel %vm6945_vm1, %v7445_v38, %v7441_v29  ;;  %v7500_v34 = vrot.slane %v16556_v59, %v15980_v11  ;;  %v12377_v46 = vpop.eup %12376  ;;  %12390 = vrsqrt.f32 %v3083_v52  ;;  %v6342_v26 = vcombine.low %v6039_v63, %v6046_v39 }
 0x3ac   :  { %v6653_v18 = vpop.permute.xlu1 %6652  ;;  %v7451_v12 = vsel %vm6952_vm2, %v7450_v43, %v7446_v47  ;;  %6838 = vperm.xlu1 %11481, %v6321_v2   ;;  %v3064_v43 = vmax.f32 %v17475_v6, 1e-24  ;;  %v6053_v27 = vrot.slane %v12377_v46, %v14905_v49  ;;  %v6060_v22 = vrot.slane %v12377_v46, %v14908_v53 }
 0x3ad   :  { %v7455_v3 = vrot.slane %v6653_v18, %v15876_v41  ;;  %v12379_v54 = vpop.eup %12378  ;;  %v6325_v5 = vcombine.low %v5801_v32, %v5808_v60  ;;  %v5941_v2 = vrot.slane %v16442_v25, %v14905_v49  ;;  %v5948_v47 = vrot.slane %v16442_v25, %v14908_v53 }
 0x3ae   :  { %v16577_v29 = vpop.permute.xlu0 %6685  ;;  %6895 = vperm.xlu0 %11480, %v6340_v51   ;;  %12392 = vrsqrt.f32 %v3064_v43  ;;  %v3085_v52 = vmax.f32 %v17478_v24, 1e-24  ;;  %v6343_v51 = vcombine.low %v6053_v27, %v6060_v22  ;;  %v6074_v39 = vrot.slane %v12379_v54, %v14908_v53 }
 0x3af   :  { %v7456_v44 = vsel %vm6959_vm3, %v7455_v3, %v7451_v12  ;;  %v7510_v8 = vrot.slane %v16577_v29, %v16038_v61  ;;  %12394 = vrsqrt.f32 %v3084_v48  ;;  %v6335_v63 = vcombine.low %v5941_v2, %v5948_v47  ;;  %v17480_v48 = vld [vmem:[#allocation32_spill] sm:$0xff] }
 0x3b0   :  { %v6659_v50 = vpop.permute.xlu1 %6658  ;;  %v7461_v16 = vsel %vm6966_vm4, %v7460_v20, %v7456_v44  ;;  %6844 = vperm.xlu1 %11481, %v6323_v4   ;;  %v6067_v4 = vrot.slane %v12379_v54, %v14905_v49  ;;  %v5969_v32 = vrot.slane %v16558_v37, %v14905_v49  ;;  %v5976_v15 = vrot.slane %v16558_v37, %v14908_v53 }
 0x3b1   :  { %v7465_v38 = vrot.slane %v6659_v50, %v15911_v7  ;;  %v12381_v25 = vpop.eup %12380  ;;  %12396 = vrsqrt.f32 %v3065_v19  ;;  %v3086_v50 = vmax.f32 %v17480_v48, 1e-24 }
 0x3b2   :  { %v16594_v20 = vpop.permute.xlu0 %6691  ;;  %6901 = vperm.xlu0 %11480, %v6342_v26   ;;  %12398 = vrsqrt.f32 %v3085_v52  ;;  %v6081_v22 = vrot.slane %v12381_v25, %v14905_v49  ;;  %v6088_v26 = vrot.slane %v12381_v25, %v14908_v53  ;;  %v6337_v2 = vcombine.low %v5969_v32, %v5976_v15 }
 0x3b3   :  { %v7466_v9 = vsel %vm6973_vm5, %v7465_v38, %v7461_v16  ;;  %v7519_v18 = vrot.slane %v16594_v20, %v15803_v36  ;;  %v12383_v60 = vpop.eup %12382 }
 0x3b4   :  { %v6665_v12 = vpop.permute.xlu1 %6664  ;;  %v7471_v46 = vsel %vm6980_vm6, %v7470_v31, %v7466_v9  ;;  %6850 = vperm.xlu1 %11481, %v6325_v5   ;;  %v17479_v31 = vld [vmem:[#allocation10_spill] sm:$0xff]  ;;  %v12385_v56 = vpop.eup %12384  ;;  %v6344_v5 = vcombine.low %v6067_v4, %v6074_v39  ;;  %v5997_v47 = vrot.slane %v12383_v60, %v14905_v49  ;;  %v6004_v9 = vrot.slane %v12383_v60, %v14908_v53 }
 0x3b5   :  { %v7475_v3 = vrot.slane %v6665_v12, %v15942_v1  ;;  %v3066_v6 = vmax.f32 %v17479_v31, 1e-24  ;;  %v12387_v38 = vpop.eup %12386  ;;  %v6025_v32 = vrot.slane %v12385_v56, %v14905_v49  ;;  %v6032_v15 = vrot.slane %v12385_v56, %v14908_v53  ;;  %v17482_v31 = vld [vmem:[#allocation12_spill] sm:$0xff] }
 0x3b6   :  { %v16613_v44 = vpop.permute.xlu0 %6697  ;;  %6904 = vperm.xlu0 %11480, %v6343_v51   ;;  %v6095_v51 = vrot.slane %v12387_v38, %v14905_v49  ;;  %v6102_v39 = vrot.slane %v12387_v38, %v14908_v53 }
 0x3b7   :  { %v7476_v43 = vsel %vm6987_vm7, %v7475_v3, %v7471_v46  ;;  %v7529_v54 = vrot.slane %v16613_v44, %v15848_v35  ;;  %12400 = vrsqrt.f32 %v3066_v6  ;;  %v12389_v24 = vpop.eup %12388  ;;  %v6345_v3 = vcombine.low %v6081_v22, %v6088_v26 }
 0x3b8   :  { %v6671_v16 = vpop.permute.xlu1 %6670  ;;  %v7481_v37 = vsel %vm6994_vm8, %v7480_v0, %v7476_v43  ;;  %6880 = vperm.xlu1 %11481, %v6335_v63   ;;  %v17481_v0 = vld [vmem:[#allocation17_spill] sm:$0xff]  ;;  %12402 = vrsqrt.f32 %v3086_v50  ;;  %v12391_v4 = vpop.eup %12390  ;;  %v6339_v63 = vcombine.low %v5997_v47, %v6004_v9  ;;  %v3068_v6 = vmax.f32 %v17482_v31, 1e-24 }
 0x3b9   :  { %v7485_v27 = vrot.slane %v6671_v16, %v15971_v58  ;;  %v3067_v19 = vmax.f32 %v17481_v0, 1e-24  ;;  %v5836_v38 = vrot.slane %v12389_v24, %v14908_v53  ;;  %v6341_v22 = vcombine.low %v6025_v32, %v6032_v15  ;;  %v17483_v0 = vld [vmem:[#allocation19_spill] sm:$0xff] }
 0x3ba   :  { %v16628_v62 = vpop.permute.xlu0 %6703  ;;  %6907 = vperm.xlu0 %11480, %v6344_v5   ;;  %v6109_v26 = vrot.slane %v12391_v4, %v14905_v49  ;;  %v6116_v5 = vrot.slane %v12391_v4, %v14908_v53 }
 0x3bb   :  { %v7486_v55 = vsel %vm7001_vm9, %v7485_v27, %v7481_v37  ;;  %v7539_v12 = vrot.slane %v16628_v62, %v15888_v21  ;;  %12404 = vrsqrt.f32 %v3067_v19  ;;  %v5829_v37 = vrot.slane %v12389_v24, %v14905_v49 }
 0x3bc   :  { %v6677_v46 = vpop.permute.xlu1 %6676  ;;  %v7491_v25 = vsel %vm17088_vm10, %v7490_v40, %v7486_v55  ;;  %6886 = vperm.xlu1 %11481, %v6337_v2   ;;  %v12393_v40 = vpop.eup %12392  ;;  %v6346_v27 = vcombine.low %v6095_v51, %v6102_v39  ;;  %12406 = vrsqrt.f32 %v3068_v6  ;;  %v3069_v19 = vmax.f32 %v17483_v0, 1e-24  ;;  %v17484_v39 = vld [vmem:[#allocation14_spill] sm:$0xff] }
 0x3bd   :  { %v7495_v52 = vrot.slane %v6677_v46, %v16001_v57  ;;  %v12395_v16 = vpop.eup %12394  ;;  %v5850_v24 = vrot.slane %v12393_v40, %v14908_v53  ;;  %v6347_v29 = vcombine.low %v6109_v26, %v6116_v5  ;;  %v3070_v32 = vmax.f32 %v17484_v39, 1e-24 }
 0x3be   :  { %v16643_v60 = vpop.permute.xlu0 %6709  ;;  %6910 = vperm.xlu0 %11480, %v6345_v3   ;;  %v12397_v55 = vpop.eup %12396  ;;  %v6327_v3 = vcombine.low %v5829_v37, %v5836_v38  ;;  %v6130_v51 = vrot.slane %v12395_v16, %v14908_v53  ;;  %12408 = vrsqrt.f32 %v3069_v19 }
 0x3bf   :  { %v7496_v17 = vsel %vm7015_vm11, %v7495_v52, %v7491_v25  ;;  %v7549_v43 = vrot.slane %v16643_v60, %v15919_v10  ;;  %v5843_v25 = vrot.slane %v12393_v40, %v14905_v49  ;;  %v12399_v52 = vpop.eup %12398  ;;  %12410 = vrsqrt.f32 %v3070_v32 }
 0x3c0   :  { %v6683_v48 = vpop.permute.xlu1 %6682  ;;  %v7501_v50 = vsel %vm7022_vm12, %v7500_v34, %v7496_v17  ;;  %6892 = vperm.xlu1 %11481, %v6339_v63  }
 0x3c1   :  { %v7505_v56 = vrot.slane %v6683_v48, %v16030_v23  ;;  %v6328_v6 = vcombine.low %v5843_v25, %v5850_v24  ;;  %v5857_v48 = vrot.slane %v12397_v55, %v14905_v49 }
 0x3c2   :  { %v16658_v59 = vpop.permute.xlu0 %6715  ;;  %6913 = vperm.xlu0 %11480, %v6346_v27  }
 0x3c3   :  { %v7506_v2 = vsel %vm7029_vm13, %v7505_v56, %v7501_v50  ;;  %v7559_v47 = vrot.slane %v16658_v59, %v15873_v33  ;;  %v5864_v56 = vrot.slane %v12397_v55, %v14908_v53 }
 0x3c4   :  { %v16664_v34 = vsel %vm7036_vm14, %v7510_v8, %v7506_v2  ;;  %v6689_v9 = vpop.permute.xlu1 %6688  ;;  %6898 = vperm.xlu1 %11481, %v6341_v22   ;;  %v6123_v8 = vrot.slane %v12395_v16, %v14905_v49  ;;  %v12401_v40 = vpop.eup %12400  ;;  %v6144_v16 = vrot.slane %v12399_v52, %v14908_v53 }
 0x3c5   :  { %v7515_v46 = vrot.slane %v6689_v9, %v15808_v14  ;;  %v12403_v20 = vpop.eup %12402  ;;  %v5871_v2 = vrot.slane %v12401_v40, %v14905_v49  ;;  %v5878_v9 = vrot.slane %v12401_v40, %v14908_v53  ;;  %v6329_v19 = vcombine.low %v5857_v48, %v5864_v56 }
 0x3c6   :  { %v16678_v63 = vpop.permute.xlu0 %6721  ;;  %6916 = vperm.xlu0 %11480, %v6347_v29   ;;  %v6348_v50 = vcombine.low %v6123_v8, %v6130_v51  ;;  %v6158_v25 = vrot.slane %v12403_v20, %v14908_v53 }
 0x3c7   :  { %v7520_v4 = vsel %vm6938_vm0, %v7519_v18, %v7515_v46  ;;  %v7569_v15 = vrot.slane %v16678_v63, %v15952_v13  ;;  %v6137_v18 = vrot.slane %v12399_v52, %v14905_v49  ;;  %v6151_v46 = vrot.slane %v12403_v20, %v14905_v49 }
 0x3c8   :  { %v6695_v17 = vpop.permute.xlu1 %6694  ;;  %6856 = vperm.xlu1 %11481, %v6327_v3   ;;  %v12405_v55 = vpop.eup %12404 }
 0x3c9   :  { %v7524_v31 = vrot.slane %v6695_v17, %v15838_v30  ;;  %v6349_v0 = vcombine.low %v6137_v18, %v6144_v16  ;;  %v12407_v3 = vpop.eup %12406  ;;  %v6350_v51 = vcombine.low %v6151_v46, %v6158_v25  ;;  %v5885_v39 = vrot.slane %v12405_v55, %v14905_v49 }
 0x3ca   :  { %v16689_v38 = vpop.permute.xlu0 %6727  ;;  %6919 = vperm.xlu0 %11480, %v6348_v50   ;;  %v5892_v32 = vrot.slane %v12405_v55, %v14908_v53  ;;  %v5899_v20 = vrot.slane %v12407_v3, %v14905_v49  ;;  %v5906_v50 = vrot.slane %v12407_v3, %v14908_v53  ;;  %v17485_v3 = vld [vmem:[#allocation74_spill] sm:$0xff] }
 0x3cb   :  { %v7525_v37 = vsel %vm6945_vm1, %v7524_v31, %v7520_v4  ;;  %v7579_v27 = vrot.slane %v16689_v38, %v15980_v11  ;;  %v6330_v4 = vcombine.low %v5871_v2, %v5878_v9 }
 0x3cc   :  { %v6701_v22 = vpop.permute.xlu1 %6700  ;;  %v7530_v26 = vsel %vm6952_vm2, %v7529_v54, %v7525_v37  ;;  %6859 = vperm.xlu1 %11481, %v6328_v6   ;;  %v12409_v6 = vpop.eup %12408  ;;  %v6331_v48 = vcombine.low %v5885_v39, %v5892_v32  ;;  %v6332_v38 = vcombine.low %v5899_v20, %v5906_v50  ;;  %v17487_v50 = vld [vmem:[#allocation36_spill] sm:$0xff] }
 0x3cd   :  { %v7534_v5 = vrot.slane %v6701_v22, %v15876_v41  ;;  %v12411_v37 = vpop.eup %12410  ;;  %v5913_v22 = vrot.slane %v12409_v6, %v14905_v49 }
 0x3ce   :  { %v6734_v44 = vpop.permute.xlu0 %6733  ;;  %6922 = vperm.xlu0 %11480, %v6349_v0   ;;  %v5927_v0 = vrot.slane %v12411_v37, %v14905_v49  ;;  %v16752_v49 = vsel %vm7907_vm15, %v16664_v34, %v17485_v3 }
 0x3cf   :  { %v7535_v24 = vsel %vm6959_vm3, %v7534_v5, %v7530_v26  ;;  %v7589_v54 = vrot.slane %v6734_v44, %v16038_v61  ;;  %v5920_v26 = vrot.slane %v12409_v6, %v14908_v53 }
 0x3d0   :  { %v6707_v52 = vpop.permute.xlu1 %6706  ;;  %v7540_v29 = vsel %vm6966_vm4, %v7539_v12, %v7535_v24  ;;  %6862 = vperm.xlu1 %11481, %v6329_v19   ;;  %v5934_v19 = vrot.slane %v12411_v37, %v14908_v53 }
 0x3d1   :  { %v7544_v8 = vrot.slane %v6707_v52, %v15911_v7  ;;  %v6333_v55 = vcombine.low %v5913_v22, %v5920_v26  ;;  %v17490_v26 = vld [vmem:[#allocation83_spill] sm:$0xff] }
 0x3d2   :  { %v16712_v40 = vpop.permute.xlu0 %6739  ;;  %6925 = vperm.xlu0 %11480, %v6350_v51   ;;  %v6334_v52 = vcombine.low %v5927_v0, %v5934_v19  ;;  %v17486_v51 = vld [vmem:[#allocation80_spill] sm:$0xff] }
 0x3d3   :  { %v7545_v17 = vsel %vm6973_vm5, %v7544_v8, %v7540_v29 }
 0x3d4   :  { %v6713_v31 = vpop.permute.xlu1 %6712  ;;  %v7550_v62 = vsel %vm6980_vm6, %v7549_v43, %v7545_v17  ;;  %6865 = vperm.xlu1 %11481, %v6330_v4  }
 0x3d5   :  { %v7554_v12 = vrot.slane %v6713_v31, %v15942_v1 }
 0x3d6   :  { %v16722_v16 = vpop.permute.xlu0 %6745 }
 0x3d7   :  { %v7555_v18 = vsel %vm6987_vm7, %v7554_v12, %v7550_v62 }
 0x3d8   :  { %v6719_v56 = vpop.permute.xlu1 %6718  ;;  %v7560_v60 = vsel %vm6994_vm8, %v7559_v47, %v7555_v18  ;;  %6868 = vperm.xlu1 %11481, %v6331_v48   ;;  %v6932_v18 = vrot.slane %v17487_v50, %v15808_v14  ;;  %v17495_v50 = vld [vmem:[#allocation85_spill] sm:$0xff] }
 0x3d9   :  { %v7564_v43 = vrot.slane %v6719_v56, %v15971_v58 }
 0x3da   :  { %v16732_v2 = vpop.permute.xlu0 %6751 }
 0x3db   :  { %v7565_v5 = vsel %vm7001_vm9, %v7564_v43, %v7560_v60  ;;  %v17488_v60 = vld [vmem:[#allocation81_spill] sm:$0xff] }
 0x3dc   :  { %v6725_v9 = vpop.permute.xlu1 %6724  ;;  %v7570_v59 = vsel %vm17088_vm10, %v7569_v15, %v7565_v5  ;;  %6871 = vperm.xlu1 %11481, %v6332_v38   ;;  %v7278_v43 = vrot.slane %v17488_v60, %v15808_v14  ;;  %v17489_v38 = vld [vmem:[#allocation37_spill] sm:$0xff]  ;;  %v7287_v5 = vrot.slane %v17490_v26, %v15838_v30 }
 0x3dd   :  { %v7574_v47 = vrot.slane %v6725_v9, %v16001_v57  ;;  %v6937_v22 = vrot.slane %v17489_v38, %v15803_v36  ;;  %v17491_v9 = vld [vmem:[#allocation39_spill] sm:$0xff] }
 0x3de   :  { %v16742_v25 = vpop.permute.xlu0 %6757 }
 0x3df   :  { %v7575_v46 = vsel %vm7015_vm11, %v7574_v47, %v7570_v59  ;;  %v6944_v59 = vrot.slane %v17491_v9, %v15838_v30  ;;  %v17492_v47 = vld [vmem:[#allocation75_spill] sm:$0xff]  ;;  %v6939_v19 = vsel %vm6938_vm0, %v6937_v22, %v6932_v18  ;;  %v7297_v18 = vrot.slane %v17495_v50, %v15876_v41 }
 0x3e0   :  { %v6731_v24 = vpop.permute.xlu1 %6730  ;;  %v7580_v44 = vsel %vm7022_vm12, %v7579_v27, %v7575_v46  ;;  %6874 = vperm.xlu1 %11481, %v6333_v55   ;;  %v7282_v55 = vrot.slane %v17492_v47, %v15803_v36  ;;  %v17493_v46 = vld [vmem:[#allocation43_spill] sm:$0xff] }
 0x3e1   :  { %v7584_v63 = vrot.slane %v6731_v24, %v16030_v23  ;;  %v6951_v24 = vrot.slane %v17493_v46, %v15848_v35  ;;  %v6946_v60 = vsel %vm6945_vm1, %v6944_v59, %v6939_v19  ;;  %v7608_v19 = vrot.slane %v16722_v16, %v15848_v35 }
 0x3e2   :  { %v16747_v29 = vpop.permute.xlu0 %6763 }
 0x3e3   :  { %v7585_v15 = vsel %vm7029_vm13, %v7584_v63, %v7580_v44 }
 0x3e4   :  { %v7590_v53 = vsel %vm7036_vm14, %v7589_v54, %v7585_v15  ;;  %v6737_v8 = vpop.permute.xlu1 %6736  ;;  %6877 = vperm.xlu1 %11481, %v6334_v52   ;;  %v7283_v52 = vsel %vm6938_vm0, %v7282_v55, %v7278_v43  ;;  %v7598_v15 = vrot.slane %v16712_v40, %v15803_v36  ;;  %v6953_v40 = vsel %vm6952_vm2, %v6951_v24, %v6946_v60  ;;  %v17501_v60 = vld [vmem:[#allocation51_spill] sm:$0xff] }
 0x3e5   :  { %v16757_v27 = vsel %vm7907_vm15, %v7590_v53, %v17486_v51  ;;  %v7594_v0 = vrot.slane %v6737_v8, %v15808_v14  ;;  %v17494_v53 = vld [vmem:[#allocation47_spill] sm:$0xff]  ;;  %v7288_v8 = vsel %vm6945_vm1, %v7287_v5, %v7283_v52  ;;  %v17497_v5 = vld [vmem:[#allocation38_spill] sm:$0xff] }
 0x3e6   :  { %v16759_v4 = vpop.permute.xlu0 %6769  ;;  %v6958_v51 = vrot.slane %v17494_v53, %v15876_v41  ;;  %v6993_v55 = vrot.slane %v17497_v5, %v15873_v33 }
 0x3e7   :  { %v7599_v22 = vsel %vm6938_vm0, %v7598_v15, %v7594_v0 }
 0x3e8   :  { %v6743_v39 = vpop.permute.xlu1 %6742  ;;  %v6960_v52 = vsel %vm6959_vm3, %v6958_v51, %v6953_v40  ;;  %v6972_v51 = vrot.slane %v17501_v60, %v15911_v7  ;;  %v17502_v40 = vld [vmem:[#allocation53_spill] sm:$0xff] }
 0x3e9   :  { %v7603_v44 = vrot.slane %v6743_v39, %v15838_v30  ;;  %v17496_v39 = vld [vmem:[#allocation76_spill] sm:$0xff]  ;;  %v6979_v5 = vrot.slane %v17502_v40, %v15919_v10 }
 0x3ea   :  { %v16761_v32 = vpop.permute.xlu0 %6775  ;;  %v7292_v38 = vrot.slane %v17496_v39, %v15848_v35 }
 0x3eb   :  { %v7604_v26 = vsel %vm6945_vm1, %v7603_v44, %v7599_v22  ;;  %v17498_v44 = vld [vmem:[#allocation87_spill] sm:$0xff] }
 0x3ec   :  { %v6749_v17 = vpop.permute.xlu1 %6748  ;;  %v7293_v59 = vsel %vm6952_vm2, %v7292_v38, %v7288_v8  ;;  %v17500_v8 = vld [vmem:[#allocation77_spill] sm:$0xff]  ;;  %v7609_v16 = vsel %vm6952_vm2, %v7608_v19, %v7604_v26 }
 0x3ed   :  { %v7613_v9 = vrot.slane %v6749_v17, %v15876_v41  ;;  %v7298_v24 = vsel %vm6959_vm3, %v7297_v18, %v7293_v59  ;;  %v7307_v17 = vrot.slane %v17498_v44, %v15911_v7  ;;  %v7302_v50 = vrot.slane %v17500_v8, %v15888_v21 }
 0x3ee   :  { %v16763_v31 = vpop.permute.xlu0 %6781 }
 0x3ef   :  { %v7614_v18 = vsel %vm6959_vm3, %v7613_v9, %v7609_v16  ;;  %v7303_v59 = vsel %vm6966_vm4, %v7302_v50, %v7298_v24  ;;  %v17503_v9 = vld [vmem:[#allocation50_spill] sm:$0xff] }
 0x3f0   :  { %v16765_v62 = vpop.permute.xlu1 %6754  ;;  %v17505_v24 = vld [vmem:[#allocation78_spill] sm:$0xff] }
 0x3f1   :  { %v7623_v39 = vrot.slane %v16765_v62, %v15911_v7  ;;  %v7308_v62 = vsel %vm6973_vm5, %v7307_v17, %v7303_v59  ;;  %v7312_v8 = vrot.slane %v17505_v24, %v15919_v10 }
 0x3f2   :  { %v6788_v34 = vpop.permute.xlu0 %6787 }
 0x3f3   :  { %v7677_v0 = vrot.slane %v6788_v34, %v15803_v36 }
 0x3f4   :  { %v16767_v12 = vpop.permute.xlu1 %6760 }
 0x3f5   :  { %v7633_v17 = vrot.slane %v16767_v12, %v15942_v1  ;;  %v17506_v12 = vld [vmem:[#allocation52_spill] sm:$0xff] }
 0x3f6   :  { %v16769_v54 = vpop.permute.xlu0 %6793 }
 0x3f7   :  { %v7687_v26 = vrot.slane %v16769_v54, %v15848_v35 }
 0x3f8   :  { %v16771_v6 = vpop.permute.xlu1 %6766 }
 0x3fa   :  { %v16773_v48 = vpop.permute.xlu0 %6799 }
 0x3fc   :  { %v16775_v20 = vpop.permute.xlu1 %6772 }
 0x3fe   :  { %v16779_v56 = vpop.permute.xlu0 %6805 }
 0x400   :  { %v16783_v37 = vpop.permute.xlu1 %6778 }
 0x402   :  { %v16798_v63 = vpop.permute.xlu0 %6811 }
 0x404   :  { %v6785_v3 = vpop.permute.xlu1 %6784 }
 0x405   :  { %v7673_v43 = vrot.slane %v6785_v3, %v15808_v14  ;;  %v17499_v3 = vld [vmem:[#allocation49_spill] sm:$0xff] }
 0x406   :  { %v16816_v47 = vpop.permute.xlu0 %6817  ;;  %v6965_v53 = vrot.slane %v17499_v3, %v15888_v21 }
 0x407   :  { %v7678_v34 = vsel %vm6938_vm0, %v7677_v0, %v7673_v43  ;;  %v7618_v43 = vrot.slane %v16732_v2, %v15888_v21  ;;  %v6986_v0 = vrot.slane %v17503_v9, %v15942_v1  ;;  %v17507_v9 = vld [vmem:[#allocation89_spill] sm:$0xff] }
 0x408   :  { %v6791_v46 = vpop.permute.xlu1 %6790  ;;  %v6967_v3 = vsel %vm6966_vm4, %v6965_v53, %v6960_v52  ;;  %v7313_v53 = vsel %vm6980_vm6, %v7312_v8, %v7308_v62  ;;  %v7327_v62 = vrot.slane %v17507_v9, %v15971_v58 }
 0x409   :  { %v7682_v15 = vrot.slane %v6791_v46, %v15838_v30  ;;  %v17504_v46 = vld [vmem:[#allocation88_spill] sm:$0xff]  ;;  %v7619_v2 = vsel %vm6966_vm4, %v7618_v43, %v7614_v18  ;;  %v6974_v16 = vsel %vm6973_vm5, %v6972_v51, %v6967_v3  ;;  %v7628_v18 = vrot.slane %v16742_v25, %v15919_v10 }
 0x40a   :  { %v16841_v22 = vpop.permute.xlu0 %6823  ;;  %v7317_v44 = vrot.slane %v17504_v46, %v15942_v1  ;;  %v6981_v52 = vsel %vm6980_vm6, %v6979_v5, %v6974_v16  ;;  %v7000_v43 = vrot.slane %v17506_v12, %v15971_v58 }
 0x40b   :  { %v7683_v38 = vsel %vm6945_vm1, %v7682_v15, %v7678_v34  ;;  %v7624_v34 = vsel %vm6973_vm5, %v7623_v39, %v7619_v2  ;;  %v6988_v39 = vsel %vm6987_vm7, %v6986_v0, %v6981_v52  ;;  %v17508_v0 = vld [vmem:[#allocation79_spill] sm:$0xff] }
 0x40c   :  { %v6797_v19 = vpop.permute.xlu1 %6796  ;;  %v7688_v54 = vsel %vm6952_vm2, %v7687_v26, %v7683_v38  ;;  %v7697_v38 = vrot.slane %v16773_v48, %v15888_v21  ;;  %v7318_v26 = vsel %vm6987_vm7, %v7317_v44, %v7313_v53  ;;  %v7629_v25 = vsel %vm6980_vm6, %v7628_v18, %v7624_v34  ;;  %v17509_v53 = vld [vmem:[#allocation40_spill] sm:$0xff] }
 0x40d   :  { %v7692_v15 = vrot.slane %v6797_v19, %v15876_v41  ;;  %v7322_v3 = vrot.slane %v17508_v0, %v15873_v33  ;;  %v7634_v24 = vsel %vm6987_vm7, %v7633_v17, %v7629_v25  ;;  %v7643_v44 = vrot.slane %v16771_v6, %v15971_v58 }
 0x40e   :  { %v10746_v50 = vpop.f32.mrf.mxu0  ;;  %v16866_v40 = vpop.permute.xlu0 %6829  ;;  %v6995_v16 = vsel %vm6994_vm8, %v6993_v55, %v6988_v39  ;;  %v7707_v34 = vrot.slane %v16779_v56, %v15919_v10  ;;  %v7007_v6 = vrot.slane %v17509_v53, %v15952_v13  ;;  %v7648_v0 = vrot.slane %v16759_v4, %v15952_v13  ;;  %v17514_v4 = vld [vmem:[#allocation84_spill] sm:$0xff] }
 0x40f   :  { %v7693_v60 = vsel %vm6959_vm3, %v7692_v15, %v7688_v54  ;;  %v7002_v18 = vsel %vm7001_vm9, %v7000_v43, %v6995_v16  ;;  %v7653_v43 = vrot.slane %v16775_v20, %v16001_v57  ;;  %v17513_v16 = vld [vmem:[#allocation91_spill] sm:$0xff]  ;;  %v7663_v53 = vrot.slane %v16783_v37, %v16030_v23 }
 0x410   :  { %v6803_v51 = vpop.permute.xlu1 %6802  ;;  %v10748_v59 = vpop.f32.mrf.mxu0  ;;  %v7698_v46 = vsel %vm6966_vm4, %v7697_v38, %v7693_v60  ;;  %v7323_v38 = vsel %vm6994_vm8, %v7322_v3, %v7318_v26  ;;  %v7717_v3 = vrot.slane %v16798_v63, %v15873_v33 }
 0x411   :  { %v7702_v19 = vrot.slane %v6803_v51, %v15911_v7  ;;  %v10787_v5 = vpop.f32.mrf.mxu1  ;;  %v7328_v39 = vsel %vm7001_vm9, %v7327_v62, %v7323_v38 }
 0x412   :  { %v16883_v48 = vadd.f32 %v10787_v5, %v10746_v50  ;;  %v10750_v15 = vpop.f32.mrf.mxu0  ;;  %v16891_v2 = vpop.permute.xlu0 %6835  ;;  %v7638_v50 = vrot.slane %v16747_v29, %v15873_v33  ;;  %v17510_v29 = vld [vmem:[#allocation90_spill] sm:$0xff] }
 0x413   :  { %v7703_v8 = vsel %vm6973_vm5, %v7702_v19, %v7698_v46  ;;  %v10789_v54 = vpop.f32.mrf.mxu1  ;;  %v7337_v12 = vrot.slane %v17510_v29, %v16001_v57  ;;  %v17511_v19 = vld [vmem:[#allocation82_spill] sm:$0xff]  ;;  %v17512_v46 = vld [vmem:[#allocation59_spill] sm:$0xff]  ;;  %v7727_v29 = vrot.slane %v16816_v47, %v15952_v13 }
 0x414   :  { %v6809_v60 = vpop.permute.xlu1 %6808  ;;  %v16898_v52 = vadd.f32 %v10789_v54, %v10748_v59  ;;  %v10751_v17 = vpop.f32.mrf.mxu0  ;;  %v7639_v56 = vsel %vm6994_vm8, %v7638_v50, %v7634_v24  ;;  %v7708_v59 = vsel %vm6980_vm6, %v7707_v34, %v7703_v8  ;;  %v7332_v5 = vrot.slane %v17511_v19, %v15952_v13 }
 0x415   :  { %v7712_v51 = vrot.slane %v6809_v60, %v15942_v1  ;;  %v10791_v55 = vpop.f32.mrf.mxu1  ;;  %v7644_v9 = vsel %vm7001_vm9, %v7643_v44, %v7639_v56  ;;  %v7014_v15 = vrot.slane %v17512_v46, %v16001_v57  ;;  %v7009_v44 = vsel %vm17088_vm10, %v7007_v6, %v7002_v18  ;;  %v17516_v56 = vld [vmem:[#allocation44_spill] sm:$0xff] }
 0x416   :  { %v16916_v25 = vpop.permute.xlu0 %6841  ;;  %v7333_v8 = vsel %vm17088_vm10, %v7332_v5, %v7328_v39  ;;  %v7347_v50 = vrot.slane %v17513_v16, %v16030_v23  ;;  %v7649_v34 = vsel %vm17088_vm10, %v7648_v0, %v7644_v9  ;;  %v7342_v17 = vrot.slane %v17514_v4, %v15980_v11 }
 0x417   :  { %v7713_v26 = vsel %vm6987_vm7, %v7712_v51, %v7708_v59  ;;  %v10792_v62 = vpop.f32.mrf.mxu1  ;;  %v7338_v54 = vsel %vm7015_vm11, %v7337_v12, %v7333_v8  ;;  %v7654_v63 = vsel %vm7015_vm11, %v7653_v43, %v7649_v34  ;;  %v7016_v38 = vsel %vm7015_vm11, %v7014_v15, %v7009_v44  ;;  %v17515_v51 = vld [vmem:[#allocation56_spill] sm:$0xff] }
 0x418   :  { %v6815_v24 = vpop.permute.xlu1 %6814  ;;  %v7718_v60 = vsel %vm6994_vm8, %v7717_v3, %v7713_v26  ;;  %v7028_v55 = vrot.slane %v17515_v51, %v16030_v23  ;;  %v7658_v39 = vrot.slane %v16761_v32, %v15980_v11  ;;  %v7021_v59 = vrot.slane %v17516_v56, %v15980_v11  ;;  %v17517_v32 = vld [vmem:[#allocation86_spill] sm:$0xff]  ;;  %v17518_v8 = vld [vmem:[#allocation48_spill] sm:$0xff] }
 0x419   :  { %v7722_v20 = vrot.slane %v6815_v24, %v15971_v58  ;;  %v7343_v37 = vsel %vm7022_vm12, %v7342_v17, %v7338_v54  ;;  %v7352_v62 = vrot.slane %v17517_v32, %v16038_v61  ;;  %v7668_v3 = vrot.slane %v16763_v31, %v16038_v61 }
 0x41a   :  { %v6848_v18 = vpop.permute.xlu0 %6847  ;;  %v7348_v5 = vsel %vm7029_vm13, %v7347_v50, %v7343_v37  ;;  %v7659_v9 = vsel %vm7022_vm12, %v7658_v39, %v7654_v63  ;;  %v7023_v26 = vsel %vm7022_vm12, %v7021_v59, %v7016_v38  ;;  %v7737_v24 = vrot.slane %v16841_v22, %v15980_v11 }
 0x41b   :  { %v7723_v6 = vsel %vm7001_vm9, %v7722_v20, %v7718_v60  ;;  %v7664_v47 = vsel %vm7029_vm13, %v7663_v53, %v7659_v9  ;;  %v7030_v0 = vsel %vm7029_vm13, %v7028_v55, %v7023_v26  ;;  %v7035_v20 = vrot.slane %v17518_v8, %v16038_v61 }
 0x41c   :  { %v6821_v12 = vpop.permute.xlu1 %6820  ;;  %v7728_v43 = vsel %vm17088_vm10, %v7727_v29, %v7723_v6  ;;  %v7353_v54 = vsel %vm7036_vm14, %v7352_v62, %v7348_v5  ;;  %vm7909_vm10 = vcmask 1042434   ;;  %v7669_v50 = vsel %vm7036_vm14, %v7668_v3, %v7664_v47 }
 0x41d   :  { %v7732_v19 = vrot.slane %v6821_v12, %v16001_v57  ;;  %v7747_v34 = vrot.slane %v16866_v40, %v16038_v61  ;;  %v7037_v31 = vsel %vm7036_vm14, %v7035_v20, %v7030_v0  ;;  %v7756_v38 = vrot.slane %v16891_v2, %v15803_v36 }
 0x41e   :  { %v6854_v15 = vpop.permute.xlu0 %6853  ;;  %v7908_v17 = vsel %vm7907_vm15, %v7353_v54, %v7037_v31  ;;  %v7766_v59 = vrot.slane %v16916_v25, %v15848_v35  ;;  %v7776_v9 = vrot.slane %v6848_v18, %v15888_v21 }
 0x41f   :  { %v7733_v46 = vsel %vm7015_vm11, %v7732_v19, %v7728_v43  ;;  %v7910_v6 = vsel %vm7909_vm10, %v7669_v50, %v7908_v17  ;;  %v7786_v25 = vrot.slane %v6854_v15, %v15919_v10 }
 0x420   :  { %v6827_v44 = vpop.permute.xlu1 %6826  ;;  %v7738_v60 = vsel %vm7022_vm12, %v7737_v24, %v7733_v46 }
 0x421   :  { %v7742_v16 = vrot.slane %v6827_v44, %v16030_v23 }
 0x422   :  { %v6884_v4 = vpop.permute.xlu0 %6883 }
 0x423   :  { %v7743_v22 = vsel %vm7029_vm13, %v7742_v16, %v7738_v60  ;;  %v7835_v44 = vrot.slane %v6884_v4, %v15803_v36 }
 0x424   :  { %v7748_v63 = vsel %vm7036_vm14, %v7747_v34, %v7743_v22  ;;  %v6833_v53 = vpop.permute.xlu1 %6832 }
 0x425   :  { %v7912_v40 = vsel %vm7909_vm10, %v7748_v63, %v16527_v45  ;;  %v7752_v51 = vrot.slane %v6833_v53, %v15808_v14 }
 0x426   :  { %v7917_v55 = vcombine.low %v7910_v6, %v7912_v40  ;;  %v6890_v29 = vpop.permute.xlu0 %6889 }
 0x427   :  { %v7757_v39 = vsel %vm6938_vm0, %v7756_v38, %v7752_v51  ;;  %v7845_v50 = vrot.slane %v6890_v29, %v15848_v35 }
 0x428   :  { %7921 = vst [vmem:[#allocation2] sm:$0x77] %v7917_v55  ;;  %v6839_v12 = vpop.permute.xlu1 %6838 }
 0x429   :  { %v7761_v56 = vrot.slane %v6839_v12, %v15838_v30 }
 0x42a   :  { %v6896_v19 = vpop.permute.xlu0 %6895 }
 0x42b   :  { %v7762_v37 = vsel %vm6945_vm1, %v7761_v56, %v7757_v39  ;;  %v7855_v36 = vrot.slane %v6896_v19, %v15888_v21 }
 0x42c   :  { %v6845_v2 = vpop.permute.xlu1 %6844  ;;  %v7767_v5 = vsel %vm6952_vm2, %v7766_v59, %v7762_v37 }
 0x42d   :  { %v7771_v45 = vrot.slane %v6845_v2, %v15876_v41 }
 0x42e   :  { %v6902_v26 = vpop.permute.xlu0 %6901 }
 0x42f   :  { %v7772_v43 = vsel %vm6959_vm3, %v7771_v45, %v7767_v5  ;;  %v7865_v35 = vrot.slane %v6902_v26, %v15919_v10 }
 0x430   :  { %v6851_v32 = vpop.permute.xlu1 %6850  ;;  %v7777_v62 = vsel %vm6966_vm4, %v7776_v9, %v7772_v43 }
 0x431   :  { %v7781_v47 = vrot.slane %v6851_v32, %v15911_v7 }
 0x432   :  { %v6905_v0 = vpop.permute.xlu0 %6904 }
 0x433   :  { %v7782_v46 = vsel %vm6973_vm5, %v7781_v47, %v7777_v62  ;;  %v7870_v53 = vrot.slane %v6905_v0, %v15942_v1 }
 0x434   :  { %v6881_v3 = vpop.permute.xlu1 %6880  ;;  %v7787_v24 = vsel %vm6980_vm6, %v7786_v25, %v7782_v46 }
 0x435   :  { %v7831_v18 = vrot.slane %v6881_v3, %v15808_v14 }
 0x436   :  { %v6908_v20 = vpop.permute.xlu0 %6907 }
 0x437   :  { %v7836_v8 = vsel %vm6938_vm0, %v7835_v44, %v7831_v18  ;;  %v7875_v40 = vrot.slane %v6908_v20, %v15873_v33  ;;  %vm17519_vm0 = vcmask 786112  }
 0x438   :  { %v6887_v54 = vpop.permute.xlu1 %6886 }
 0x439   :  { %v7840_v16 = vrot.slane %v6887_v54, %v15838_v30 }
 0x43a   :  { %v6911_v34 = vpop.permute.xlu0 %6910 }
 0x43b   :  { %v7841_v15 = vsel %vm6945_vm1, %v7840_v16, %v7836_v8  ;;  %v7880_v51 = vrot.slane %v6911_v34, %v15971_v58  ;;  %vm17520_vm1 = vmmov %vm17519_vm0 }
 0x43c   :  { %v6893_v60 = vpop.permute.xlu1 %6892  ;;  %v7846_v31 = vsel %vm6952_vm2, %v7845_v50, %v7841_v15 }
 0x43d   :  { %v7850_v22 = vrot.slane %v6893_v60, %v15876_v41 }
 0x43e   :  { %v6914_v4 = vpop.permute.xlu0 %6913 }
 0x43f   :  { %v7851_v14 = vsel %vm6959_vm3, %v7850_v22, %v7846_v31 }
 0x440   :  { %v6899_v17 = vpop.permute.xlu1 %6898  ;;  %v7856_v63 = vsel %vm6966_vm4, %v7855_v36, %v7851_v14  ;;  %v17521_v36 = vld [vmem:[#allocation121_spill] sm:$0xff] }
 0x441   :  { %v7860_v30 = vrot.slane %v6899_v17, %v15911_v7  ;;  %v7885_v7 = vrot.slane %v6914_v4, %v15952_v13  ;;  %v8875_v14 = vsub.s32 0, %v17521_v36  ;;  %v8883_v4 = vsub.s32 2, %v17521_v36  ;;  %v17522_v17 = vld [vmem:[#allocation41_spill] sm:$0xff] }
 0x442   :  { %v6917_v38 = vpop.permute.xlu0 %6916 }
 0x443   :  { %v7861_v6 = vsel %vm6973_vm5, %v7860_v30, %v7856_v63  ;;  %v7890_v12 = vrot.slane %v6917_v38, %v16001_v57  ;;  %v17523_v63 = vld [vmem:[#allocation42_spill] sm:$0xff]  ;;  %v17527_v38 = vld [vmem:[#allocation100_spill] sm:$0xff] }
 0x444   :  { %v7866_v41 = vsel %vm6980_vm6, %v7865_v35, %v7861_v6  ;;  %v6857_v21 = vpop.permute.xlu1 %6856  ;;  %v8783_v30 = vadd.f32 %v17523_v63, %v17522_v17  ;;  %v17524_v35 = vld [vmem:[#allocation45_spill] sm:$0xff]  ;;  %v17526_v6 = vld [vmem:[#allocation99_spill] sm:$0xff] }
 0x445   :  { %v7871_v55 = vsel %vm6987_vm7, %v7870_v53, %v7866_v41  ;;  %v7791_v39 = vrot.slane %v6857_v21, %v15942_v1  ;;  %v17529_v41 = vld [vmem:[#allocation102_spill] sm:$0xff] }
 0x446   :  { %v7876_v10 = vsel %vm6994_vm8, %v7875_v40, %v7871_v55  ;;  %v6920_v59 = vpop.permute.xlu0 %6919  ;;  %v8865_v40 = vadd.f32 %v17527_v38, %v17526_v6 }
 0x447   :  { %v7881_v29 = vsel %vm7001_vm9, %v7880_v51, %v7876_v10  ;;  %v7792_v56 = vsel %vm6987_vm7, %v7791_v39, %v7787_v24  ;;  %v7895_v19 = vrot.slane %v6920_v59, %v15980_v11 }
 0x448   :  { %v7886_v37 = vsel %vm17519_vm0, %v7885_v7, %v7881_v29  ;;  %v6860_v2 = vpop.permute.xlu1 %6859 }
 0x449   :  { %v7891_v5 = vsel %vm7015_vm11, %v7890_v12, %v7886_v37  ;;  %v7796_v1 = vrot.slane %v6860_v2, %v15873_v33 }
 0x44a   :  { %v7896_v45 = vsel %vm7022_vm12, %v7895_v19, %v7891_v5  ;;  %v6923_v43 = vpop.permute.xlu0 %6922 }
 0x44b   :  { %v7797_v9 = vsel %vm6994_vm8, %v7796_v1, %v7792_v56  ;;  %v7900_v26 = vrot.slane %v6923_v43, %v16030_v23  ;;  %v17531_v43 = vld [vmem:[#allocation22_spill] sm:$0xff] }
 0x44c   :  { %v6863_v32 = vpop.permute.xlu1 %6862 }
 0x44d   :  { %v7801_v62 = vrot.slane %v6863_v32, %v15971_v58  ;;  %v7901_v47 = vsel %vm7029_vm13, %v7900_v26, %v7896_v45  ;;  %v17530_v45 = vld [vmem:[#allocation23_spill] sm:$0xff] }
 0x44e   :  { %v6926_v46 = vpop.permute.xlu0 %6925  ;;  %v17532_v32 = vld [vmem:[#allocation67_spill] sm:$0xff] }
 0x44f   :  { %v7802_v25 = vsel %vm7001_vm9, %v7801_v62, %v7797_v9  ;;  %v7905_v0 = vrot.slane %v6926_v46, %v16038_v61 }
 0x450   :  { %v6866_v3 = vpop.permute.xlu1 %6865 }
 0x451   :  { %v7806_v33 = vrot.slane %v6866_v3, %v15952_v13  ;;  %v7906_v24 = vsel %vm7036_vm14, %v7905_v0, %v7901_v47 }
 0x452   :  { %v7916_v44 = vsel %vm7909_vm10, %v7906_v24, %v16757_v27 }
 0x453   :  { %v7807_v18 = vsel %vm17520_vm1, %v7806_v33, %v7802_v25 }
 0x454   :  { %v6869_v8 = vpop.permute.xlu1 %6868 }
 0x455   :  { %v7811_v58 = vrot.slane %v6869_v8, %v16001_v57 }
 0x457   :  { %v7812_v20 = vsel %vm7015_vm11, %v7811_v58, %v7807_v18 }
 0x458   :  { %v6872_v54 = vpop.permute.xlu1 %6871 }
 0x459   :  { %v7816_v16 = vrot.slane %v6872_v54, %v15980_v11  ;;  %v8879_v11 = vsub.s32 1, %v17521_v36  ;;  %v17533_v54 = vld [vmem:[#allocation69_spill] sm:$0xff] }
 0x45b   :  { %v7817_v50 = vsel %vm7022_vm12, %v7816_v16, %v7812_v20 }
 0x45c   :  { %v6875_v15 = vpop.permute.xlu1 %6874 }
 0x45d   :  { %v7821_v13 = vrot.slane %v6875_v15, %v16030_v23  ;;  %v8887_v23 = vsub.s32 3, %v17521_v36 }
 0x45f   :  { %v7822_v34 = vsel %vm7029_vm13, %v7821_v13, %v7817_v50 }
 0x460   :  { %v6878_v60 = vpop.permute.xlu1 %6877 }
 0x461   :  { %v7826_v27 = vrot.slane %v6878_v60, %v16038_v61  ;;  %v17525_v61 = vld [vmem:[#allocation46_spill] sm:$0xff] }
 0x462   :  { %v8785_v53 = vadd.f32 %v17525_v61, %v17524_v35 }
 0x463   :  { %v7827_v31 = vsel %vm7036_vm14, %v7826_v27, %v7822_v34 }
 0x464   :  { %v7914_v57 = vsel %vm7909_vm10, %v7827_v31, %v16752_v49  ;;  %v17528_v49 = vld [vmem:[#allocation101_spill] sm:$0xff] }
 0x465   :  { %v7918_v22 = vcombine.low %v7914_v57, %v7916_v44  ;;  %v8867_v21 = vadd.f32 %v17529_v41, %v17528_v49 }
 0x467   :  { %7922 = vst [vmem:[#allocation2 + $0x8] sm:$0x77] %v7918_v22 }
 0x46e   :  { %v8871_v51 = vld [vmem:[#allocation2] ss:$4 sm:$0xf]  ;;  %v9831_v55 = vld [vmem:[#allocation2 + $0x1] ss:$4 sm:$0xf] }
 0x46f   :  { %v8876_v39 = vrot.slane %v8871_v51, %v8875_v14  ;;  %v8880_v7 = vrot.slane %v8871_v51, %v8879_v11  ;;  %v8884_v10 = vrot.slane %v8871_v51, %v8883_v4  ;;  %v9836_v29 = vrot.slane %v9831_v55, %v8875_v14  ;;  %v10795_v12 = vld [vmem:[#allocation2 + $0x2] ss:$4 sm:$0xf] }
 0x470   :  { %v9840_v56 = vrot.slane %v9831_v55, %v8879_v11  ;;  %v9844_v59 = vrot.slane %v9831_v55, %v8883_v4  ;;  %v10800_v37 = vrot.slane %v10795_v12, %v8875_v14  ;;  %v10804_v19 = vrot.slane %v10795_v12, %v8879_v11 }
 0x471   :  { %v8893_v2 = vmul.f32 %v8876_v39, %v8783_v30  ;;  %v8894_v5 = vmul.f32 %v8880_v7, %v8785_v53  ;;  %v8895_v1 = vmul.f32 %v8884_v10, %v8865_v40  ;;  %v9853_v9 = vmul.f32 %v9836_v29, %v17530_v45 }
 0x472   :  { %v9854_v26 = vmul.f32 %v9840_v56, %v17531_v43  ;;  %v9855_v62 = vmul.f32 %v9844_v59, %v17532_v32  ;;  %v10808_v47 = vrot.slane %v10795_v12, %v8883_v4  ;;  %v10817_v25 = vmul.f32 %v10800_v37, %v16414_v28 }
 0x473   :  { %v9857_v46 = vmax.f32 %v8893_v2, %v9853_v9  ;;  %v10818_v0 = vmul.f32 %v10804_v19, %v16429_v42  ;;  %v8888_v3 = vrot.slane %v8871_v51, %v8887_v23  ;;  %v9848_v33 = vrot.slane %v9831_v55, %v8887_v23 }
 0x474   :  { %v9858_v24 = vmax.f32 %v8894_v5, %v9854_v26  ;;  %v9859_v44 = vmax.f32 %v8895_v1, %v9855_v62  ;;  %v10819_v18 = vmul.f32 %v10808_v47, %v16883_v48  ;;  %v10812_v8 = vrot.slane %v10795_v12, %v8887_v23 }
 0x475   :  { %v10821_v58 = vmax.f32 %v9857_v46, %v10817_v25  ;;  %v8896_v20 = vmul.f32 %v8888_v3, %v8867_v21  ;;  %v9856_v16 = vmul.f32 %v9848_v33, %v17533_v54 }
 0x476   :  { %v10822_v50 = vmax.f32 %v9858_v24, %v10818_v0  ;;  %v10823_v15 = vmax.f32 %v9859_v44, %v10819_v18  ;;  %v10820_v13 = vmul.f32 %v10812_v8, %v16898_v52 }
 0x477   :  { %10825 = vst [vmem:[%s17079_s2] sm:$0xff] %v10821_v58  ;;  %v9860_v28 = vmax.f32 %v8896_v20, %v9856_v16 }
 0x478   :  { %10826 = vst [vmem:[%s17079_s2 + $0x8] sm:$0xff] %v10822_v50  ;;  %10827 = vst [vmem:[%s17079_s2 + $0x10] sm:$0xff] %v10823_v15 }
 0x479   :  { %v10824_v42 = vmax.f32 %v9860_v28, %v10820_v13 }
 0x47b   :  { %10828 = vst [vmem:[%s17079_s2 + $0x18] sm:$0xff] %v10824_v42 }

</bundles_post_ra>
